<compile_context>
chip_gen: v6e
topology: v6e:2x2x1
jax: 0.10.0
libtpu: 0.0.40
codegen_flags: <defaults>
</compile_context>

<pallas_src>
import functools

import jax
import jax.numpy as jnp
from jax.experimental import pallas as pl
from jax.experimental.pallas import tpu as pltpu

BN_EPS = 1e-5

_VMEM = pl.BlockSpec(memory_space=pltpu.MemorySpace.VMEM)


# ---------------------------------------------------------------------------
# Fused Pallas kernel: whole PixelCNN forward (lane-flat layout)
# ---------------------------------------------------------------------------
def _pixelcnn_kernel(lhs0_ref, m1_ref, gA_ref, bA_ref,
                     mh_ref, gH_ref, bH_ref,
                     mo_ref, bo_ref, fold_ref, expand_ref,
                     o_ref, padh_ref, *, N, H, W, C, L):
    """Whole PixelCNN forward; activations stay resident in VMEM.

    lhs0_ref : (N*H, K*(W+2p))      bf16  kh-stacked padded 1-channel input
    m1_ref   : (K*(W+2p), W*C)      bf16  masked 'A' conv, folded to one matmul
    gA_ref, bA_ref : (1, W*C)       f32   BN affine (first layer), lane-tiled
    mh_ref   : (L*3, (W+2)*C, W*C)  bf16  masked 'B' 3x3 convs, banded per kh
    gH_ref, bH_ref : (L, 1, W*C)    f32   BN affine (hidden layers), lane-tiled
    mo_ref   : (W*C, W*C)           bf16  final 1x1 conv, block-diagonal
    bo_ref   : (1, W*C)             f32   final 1x1 conv bias, lane-tiled
    fold_ref : (W*C, C)             f32   sums the W lane-groups per channel
    expand_ref : (C, W*C)           f32   broadcasts per-channel stats to lanes
    o_ref    : (N*H, W*C)           f32   output (lane-dense, 512 lanes)
    padh_ref : (N, H+2, (W+2)*C)    bf16  scratch: zero-padded activation
    """
    NH = N * H
    WC = W * C
    WPC = (W + 2) * C
    inv_n = 1.0 / float(N * H * W)

    fold = fold_ref[...]        # (W*C, C)
    expand = expand_ref[...]    # (C, W*C)

    def bn_relu(acc, gamma_f, beta_f):
        # Training-mode BatchNorm2d (batch stats, biased variance) + fused
        # ReLU.  All reductions / broadcasts run as small MXU matmuls; acc is
        # the f32 conv accumulator of shape (NH, WC).
        # TODO(synk): running_mean / running_var buffer updates (training
        # side effects of nn.BatchNorm2d) are not reproduced here.
        pr = jnp.dot(acc, fold, preferred_element_type=jnp.float32)        # (NH, C)
        prs = jnp.dot(acc * acc, fold, preferred_element_type=jnp.float32)  # (NH, C)
        mean_c = jnp.sum(pr, axis=0, keepdims=True) * inv_n                # (1, C)
        ex2_c = jnp.sum(prs, axis=0, keepdims=True) * inv_n
        var_c = jnp.maximum(ex2_c - mean_c * mean_c, 0.0)
        mean_f = jnp.dot(mean_c, expand, preferred_element_type=jnp.float32)
        var_f = jnp.dot(var_c, expand, preferred_element_type=jnp.float32)
        scale = gamma_f * jax.lax.rsqrt(var_f + BN_EPS)                    # (1, WC)
        shift = beta_f - mean_f * scale
        return jnp.maximum(acc * scale + shift, 0.0)                       # (NH, WC)

    # Zero the padded activation once; pad rows (0, H+1) and pad lanes
    # [WC:WPC] stay zero for every layer, only the interior is rewritten.
    padh_ref[...] = jnp.zeros_like(padh_ref)

    # ---- first layer: masked 'A' KxK conv = ONE matmul (kh folded in) ------
    acc0 = jnp.dot(lhs0_ref[...], m1_ref[...],
                   preferred_element_type=jnp.float32)                     # (NH, WC)
    y0 = bn_relu(acc0, gA_ref[...], bA_ref[...])
    padh_ref[:, 1:1 + H, 0:WC] = y0.reshape(N, H, WC).astype(padh_ref.dtype)

    # ---- hidden blocks: masked 'B' 3x3 conv = 3 banded matmuls + BN + ReLU --
    @pl.loop(0, L)
    def _layer(l):
        acc = jnp.zeros((NH, WC), jnp.float32)
        for kh in range(3):   # tiny static unroll; each slab dies after its dot
            slab = padh_ref[:, kh:kh + H, :].reshape(NH, WPC)              # bf16
            acc = acc + jnp.dot(slab, mh_ref[l * 3 + kh],
                                preferred_element_type=jnp.float32)
        yl = bn_relu(acc, gH_ref[l], bH_ref[l])
        padh_ref[:, 1:1 + H, 0:WC] = yl.reshape(N, H, WC).astype(padh_ref.dtype)

    # ---- output 1x1 conv (block-diagonal matmul) + bias, lane-dense store ---
    xin = padh_ref[:, 1:1 + H, 0:WC].reshape(NH, WC)
    out = jnp.dot(xin, mo_ref[...], preferred_element_type=jnp.float32) + bo_ref[...]
    o_ref[...] = out


# ---------------------------------------------------------------------------
# Masks, params, weight folding, wrapper
# ---------------------------------------------------------------------------
def conv_mask(K, mask_type):
    """PixelCNN causal mask over the (K, K) spatial kernel.

    'A': strictly-before pixels only (center excluded).
    'B': before-or-equal (center included).
    """
    kh = jnp.arange(K)[:, None]
    kw = jnp.arange(K)[None, :]
    c = K // 2
    allow_center = 1 if mask_type == 'B' else 0
    m = (kh < c) | ((kh == c) & (kw < c + allow_center))
    return m.astype(jnp.float32)


def init_params(key, num_layers, kernel_size, num_channels):
    ks = jax.random.split(key, 8)
    C = num_channels
    K = kernel_size
    return {
        # maskedConv('A', 1, C, K, bias=False)  -> (K, K, 1, C)
        "w_first": 0.1 * jax.random.normal(ks[0], (K, K, 1, C), jnp.float32),
        "gamma_first": 1.0 + 0.1 * jax.random.normal(ks[1], (1, C), jnp.float32),
        "beta_first": 0.1 * jax.random.normal(ks[2], (1, C), jnp.float32),
        # num_layers x maskedConv('B', C, C, 3, bias=False) -> (L, 3, 3, C, C)
        "w_hidden": 0.05 * jax.random.normal(ks[3], (num_layers, 3, 3, C, C),
                                             jnp.float32),
        "gamma_hidden": 1.0 + 0.1 * jax.random.normal(ks[4], (num_layers, 1, C),
                                                      jnp.float32),
        "beta_hidden": 0.1 * jax.random.normal(ks[5], (num_layers, 1, C),
                                               jnp.float32),
        # nn.Conv2d(C, C, 1) -> weight (Cin, Cout) = (C, C), bias (1, C)
        "w_out": 0.1 * jax.random.normal(ks[6], (C, C), jnp.float32),
        "b_out": 0.1 * jax.random.normal(ks[7], (1, C), jnp.float32),
    }


def _fold_first_weights(w_first, K, W, C):
    """Masked 'A' KxK conv (1->C, pad K//2) folded into one (K*(W+2p), W*C) matmul."""
    p = K // 2
    Wp = W + 2 * p
    wa = (w_first * conv_mask(K, 'A')[:, :, None, None])[:, :, 0, :]   # (K, K, C)
    kw = jnp.arange(Wp)[:, None] - jnp.arange(W)[None, :]              # w'' - w
    valid = (kw >= 0) & (kw < K)
    g = wa[:, jnp.clip(kw, 0, K - 1), :]                               # (K, Wp, W, C)
    g = jnp.where(valid[None, :, :, None], g, 0.0)
    return g.reshape(K * Wp, W * C)


def _fold_hidden_weights(w_hidden, W, C):
    """Masked 'B' 3x3 convs as banded ((W+2)*C, W*C) matrices, one per (l, kh).

    Activation lane order: interior cols w=0..W-1 (C lanes each), then the
    left-pad column, then the right-pad column (pad lanes stay zero).
    """
    L = w_hidden.shape[0]
    wb = w_hidden * conv_mask(3, 'B')[None, :, :, None, None]          # (L,3,3,C,C)
    wcol = jnp.concatenate([jnp.arange(W), jnp.array([-1, W])])        # actual col per lane block
    kw = wcol[:, None] - jnp.arange(W)[None, :] + 1                    # (W+2, W)
    valid = (kw >= 0) & (kw <= 2)
    g = wb[:, :, jnp.clip(kw, 0, 2), :, :]                             # (L,3,W+2,W,C,C)
    g = jnp.where(valid[None, None, :, :, None, None], g, 0.0)
    g = g.transpose(0, 1, 2, 4, 3, 5)                                  # (L,3,W+2,C,W,C)
    return g.reshape(L * 3, (W + 2) * C, W * C)


def _fold_out_weights(w_out, W, C):
    """1x1 conv (with Cin->Cout mixing) as a block-diagonal (W*C, W*C) matmul."""
    eye_w = jnp.eye(W, dtype=w_out.dtype)
    return (eye_w[:, None, :, None] * w_out[None, :, None, :]).reshape(W * C, W * C)


def pixelcnn_forward(x_nchw, params, *, num_layers, kernel_size):
    """Mirrors PixelCNN.forward.  x_nchw: (N, 1, H, W) -> (N, C, H, W)."""
    N, _, H, W = x_nchw.shape
    K = kernel_size
    L = num_layers
    C = params["w_out"].shape[0]
    p = K // 2
    Wp = W + 2 * p
    WC = W * C
    assert WC % 128 == 0, "lane-flat layout wants W*C to be a multiple of 128"

    # ---- fold conv weights (causal masks applied) into lane-flat operands ---
    m1 = _fold_first_weights(params["w_first"], K, W, C).astype(jnp.bfloat16)
    mh = _fold_hidden_weights(params["w_hidden"], W, C).astype(jnp.bfloat16)
    mo = _fold_out_weights(params["w_out"], W, C).astype(jnp.bfloat16)

    # constant fold / expand matrices for the BN channel reductions (MXU)
    fold = jnp.tile(jnp.eye(C, dtype=jnp.float32), (W, 1))              # (W*C, C)
    expand = jnp.tile(jnp.eye(C, dtype=jnp.float32), (1, W))            # (C, W*C)

    # BN affine + output bias pre-tiled to the flat lane layout
    gA = jnp.tile(params["gamma_first"], (1, W))
    bA = jnp.tile(params["beta_first"], (1, W))
    gH = jnp.tile(params["gamma_hidden"], (1, 1, W))
    bH = jnp.tile(params["beta_hidden"], (1, 1, W))
    bo = jnp.tile(params["b_out"], (1, W))

    # First-layer LHS: kh-stacked rows of the zero-padded 1-channel input,
    # built once in XLA (tiny); all later pads / taps / activations stay in
    # VMEM inside the kernel.
    xp = jnp.pad(x_nchw[:, 0, :, :], ((0, 0), (p, p), (p, p)))          # (N, H+2p, Wp)
    lhs0 = jnp.concatenate([xp[:, kh:kh + H, :] for kh in range(K)], axis=-1)
    lhs0 = lhs0.reshape(N * H, K * Wp).astype(jnp.bfloat16)

    kern = functools.partial(_pixelcnn_kernel, N=N, H=H, W=W, C=C, L=L)
    out2d = pl.pallas_call(
        kern,
        out_shape=jax.ShapeDtypeStruct((N * H, WC), jnp.float32),
        in_specs=[_VMEM] * 11,
        out_specs=_VMEM,
        scratch_shapes=[
            pltpu.VMEM((N, H + 2, (W + 2) * C), jnp.bfloat16),  # padded activation
        ],
        compiler_params=pltpu.CompilerParams(vmem_limit_bytes=48 * 1024 * 1024),
        # TODO(synk): at real MNIST scale (C=128, 28x28, large batch) the
        # banded weights / resident activations no longer fit VMEM: tile a
        # grid over N*H row blocks (parallel across v7x's two TensorCores)
        # with a two-phase BatchNorm reduction, and switch the hidden conv to
        # per-kw (C, C) blocks instead of the full banded matrices.
    )(lhs0, m1, gA, bA, mh, gH, bH, mo, bo, fold, expand)

    out = out2d.reshape(N, H, W, C)
    return jnp.transpose(out, (0, 3, 1, 2))                  # NHWC -> NCHW


if __name__ == "__main__":
    # Small, MNIST-like shapes: batch=2, single input channel, 16x16 spatial,
    # 3 hidden blocks, 32 feature channels, first-layer kernel 7.
    NUM_LAYERS = 3
    KERNEL_SIZE = 7
    NUM_CHANNELS = 32
    N, H, W = 2, 16, 16

    key = jax.random.PRNGKey(0)
    k_x, k_p = jax.random.split(key)
    x = jax.random.normal(k_x, (N, 1, H, W), jnp.float32)
    params = init_params(k_p, NUM_LAYERS, KERNEL_SIZE, NUM_CHANNELS)

    fwd = jax.jit(functools.partial(pixelcnn_forward,
                                    num_layers=NUM_LAYERS,
                                    kernel_size=KERNEL_SIZE))
    out = fwd(x, params)
    jax.block_until_ready(out)
    assert out.shape == (N, NUM_CHANNELS, H, W), out.shape
    assert jnp.isfinite(out).all()
    print("KERNEL_OK")
</pallas_src>

<mosaic_0001>
module attributes {stable_mosaic.version = 11 : i64} {
  func.func @_pixelcnn_kernel(%arg0: memref<32x154xbf16, #tpu.memory_space<vmem>>, %arg1: memref<154x512xbf16, #tpu.memory_space<vmem>>, %arg2: memref<1x512xf32, #tpu.memory_space<vmem>>, %arg3: memref<1x512xf32, #tpu.memory_space<vmem>>, %arg4: memref<9x576x512xbf16, #tpu.memory_space<vmem>>, %arg5: memref<3x1x512xf32, #tpu.memory_space<vmem>>, %arg6: memref<3x1x512xf32, #tpu.memory_space<vmem>>, %arg7: memref<512x512xbf16, #tpu.memory_space<vmem>>, %arg8: memref<1x512xf32, #tpu.memory_space<vmem>>, %arg9: memref<512x32xf32, #tpu.memory_space<vmem>>, %arg10: memref<32x512xf32, #tpu.memory_space<vmem>>, %arg11: memref<32x512xf32, #tpu.memory_space<vmem>>, %arg12: memref<2x18x576xbf16, #tpu.memory_space<vmem>>) attributes {dimension_semantics = [], scalar_prefetch = 0 : i64, scratch_operands = 1 : i64, tpu.core_type = #tpu.core_type<tc>} {
    %c0 = arith.constant 0 : index
    %c0_0 = arith.constant 0 : index
    %0 = vector.load %arg9[%c0, %c0_0] : memref<512x32xf32, #tpu.memory_space<vmem>>, vector<512x32xf32>
    %c0_1 = arith.constant 0 : index
    %c0_2 = arith.constant 0 : index
    %1 = vector.load %arg10[%c0_1, %c0_2] : memref<32x512xf32, #tpu.memory_space<vmem>>, vector<32x512xf32>
    %cst = arith.constant 0.000000e+00 : bf16
    %2 = vector.broadcast %cst : bf16 to vector<2x18x576xbf16>
    %c0_3 = arith.constant 0 : index
    %c0_4 = arith.constant 0 : index
    %c0_5 = arith.constant 0 : index
    %3 = vector.load %arg12[%c0_3, %c0_4, %c0_5] : memref<2x18x576xbf16, #tpu.memory_space<vmem>>, vector<2x18x576xbf16>
    tpu.vector_store %arg12[%c0_3, %c0_4, %c0_5], %2 {strides = array<i32>} : memref<2x18x576xbf16, #tpu.memory_space<vmem>>, vector<2x18x576xbf16>,
    %c0_6 = arith.constant 0 : index
    %c0_7 = arith.constant 0 : index
    %4 = vector.load %arg0[%c0_6, %c0_7] : memref<32x154xbf16, #tpu.memory_space<vmem>>, vector<32x154xbf16>
    %c0_8 = arith.constant 0 : index
    %c0_9 = arith.constant 0 : index
    %5 = vector.load %arg1[%c0_8, %c0_9] : memref<154x512xbf16, #tpu.memory_space<vmem>>, vector<154x512xbf16>
    %cst_10 = arith.constant dense<0.000000e+00> : vector<32x512xf32>
    %6 = tpu.matmul %4, %5, %cst_10 {dimension_numbers = #tpu.dot_dimension_numbers<[1], [0], [0], [1], [0, 0, 1, 1], [], []>} : vector<32x154xbf16>, vector<154x512xbf16>, vector<32x512xf32> -> vector<32x512xf32>
    %c0_11 = arith.constant 0 : index
    %c0_12 = arith.constant 0 : index
    %7 = vector.load %arg2[%c0_11, %c0_12] : memref<1x512xf32, #tpu.memory_space<vmem>>, vector<1x512xf32>
    %c0_13 = arith.constant 0 : index
    %c0_14 = arith.constant 0 : index
    %8 = vector.load %arg3[%c0_13, %c0_14] : memref<1x512xf32, #tpu.memory_space<vmem>>, vector<1x512xf32>
    %cst_15 = arith.constant dense<0.000000e+00> : vector<32x32xf32>
    %9 = tpu.matmul %6, %0, %cst_15 {dimension_numbers = #tpu.dot_dimension_numbers<[1], [0], [0], [1], [0, 0, 1, 1], [], []>} : vector<32x512xf32>, vector<512x32xf32>, vector<32x32xf32> -> vector<32x32xf32>
    %10 = arith.mulf %6, %6 : vector<32x512xf32>
    %cst_16 = arith.constant dense<0.000000e+00> : vector<32x32xf32>
    %11 = tpu.matmul %10, %0, %cst_16 {dimension_numbers = #tpu.dot_dimension_numbers<[1], [0], [0], [1], [0, 0, 1, 1], [], []>} : vector<32x512xf32>, vector<512x32xf32>, vector<32x32xf32> -> vector<32x32xf32>
    %cst_17 = arith.constant dense<0.000000e+00> : vector<32xf32>
    %12 = vector.multi_reduction <add>, %9, %cst_17 [0] : vector<32x32xf32> to vector<32xf32>
    %13 = vector.shape_cast %12 : vector<32xf32> to vector<1x32xf32>
    %cst_18 = arith.constant 0.001953125 : f32
    %14 = vector.broadcast %cst_18 : f32 to vector<1x32xf32>
    %15 = arith.mulf %13, %14 : vector<1x32xf32>
    %cst_19 = arith.constant dense<0.000000e+00> : vector<32xf32>
    %16 = vector.multi_reduction <add>, %11, %cst_19 [0] : vector<32x32xf32> to vector<32xf32>
    %17 = vector.shape_cast %16 : vector<32xf32> to vector<1x32xf32>
    %cst_20 = arith.constant 0.001953125 : f32
    %18 = vector.broadcast %cst_20 : f32 to vector<1x32xf32>
    %19 = arith.mulf %17, %18 : vector<1x32xf32>
    %20 = arith.mulf %15, %15 : vector<1x32xf32>
    %21 = arith.subf %19, %20 : vector<1x32xf32>
    %cst_21 = arith.constant 0.000000e+00 : f32
    %22 = vector.broadcast %cst_21 : f32 to vector<1x32xf32>
    %23 = arith.maximumf %21, %22 : vector<1x32xf32>
    %cst_22 = arith.constant dense<0.000000e+00> : vector<1x512xf32>
    %24 = tpu.matmul %15, %1, %cst_22 {dimension_numbers = #tpu.dot_dimension_numbers<[1], [0], [0], [1], [0, 0, 1, 1], [], []>} : vector<1x32xf32>, vector<32x512xf32>, vector<1x512xf32> -> vector<1x512xf32>
    %cst_23 = arith.constant dense<0.000000e+00> : vector<1x512xf32>
    %25 = tpu.matmul %23, %1, %cst_23 {dimension_numbers = #tpu.dot_dimension_numbers<[1], [0], [0], [1], [0, 0, 1, 1], [], []>} : vector<1x32xf32>, vector<32x512xf32>, vector<1x512xf32> -> vector<1x512xf32>
    %cst_24 = arith.constant 9.99999974E-6 : f32
    %26 = vector.broadcast %cst_24 : f32 to vector<1x512xf32>
    %27 = arith.addf %25, %26 : vector<1x512xf32>
    %28 = math.rsqrt %27 : vector<1x512xf32>
    %29 = arith.mulf %7, %28 : vector<1x512xf32>
    %30 = arith.mulf %24, %29 : vector<1x512xf32>
    %31 = arith.subf %8, %30 : vector<1x512xf32>
    %32 = vector.broadcast %29 : vector<1x512xf32> to vector<32x512xf32>
    %33 = arith.mulf %6, %32 : vector<32x512xf32>
    %34 = vector.broadcast %31 : vector<1x512xf32> to vector<32x512xf32>
    %35 = arith.addf %33, %34 : vector<32x512xf32>
    %cst_25 = arith.constant 0.000000e+00 : f32
    %36 = vector.broadcast %cst_25 : f32 to vector<32x512xf32>
    %37 = arith.maximumf %35, %36 : vector<32x512xf32>
    %38 = vector.shape_cast %37 : vector<32x512xf32> to vector<2x16x512xf32>
    %39 = arith.truncf %38 : vector<2x16x512xf32> to vector<2x16x512xbf16>
    %c0_26 = arith.constant 0 : index
    %c1 = arith.constant 1 : index
    %c0_27 = arith.constant 0 : index
    %40 = vector.load %arg12[%c0_26, %c1, %c0_27] : memref<2x18x576xbf16, #tpu.memory_space<vmem>>, vector<2x16x512xbf16>
    tpu.vector_store %arg12[%c0_26, %c1, %c0_27], %39 {strides = array<i32>} : memref<2x18x576xbf16, #tpu.memory_space<vmem>>, vector<2x16x512xbf16>,
    %c0_i32 = arith.constant 0 : i32
    %c3_i32 = arith.constant 3 : i32
    %41 = arith.addi %c0_i32, %c3_i32 : i32
    %c1_i32 = arith.constant 1 : i32
    scf.for %arg13 = %c0_i32 to %41 step %c1_i32  : i32 {
      %c1_i32_39 = arith.constant 1 : i32
      %50 = arith.muli %arg13, %c1_i32_39 : i32
      %c0_i32_40 = arith.constant 0 : i32
      %51 = arith.addi %c0_i32_40, %50 : i32
      %cst_41 = arith.constant 0.000000e+00 : f32
      %52 = vector.broadcast %cst_41 : f32 to vector<32x512xf32>
      %c0_42 = arith.constant 0 : index
      %c0_43 = arith.constant 0 : index
      %c0_44 = arith.constant 0 : index
      %53 = vector.load %arg12[%c0_42, %c0_43, %c0_44] : memref<2x18x576xbf16, #tpu.memory_space<vmem>>, vector<2x16x576xbf16>
      %54 = vector.shape_cast %53 : vector<2x16x576xbf16> to vector<32x576xbf16>
      %c3_i32_45 = arith.constant 3 : i32
      %55 = arith.muli %51, %c3_i32_45 : i32
      %c0_i32_46 = arith.constant 0 : i32
      %56 = arith.addi %55, %c0_i32_46 : i32
      %57 = arith.index_cast %56 : i32 to index
      %c0_47 = arith.constant 0 : index
      %c0_48 = arith.constant 0 : index
      %58 = vector.load %arg4[%57, %c0_47, %c0_48] : memref<9x576x512xbf16, #tpu.memory_space<vmem>>, vector<1x576x512xbf16>
      %59 = vector.shape_cast %58 : vector<1x576x512xbf16> to vector<576x512xbf16>
      %cst_49 = arith.constant dense<0.000000e+00> : vector<32x512xf32>
      %60 = tpu.matmul %54, %59, %cst_49 {dimension_numbers = #tpu.dot_dimension_numbers<[1], [0], [0], [1], [0, 0, 1, 1], [], []>} : vector<32x576xbf16>, vector<576x512xbf16>, vector<32x512xf32> -> vector<32x512xf32>
      %61 = arith.addf %52, %60 : vector<32x512xf32>
      %c0_50 = arith.constant 0 : index
      %c1_51 = arith.constant 1 : index
      %c0_52 = arith.constant 0 : index
      %62 = vector.load %arg12[%c0_50, %c1_51, %c0_52] : memref<2x18x576xbf16, #tpu.memory_space<vmem>>, vector<2x16x576xbf16>
      %63 = vector.shape_cast %62 : vector<2x16x576xbf16> to vector<32x576xbf16>
      %c3_i32_53 = arith.constant 3 : i32
      %64 = arith.muli %51, %c3_i32_53 : i32
      %c1_i32_54 = arith.constant 1 : i32
      %65 = arith.addi %64, %c1_i32_54 : i32
      %66 = arith.index_cast %65 : i32 to index
      %c0_55 = arith.constant 0 : index
      %c0_56 = arith.constant 0 : index
      %67 = vector.load %arg4[%66, %c0_55, %c0_56] : memref<9x576x512xbf16, #tpu.memory_space<vmem>>, vector<1x576x512xbf16>
      %68 = vector.shape_cast %67 : vector<1x576x512xbf16> to vector<576x512xbf16>
      %cst_57 = arith.constant dense<0.000000e+00> : vector<32x512xf32>
      %69 = tpu.matmul %63, %68, %cst_57 {dimension_numbers = #tpu.dot_dimension_numbers<[1], [0], [0], [1], [0, 0, 1, 1], [], []>} : vector<32x576xbf16>, vector<576x512xbf16>, vector<32x512xf32> -> vector<32x512xf32>
      %70 = arith.addf %61, %69 : vector<32x512xf32>
      %c0_58 = arith.constant 0 : index
      %c2 = arith.constant 2 : index
      %c0_59 = arith.constant 0 : index
      %71 = vector.load %arg12[%c0_58, %c2, %c0_59] : memref<2x18x576xbf16, #tpu.memory_space<vmem>>, vector<2x16x576xbf16>
      %72 = vector.shape_cast %71 : vector<2x16x576xbf16> to vector<32x576xbf16>
      %c3_i32_60 = arith.constant 3 : i32
      %73 = arith.muli %51, %c3_i32_60 : i32
      %c2_i32 = arith.constant 2 : i32
      %74 = arith.addi %73, %c2_i32 : i32
      %75 = arith.index_cast %74 : i32 to index
      %c0_61 = arith.constant 0 : index
      %c0_62 = arith.constant 0 : index
      %76 = vector.load %arg4[%75, %c0_61, %c0_62] : memref<9x576x512xbf16, #tpu.memory_space<vmem>>, vector<1x576x512xbf16>
      %77 = vector.shape_cast %76 : vector<1x576x512xbf16> to vector<576x512xbf16>
      %cst_63 = arith.constant dense<0.000000e+00> : vector<32x512xf32>
      %78 = tpu.matmul %72, %77, %cst_63 {dimension_numbers = #tpu.dot_dimension_numbers<[1], [0], [0], [1], [0, 0, 1, 1], [], []>} : vector<32x576xbf16>, vector<576x512xbf16>, vector<32x512xf32> -> vector<32x512xf32>
      %79 = arith.addf %70, %78 : vector<32x512xf32>
      %80 = arith.index_cast %51 : i32 to index
      %c0_64 = arith.constant 0 : index
      %c0_65 = arith.constant 0 : index
      %81 = vector.load %arg5[%80, %c0_64, %c0_65] : memref<3x1x512xf32, #tpu.memory_space<vmem>>, vector<1x1x512xf32>
      %82 = vector.shape_cast %81 : vector<1x1x512xf32> to vector<1x512xf32>
      %83 = arith.index_cast %51 : i32 to index
      %c0_66 = arith.constant 0 : index
      %c0_67 = arith.constant 0 : index
      %84 = vector.load %arg6[%83, %c0_66, %c0_67] : memref<3x1x512xf32, #tpu.memory_space<vmem>>, vector<1x1x512xf32>
      %85 = vector.shape_cast %84 : vector<1x1x512xf32> to vector<1x512xf32>
      %cst_68 = arith.constant dense<0.000000e+00> : vector<32x32xf32>
      %86 = tpu.matmul %79, %0, %cst_68 {dimension_numbers = #tpu.dot_dimension_numbers<[1], [0], [0], [1], [0, 0, 1, 1], [], []>} : vector<32x512xf32>, vector<512x32xf32>, vector<32x32xf32> -> vector<32x32xf32>
      %87 = arith.mulf %79, %79 : vector<32x512xf32>
      %cst_69 = arith.constant dense<0.000000e+00> : vector<32x32xf32>
      %88 = tpu.matmul %87, %0, %cst_69 {dimension_numbers = #tpu.dot_dimension_numbers<[1], [0], [0], [1], [0, 0, 1, 1], [], []>} : vector<32x512xf32>, vector<512x32xf32>, vector<32x32xf32> -> vector<32x32xf32>
      %cst_70 = arith.constant dense<0.000000e+00> : vector<32xf32>
      %89 = vector.multi_reduction <add>, %86, %cst_70 [0] : vector<32x32xf32> to vector<32xf32>
      %90 = vector.shape_cast %89 : vector<32xf32> to vector<1x32xf32>
      %cst_71 = arith.constant 0.001953125 : f32
      %91 = vector.broadcast %cst_71 : f32 to vector<1x32xf32>
      %92 = arith.mulf %90, %91 : vector<1x32xf32>
      %cst_72 = arith.constant dense<0.000000e+00> : vector<32xf32>
      %93 = vector.multi_reduction <add>, %88, %cst_72 [0] : vector<32x32xf32> to vector<32xf32>
      %94 = vector.shape_cast %93 : vector<32xf32> to vector<1x32xf32>
      %cst_73 = arith.constant 0.001953125 : f32
      %95 = vector.broadcast %cst_73 : f32 to vector<1x32xf32>
      %96 = arith.mulf %94, %95 : vector<1x32xf32>
      %97 = arith.mulf %92, %92 : vector<1x32xf32>
      %98 = arith.subf %96, %97 : vector<1x32xf32>
      %cst_74 = arith.constant 0.000000e+00 : f32
      %99 = vector.broadcast %cst_74 : f32 to vector<1x32xf32>
      %100 = arith.maximumf %98, %99 : vector<1x32xf32>
      %cst_75 = arith.constant dense<0.000000e+00> : vector<1x512xf32>
      %101 = tpu.matmul %92, %1, %cst_75 {dimension_numbers = #tpu.dot_dimension_numbers<[1], [0], [0], [1], [0, 0, 1, 1], [], []>} : vector<1x32xf32>, vector<32x512xf32>, vector<1x512xf32> -> vector<1x512xf32>
      %cst_76 = arith.constant dense<0.000000e+00> : vector<1x512xf32>
      %102 = tpu.matmul %100, %1, %cst_76 {dimension_numbers = #tpu.dot_dimension_numbers<[1], [0], [0], [1], [0, 0, 1, 1], [], []>} : vector<1x32xf32>, vector<32x512xf32>, vector<1x512xf32> -> vector<1x512xf32>
      %cst_77 = arith.constant 9.99999974E-6 : f32
      %103 = vector.broadcast %cst_77 : f32 to vector<1x512xf32>
      %104 = arith.addf %102, %103 : vector<1x512xf32>
      %105 = math.rsqrt %104 : vector<1x512xf32>
      %106 = arith.mulf %82, %105 : vector<1x512xf32>
      %107 = arith.mulf %101, %106 : vector<1x512xf32>
      %108 = arith.subf %85, %107 : vector<1x512xf32>
      %109 = vector.broadcast %106 : vector<1x512xf32> to vector<32x512xf32>
      %110 = arith.mulf %79, %109 : vector<32x512xf32>
      %111 = vector.broadcast %108 : vector<1x512xf32> to vector<32x512xf32>
      %112 = arith.addf %110, %111 : vector<32x512xf32>
      %cst_78 = arith.constant 0.000000e+00 : f32
      %113 = vector.broadcast %cst_78 : f32 to vector<32x512xf32>
      %114 = arith.maximumf %112, %113 : vector<32x512xf32>
      %115 = vector.shape_cast %114 : vector<32x512xf32> to vector<2x16x512xf32>
      %116 = arith.truncf %115 : vector<2x16x512xf32> to vector<2x16x512xbf16>
      %c0_79 = arith.constant 0 : index
      %c1_80 = arith.constant 1 : index
      %c0_81 = arith.constant 0 : index
      %117 = vector.load %arg12[%c0_79, %c1_80, %c0_81] : memref<2x18x576xbf16, #tpu.memory_space<vmem>>, vector<2x16x512xbf16>
      tpu.vector_store %arg12[%c0_79, %c1_80, %c0_81], %116 {strides = array<i32>} : memref<2x18x576xbf16, #tpu.memory_space<vmem>>, vector<2x16x512xbf16>,
    }
    %c3_i32_28 = arith.constant 3 : i32
    %c0_29 = arith.constant 0 : index
    %c1_30 = arith.constant 1 : index
    %c0_31 = arith.constant 0 : index
    %42 = vector.load %arg12[%c0_29, %c1_30, %c0_31] : memref<2x18x576xbf16, #tpu.memory_space<vmem>>, vector<2x16x512xbf16>
    %43 = vector.shape_cast %42 : vector<2x16x512xbf16> to vector<32x512xbf16>
    %c0_32 = arith.constant 0 : index
    %c0_33 = arith.constant 0 : index
    %44 = vector.load %arg7[%c0_32, %c0_33] : memref<512x512xbf16, #tpu.memory_space<vmem>>, vector<512x512xbf16>
    %cst_34 = arith.constant dense<0.000000e+00> : vector<32x512xf32>
    %45 = tpu.matmul %43, %44, %cst_34 {dimension_numbers = #tpu.dot_dimension_numbers<[1], [0], [0], [1], [0, 0, 1, 1], [], []>} : vector<32x512xbf16>, vector<512x512xbf16>, vector<32x512xf32> -> vector<32x512xf32>
    %c0_35 = arith.constant 0 : index
    %c0_36 = arith.constant 0 : index
    %46 = vector.load %arg8[%c0_35, %c0_36] : memref<1x512xf32, #tpu.memory_space<vmem>>, vector<1x512xf32>
    %47 = vector.broadcast %46 : vector<1x512xf32> to vector<32x512xf32>
    %48 = arith.addf %45, %47 : vector<32x512xf32>
    %c0_37 = arith.constant 0 : index
    %c0_38 = arith.constant 0 : index
    %49 = vector.load %arg11[%c0_37, %c0_38] : memref<32x512xf32, #tpu.memory_space<vmem>>, vector<32x512xf32>
    tpu.vector_store %arg11[%c0_37, %c0_38], %48 {strides = array<i32>} : memref<32x512xf32, #tpu.memory_space<vmem>>, vector<32x512xf32>,
    return
  }
}

</mosaic_0001>

<bundles_post_ra>
// kernel: tile.44
= control target key start
LH: loop header
LB: loop body
LE: loop exit
PB: predicated region body
PF: predicated region fallthrough
CT: control target
= control target key end

     0   :  { %vm118_vm0 = vcmask 1043458   ;;  %s158_s6 = smov 3  ;;  %vm123_vm1 = vcmask 1045508   ;;  %vm128_vm2 = vcmask 1047558   ;;  %s161_s9 = smov 12  ;;  %vm3_vm3 = vcmask 261120   ;;  %s2648_s0 = inlined_call_operand.vmem [shape: f32[32,16,32], index: 0, kind: input, shape index: {}]   ;;  %s2649_s1 = inlined_call_operand.vmem [shape: f32[32,512], index: 1, kind: output, shape index: {}]  }
   0x1   :  { %v1268_v0 = vld [vmem:[%s2648_s0 + $0x103] ss:$16 sm:%s158_s6]   ;;  %s166_s10 = smov 48  ;;  %s171_s15 = smov 192  ;;  %v1223_v54 = vld [vmem:[%s2648_s0 + $0x80] ss:$4 sm:$0xff]  }
   0x2   :  { %v1269_v1 = vld [vmem:[%s2648_s0 + $0x103] ss:$16 sm:%s161_s9]   ;;  %s113_s16 = smov 3  ;;  %s116_s21 = smov 12  ;;  %vm132_vm4 = vcmask 1048320   ;;  %vm499_vm5 = vcmask 785920  }
   0x3   :  { %v1270_v2 = vld [vmem:[%s2648_s0 + $0x103] ss:$16 sm:%s166_s10]   ;;  %v164_v3 = vsel %vm118_vm0, %v1269_v1, %v1268_v0  ;;  %s121_s22 = smov 48  ;;  %s126_s27 = smov 192  ;;  %v1226_v0 = vld [vmem:[%s2648_s0 + $0xa0] ss:$4 sm:$0xff]  }
   0x4   :  { %v1271_v4 = vld [vmem:[%s2648_s0 + $0x103] ss:$16 sm:%s171_s15]   ;;  %v169_v6 = vsel %vm123_vm1, %v1270_v2, %v164_v3  ;;  %s181_s28 = smov 3  ;;  %s184_s4 = smov 12  ;;  %vm866_vm6 = vcmask 523520  }
   0x5   :  { %v1259_v5 = vld [vmem:[%s2648_s0 + $0x3] ss:$16 sm:%s113_s16]   ;;  %v174_v9 = vsel %vm128_vm2, %v1271_v4, %v169_v6  ;;  %s189_s5 = smov 48  ;;  %s1499_s6 = smov 96   ;;  %v1229_v6 = vld [vmem:[%s2648_s0 + $0xc0] ss:$4 sm:$0xff]  }
   0x6   :  { %v1260_v7 = vld [vmem:[%s2648_s0 + $0x3] ss:$16 sm:%s116_s21]   ;;  %175 = vrot.lane.b32.xlu1 %v174_v9, %s1499_s6  ;;  %s194_s9 = smov 192  ;;  %s135_s10 = smov 3 }
   0x7   :  { %v1261_v8 = vld [vmem:[%s2648_s0 + $0x3] ss:$16 sm:%s121_s22]   ;;  %v119_v10 = vsel %vm118_vm0, %v1260_v7, %v1259_v5  ;;  %s138_s15 = smov 12  ;;  %s143_s16 = smov 48 }
   0x8   :  { %v1262_v11 = vld [vmem:[%s2648_s0 + $0x3] ss:$16 sm:%s126_s27]   ;;  %v124_v13 = vsel %vm123_vm1, %v1261_v8, %v119_v10  ;;  %s148_s19 = smov 192  ;;  %s227_s20 = smov 3 }
   0x9   :  { %v1273_v12 = vld [vmem:[%s2648_s0 + $0x183] ss:$16 sm:%s181_s28]   ;;  %v129_v15 = vsel %vm128_vm2, %v1262_v11, %v124_v13  ;;  %s230_s25 = smov 12  ;;  %s235_s26 = smov 48  ;;  %v1283_v27 = vld [vmem:[%s2648_s0 + $0x87] ss:$16 sm:%s227_s20]  }
   0xa   :  { %v1274_v14 = vld [vmem:[%s2648_s0 + $0x183] ss:$16 sm:%s184_s4]   ;;  %130 = vrot.lane.b32.xlu0 %v129_v15, %s1499_s6  ;;  %s240_s29 = smov 192  ;;  %s204_s30 = smov 3 }
   0xb   :  { %v187_v16 = vsel %vm118_vm0, %v1274_v14, %v1273_v12  ;;  %v1275_v17 = vld [vmem:[%s2648_s0 + $0x183] ss:$16 sm:%s189_s5]   ;;  %v1284_v28 = vld [vmem:[%s2648_s0 + $0x87] ss:$16 sm:%s230_s25]   ;;  %s207_s7 = smov 12  ;;  %s212_s8 = smov 48 }
   0xc   :  { %v1276_v18 = vld [vmem:[%s2648_s0 + $0x183] ss:$16 sm:%s194_s9]   ;;  %v192_v19 = vsel %vm123_vm1, %v1275_v17, %v187_v16  ;;  %v233_v30 = vsel %vm118_vm0, %v1284_v28, %v1283_v27  ;;  %v1285_v31 = vld [vmem:[%s2648_s0 + $0x87] ss:$16 sm:%s235_s26]   ;;  %s217_s13 = smov 192  ;;  %s276_s17 = smov 12 }
   0xd   :  { %v1263_v20 = vld [vmem:[%s2648_s0 + $0x83] ss:$16 sm:%s135_s10]   ;;  %v197_v21 = vsel %vm128_vm2, %v1276_v18, %v192_v19  ;;  %v1286_v32 = vld [vmem:[%s2648_s0 + $0x87] ss:$16 sm:%s240_s29]   ;;  %v238_v33 = vsel %vm123_vm1, %v1285_v31, %v233_v30  ;;  %s281_s22 = smov 48  ;;  %s286_s23 = smov 192 }
   0xe   :  { %v1264_v22 = vld [vmem:[%s2648_s0 + $0x83] ss:$16 sm:%s138_s15]   ;;  %198 = vrot.lane.b32.xlu1 %v197_v21, %s1499_s6  ;;  %v243_v35 = vsel %vm128_vm2, %v1286_v32, %v238_v33  ;;  %s250_s26 = smov 3  ;;  %s253_s2 = smov 12  ;;  %v1232_v16 = vld [vmem:[%s2648_s0 + $0xe0] ss:$4 sm:$0xff]  }
   0xf   :  { %v1265_v23 = vld [vmem:[%s2648_s0 + $0x83] ss:$16 sm:%s143_s16]   ;;  %v141_v24 = vsel %vm118_vm0, %v1264_v22, %v1263_v20  ;;  %v1278_v34 = vld [vmem:[%s2648_s0 + $0x7] ss:$16 sm:%s204_s30]   ;;  %s273_s16 = smov 3  ;;  %s258_s3 = smov 48 }
  0x10   :  { %v1266_v25 = vld [vmem:[%s2648_s0 + $0x83] ss:$16 sm:%s148_s19]   ;;  %v146_v26 = vsel %vm123_vm1, %v1265_v23, %v141_v24  ;;  %v1279_v36 = vld [vmem:[%s2648_s0 + $0x7] ss:$16 sm:%s207_s7]   ;;  %s263_s9 = smov 192  ;;  %s319_s12 = smov 3 }
  0x11   :  { %v151_v29 = vsel %vm128_vm2, %v1266_v25, %v146_v26  ;;  %v1280_v37 = vld [vmem:[%s2648_s0 + $0x7] ss:$16 sm:%s212_s8]   ;;  %v210_v38 = vsel %vm118_vm0, %v1279_v36, %v1278_v34  ;;  %s327_s18 = smov 48  ;;  %s332_s19 = smov 192  ;;  %v1303_v56 = vld [vmem:[%s2648_s0 + $0x8b] ss:$16 sm:%s319_s12]  }
  0x12   :  { %152 = vrot.lane.b32.xlu0 %v151_v29, %s1499_s6  ;;  %244 = vrot.lane.b32.xlu1 %v243_v35, %s1499_s6  ;;  %v1281_v39 = vld [vmem:[%s2648_s0 + $0x7] ss:$16 sm:%s217_s13]   ;;  %v215_v40 = vsel %vm123_vm1, %v1280_v37, %v210_v38  ;;  %s322_s13 = smov 12  ;;  %s299_s29 = smov 12 }
  0x13   :  { %v1293_v41 = vld [vmem:[%s2648_s0 + $0x187] ss:$16 sm:%s273_s16]   ;;  %v220_v43 = vsel %vm128_vm2, %v1281_v39, %v215_v40  ;;  %v1304_v57 = vld [vmem:[%s2648_s0 + $0x8b] ss:$16 sm:%s322_s13]   ;;  %s304_s30 = smov 48  ;;  %s309_s11 = smov 192 }
  0x14   :  { %v1294_v42 = vld [vmem:[%s2648_s0 + $0x187] ss:$16 sm:%s276_s17]   ;;  %1224 = vst.msk [vmem:[%s2649_s1 + $0x20] ss:$8 sm:$0xf] %vm3_vm3, %v1223_v54   ;;  %v325_v59 = vsel %vm118_vm0, %v1304_v57, %v1303_v56  ;;  %s365_s14 = smov 3 }
  0x15   :  { %v279_v44 = vsel %vm118_vm0, %v1294_v42, %v1293_v41  ;;  %v1295_v45 = vld [vmem:[%s2648_s0 + $0x187] ss:$16 sm:%s281_s22]   ;;  %s296_s22 = smov 3  ;;  %1225 = vst.msk [vmem:[%s2649_s1 + $0x1] ss:$8 sm:$0xf0] %vm3_vm3, %v1223_v54  }
  0x16   :  { %v1296_v46 = vld [vmem:[%s2648_s0 + $0x187] ss:$16 sm:%s286_s23]   ;;  %221 = vrot.lane.b32.xlu0 %v220_v43, %s1499_s6  ;;  %v284_v47 = vsel %vm123_vm1, %v1295_v45, %v279_v44  ;;  %s368_s15 = smov 12  ;;  %s378_s23 = smov 192  ;;  %v2_v31 = vld [vmem:[%s2648_s0] ss:$4 sm:$0xff]  }
  0x17   :  { %v1288_v48 = vld [vmem:[%s2648_s0 + $0x107] ss:$16 sm:%s250_s26]   ;;  %v289_v49 = vsel %vm128_vm2, %v1296_v46, %v284_v47  ;;  %v1305_v60 = vld [vmem:[%s2648_s0 + $0x8b] ss:$16 sm:%s327_s18]   ;;  %s350_s10 = smov 48  ;;  %s396_s16 = smov 48 }
  0x18   :  { %v1289_v50 = vld [vmem:[%s2648_s0 + $0x107] ss:$16 sm:%s253_s2]   ;;  %290 = vrot.lane.b32.xlu1 %v289_v49, %s1499_s6  ;;  %v330_v62 = vsel %vm123_vm1, %v1305_v60, %v325_v59  ;;  %1227 = vst.msk [vmem:[%s2649_s1 + $0x22] ss:$8 sm:$0xf] %vm3_vm3, %v1226_v0   ;;  %s424_s2 = smov 192 }
  0x19   :  { %v1290_v51 = vld [vmem:[%s2648_s0 + $0x107] ss:$16 sm:%s258_s3]   ;;  %v256_v52 = vsel %vm118_vm0, %v1289_v50, %v1288_v48  ;;  %v1306_v61 = vld [vmem:[%s2648_s0 + $0x8b] ss:$16 sm:%s332_s19]   ;;  %s355_s19 = smov 192  ;;  %s401_s21 = smov 192 }
  0x1a   :  { %v1291_v53 = vld [vmem:[%s2648_s0 + $0x107] ss:$16 sm:%s263_s9]   ;;  %v261_v55 = vsel %vm123_vm1, %v1290_v51, %v256_v52  ;;  %v1298_v63 = vld [vmem:[%s2648_s0 + $0xb] ss:$16 sm:%s296_s22]   ;;  %v335_v1 = vsel %vm128_vm2, %v1306_v61, %v330_v62  ;;  %s373_s22 = smov 48  ;;  %s345_s9 = smov 12 }
  0x1b   :  { %v266_v58 = vsel %vm128_vm2, %v1291_v53, %v261_v55  ;;  %v1299_v2 = vld [vmem:[%s2648_s0 + $0xb] ss:$16 sm:%s299_s29]   ;;  %1228 = vst.msk [vmem:[%s2649_s1 + $0x3] ss:$8 sm:$0xf0] %vm3_vm3, %v1226_v0   ;;  %s457_s24 = smov 3 }
  0x1c   :  { %267 = vrot.lane.b32.xlu0 %v266_v58, %s1499_s6  ;;  %v1300_v3 = vld [vmem:[%s2648_s0 + $0xb] ss:$16 sm:%s304_s30]   ;;  %336 = vrot.lane.b32.xlu1 %v335_v1, %s1499_s6  ;;  %v302_v4 = vsel %vm118_vm0, %v1299_v2, %v1298_v63  ;;  %s342_s30 = smov 3  ;;  %s460_s25 = smov 12 }
  0x1d   :  { %v1301_v5 = vld [vmem:[%s2648_s0 + $0xb] ss:$16 sm:%s309_s11]   ;;  %v307_v7 = vsel %vm123_vm1, %v1300_v3, %v302_v4  ;;  %1230 = vst.msk [vmem:[%s2649_s1 + $0x24] ss:$8 sm:$0xf] %vm3_vm3, %v1229_v6   ;;  %s465_s3 = smov 48 }
  0x1e   :  { %v1313_v8 = vld [vmem:[%s2648_s0 + $0x18b] ss:$16 sm:%s365_s14]   ;;  %1231 = vst.msk [vmem:[%s2649_s1 + $0x5] ss:$8 sm:$0xf0] %vm3_vm3, %v1229_v6   ;;  %v312_v10 = vsel %vm128_vm2, %v1301_v5, %v307_v7  ;;  %s470_s4 = smov 192 }
  0x1f   :  { %v1314_v9 = vld [vmem:[%s2648_s0 + $0x18b] ss:$16 sm:%s368_s15]   ;;  %1233 = vst.msk [vmem:[%s2649_s1 + $0x26] ss:$8 sm:$0xf] %vm3_vm3, %v1232_v16   ;;  %s391_s15 = smov 12 }
  0x20   :  { %v371_v11 = vsel %vm118_vm0, %v1314_v9, %v1313_v8  ;;  %v1315_v12 = vld [vmem:[%s2648_s0 + $0x18b] ss:$16 sm:%s373_s22]   ;;  %313 = vrot.lane.b32.xlu0 %v312_v10, %s1499_s6  ;;  %s411_s22 = smov 3  ;;  %1234 = vst.msk [vmem:[%s2649_s1 + $0x7] ss:$8 sm:$0xf0] %vm3_vm3, %v1232_v16  }
  0x21   :  { %v1316_v13 = vld [vmem:[%s2648_s0 + $0x18b] ss:$16 sm:%s378_s23]   ;;  %v376_v14 = vsel %vm123_vm1, %v1315_v12, %v371_v11  ;;  %s414_s23 = smov 12  ;;  %v1323_v23 = vld [vmem:[%s2648_s0 + $0x8f] ss:$16 sm:%s411_s22]   ;;  %s434_s12 = smov 3 }
  0x22   :  { %v1308_v15 = vld [vmem:[%s2648_s0 + $0x10b] ss:$16 sm:%s342_s30]   ;;  %v381_v17 = vsel %vm128_vm2, %v1316_v13, %v376_v14  ;;  %s419_s30 = smov 48  ;;  %v1324_v24 = vld [vmem:[%s2648_s0 + $0x8f] ss:$16 sm:%s414_s23]   ;;  %s442_s20 = smov 48 }
  0x23   :  { %v1309_v18 = vld [vmem:[%s2648_s0 + $0x10b] ss:$16 sm:%s345_s9]   ;;  %382 = vrot.lane.b32.xlu1 %v381_v17, %s1499_s6  ;;  %v417_v26 = vsel %vm118_vm0, %v1324_v24, %v1323_v23  ;;  %4 = vst.msk [vmem:[%s2649_s1] ss:$8 sm:$0xf] %vm3_vm3, %v2_v31   ;;  %s447_s29 = smov 192 }
  0x24   :  { %v1310_v19 = vld [vmem:[%s2648_s0 + $0x10b] ss:$16 sm:%s350_s10]   ;;  %v348_v20 = vsel %vm118_vm0, %v1309_v18, %v1308_v15  ;;  %s388_s10 = smov 3  ;;  %v1325_v27 = vld [vmem:[%s2648_s0 + $0x8f] ss:$16 sm:%s419_s30]   ;;  %s515_s13 = smov 192 }
  0x25   :  { %v1311_v21 = vld [vmem:[%s2648_s0 + $0x10b] ss:$16 sm:%s355_s19]   ;;  %v353_v22 = vsel %vm123_vm1, %v1310_v19, %v348_v20  ;;  %v1326_v28 = vld [vmem:[%s2648_s0 + $0x8f] ss:$16 sm:%s424_s2]   ;;  %v422_v29 = vsel %vm123_vm1, %v1325_v27, %v417_v26  ;;  %s437_s19 = smov 12  ;;  %s483_s27 = smov 12 }
  0x26   :  { %v358_v25 = vsel %vm128_vm2, %v1311_v21, %v353_v22  ;;  %v1318_v30 = vld [vmem:[%s2648_s0 + $0xf] ss:$16 sm:%s388_s10]   ;;  %v427_v32 = vsel %vm128_vm2, %v1326_v28, %v422_v29  ;;  %1213 = vst.msk [vmem:[%s2649_s1 - $0x1f] ss:$8 sm:$0xf0] %vm3_vm3, %v2_v31   ;;  %s488_s28 = smov 48 }
  0x27   :  { %359 = vrot.lane.b32.xlu0 %v358_v25, %s1499_s6  ;;  %v1319_v33 = vld [vmem:[%s2648_s0 + $0xf] ss:$16 sm:%s391_s15]   ;;  %428 = vrot.lane.b32.xlu1 %v427_v32, %s1499_s6  ;;  %s493_s9 = smov 192  ;;  %s548_s11 = smov 3 }
  0x28   :  { %v1320_v34 = vld [vmem:[%s2648_s0 + $0xf] ss:$16 sm:%s396_s16]   ;;  %v394_v35 = vsel %vm118_vm0, %v1319_v33, %v1318_v30  ;;  %v1214_v37 = vld [vmem:[%s2648_s0 + $0x20] ss:$4 sm:$0xff]   ;;  %s528_s7 = smov 12  ;;  %s533_s8 = smov 48 }
  0x29   :  { %v1321_v36 = vld [vmem:[%s2648_s0 + $0xf] ss:$16 sm:%s401_s21]   ;;  %v399_v38 = vsel %vm123_vm1, %v1320_v34, %v394_v35  ;;  %1215 = vst.msk [vmem:[%s2649_s1 + $0x2] ss:$8 sm:$0xf] %vm3_vm3, %v1214_v37   ;;  %s538_s16 = smov 192 }
  0x2a   :  { %v1333_v39 = vld [vmem:[%s2648_s0 + $0x18f] ss:$16 sm:%s457_s24]   ;;  %1216 = vst.msk [vmem:[%s2649_s1 - $0x1d] ss:$8 sm:$0xf0] %vm3_vm3, %v1214_v37   ;;  %v404_v41 = vsel %vm128_vm2, %v1321_v36, %v399_v38  ;;  %s574_s14 = smov 12 }
  0x2b   :  { %v1334_v40 = vld [vmem:[%s2648_s0 + $0x18f] ss:$16 sm:%s460_s25]   ;;  %405 = vrot.lane.b32.xlu0 %v404_v41, %s1499_s6  ;;  %v1217_v47 = vld [vmem:[%s2648_s0 + $0x40] ss:$4 sm:$0xff]   ;;  %s1500_s25 = smov 64   ;;  %s579_s15 = smov 48 }
  0x2c   :  { %v463_v42 = vsel %vm118_vm0, %v1334_v40, %v1333_v39  ;;  %v1335_v43 = vld [vmem:[%s2648_s0 + $0x18f] ss:$16 sm:%s465_s3]   ;;  %s502_s3 = smov 3  ;;  %1218 = vst.msk [vmem:[%s2649_s1 + $0x4] ss:$8 sm:$0xf] %vm3_vm3, %v1217_v47  }
  0x2d   :  { %v1336_v44 = vld [vmem:[%s2648_s0 + $0x18f] ss:$16 sm:%s470_s4]   ;;  %v468_v45 = vsel %vm123_vm1, %v1335_v43, %v463_v42  ;;  %s505_s4 = smov 12  ;;  %1219 = vst.msk [vmem:[%s2649_s1 - $0x1b] ss:$8 sm:$0xf0] %vm3_vm3, %v1217_v47  }
  0x2e   :  { %v1328_v46 = vld [vmem:[%s2648_s0 + $0x10f] ss:$16 sm:%s434_s12]   ;;  %v473_v48 = vsel %vm128_vm2, %v1336_v44, %v468_v45  ;;  %s510_s12 = smov 48  ;;  %v1220_v53 = vld [vmem:[%s2648_s0 + $0x60] ss:$4 sm:$0xff]   ;;  %s584_s24 = smov 192 }
  0x2f   :  { %v1329_v49 = vld [vmem:[%s2648_s0 + $0x10f] ss:$16 sm:%s437_s19]   ;;  %474 = vrot.lane.b32.xlu1 %v473_v48, %s1499_s6  ;;  %1221 = vst.msk [vmem:[%s2649_s1 + $0x6] ss:$8 sm:$0xf] %vm3_vm3, %v1220_v53   ;;  %s556_s19 = smov 48 }
  0x30   :  { %v1330_v50 = vld [vmem:[%s2648_s0 + $0x10f] ss:$16 sm:%s442_s20]   ;;  %v440_v51 = vsel %vm118_vm0, %v1329_v49, %v1328_v46  ;;  %s480_s20 = smov 3  ;;  %v1342_v55 = vld [vmem:[%s2648_s0 + $0x82] ss:$16 sm:%s502_s3]   ;;  %s620_s22 = smov 12 }
  0x31   :  { %v1331_v52 = vld [vmem:[%s2648_s0 + $0x10f] ss:$16 sm:%s447_s29]   ;;  %v445_v54 = vsel %vm123_vm1, %v1330_v50, %v440_v51  ;;  %v1343_v56 = vld [vmem:[%s2648_s0 + $0x82] ss:$16 sm:%s505_s4]   ;;  %s607_s29 = smov 192  ;;  %s625_s23 = smov 48 }
  0x32   :  { %1222 = vst.msk [vmem:[%s2649_s1 - $0x19] ss:$8 sm:$0xf0] %vm3_vm3, %v1220_v53   ;;  %v450_v57 = vsel %vm128_vm2, %v1331_v52, %v445_v54  ;;  %v508_v58 = vsel %vm118_vm0, %v1343_v56, %v1342_v55  ;;  %v1344_v59 = vld [vmem:[%s2648_s0 + $0x82] ss:$16 sm:%s510_s12]   ;;  %s551_s12 = smov 12 }
  0x33   :  { %v1345_v60 = vld [vmem:[%s2648_s0 + $0x82] ss:$16 sm:%s515_s13]   ;;  %451 = vrot.lane.b32.xlu0 %v450_v57, %s1499_s6  ;;  %v513_v61 = vsel %vm123_vm1, %v1344_v59, %v508_v58  ;;  %v1247_v63 = vld [vmem:[%s2648_s0 + $0x180] ss:$4 sm:$0xff]   ;;  %s630_s4 = smov 192  ;;  %s666_s2 = smov 12 }
  0x34   :  { %v1338_v62 = vld [vmem:[%s2648_s0 + $0x2] ss:$16 sm:%s480_s20]   ;;  %v518_v0 = vsel %vm128_vm2, %v1345_v60, %v513_v61  ;;  %s561_s20 = smov 192  ;;  %1248 = vst.msk [vmem:[%s2649_s1 + $0x60] ss:$8 sm:$0xf] %vm3_vm3, %v1247_v63  }
  0x35   :  { %v1339_v1 = vld [vmem:[%s2648_s0 + $0x2] ss:$16 sm:%s483_s27]   ;;  %1249 = vst.msk [vmem:[%s2649_s1 + $0x41] ss:$8 sm:$0xf0] %vm3_vm3, %v1247_v63   ;;  %519 = vrot.lane.b32.xlu1 %v518_v0, %s1500_s25  ;;  %s671_s3 = smov 48 }
  0x36   :  { %v1340_v2 = vld [vmem:[%s2648_s0 + $0x2] ss:$16 sm:%s488_s28]   ;;  %v486_v3 = vsel %vm118_vm0, %v1339_v1, %v1338_v62  ;;  %s525_s28 = smov 3  ;;  %v1250_v5 = vld [vmem:[%s2648_s0 + $0x1a0] ss:$4 sm:$0xff]   ;;  %s740_s21 = smov 48 }
  0x37   :  { %v1341_v4 = vld [vmem:[%s2648_s0 + $0x2] ss:$16 sm:%s493_s9]   ;;  %v491_v6 = vsel %vm123_vm1, %v1340_v2, %v486_v3  ;;  %1251 = vst.msk [vmem:[%s2649_s1 + $0x62] ss:$8 sm:$0xf] %vm3_vm3, %v1250_v5   ;;  %s653_s9 = smov 192 }
  0x38   :  { %v1352_v7 = vld [vmem:[%s2648_s0 + $0x182] ss:$16 sm:%s548_s11]   ;;  %1252 = vst.msk [vmem:[%s2649_s1 + $0x43] ss:$8 sm:$0xf0] %vm3_vm3, %v1250_v5   ;;  %v496_v9 = vsel %vm128_vm2, %v1341_v4, %v491_v6  ;;  %s709_s26 = smov 3 }
  0x39   :  { %v1353_v8 = vld [vmem:[%s2648_s0 + $0x182] ss:$16 sm:%s551_s12]   ;;  %497 = vrot.lane.b32.xlu0 %v496_v9, %s1500_s25  ;;  %v1253_v15 = vld [vmem:[%s2648_s0 + $0x1c0] ss:$4 sm:$0xff]   ;;  %s676_s12 = smov 192  ;;  %s778_s11 = smov 3 }
  0x3a   :  { %v554_v10 = vsel %vm118_vm0, %v1353_v8, %v1352_v7  ;;  %v1354_v11 = vld [vmem:[%s2648_s0 + $0x182] ss:$16 sm:%s556_s19]   ;;  %s594_s19 = smov 3  ;;  %1254 = vst.msk [vmem:[%s2649_s1 + $0x64] ss:$8 sm:$0xf] %vm3_vm3, %v1253_v15  }
  0x3b   :  { %v1355_v12 = vld [vmem:[%s2648_s0 + $0x182] ss:$16 sm:%s561_s20]   ;;  %v559_v13 = vsel %vm123_vm1, %v1354_v11, %v554_v10  ;;  %s597_s20 = smov 12  ;;  %1255 = vst.msk [vmem:[%s2649_s1 + $0x45] ss:$8 sm:$0xf0] %vm3_vm3, %v1253_v15  }
  0x3c   :  { %v1347_v14 = vld [vmem:[%s2648_s0 + $0x102] ss:$16 sm:%s525_s28]   ;;  %v564_v16 = vsel %vm128_vm2, %v1355_v12, %v559_v13  ;;  %s602_s28 = smov 48  ;;  %v1256_v21 = vld [vmem:[%s2648_s0 + $0x1e0] ss:$4 sm:$0xff]   ;;  %s786_s17 = smov 48 }
  0x3d   :  { %v1348_v17 = vld [vmem:[%s2648_s0 + $0x102] ss:$16 sm:%s528_s7]   ;;  %565 = vrot.lane.b32.xlu1 %v564_v16, %s1500_s25  ;;  %1257 = vst.msk [vmem:[%s2649_s1 + $0x66] ss:$8 sm:$0xf] %vm3_vm3, %v1256_v21   ;;  %s791_s18 = smov 192 }
  0x3e   :  { %v1349_v18 = vld [vmem:[%s2648_s0 + $0x102] ss:$16 sm:%s533_s8]   ;;  %v531_v19 = vsel %vm118_vm0, %v1348_v17, %v1347_v14  ;;  %s571_s8 = smov 3  ;;  %v1362_v23 = vld [vmem:[%s2648_s0 + $0x86] ss:$16 sm:%s594_s19]   ;;  %s758_s27 = smov 12 }
  0x3f   :  { %v1350_v20 = vld [vmem:[%s2648_s0 + $0x102] ss:$16 sm:%s538_s16]   ;;  %v536_v22 = vsel %vm123_vm1, %v1349_v18, %v531_v19  ;;  %v1363_v24 = vld [vmem:[%s2648_s0 + $0x86] ss:$16 sm:%s597_s20]   ;;  %s699_s16 = smov 192  ;;  %s832_s13 = smov 48 }
  0x40   :  { %1258 = vst.msk [vmem:[%s2649_s1 + $0x47] ss:$8 sm:$0xf0] %vm3_vm3, %v1256_v21   ;;  %v541_v25 = vsel %vm128_vm2, %v1350_v20, %v536_v22  ;;  %v600_v26 = vsel %vm118_vm0, %v1363_v24, %v1362_v23  ;;  %v1364_v27 = vld [vmem:[%s2648_s0 + $0x86] ss:$16 sm:%s602_s28]   ;;  %s640_s28 = smov 3 }
  0x41   :  { %v1365_v28 = vld [vmem:[%s2648_s0 + $0x86] ss:$16 sm:%s607_s29]   ;;  %542 = vrot.lane.b32.xlu0 %v541_v25, %s1500_s25  ;;  %v605_v29 = vsel %vm123_vm1, %v1364_v27, %v600_v26  ;;  %s643_s29 = smov 12  ;;  %v1235_v31 = vld [vmem:[%s2648_s0 + $0x100] ss:$4 sm:$0xff]   ;;  %s877_s6 = smov 48 }
  0x42   :  { %v1357_v30 = vld [vmem:[%s2648_s0 + $0x6] ss:$16 sm:%s571_s8]   ;;  %v610_v32 = vsel %vm128_vm2, %v1365_v28, %v605_v29  ;;  %s648_s8 = smov 48  ;;  %1236 = vst.msk [vmem:[%s2649_s1 + $0x40] ss:$8 sm:$0xf] %vm3_vm3, %v1235_v31  }
  0x43   :  { %v1358_v33 = vld [vmem:[%s2648_s0 + $0x6] ss:$16 sm:%s574_s14]   ;;  %1237 = vst.msk [vmem:[%s2649_s1 + $0x21] ss:$8 sm:$0xf0] %vm3_vm3, %v1235_v31   ;;  %611 = vrot.lane.b32.xlu1 %v610_v32, %s1500_s25  ;;  %s837_s14 = smov 192 }
  0x44   :  { %v1359_v34 = vld [vmem:[%s2648_s0 + $0x6] ss:$16 sm:%s579_s15]   ;;  %v577_v35 = vsel %vm118_vm0, %v1358_v33, %v1357_v30  ;;  %s617_s15 = smov 3  ;;  %v1238_v37 = vld [vmem:[%s2648_s0 + $0x120] ss:$4 sm:$0xff]   ;;  %s882_s10 = smov 192 }
  0x45   :  { %v1360_v36 = vld [vmem:[%s2648_s0 + $0x6] ss:$16 sm:%s584_s24]   ;;  %v582_v38 = vsel %vm123_vm1, %v1359_v34, %v577_v35  ;;  %1239 = vst.msk [vmem:[%s2649_s1 + $0x42] ss:$8 sm:$0xf] %vm3_vm3, %v1238_v37   ;;  %s855_s19 = smov 48 }
  0x46   :  { %v1372_v39 = vld [vmem:[%s2648_s0 + $0x186] ss:$16 sm:%s640_s28]   ;;  %1240 = vst.msk [vmem:[%s2649_s1 + $0x23] ss:$8 sm:$0xf0] %vm3_vm3, %v1238_v37   ;;  %v587_v41 = vsel %vm128_vm2, %v1360_v36, %v582_v38  ;;  %s763_s28 = smov 48 }
  0x47   :  { %v1373_v40 = vld [vmem:[%s2648_s0 + $0x186] ss:$16 sm:%s643_s29]   ;;  %588 = vrot.lane.b32.xlu0 %v587_v41, %s1500_s25  ;;  %v1241_v47 = vld [vmem:[%s2648_s0 + $0x140] ss:$4 sm:$0xff]   ;;  %s814_s29 = smov 192  ;;  %s860_s24 = smov 192 }
  0x48   :  { %v646_v42 = vsel %vm118_vm0, %v1373_v40, %v1372_v39  ;;  %v1374_v43 = vld [vmem:[%s2648_s0 + $0x186] ss:$16 sm:%s648_s8]   ;;  %s686_s8 = smov 3  ;;  %1242 = vst.msk [vmem:[%s2649_s1 + $0x44] ss:$8 sm:$0xf] %vm3_vm3, %v1241_v47  }
  0x49   :  { %v1375_v44 = vld [vmem:[%s2648_s0 + $0x186] ss:$16 sm:%s653_s9]   ;;  %v651_v45 = vsel %vm123_vm1, %v1374_v43, %v646_v42  ;;  %s689_s9 = smov 12  ;;  %1243 = vst.msk [vmem:[%s2649_s1 + $0x25] ss:$8 sm:$0xf0] %vm3_vm3, %v1241_v47  }
  0x4a   :  { %v1367_v46 = vld [vmem:[%s2648_s0 + $0x106] ss:$16 sm:%s617_s15]   ;;  %v656_v48 = vsel %vm128_vm2, %v1375_v44, %v651_v45  ;;  %s694_s15 = smov 48  ;;  %v1244_v53 = vld [vmem:[%s2648_s0 + $0x160] ss:$4 sm:$0xff]   ;;  %s928_s5 = smov 192 }
  0x4b   :  { %v1368_v49 = vld [vmem:[%s2648_s0 + $0x106] ss:$16 sm:%s620_s22]   ;;  %657 = vrot.lane.b32.xlu1 %v656_v48, %s1500_s25  ;;  %1245 = vst.msk [vmem:[%s2649_s1 + $0x46] ss:$8 sm:$0xf] %vm3_vm3, %v1244_v53   ;;  %s745_s22 = smov 192 }
  0x4c   :  { %v1369_v50 = vld [vmem:[%s2648_s0 + $0x106] ss:$16 sm:%s625_s23]   ;;  %v623_v51 = vsel %vm118_vm0, %v1368_v49, %v1367_v46  ;;  %s663_s23 = smov 3  ;;  %v1382_v55 = vld [vmem:[%s2648_s0 + $0x8a] ss:$16 sm:%s686_s8]   ;;  %s824_s8 = smov 3 }
  0x4d   :  { %v1370_v52 = vld [vmem:[%s2648_s0 + $0x106] ss:$16 sm:%s630_s4]   ;;  %v628_v54 = vsel %vm123_vm1, %v1369_v50, %v623_v51  ;;  %v1383_v56 = vld [vmem:[%s2648_s0 + $0x8a] ss:$16 sm:%s689_s9]   ;;  %s722_s9 = smov 192  ;;  %s768_s4 = smov 192 }
  0x4e   :  { %1246 = vst.msk [vmem:[%s2649_s1 + $0x27] ss:$8 sm:$0xf0] %vm3_vm3, %v1244_v53   ;;  %v633_v57 = vsel %vm128_vm2, %v1370_v52, %v628_v54  ;;  %v692_v58 = vsel %vm118_vm0, %v1383_v56, %v1382_v55  ;;  %v1384_v59 = vld [vmem:[%s2648_s0 + $0x8a] ss:$16 sm:%s694_s15]   ;;  %s732_s15 = smov 3 }
  0x4f   :  { %v1385_v60 = vld [vmem:[%s2648_s0 + $0x8a] ss:$16 sm:%s699_s16]   ;;  %634 = vrot.lane.b32.xlu0 %v633_v57, %s1500_s25  ;;  %v697_v61 = vsel %vm123_vm1, %v1384_v59, %v692_v58  ;;  %s735_s16 = smov 12  ;;  %s1501_s7 = smov 32  }
  0x50   :  { %v1377_v62 = vld [vmem:[%s2648_s0 + $0xa] ss:$16 sm:%s663_s23]   ;;  %v702_v63 = vsel %vm128_vm2, %v1385_v60, %v697_v61  ;;  %v1402_v19 = vld [vmem:[%s2648_s0 + $0x8e] ss:$16 sm:%s778_s11]   ;;  %s809_s23 = smov 48  ;;  %s905_s20 = smov 192 }
  0x51   :  { %v1378_v0 = vld [vmem:[%s2648_s0 + $0xa] ss:$16 sm:%s666_s2]   ;;  %703 = vrot.lane.b32.xlu1 %v702_v63, %s1500_s25  ;;  %s712_s2 = smov 12  ;;  %s974_s30 = smov 192 }
  0x52   :  { %v1379_v1 = vld [vmem:[%s2648_s0 + $0xa] ss:$16 sm:%s671_s3]   ;;  %v669_v2 = vsel %vm118_vm0, %v1378_v0, %v1377_v62  ;;  %s717_s3 = smov 48  ;;  %v1404_v23 = vld [vmem:[%s2648_s0 + $0x8e] ss:$16 sm:%s786_s17]   ;;  %s801_s17 = smov 3 }
  0x53   :  { %v1380_v3 = vld [vmem:[%s2648_s0 + $0xa] ss:$16 sm:%s676_s12]   ;;  %v674_v4 = vsel %vm123_vm1, %v1379_v1, %v669_v2  ;;  %s781_s12 = smov 12  ;;  %v1405_v24 = vld [vmem:[%s2648_s0 + $0x8e] ss:$16 sm:%s791_s18]   ;;  %s850_s18 = smov 12 }
  0x54   :  { %v1392_v5 = vld [vmem:[%s2648_s0 + $0x18a] ss:$16 sm:%s732_s15]   ;;  %v679_v7 = vsel %vm128_vm2, %v1380_v3, %v674_v4  ;;  %v1403_v20 = vld [vmem:[%s2648_s0 + $0x8e] ss:$16 sm:%s781_s12]   ;;  %s900_s15 = smov 48  ;;  %s946_s11 = smov 48 }
  0x55   :  { %v1393_v6 = vld [vmem:[%s2648_s0 + $0x18a] ss:$16 sm:%s735_s16]   ;;  %680 = vrot.lane.b32.xlu0 %v679_v7, %s1500_s25  ;;  %v784_v22 = vsel %vm118_vm0, %v1403_v20, %v1402_v19  ;;  %s951_s16 = smov 192  ;;  %s997_s12 = smov 192 }
  0x56   :  { %v738_v8 = vsel %vm118_vm0, %v1393_v6, %v1392_v5  ;;  %v1394_v9 = vld [vmem:[%s2648_s0 + $0x18a] ss:$16 sm:%s740_s21]   ;;  %s755_s21 = smov 3  ;;  %v789_v25 = vsel %vm123_vm1, %v1404_v23, %v784_v22  ;;  %v1398_v28 = vld [vmem:[%s2648_s0 + $0xe] ss:$16 sm:%s758_s27]   ;;  %s915_s27 = smov 3 }
  0x57   :  { %v1395_v10 = vld [vmem:[%s2648_s0 + $0x18a] ss:$16 sm:%s745_s22]   ;;  %v743_v11 = vsel %vm123_vm1, %v1394_v9, %v738_v8  ;;  %v1397_v26 = vld [vmem:[%s2648_s0 + $0xe] ss:$16 sm:%s755_s21]   ;;  %v794_v27 = vsel %vm128_vm2, %v1405_v24, %v789_v25  ;;  %s804_s22 = smov 12  ;;  %s1061_s21 = smov 48 }
  0x58   :  { %v1387_v12 = vld [vmem:[%s2648_s0 + $0x10a] ss:$16 sm:%s709_s26]   ;;  %v748_v13 = vsel %vm128_vm2, %v1395_v10, %v743_v11  ;;  %v1399_v29 = vld [vmem:[%s2648_s0 + $0xe] ss:$16 sm:%s763_s28]   ;;  %v761_v30 = vsel %vm118_vm0, %v1398_v28, %v1397_v26  ;;  %s918_s28 = smov 12  ;;  %s1020_s26 = smov 192 }
  0x59   :  { %v1388_v14 = vld [vmem:[%s2648_s0 + $0x10a] ss:$16 sm:%s712_s2]   ;;  %749 = vrot.lane.b32.xlu1 %v748_v13, %s1500_s25  ;;  %v766_v32 = vsel %vm123_vm1, %v1399_v29, %v761_v30  ;;  %s1038_s2 = smov 48 }
  0x5a   :  { %v1389_v15 = vld [vmem:[%s2648_s0 + $0x10a] ss:$16 sm:%s717_s3]   ;;  %v715_v16 = vsel %vm118_vm0, %v1388_v14, %v1387_v12  ;;  %v1400_v31 = vld [vmem:[%s2648_s0 + $0xe] ss:$16 sm:%s768_s4]   ;;  %s869_s3 = smov 3  ;;  %s872_s4 = smov 12 }
  0x5b   :  { %v1390_v17 = vld [vmem:[%s2648_s0 + $0x10a] ss:$16 sm:%s722_s9]   ;;  %v720_v18 = vsel %vm123_vm1, %v1389_v15, %v715_v16  ;;  %s827_s9 = smov 12  ;;  %v1412_v33 = vld [vmem:[%s2648_s0 + $0x18e] ss:$16 sm:%s824_s8]   ;;  %v771_v35 = vsel %vm128_vm2, %v1400_v31, %v766_v32  ;;  %s992_s8 = smov 48 }
  0x5c   :  { %v725_v21 = vsel %vm128_vm2, %v1390_v17, %v720_v18  ;;  %v1413_v34 = vld [vmem:[%s2648_s0 + $0x18e] ss:$16 sm:%s827_s9]   ;;  %v1421_v47 = vld [vmem:[%s2648_s0 + $0x81] ss:$16 sm:%s869_s3]   ;;  %s1043_s9 = smov 192  ;;  %s1089_s3 = smov 192 }
  0x5d   :  { %726 = vrot.lane.b32.xlu0 %v725_v21, %s1500_s25  ;;  %795 = vrot.lane.b32.xlu1 %v794_v27, %s1500_s25  ;;  %v830_v36 = vsel %vm118_vm0, %v1413_v34, %v1412_v33  ;;  %v1414_v37 = vld [vmem:[%s2648_s0 + $0x18e] ss:$16 sm:%s832_s13]   ;;  %s847_s13 = smov 3 }
  0x5e   :  { %v1415_v38 = vld [vmem:[%s2648_s0 + $0x18e] ss:$16 sm:%s837_s14]   ;;  %v835_v39 = vsel %vm123_vm1, %v1414_v37, %v830_v36  ;;  %v1422_v48 = vld [vmem:[%s2648_s0 + $0x81] ss:$16 sm:%s872_s4]   ;;  %s923_s4 = smov 48  ;;  %s895_s14 = smov 12 }
  0x5f   :  { %v1407_v40 = vld [vmem:[%s2648_s0 + $0x10e] ss:$16 sm:%s801_s17]   ;;  %v840_v41 = vsel %vm128_vm2, %v1415_v38, %v835_v39  ;;  %v875_v50 = vsel %vm118_vm0, %v1422_v48, %v1421_v47  ;;  %v1423_v51 = vld [vmem:[%s2648_s0 + $0x81] ss:$16 sm:%s877_s6]   ;;  %s892_s6 = smov 3  ;;  %s1107_s17 = smov 48 }
  0x60   :  { %v1408_v42 = vld [vmem:[%s2648_s0 + $0x10e] ss:$16 sm:%s804_s22]   ;;  %v1424_v52 = vld [vmem:[%s2648_s0 + $0x81] ss:$16 sm:%s882_s10]   ;;  %v880_v53 = vsel %vm123_vm1, %v1423_v51, %v875_v50  ;;  %s941_s10 = smov 12  ;;  %s1066_s22 = smov 192 }
  0x61   :  { %772 = vrot.lane.b32.xlu0 %v771_v35, %s1500_s25  ;;  %v1409_v43 = vld [vmem:[%s2648_s0 + $0x10e] ss:$16 sm:%s809_s23]   ;;  %841 = vrot.lane.b32.xlu1 %v840_v41, %s1500_s25  ;;  %v807_v44 = vsel %vm118_vm0, %v1408_v42, %v1407_v40  ;;  %v885_v55 = vsel %vm128_vm2, %v1424_v52, %v880_v53  ;;  %s961_s23 = smov 3 }
  0x62   :  { %v1410_v45 = vld [vmem:[%s2648_s0 + $0x10e] ss:$16 sm:%s814_s29]   ;;  %v812_v46 = vsel %vm123_vm1, %v1409_v43, %v807_v44  ;;  %v1417_v54 = vld [vmem:[%s2648_s0 + $0x1] ss:$16 sm:%s847_s13]   ;;  %s969_s29 = smov 48  ;;  %s1153_s13 = smov 48 }
  0x63   :  { %v817_v49 = vsel %vm128_vm2, %v1410_v45, %v812_v46  ;;  %v1418_v56 = vld [vmem:[%s2648_s0 + $0x1] ss:$16 sm:%s850_s18]   ;;  %v1441_v11 = vld [vmem:[%s2648_s0 + $0x85] ss:$16 sm:%s961_s23]   ;;  %s1112_s18 = smov 192  ;;  %s1130_s23 = smov 48 }
  0x64   :  { %v1419_v57 = vld [vmem:[%s2648_s0 + $0x1] ss:$16 sm:%s855_s19]   ;;  %v853_v58 = vsel %vm118_vm0, %v1418_v56, %v1417_v54  ;;  %v1443_v15 = vld [vmem:[%s2648_s0 + $0x85] ss:$16 sm:%s969_s29]   ;;  %s1007_s19 = smov 3  ;;  %s984_s29 = smov 3 }
  0x65   :  { %818 = vrot.lane.b32.xlu0 %v817_v49, %s1500_s25  ;;  %886 = vrot.lane.b32.xlu1 %v885_v55, %s1501_s7  ;;  %v1420_v59 = vld [vmem:[%s2648_s0 + $0x1] ss:$16 sm:%s860_s24]   ;;  %v858_v60 = vsel %vm123_vm1, %v1419_v57, %v853_v58  ;;  %s964_s24 = smov 12  ;;  %s1015_s25 = smov 48 }
  0x66   :  { %v1431_v61 = vld [vmem:[%s2648_s0 + $0x181] ss:$16 sm:%s915_s27]   ;;  %v863_v63 = vsel %vm128_vm2, %v1420_v59, %v858_v60  ;;  %v1442_v12 = vld [vmem:[%s2648_s0 + $0x85] ss:$16 sm:%s964_s24]   ;;  %s1084_s27 = smov 48  ;;  %s1181_s24 = smov 192 }
  0x67   :  { %v1432_v62 = vld [vmem:[%s2648_s0 + $0x181] ss:$16 sm:%s918_s28]   ;;  %v967_v14 = vsel %vm118_vm0, %v1442_v12, %v1441_v11  ;;  %v1444_v16 = vld [vmem:[%s2648_s0 + $0x85] ss:$16 sm:%s974_s30]   ;;  %s1033_s30 = smov 12  ;;  %s1135_s28 = smov 192 }
  0x68   :  { %v921_v0 = vsel %vm118_vm0, %v1432_v62, %v1431_v61  ;;  %v1433_v1 = vld [vmem:[%s2648_s0 + $0x181] ss:$16 sm:%s923_s4]   ;;  %s938_s4 = smov 3  ;;  %v972_v17 = vsel %vm123_vm1, %v1443_v15, %v967_v14  ;;  %v1437_v20 = vld [vmem:[%s2648_s0 + $0x5] ss:$16 sm:%s941_s10]   ;;  %s1204_s10 = smov 192 }
  0x69   :  { %v1434_v2 = vld [vmem:[%s2648_s0 + $0x181] ss:$16 sm:%s928_s5]   ;;  %864 = vrot.lane.b32.xlu0 %v863_v63, %s1501_s7  ;;  %v926_v3 = vsel %vm123_vm1, %v1433_v1, %v921_v0  ;;  %v977_v19 = vsel %vm128_vm2, %v1444_v16, %v972_v17  ;;  %s987_s5 = smov 12 }
  0x6a   :  { %v1426_v4 = vld [vmem:[%s2648_s0 + $0x101] ss:$16 sm:%s892_s6]   ;;  %v931_v5 = vsel %vm128_vm2, %v1434_v2, %v926_v3  ;;  %v1436_v18 = vld [vmem:[%s2648_s0 + $0x5] ss:$16 sm:%s938_s4]   ;;  %s1199_s6 = smov 48 }
  0x6b   :  { %v1427_v6 = vld [vmem:[%s2648_s0 + $0x101] ss:$16 sm:%s895_s14]   ;;  %932 = vrot.lane.b32.xlu1 %v931_v5, %s1501_s7  ;;  %v944_v22 = vsel %vm118_vm0, %v1437_v20, %v1436_v18  ;;  %s1158_s14 = smov 192 }
  0x6c   :  { %v1428_v7 = vld [vmem:[%s2648_s0 + $0x101] ss:$16 sm:%s900_s15]   ;;  %v898_v8 = vsel %vm118_vm0, %v1427_v6, %v1426_v4  ;;  %v1438_v21 = vld [vmem:[%s2648_s0 + $0x5] ss:$16 sm:%s946_s11]   ;;  %s1053_s15 = smov 3  ;;  %s1099_s11 = smov 3 }
  0x6d   :  { %v1429_v9 = vld [vmem:[%s2648_s0 + $0x101] ss:$16 sm:%s905_s20]   ;;  %v903_v10 = vsel %vm123_vm1, %v1428_v7, %v898_v8  ;;  %s1010_s20 = smov 12  ;;  %v1439_v23 = vld [vmem:[%s2648_s0 + $0x5] ss:$16 sm:%s951_s16]   ;;  %v949_v24 = vsel %vm123_vm1, %v1438_v21, %v944_v22  ;;  %s1056_s16 = smov 12 }
  0x6e   :  { %v908_v13 = vsel %vm128_vm2, %v1429_v9, %v903_v10  ;;  %v1451_v25 = vld [vmem:[%s2648_s0 + $0x185] ss:$16 sm:%s1007_s19]   ;;  %v954_v27 = vsel %vm128_vm2, %v1439_v23, %v949_v24  ;;  %v1461_v39 = vld [vmem:[%s2648_s0 + $0x89] ss:$16 sm:%s1053_s15]   ;;  %s1176_s19 = smov 48 }
  0x6f   :  { %909 = vrot.lane.b32.xlu0 %v908_v13, %s1501_s7  ;;  %978 = vrot.lane.b32.xlu1 %v977_v19, %s1501_s7  ;;  %v1452_v26 = vld [vmem:[%s2648_s0 + $0x185] ss:$16 sm:%s1010_s20]  }
  0x70   :  { %v1013_v28 = vsel %vm118_vm0, %v1452_v26, %v1451_v25  ;;  %v1453_v29 = vld [vmem:[%s2648_s0 + $0x185] ss:$16 sm:%s1015_s25]   ;;  %s1030_s25 = smov 3  ;;  %v1462_v40 = vld [vmem:[%s2648_s0 + $0x89] ss:$16 sm:%s1056_s16]  }
  0x71   :  { %v1454_v30 = vld [vmem:[%s2648_s0 + $0x185] ss:$16 sm:%s1020_s26]   ;;  %v1018_v31 = vsel %vm123_vm1, %v1453_v29, %v1013_v28  ;;  %v1059_v42 = vsel %vm118_vm0, %v1462_v40, %v1461_v39  ;;  %v1463_v43 = vld [vmem:[%s2648_s0 + $0x89] ss:$16 sm:%s1061_s21]   ;;  %s1076_s21 = smov 3  ;;  %s1079_s26 = smov 12 }
  0x72   :  { %v1446_v32 = vld [vmem:[%s2648_s0 + $0x105] ss:$16 sm:%s984_s29]   ;;  %v1023_v33 = vsel %vm128_vm2, %v1454_v30, %v1018_v31  ;;  %v1464_v44 = vld [vmem:[%s2648_s0 + $0x89] ss:$16 sm:%s1066_s22]   ;;  %v1064_v45 = vsel %vm123_vm1, %v1463_v43, %v1059_v42  ;;  %s1125_s22 = smov 12 }
  0x73   :  { %955 = vrot.lane.b32.xlu0 %v954_v27, %s1501_s7  ;;  %v1447_v34 = vld [vmem:[%s2648_s0 + $0x105] ss:$16 sm:%s987_s5]   ;;  %1024 = vrot.lane.b32.xlu1 %v1023_v33, %s1501_s7  ;;  %v1069_v47 = vsel %vm128_vm2, %v1464_v44, %v1064_v45 }
  0x74   :  { %v1448_v35 = vld [vmem:[%s2648_s0 + $0x105] ss:$16 sm:%s992_s8]   ;;  %v990_v36 = vsel %vm118_vm0, %v1447_v34, %v1446_v32  ;;  %v1456_v46 = vld [vmem:[%s2648_s0 + $0x9] ss:$16 sm:%s1030_s25]   ;;  %s1145_s8 = smov 3 }
  0x75   :  { %v1449_v37 = vld [vmem:[%s2648_s0 + $0x105] ss:$16 sm:%s997_s12]   ;;  %v995_v38 = vsel %vm123_vm1, %v1448_v35, %v990_v36  ;;  %s1102_s12 = smov 12  ;;  %v1457_v48 = vld [vmem:[%s2648_s0 + $0x9] ss:$16 sm:%s1033_s30]  }
  0x76   :  { %v1000_v41 = vsel %vm128_vm2, %v1449_v37, %v995_v38  ;;  %v1458_v49 = vld [vmem:[%s2648_s0 + $0x9] ss:$16 sm:%s1038_s2]   ;;  %v1036_v50 = vsel %vm118_vm0, %v1457_v48, %v1456_v46  ;;  %v1481_v3 = vld [vmem:[%s2648_s0 + $0x8d] ss:$16 sm:%s1145_s8]   ;;  %s1191_s2 = smov 3 }
  0x77   :  { %1001 = vrot.lane.b32.xlu0 %v1000_v41, %s1501_s7  ;;  %1070 = vrot.lane.b32.xlu1 %v1069_v47, %s1501_s7  ;;  %v1459_v51 = vld [vmem:[%s2648_s0 + $0x9] ss:$16 sm:%s1043_s9]   ;;  %v1041_v52 = vsel %vm123_vm1, %v1458_v49, %v1036_v50  ;;  %s1148_s9 = smov 12 }
  0x78   :  { %v1471_v53 = vld [vmem:[%s2648_s0 + $0x189] ss:$16 sm:%s1099_s11]   ;;  %v1046_v55 = vsel %vm128_vm2, %v1459_v51, %v1041_v52  ;;  %v1482_v4 = vld [vmem:[%s2648_s0 + $0x8d] ss:$16 sm:%s1148_s9]   ;;  %v176_v30 = vpop.permute.xlu1 %175  }
  0x79   :  { %v1472_v54 = vld [vmem:[%s2648_s0 + $0x189] ss:$16 sm:%s1102_s12]   ;;  %v1151_v6 = vsel %vm118_vm0, %v1482_v4, %v1481_v3  ;;  %v1483_v7 = vld [vmem:[%s2648_s0 + $0x8d] ss:$16 sm:%s1153_s13]   ;;  %s1168_s13 = smov 3 }
  0x7a   :  { %v1105_v56 = vsel %vm118_vm0, %v1472_v54, %v1471_v53  ;;  %v1473_v57 = vld [vmem:[%s2648_s0 + $0x189] ss:$16 sm:%s1107_s17]   ;;  %s1122_s17 = smov 3  ;;  %v1484_v8 = vld [vmem:[%s2648_s0 + $0x8d] ss:$16 sm:%s1158_s14]   ;;  %v1156_v9 = vsel %vm123_vm1, %v1483_v7, %v1151_v6 }
  0x7b   :  { %v1474_v58 = vld [vmem:[%s2648_s0 + $0x189] ss:$16 sm:%s1112_s18]   ;;  %1047 = vrot.lane.b32.xlu0 %v1046_v55, %s1501_s7  ;;  %v1110_v59 = vsel %vm123_vm1, %v1473_v57, %v1105_v56  ;;  %v1161_v11 = vsel %vm128_vm2, %v1484_v8, %v1156_v9  ;;  %s1171_s18 = smov 12  ;;  %1272 = vst.msk [vmem:[%s2649_s1 + $0x40] sm:$0xff] %vm132_vm4, %v176_v30  }
  0x7c   :  { %v1466_v60 = vld [vmem:[%s2648_s0 + $0x109] ss:$16 sm:%s1076_s21]   ;;  %v1115_v61 = vsel %vm128_vm2, %v1474_v58, %v1110_v59  ;;  %v1476_v10 = vld [vmem:[%s2648_s0 + $0xd] ss:$16 sm:%s1122_s17]   ;;  %v131_v33 = vpop.permute.xlu0 %130  }
  0x7d   :  { %v1467_v62 = vld [vmem:[%s2648_s0 + $0x109] ss:$16 sm:%s1079_s26]   ;;  %1116 = vrot.lane.b32.xlu1 %v1115_v61, %s1501_s7  ;;  %133 = vst.msk [vmem:[%s2649_s1] sm:$0xff] %vm132_vm4, %v131_v33  }
  0x7e   :  { %v1468_v63 = vld [vmem:[%s2648_s0 + $0x109] ss:$16 sm:%s1084_s27]   ;;  %v1082_v0 = vsel %vm118_vm0, %v1467_v62, %v1466_v60  ;;  %v1477_v12 = vld [vmem:[%s2648_s0 + $0xd] ss:$16 sm:%s1125_s22]  }
  0x7f   :  { %v1469_v1 = vld [vmem:[%s2648_s0 + $0x109] ss:$16 sm:%s1089_s3]   ;;  %v1087_v2 = vsel %vm123_vm1, %v1468_v63, %v1082_v0  ;;  %s1194_s3 = smov 12  ;;  %v1478_v13 = vld [vmem:[%s2648_s0 + $0xd] ss:$16 sm:%s1130_s23]   ;;  %v1128_v14 = vsel %vm118_vm0, %v1477_v12, %v1476_v10 }
  0x80   :  { %v1092_v5 = vsel %vm128_vm2, %v1469_v1, %v1087_v2  ;;  %v1479_v15 = vld [vmem:[%s2648_s0 + $0xd] ss:$16 sm:%s1135_s28]   ;;  %v1133_v16 = vsel %vm123_vm1, %v1478_v13, %v1128_v14  ;;  %v199_v34 = vpop.permute.xlu1 %198  }
  0x81   :  { %1093 = vrot.lane.b32.xlu0 %v1092_v5, %s1501_s7  ;;  %1162 = vrot.lane.b32.xlu1 %v1161_v11, %s1501_s7  ;;  %v1491_v17 = vld [vmem:[%s2648_s0 + $0x18d] ss:$16 sm:%s1191_s2]   ;;  %v1138_v19 = vsel %vm128_vm2, %v1479_v15, %v1133_v16 }
  0x82   :  { %v1492_v18 = vld [vmem:[%s2648_s0 + $0x18d] ss:$16 sm:%s1194_s3]   ;;  %1277 = vst.msk [vmem:[%s2649_s1 + $0x60] sm:$0xff] %vm132_vm4, %v199_v34  }
  0x83   :  { %v1197_v20 = vsel %vm118_vm0, %v1492_v18, %v1491_v17  ;;  %v1493_v21 = vld [vmem:[%s2648_s0 + $0x18d] ss:$16 sm:%s1199_s6]  }
  0x84   :  { %v1494_v22 = vld [vmem:[%s2648_s0 + $0x18d] ss:$16 sm:%s1204_s10]   ;;  %v1202_v23 = vsel %vm123_vm1, %v1493_v21, %v1197_v20  ;;  %v153_v35 = vpop.permute.xlu0 %152   ;;  %v245_v36 = vpop.permute.xlu1 %244  }
  0x85   :  { %1139 = vrot.lane.b32.xlu0 %v1138_v19, %s1501_s7  ;;  %v1486_v24 = vld [vmem:[%s2648_s0 + $0x10d] ss:$16 sm:%s1168_s13]   ;;  %v1207_v25 = vsel %vm128_vm2, %v1494_v22, %v1202_v23  ;;  %1267 = vst.msk [vmem:[%s2649_s1 + $0x20] sm:$0xff] %vm132_vm4, %v153_v35  }
  0x86   :  { %v1487_v26 = vld [vmem:[%s2648_s0 + $0x10d] ss:$16 sm:%s1171_s18]   ;;  %1208 = vrot.lane.b32.xlu1 %v1207_v25, %s1501_s7  ;;  %1287 = vst.msk [vmem:[%s2649_s1 + $0x28] sm:$0xff] %vm132_vm4, %v245_v36  }
  0x87   :  { %v1488_v27 = vld [vmem:[%s2648_s0 + $0x10d] ss:$16 sm:%s1176_s19]   ;;  %v1174_v28 = vsel %vm118_vm0, %v1487_v26, %v1486_v24 }
  0x88   :  { %v1489_v29 = vld [vmem:[%s2648_s0 + $0x10d] ss:$16 sm:%s1181_s24]   ;;  %v1179_v31 = vsel %vm123_vm1, %v1488_v27, %v1174_v28  ;;  %v222_v37 = vpop.permute.xlu0 %221  }
  0x89   :  { %v1184_v32 = vsel %vm128_vm2, %v1489_v29, %v1179_v31  ;;  %1282 = vst.msk [vmem:[%s2649_s1 + $0x8] sm:$0xff] %vm132_vm4, %v222_v37  }
  0x8a   :  { %1185 = vrot.lane.b32.xlu0 %v1184_v32, %s1501_s7  ;;  %v291_v38 = vpop.permute.xlu1 %290  }
  0x8b   :  { %1297 = vst.msk [vmem:[%s2649_s1 + $0x68] sm:$0xff] %vm132_vm4, %v291_v38  }
  0x8e   :  { %v268_v39 = vpop.permute.xlu0 %267   ;;  %v337_v40 = vpop.permute.xlu1 %336  }
  0x8f   :  { %1292 = vst.msk [vmem:[%s2649_s1 + $0x48] sm:$0xff] %vm132_vm4, %v268_v39   ;;  %1307 = vst.msk [vmem:[%s2649_s1 + $0x30] sm:$0xff] %vm132_vm4, %v337_v40  }
  0x92   :  { %v314_v41 = vpop.permute.xlu0 %313  }
  0x93   :  { %1302 = vst.msk [vmem:[%s2649_s1 + $0x10] sm:$0xff] %vm132_vm4, %v314_v41  }
  0x95   :  { %v383_v42 = vpop.permute.xlu1 %382  }
  0x96   :  { %1317 = vst.msk [vmem:[%s2649_s1 + $0x70] sm:$0xff] %vm132_vm4, %v383_v42  }
  0x99   :  { %v360_v43 = vpop.permute.xlu0 %359   ;;  %v429_v44 = vpop.permute.xlu1 %428  }
  0x9a   :  { %1312 = vst.msk [vmem:[%s2649_s1 + $0x50] sm:$0xff] %vm132_vm4, %v360_v43   ;;  %1327 = vst.msk [vmem:[%s2649_s1 + $0x38] sm:$0xff] %vm132_vm4, %v429_v44  }
  0x9d   :  { %v406_v45 = vpop.permute.xlu0 %405  }
  0x9e   :  { %1322 = vst.msk [vmem:[%s2649_s1 + $0x18] sm:$0xff] %vm132_vm4, %v406_v45  }
  0xa1   :  { %v475_v46 = vpop.permute.xlu1 %474  }
  0xa2   :  { %1337 = vst.msk [vmem:[%s2649_s1 + $0x78] sm:$0xff] %vm132_vm4, %v475_v46  }
  0xa5   :  { %v452_v47 = vpop.permute.xlu0 %451  }
  0xa6   :  { %1332 = vst.msk [vmem:[%s2649_s1 + $0x58] sm:$0xff] %vm132_vm4, %v452_v47  }
  0xa7   :  { %v520_v48 = vpop.permute.xlu1 %519  }
  0xa8   :  { %1346 = vst.msk [vmem:[%s2649_s1 + $0x20] sm:$0xff] %vm499_vm5, %v520_v48  }
  0xab   :  { %v498_v49 = vpop.permute.xlu0 %497  }
  0xac   :  { %500 = vst.msk [vmem:[%s2649_s1] sm:$0xff] %vm499_vm5, %v498_v49  }
  0xaf   :  { %v566_v50 = vpop.permute.xlu1 %565  }
  0xb0   :  { %1356 = vst.msk [vmem:[%s2649_s1 + $0x60] sm:$0xff] %vm499_vm5, %v566_v50  }
  0xb3   :  { %v543_v51 = vpop.permute.xlu0 %542  }
  0xb4   :  { %1351 = vst.msk [vmem:[%s2649_s1 + $0x40] sm:$0xff] %vm499_vm5, %v543_v51  }
  0xb5   :  { %v612_v52 = vpop.permute.xlu1 %611  }
  0xb6   :  { %1366 = vst.msk [vmem:[%s2649_s1 + $0x28] sm:$0xff] %vm499_vm5, %v612_v52  }
  0xb9   :  { %v589_v53 = vpop.permute.xlu0 %588  }
  0xba   :  { %1361 = vst.msk [vmem:[%s2649_s1 + $0x8] sm:$0xff] %vm499_vm5, %v589_v53  }
  0xbd   :  { %v658_v54 = vpop.permute.xlu1 %657  }
  0xbe   :  { %1376 = vst.msk [vmem:[%s2649_s1 + $0x68] sm:$0xff] %vm499_vm5, %v658_v54  }
  0xc1   :  { %v635_v55 = vpop.permute.xlu0 %634  }
  0xc2   :  { %1371 = vst.msk [vmem:[%s2649_s1 + $0x48] sm:$0xff] %vm499_vm5, %v635_v55  }
  0xc3   :  { %v704_v56 = vpop.permute.xlu1 %703  }
  0xc4   :  { %1386 = vst.msk [vmem:[%s2649_s1 + $0x30] sm:$0xff] %vm499_vm5, %v704_v56  }
  0xc7   :  { %v681_v57 = vpop.permute.xlu0 %680  }
  0xc8   :  { %1381 = vst.msk [vmem:[%s2649_s1 + $0x10] sm:$0xff] %vm499_vm5, %v681_v57  }
  0xcb   :  { %v750_v58 = vpop.permute.xlu1 %749  }
  0xcc   :  { %1396 = vst.msk [vmem:[%s2649_s1 + $0x70] sm:$0xff] %vm499_vm5, %v750_v58  }
  0xcf   :  { %v727_v59 = vpop.permute.xlu0 %726   ;;  %v796_v60 = vpop.permute.xlu1 %795  }
  0xd0   :  { %1391 = vst.msk [vmem:[%s2649_s1 + $0x50] sm:$0xff] %vm499_vm5, %v727_v59   ;;  %1406 = vst.msk [vmem:[%s2649_s1 + $0x38] sm:$0xff] %vm499_vm5, %v796_v60  }
  0xd3   :  { %v773_v61 = vpop.permute.xlu0 %772   ;;  %v842_v62 = vpop.permute.xlu1 %841  }
  0xd4   :  { %1401 = vst.msk [vmem:[%s2649_s1 + $0x18] sm:$0xff] %vm499_vm5, %v773_v61   ;;  %1416 = vst.msk [vmem:[%s2649_s1 + $0x78] sm:$0xff] %vm499_vm5, %v842_v62  }
  0xd7   :  { %v819_v63 = vpop.permute.xlu0 %818   ;;  %v887_v0 = vpop.permute.xlu1 %886  }
  0xd8   :  { %1411 = vst.msk [vmem:[%s2649_s1 + $0x58] sm:$0xff] %vm499_vm5, %v819_v63  }
  0xd9   :  { %1425 = vst.msk [vmem:[%s2649_s1 + $0x20] sm:$0xff] %vm866_vm6, %v887_v0  }
  0xdb   :  { %v865_v1 = vpop.permute.xlu0 %864  }
  0xdc   :  { %867 = vst.msk [vmem:[%s2649_s1] sm:$0xff] %vm866_vm6, %v865_v1  }
  0xdd   :  { %v933_v2 = vpop.permute.xlu1 %932  }
  0xde   :  { %1435 = vst.msk [vmem:[%s2649_s1 + $0x60] sm:$0xff] %vm866_vm6, %v933_v2  }
  0xe1   :  { %v910_v3 = vpop.permute.xlu0 %909   ;;  %v979_v4 = vpop.permute.xlu1 %978  }
  0xe2   :  { %1430 = vst.msk [vmem:[%s2649_s1 + $0x40] sm:$0xff] %vm866_vm6, %v910_v3   ;;  %1445 = vst.msk [vmem:[%s2649_s1 + $0x28] sm:$0xff] %vm866_vm6, %v979_v4  }
  0xe5   :  { %v956_v5 = vpop.permute.xlu0 %955   ;;  %v1025_v6 = vpop.permute.xlu1 %1024  }
  0xe6   :  { %1440 = vst.msk [vmem:[%s2649_s1 + $0x8] sm:$0xff] %vm866_vm6, %v956_v5   ;;  %1455 = vst.msk [vmem:[%s2649_s1 + $0x68] sm:$0xff] %vm866_vm6, %v1025_v6  }
  0xe9   :  { %v1002_v7 = vpop.permute.xlu0 %1001   ;;  %v1071_v8 = vpop.permute.xlu1 %1070  }
  0xea   :  { %1450 = vst.msk [vmem:[%s2649_s1 + $0x48] sm:$0xff] %vm866_vm6, %v1002_v7   ;;  %1465 = vst.msk [vmem:[%s2649_s1 + $0x30] sm:$0xff] %vm866_vm6, %v1071_v8  }
  0xed   :  { %v1048_v9 = vpop.permute.xlu0 %1047  }
  0xee   :  { %1460 = vst.msk [vmem:[%s2649_s1 + $0x10] sm:$0xff] %vm866_vm6, %v1048_v9  }
  0xef   :  { %v1117_v10 = vpop.permute.xlu1 %1116  }
  0xf0   :  { %1475 = vst.msk [vmem:[%s2649_s1 + $0x70] sm:$0xff] %vm866_vm6, %v1117_v10  }
  0xf3   :  { %v1094_v11 = vpop.permute.xlu0 %1093   ;;  %v1163_v12 = vpop.permute.xlu1 %1162  }
  0xf4   :  { %1470 = vst.msk [vmem:[%s2649_s1 + $0x50] sm:$0xff] %vm866_vm6, %v1094_v11   ;;  %1485 = vst.msk [vmem:[%s2649_s1 + $0x38] sm:$0xff] %vm866_vm6, %v1163_v12  }
  0xf7   :  { %v1140_v13 = vpop.permute.xlu0 %1139  }
  0xf8   :  { %1480 = vst.msk [vmem:[%s2649_s1 + $0x18] sm:$0xff] %vm866_vm6, %v1140_v13   ;;  %v1209_v14 = vpop.permute.xlu1 %1208  }
  0xf9   :  { %1495 = vst.msk [vmem:[%s2649_s1 + $0x78] sm:$0xff] %vm866_vm6, %v1209_v14  }
  0xfc   :  { %v1186_v15 = vpop.permute.xlu0 %1185  }
  0xfd   :  { %1490 = vst.msk [vmem:[%s2649_s1 + $0x58] sm:$0xff] %vm866_vm6, %v1186_v15  }

// kernel: pixelcnn_forward.1
= control target key start
LH: loop header
LB: loop body
LE: loop exit
PB: predicated region body
PF: predicated region fallthrough
CT: control target
= control target key end

     0   :  { %vm397_vm0 = vcmask 211968   ;;  %vm404_vm1 = vcmask 1044480   ;;  %vm881_vm2 = vcmask 261120   ;;  %vm121_vm3 = vcmask 519168   ;;  %s12625_s1 = inlined_call_operand.vmem [shape: bf16[154,512], index: 1, kind: input, shape index: {}]   ;;  %s12626_s4 = inlined_call_operand.vmem [shape: bf16[9,576,512], index: 4, kind: input, shape index: {}]   ;;  %s12627_s5 = inlined_call_operand.vmem [shape: f32[3,1,512], index: 5, kind: input, shape index: {}]   ;;  %s12628_s6 = inlined_call_operand.vmem [shape: f32[3,1,512], index: 6, kind: input, shape index: {}]   ;;  %s12629_s7 = inlined_call_operand.vmem [shape: bf16[512,512], index: 7, kind: input, shape index: {}]   ;;  %s12630_s8 = inlined_call_operand.vmem [shape: f32[1,512], index: 8, kind: input, shape index: {}]   ;;  %s12631_s11 = inlined_call_operand.vmem [shape: f32[32,512], index: 11, kind: output, shape index: {}]   ;;  %s12632_s0 = inlined_call_operand.vmem [shape: bf16[32,154], index: 0, kind: input, shape index: {}]   ;;  %s12633_s9 = inlined_call_operand.vmem [shape: f32[512,32], index: 9, kind: input, shape index: {}]   ;;  %s12634_s10 = inlined_call_operand.vmem [shape: f32[32,512], index: 10, kind: input, shape index: {}]   ;;  %s12635_s2 = inlined_call_operand.vmem [shape: f32[1,512], index: 2, kind: input, shape index: {}]   ;;  %s12636_s3 = inlined_call_operand.vmem [shape: f32[1,512], index: 3, kind: input, shape index: {}]  }
   0x1   :  { %v9015_v0 = vld [vmem:[%s12625_s1 + $0xe4] ss:$16 sps:$4 sm:$0xff]   ;;  %v9017_v1 = vld [vmem:[%s12625_s1 + $0xec] ss:$16 sps:$4 sm:$0xff]   ;;  %v9019_v2 = vld [vmem:[%s12625_s1 + $0xe0] ss:$16 sps:$4 sm:$0xff]  }
   0x2   :  { %417 = vmatprep.subr.bf16.mxu0 %v9015_v0  ;;  %v9020_v3 = vld [vmem:[%s12625_s1 + $0xe8] ss:$16 sps:$4 sm:$0xff]   ;;  %470 = vmatprep.subr.bf16.mxu1 %v9017_v1  ;;  %v9021_v4 = vld [vmem:[%s12625_s1 + $0xc4] ss:$16 sps:$4 sm:$0xff]   ;;  %v9023_v5 = vld [vmem:[%s12625_s1 + $0xcc] ss:$16 sps:$4 sm:$0xff]  }
   0x3   :  { %418 = vmatpush1.bf16.msra.mxu0 %v9019_v2  ;;  %471 = vmatpush1.bf16.msra.mxu1 %v9020_v3  ;;  %v9025_v6 = vld [vmem:[%s12625_s1 + $0xc0] ss:$16 sps:$4 sm:$0xff]   ;;  %v9026_v7 = vld [vmem:[%s12625_s1 + $0xc8] ss:$16 sps:$4 sm:$0xff]   ;;  %v9027_v8 = vld [vmem:[%s12625_s1 + $0xa4] ss:$16 sps:$4 sm:$0xff]  }
   0x4   :  { %419 = vmatprep.subr.bf16.mxu0 %v9021_v4  ;;  %472 = vmatprep.subr.bf16.mxu1 %v9023_v5  ;;  %v9029_v9 = vld [vmem:[%s12625_s1 + $0xac] ss:$16 sps:$4 sm:$0xff]   ;;  %v9031_v10 = vld [vmem:[%s12625_s1 + $0xa0] ss:$16 sps:$4 sm:$0xff]   ;;  %v9032_v11 = vld [vmem:[%s12625_s1 + $0xa8] ss:$16 sps:$4 sm:$0xff]  }
   0x5   :  { %v9033_v12 = vld [vmem:[%s12625_s1 + $0x84] ss:$16 sps:$4 sm:$0xff]   ;;  %v9035_v13 = vld [vmem:[%s12625_s1 + $0x8c] ss:$16 sps:$4 sm:$0xff]   ;;  %v9037_v14 = vld [vmem:[%s12625_s1 + $0x80] ss:$16 sps:$4 sm:$0xff]  }
   0x6   :  { %v9038_v15 = vld [vmem:[%s12625_s1 + $0x88] ss:$16 sps:$4 sm:$0xff]   ;;  %v9039_v16 = vld [vmem:[%s12625_s1 + $0x64] ss:$16 sps:$4 sm:$0xff]   ;;  %v9041_v17 = vld [vmem:[%s12625_s1 + $0x6c] ss:$16 sps:$4 sm:$0xff]  }
   0x7   :  { %420 = vmatpush1.bf16.msra.mxu0 %v9025_v6  ;;  %473 = vmatpush1.bf16.msra.mxu1 %v9026_v7  ;;  %v9043_v18 = vld [vmem:[%s12625_s1 + $0x60] ss:$16 sps:$4 sm:$0xff]   ;;  %v9044_v19 = vld [vmem:[%s12625_s1 + $0x68] ss:$16 sps:$4 sm:$0xff]   ;;  %v9045_v20 = vld [vmem:[%s12625_s1 + $0x44] ss:$16 sps:$4 sm:$0xff]  }
   0x8   :  { %421 = vmatprep.subr.bf16.mxu0 %v9027_v8  ;;  %474 = vmatprep.subr.bf16.mxu1 %v9029_v9  ;;  %v9047_v21 = vld [vmem:[%s12625_s1 + $0x4c] ss:$16 sps:$4 sm:$0xff]   ;;  %v9049_v22 = vld [vmem:[%s12625_s1 + $0x40] ss:$16 sps:$4 sm:$0xff]   ;;  %v9050_v23 = vld [vmem:[%s12625_s1 + $0x48] ss:$16 sps:$4 sm:$0xff]  }
   0x9   :  { %v9051_v24 = vld [vmem:[%s12625_s1 + $0x24] ss:$16 sps:$4 sm:$0xff]   ;;  %v9053_v25 = vld [vmem:[%s12625_s1 + $0x2c] ss:$16 sps:$4 sm:$0xff]   ;;  %v9055_v26 = vld [vmem:[%s12625_s1 + $0x20] ss:$16 sps:$4 sm:$0xff]  }
   0xa   :  { %v9056_v27 = vld [vmem:[%s12625_s1 + $0x28] ss:$16 sps:$4 sm:$0xff]   ;;  %v9057_v28 = vld [vmem:[%s12625_s1 + $0x4] ss:$16 sps:$4 sm:$0xff]   ;;  %v9059_v29 = vld [vmem:[%s12625_s1 + $0xc] ss:$16 sps:$4 sm:$0xff]  }
   0xb   :  { %422 = vmatpush1.bf16.msra.mxu0 %v9031_v10  ;;  %475 = vmatpush1.bf16.msra.mxu1 %v9032_v11  ;;  %v9061_v30 = vld [vmem:[%s12625_s1] ss:$16 sps:$4 sm:$0xff]   ;;  %v9062_v31 = vld [vmem:[%s12625_s1 + $0x8] ss:$16 sps:$4 sm:$0xff]   ;;  %v9077_v34 = vld [vmem:[%s12632_s0 + $0x4] ss:$8 sps:$4 sm:$0xff]  }
   0xc   :  { %423 = vmatprep.subr.bf16.mxu0 %v9033_v12  ;;  %476 = vmatprep.subr.bf16.mxu1 %v9035_v13  ;;  %v9063_v32 = vld [vmem:[%s12625_s1 + $0x124] ss:$16 sps:$4 sm:$0x1f]   ;;  %v9065_v33 = vld [vmem:[%s12625_s1 + $0x12c] ss:$16 sps:$4 sm:$0x1f]  }
   0xd   :  { %v9067_v35 = vld [vmem:[%s12625_s1 + $0x120] ss:$16 sps:$4 sm:$0x1f]   ;;  %v9068_v36 = vld [vmem:[%s12625_s1 + $0x128] ss:$16 sps:$4 sm:$0x1f]   ;;  %7695 = vmatprep.mubr.msk.bf16.mxu0 %vm397_vm0, %v9077_v34  ;;  %7698 = vmatprep.mubr.msk.bf16.mxu1 %vm397_vm0, %v9077_v34 }
   0xe   :  { %v406_v37 = vsel %vm404_vm1, %v9067_v35, 0  ;;  %v412_v38 = vsel %vm404_vm1, %v9068_v36, 0  ;;  %v9069_v39 = vld [vmem:[%s12625_s1 + $0x104] ss:$16 sps:$4 sm:$0xff]   ;;  %v9071_v40 = vld [vmem:[%s12625_s1 + $0x10c] ss:$16 sps:$4 sm:$0xff]  }
   0xf   :  { %424 = vmatpush1.bf16.msra.mxu0 %v9037_v14  ;;  %477 = vmatpush1.bf16.msra.mxu1 %v9038_v15  ;;  %v9073_v41 = vld [vmem:[%s12625_s1 + $0x100] ss:$16 sps:$4 sm:$0xff]   ;;  %v9074_v42 = vld [vmem:[%s12625_s1 + $0x108] ss:$16 sps:$4 sm:$0xff]   ;;  %v9078_v46 = vld [vmem:[%s12632_s0 + $0x14] ss:$8 sps:$4 sm:$0xff]  }
  0x10   :  { %425 = vmatprep.subr.bf16.mxu0 %v9039_v16  ;;  %478 = vmatprep.subr.bf16.mxu1 %v9041_v17  ;;  %v10168_v43 = vld [vmem:[%s12633_s9 + $0xf8] sm:$0xff]  ;;  %v9075_v45 = vld [vmem:[%s12632_s0] ss:$8 sps:$4 sm:$0xff]   ;;  %v10196_v49 = vld [vmem:[%s12633_s9 + $0xf0] sm:$0xff]  ;;  %vm128_vm4 = vcmask 516096   ;;  %vm1484_vm7 = vcmask 1043456  }
  0x11   :  { %12814 = vst [vmem:[#allocation3_spill] sm:$0xff] %v10168_v43  ;;  %v10173_v44 = vld [vmem:[%s12633_s9 + $0x1f8] sm:$0xff]  ;;  %v10201_v50 = vld [vmem:[%s12633_s9 + $0x1f0] sm:$0xff]  ;;  %v10220_v53 = vld [vmem:[%s12633_s9 + $0xe8] sm:$0xff]  ;;  %vm1401_vm5 = vsmask.f32 256 }
  0x12   :  { %12815 = vst [vmem:[#allocation4_spill] sm:$0xff] %v10173_v44  ;;  %v10186_v47 = vld [vmem:[%s12633_s9 + $0x78] sm:$0xff]  ;;  %12818 = vst [vmem:[#allocation7_spill] sm:$0xff] %v10201_v50  ;;  %v10208_v51 = vld [vmem:[%s12633_s9 + $0x70] sm:$0xff]  ;;  %vm1402_vm6 = vsmask.f32 4368 }
  0x13   :  { %426 = vmatpush1.bf16.msra.mxu0 %v9043_v18  ;;  %479 = vmatpush1.bf16.msra.mxu1 %v9044_v19  ;;  %12816 = vst [vmem:[#allocation5_spill] sm:$0xff] %v10186_v47  ;;  %v10191_v48 = vld [vmem:[%s12633_s9 + $0x178] sm:$0xff]  ;;  %12819 = vst [vmem:[#allocation8_spill] sm:$0xff] %v10208_v51  ;;  %v10213_v52 = vld [vmem:[%s12633_s9 + $0x170] sm:$0xff]  ;;  %vm1485_vm8 = vsmask.f32 7938 }
  0x14   :  { %427 = vmatprep.subr.bf16.mxu0 %v9045_v20  ;;  %480 = vmatprep.subr.bf16.mxu1 %v9047_v21  ;;  %12817 = vst [vmem:[#allocation6_spill] sm:$0xff] %v10191_v48  ;;  %12820 = vst [vmem:[#allocation9_spill] sm:$0xff] %v10213_v52  ;;  %v10225_v54 = vld [vmem:[%s12633_s9 + $0x1e8] sm:$0xff]  ;;  %v9080_v57 = vld [vmem:[%s12632_s0 + $0x10] ss:$8 sps:$4 sm:$0xff]   ;;  %vm1487_vm9 = vcmask 1047556  }
  0x15   :  { %12821 = vst [vmem:[#allocation10_spill] sm:$0xff] %v10220_v53  ;;  %12822 = vst [vmem:[#allocation11_spill] sm:$0xff] %v10225_v54  ;;  %v10232_v55 = vld [vmem:[%s12633_s9 + $0x68] sm:$0xff]  ;;  %v10247_v58 = vld [vmem:[%s12633_s9 + $0xe0] sm:$0xff]  ;;  %vm1488_vm10 = vsmask.f32 7954 }
  0x16   :  { %v10237_v56 = vld [vmem:[%s12633_s9 + $0x168] sm:$0xff]  ;;  %v10252_v59 = vld [vmem:[%s12633_s9 + $0x1e0] sm:$0xff]  ;;  %v10273_v62 = vld [vmem:[%s12633_s9 + $0xd8] sm:$0xff]  ;;  %vm1499_vm11 = vcmask 1040384   ;;  %vm1501_vm12 = vcmask 1044484  }
  0x17   :  { %428 = vmatpush1.bf16.msra.mxu0 %v9049_v22  ;;  %481 = vmatpush1.bf16.msra.mxu1 %v9050_v23  ;;  %12823 = vst [vmem:[#allocation12_spill] sm:$0xff] %v10237_v56  ;;  %12824 = vst [vmem:[#allocation13_spill] sm:$0xff] %v10252_v59  ;;  %v10261_v60 = vld [vmem:[%s12633_s9 + $0x60] sm:$0xff]  ;;  %v10278_v63 = vld [vmem:[%s12633_s9 + $0x1d8] sm:$0xff]  ;;  %vm1502_vm13 = vsmask.f32 4352 }
  0x18   :  { %429 = vmatprep.subr.bf16.mxu0 %v9051_v24  ;;  %482 = vmatprep.subr.bf16.mxu1 %v9053_v25  ;;  %12825 = vst [vmem:[#allocation14_spill] sm:$0xff] %v10261_v60  ;;  %v10266_v61 = vld [vmem:[%s12633_s9 + $0x160] sm:$0xff]  ;;  %12827 = vst [vmem:[#allocation16_spill] sm:$0xff] %v10273_v62  ;;  %v10283_v0 = vld [vmem:[%s12633_s9 + $0x58] sm:$0xff] }
  0x19   :  { %12826 = vst [vmem:[#allocation15_spill] sm:$0xff] %v10266_v61  ;;  %12828 = vst [vmem:[#allocation17_spill] sm:$0xff] %v10278_v63  ;;  %v10288_v1 = vld [vmem:[%s12633_s9 + $0x158] sm:$0xff]  ;;  %v10295_v2 = vld [vmem:[%s12633_s9 + $0xd0] sm:$0xff] }
  0x1a   :  { %12829 = vst [vmem:[#allocation18_spill] sm:$0xff] %v10283_v0  ;;  %12830 = vst [vmem:[#allocation19_spill] sm:$0xff] %v10288_v1  ;;  %v10300_v3 = vld [vmem:[%s12633_s9 + $0x1d0] sm:$0xff]  ;;  %v10319_v6 = vld [vmem:[%s12633_s9 + $0xc8] sm:$0xff] }
  0x1b   :  { %430 = vmatpush1.bf16.msra.mxu0 %v9055_v26  ;;  %483 = vmatpush1.bf16.msra.mxu1 %v9056_v27  ;;  %12831 = vst [vmem:[#allocation20_spill] sm:$0xff] %v10295_v2  ;;  %12832 = vst [vmem:[#allocation21_spill] sm:$0xff] %v10300_v3  ;;  %v10307_v4 = vld [vmem:[%s12633_s9 + $0x50] sm:$0xff]  ;;  %v10324_v7 = vld [vmem:[%s12633_s9 + $0x1c8] sm:$0xff] }
  0x1c   :  { %431 = vmatprep.subr.bf16.mxu0 %v9057_v28  ;;  %484 = vmatprep.subr.bf16.mxu1 %v9059_v29  ;;  %12833 = vst [vmem:[#allocation22_spill] sm:$0xff] %v10307_v4  ;;  %v10312_v5 = vld [vmem:[%s12633_s9 + $0x150] sm:$0xff]  ;;  %12835 = vst [vmem:[#allocation24_spill] sm:$0xff] %v10319_v6  ;;  %v10331_v8 = vld [vmem:[%s12633_s9 + $0x48] sm:$0xff] }
  0x1d   :  { %12834 = vst [vmem:[#allocation23_spill] sm:$0xff] %v10312_v5  ;;  %12836 = vst [vmem:[#allocation25_spill] sm:$0xff] %v10324_v7  ;;  %v10336_v9 = vld [vmem:[%s12633_s9 + $0x148] sm:$0xff]  ;;  %v10343_v10 = vld [vmem:[%s12633_s9 + $0xc0] sm:$0xff] }
  0x1e   :  { %12837 = vst [vmem:[#allocation26_spill] sm:$0xff] %v10331_v8  ;;  %12838 = vst [vmem:[#allocation27_spill] sm:$0xff] %v10336_v9  ;;  %v10348_v11 = vld [vmem:[%s12633_s9 + $0x1c0] sm:$0xff]  ;;  %v10367_v14 = vld [vmem:[%s12633_s9 + $0xb8] sm:$0xff] }
  0x1f   :  { %432 = vmatpush1.bf16.msra.mxu0 %v9061_v30  ;;  %485 = vmatpush1.bf16.msra.mxu1 %v9062_v31  ;;  %12839 = vst [vmem:[#allocation28_spill] sm:$0xff] %v10343_v10  ;;  %12840 = vst [vmem:[#allocation29_spill] sm:$0xff] %v10348_v11  ;;  %v10355_v12 = vld [vmem:[%s12633_s9 + $0x40] sm:$0xff]  ;;  %v10372_v15 = vld [vmem:[%s12633_s9 + $0x1b8] sm:$0xff] }
  0x20   :  { %7694 = vmatprep.subr.msk.bf16.mxu0 %vm404_vm1, %v9063_v32  ;;  %7697 = vmatprep.subr.msk.bf16.mxu1 %vm404_vm1, %v9065_v33  ;;  %12841 = vst [vmem:[#allocation30_spill] sm:$0xff] %v10355_v12  ;;  %v10360_v13 = vld [vmem:[%s12633_s9 + $0x140] sm:$0xff]  ;;  %12843 = vst [vmem:[#allocation32_spill] sm:$0xff] %v10367_v14  ;;  %v10379_v16 = vld [vmem:[%s12633_s9 + $0x38] sm:$0xff] }
  0x21   :  { %12842 = vst [vmem:[#allocation31_spill] sm:$0xff] %v10360_v13  ;;  %12844 = vst [vmem:[#allocation33_spill] sm:$0xff] %v10372_v15  ;;  %v10384_v17 = vld [vmem:[%s12633_s9 + $0x138] sm:$0xff]  ;;  %v10391_v18 = vld [vmem:[%s12633_s9 + $0xb0] sm:$0xff] }
  0x22   :  { %12845 = vst [vmem:[#allocation34_spill] sm:$0xff] %v10379_v16  ;;  %12846 = vst [vmem:[#allocation35_spill] sm:$0xff] %v10384_v17  ;;  %v10396_v19 = vld [vmem:[%s12633_s9 + $0x1b0] sm:$0xff]  ;;  %v10415_v22 = vld [vmem:[%s12633_s9 + $0xa8] sm:$0xff] }
  0x23   :  { %446 = vmatpush2.bf16.msra.mxu0 %v406_v37  ;;  %499 = vmatpush2.bf16.msra.mxu1 %v412_v38  ;;  %12847 = vst [vmem:[#allocation36_spill] sm:$0xff] %v10391_v18  ;;  %12848 = vst [vmem:[#allocation37_spill] sm:$0xff] %v10396_v19  ;;  %v10403_v20 = vld [vmem:[%s12633_s9 + $0x30] sm:$0xff]  ;;  %v10420_v23 = vld [vmem:[%s12633_s9 + $0x1a8] sm:$0xff] }
  0x24   :  { %447 = vmatprep.subr.bf16.mxu0 %v9069_v39  ;;  %500 = vmatprep.subr.bf16.mxu1 %v9071_v40  ;;  %12849 = vst [vmem:[#allocation38_spill] sm:$0xff] %v10403_v20  ;;  %v10408_v21 = vld [vmem:[%s12633_s9 + $0x130] sm:$0xff]  ;;  %12851 = vst [vmem:[#allocation40_spill] sm:$0xff] %v10415_v22  ;;  %v10427_v24 = vld [vmem:[%s12633_s9 + $0x28] sm:$0xff] }
  0x25   :  { %12850 = vst [vmem:[#allocation39_spill] sm:$0xff] %v10408_v21  ;;  %12852 = vst [vmem:[#allocation41_spill] sm:$0xff] %v10420_v23  ;;  %v10432_v25 = vld [vmem:[%s12633_s9 + $0x128] sm:$0xff]  ;;  %v10439_v26 = vld [vmem:[%s12633_s9 + $0xa0] sm:$0xff] }
  0x26   :  { %12853 = vst [vmem:[#allocation42_spill] sm:$0xff] %v10427_v24  ;;  %12854 = vst [vmem:[#allocation43_spill] sm:$0xff] %v10432_v25  ;;  %v10444_v27 = vld [vmem:[%s12633_s9 + $0x1a0] sm:$0xff]  ;;  %v10463_v30 = vld [vmem:[%s12633_s9 + $0x98] sm:$0xff] }
  0x27   :  { %448 = vmatpush2.bf16.msra.mxu0 %v9073_v41  ;;  %501 = vmatpush2.bf16.msra.mxu1 %v9074_v42  ;;  %12855 = vst [vmem:[#allocation44_spill] sm:$0xff] %v10439_v26  ;;  %12856 = vst [vmem:[#allocation45_spill] sm:$0xff] %v10444_v27  ;;  %v10451_v28 = vld [vmem:[%s12633_s9 + $0x20] sm:$0xff]  ;;  %v10468_v31 = vld [vmem:[%s12633_s9 + $0x198] sm:$0xff] }
  0x28   :  { %8650 = vmatprep.subr.mxu0 %v10168_v43  ;;  %8694 = vmatprep.subr.mxu1 %v10173_v44  ;;  %12857 = vst [vmem:[#allocation46_spill] sm:$0xff] %v10451_v28  ;;  %v10456_v29 = vld [vmem:[%s12633_s9 + $0x120] sm:$0xff]  ;;  %12859 = vst [vmem:[#allocation48_spill] sm:$0xff] %v10463_v30  ;;  %v10475_v32 = vld [vmem:[%s12633_s9 + $0x18] sm:$0xff] }
  0x29   :  { %12858 = vst [vmem:[#allocation47_spill] sm:$0xff] %v10456_v29  ;;  %12860 = vst [vmem:[#allocation49_spill] sm:$0xff] %v10468_v31  ;;  %v10480_v33 = vld [vmem:[%s12633_s9 + $0x118] sm:$0xff]  ;;  %v10487_v34 = vld [vmem:[%s12633_s9 + $0x90] sm:$0xff] }
  0x2a   :  { %450 = vmatmul.mubr.bf16.vlgmr.msra.gmra.mxu0 %v9075_v45  ;;  %503 = vmatmul.mubr.bf16.vlgmr.msra.gmra.mxu1 %v9075_v45  ;;  %12861 = vst [vmem:[#allocation50_spill] sm:$0xff] %v10475_v32  ;;  %12862 = vst [vmem:[#allocation51_spill] sm:$0xff] %v10480_v33  ;;  %v10492_v35 = vld [vmem:[%s12633_s9 + $0x190] sm:$0xff]  ;;  %v10511_v38 = vld [vmem:[%s12633_s9 + $0x88] sm:$0xff] }
  0x2b   :  { %7696 = vmatprep.mubr.msk.bf16.mxu0 %vm397_vm0, %v9078_v46  ;;  %7699 = vmatprep.mubr.msk.bf16.mxu1 %vm397_vm0, %v9078_v46  ;;  %12863 = vst [vmem:[#allocation52_spill] sm:$0xff] %v10487_v34  ;;  %12864 = vst [vmem:[#allocation53_spill] sm:$0xff] %v10492_v35  ;;  %v10499_v36 = vld [vmem:[%s12633_s9 + $0x10] sm:$0xff]  ;;  %v10516_v39 = vld [vmem:[%s12633_s9 + $0x188] sm:$0xff] }
  0x2c   :  { %8651 = vmatpush3.msra.mxu0 %v10186_v47  ;;  %8695 = vmatpush3.msra.mxu1 %v10191_v48  ;;  %12865 = vst [vmem:[#allocation54_spill] sm:$0xff] %v10499_v36  ;;  %v10504_v37 = vld [vmem:[%s12633_s9 + $0x110] sm:$0xff]  ;;  %12867 = vst [vmem:[#allocation56_spill] sm:$0xff] %v10511_v38  ;;  %v10527_v40 = vld [vmem:[%s12633_s9 + $0x8] sm:$0xff] }
  0x2d   :  { %8652 = vmatprep.subr.mxu0 %v10196_v49  ;;  %8696 = vmatprep.subr.mxu1 %v10201_v50  ;;  %12866 = vst [vmem:[#allocation55_spill] sm:$0xff] %v10504_v37  ;;  %12868 = vst [vmem:[#allocation57_spill] sm:$0xff] %v10516_v39  ;;  %v10532_v41 = vld [vmem:[%s12633_s9 + $0x108] sm:$0xff]  ;;  %v10539_v42 = vld [vmem:[%s12633_s9 + $0x80] sm:$0xff] }
  0x2e   :  { %8653 = vmatpush3.msra.mxu0 %v10208_v51  ;;  %8697 = vmatpush3.msra.mxu1 %v10213_v52  ;;  %12869 = vst [vmem:[#allocation58_spill] sm:$0xff] %v10527_v40  ;;  %12870 = vst [vmem:[#allocation59_spill] sm:$0xff] %v10532_v41  ;;  %v10544_v45 = vld [vmem:[%s12633_s9 + $0x180] sm:$0xff] }
  0x2f   :  { %8654 = vmatprep.subr.mxu0 %v10220_v53  ;;  %8698 = vmatprep.subr.mxu1 %v10225_v54  ;;  %12871 = vst [vmem:[#allocation60_spill] sm:$0xff] %v10539_v42  ;;  %12872 = vst [vmem:[#allocation61_spill] sm:$0xff] %v10544_v45  ;;  %v10551_v46 = vld [vmem:[%s12633_s9] sm:$0xff] }
  0x30   :  { %8655 = vmatpush3.msra.mxu0 %v10232_v55  ;;  %8699 = vmatpush3.msra.mxu1 %v10237_v56  ;;  %12873 = vst [vmem:[#allocation62_spill] sm:$0xff] %v10551_v46  ;;  %vm10880_vm14 = vmor %vm1401_vm5, %vm1402_vm6 }
  0x31   :  { %8656 = vmatprep.subr.mxu0 %v10247_v58  ;;  %8700 = vmatprep.subr.mxu1 %v10252_v59  ;;  %vm10886_vm15 = vmand %vm1484_vm7, %vm1485_vm8 }
  0x32   :  { %460 = vmatmul.mubr.bf16.gmra.mxu0 %v9080_v57  ;;  %513 = vmatmul.mubr.bf16.gmra.mxu1 %v9080_v57  ;;  %v10556_v57 = vld [vmem:[%s12633_s9 + $0x100] sm:$0xff]  ;;  %vm10892_vm0 = vmand %vm1487_vm9, %vm1488_vm10 }
  0x33   :  { %8657 = vmatpush3.msra.mxu0 %v10261_v60  ;;  %8701 = vmatpush3.msra.mxu1 %v10266_v61  ;;  %12874 = vst [vmem:[#allocation63_spill] sm:$0xff] %v10556_v57  ;;  %vm10898_vm1 = vmand %vm1499_vm11, %vm1401_vm5 }
  0x34   :  { %8658 = vmatprep.subr.mxu0 %v10273_v62  ;;  %8702 = vmatprep.subr.mxu1 %v10278_v63 }
  0x35   :  { %8659 = vmatpush3.msra.mxu0 %v10283_v0  ;;  %8703 = vmatpush3.msra.mxu1 %v10288_v1 }
  0x36   :  { %8660 = vmatprep.subr.mxu0 %v10295_v2  ;;  %8704 = vmatprep.subr.mxu1 %v10300_v3 }
  0x37   :  { %8661 = vmatpush3.msra.mxu0 %v10307_v4  ;;  %8705 = vmatpush3.msra.mxu1 %v10312_v5 }
  0x38   :  { %8662 = vmatprep.subr.mxu0 %v10319_v6  ;;  %8706 = vmatprep.subr.mxu1 %v10324_v7 }
  0x39   :  { %8663 = vmatpush3.msra.mxu0 %v10331_v8  ;;  %8707 = vmatpush3.msra.mxu1 %v10336_v9 }
  0x3a   :  { %8664 = vmatprep.subr.mxu0 %v10343_v10  ;;  %8708 = vmatprep.subr.mxu1 %v10348_v11 }
  0x3b   :  { %8665 = vmatpush3.msra.mxu0 %v10355_v12  ;;  %8709 = vmatpush3.msra.mxu1 %v10360_v13 }
  0x3c   :  { %8666 = vmatprep.subr.mxu0 %v10367_v14  ;;  %8710 = vmatprep.subr.mxu1 %v10372_v15 }
  0x3d   :  { %8667 = vmatpush3.msra.mxu0 %v10379_v16  ;;  %8711 = vmatpush3.msra.mxu1 %v10384_v17 }
  0x3e   :  { %8668 = vmatprep.subr.mxu0 %v10391_v18  ;;  %8712 = vmatprep.subr.mxu1 %v10396_v19 }
  0x3f   :  { %8669 = vmatpush3.msra.mxu0 %v10403_v20  ;;  %8713 = vmatpush3.msra.mxu1 %v10408_v21 }
  0x40   :  { %8670 = vmatprep.subr.mxu0 %v10415_v22  ;;  %8714 = vmatprep.subr.mxu1 %v10420_v23 }
  0x41   :  { %8671 = vmatpush3.msra.mxu0 %v10427_v24  ;;  %8715 = vmatpush3.msra.mxu1 %v10432_v25 }
  0x42   :  { %8672 = vmatprep.subr.mxu0 %v10439_v26  ;;  %8716 = vmatprep.subr.mxu1 %v10444_v27 }
  0x43   :  { %8673 = vmatpush3.msra.mxu0 %v10451_v28  ;;  %8717 = vmatpush3.msra.mxu1 %v10456_v29 }
  0x44   :  { %8674 = vmatprep.subr.mxu0 %v10463_v30  ;;  %8718 = vmatprep.subr.mxu1 %v10468_v31 }
  0x45   :  { %8675 = vmatpush3.msra.mxu0 %v10475_v32  ;;  %8719 = vmatpush3.msra.mxu1 %v10480_v33 }
  0x46   :  { %8676 = vmatprep.subr.mxu0 %v10487_v34  ;;  %8720 = vmatprep.subr.mxu1 %v10492_v35 }
  0x47   :  { %8677 = vmatpush3.msra.mxu0 %v10499_v36  ;;  %8721 = vmatpush3.msra.mxu1 %v10504_v37 }
  0x48   :  { %8678 = vmatprep.subr.mxu0 %v10511_v38  ;;  %8722 = vmatprep.subr.mxu1 %v10516_v39 }
  0x49   :  { %8679 = vmatpush3.msra.mxu0 %v10527_v40  ;;  %8723 = vmatpush3.msra.mxu1 %v10532_v41 }
  0x4a   :  { %8680 = vmatprep.subr.mxu0 %v10539_v42  ;;  %8724 = vmatprep.subr.mxu1 %v10544_v45 }
  0x4b   :  { %8681 = vmatpush3.msra.mxu0 %v10551_v46  ;;  %8725 = vmatpush3.msra.mxu1 %v10556_v57 }
  0x4c   :  { %8738 = vmatprep.subr.mxu0 %v10168_v43  ;;  %8782 = vmatprep.subr.mxu1 %v10173_v44 }
  0xea   :  { %v10562_v42 = vpop.f32.mrf.mxu0  ;;  %v10564_v45 = vpop.f32.mrf.mxu1 }
  0xec   :  { %v10566_v41 = vpop.f32.mrf.mxu0  ;;  %v10568_v40 = vpop.f32.mrf.mxu1 }
  0xed   :  { %589 = vmatprep.mubr.f32.mxu0 %v10566_v41  ;;  %674 = vmatprep.mubr.f32.mxu1 %v10568_v40 }
  0xee   :  { %v10572_v39 = vpop.f32.mrf.mxu0  ;;  %v10574_v46 = vpop.f32.mrf.mxu1  ;;  %590 = vmatmul.mubr.f32.vlgmr.msra.gmra.mxu0 %v10562_v42  ;;  %675 = vmatmul.mubr.f32.vlgmr.msra.gmra.mxu1 %v10564_v45 }
  0xef   :  { %8739 = vmatpush3.msra.mxu0 %v10186_v47  ;;  %8783 = vmatpush3.msra.mxu1 %v10191_v48 }
  0xf0   :  { %8740 = vmatprep.subr.mxu0 %v10196_v49  ;;  %8784 = vmatprep.subr.mxu1 %v10201_v50  ;;  %v10582_v44 = vpop.f32.mrf.mxu0  ;;  %v10584_v43 = vpop.f32.mrf.mxu1 }
  0xf1   :  { %8741 = vmatpush3.msra.mxu0 %v10208_v51  ;;  %8785 = vmatpush3.msra.mxu1 %v10213_v52 }
  0xf2   :  { %594 = vmatprep.mubr.f32.mxu0 %v10582_v44  ;;  %679 = vmatprep.mubr.f32.mxu1 %v10584_v43  ;;  %v10590_v57 = vpop.f32.mrf.mxu0  ;;  %v10592_v47 = vpop.f32.mrf.mxu1 }
  0xf3   :  { %8742 = vmatprep.subr.mxu0 %v10220_v53  ;;  %8786 = vmatprep.subr.mxu1 %v10225_v54 }
  0xf4   :  { %595 = vmatmul.mubr.f32.gmra.mxu0 %v10572_v39  ;;  %680 = vmatmul.mubr.f32.gmra.mxu1 %v10574_v46  ;;  %v10598_v50 = vpop.f32.mrf.mxu0  ;;  %v10600_v51 = vpop.f32.mrf.mxu1 }
  0xf5   :  { %8743 = vmatpush3.msra.mxu0 %v10232_v55  ;;  %8787 = vmatpush3.msra.mxu1 %v10237_v56 }
  0xf6   :  { %8744 = vmatprep.subr.mxu0 %v10247_v58  ;;  %8788 = vmatprep.subr.mxu1 %v10252_v59  ;;  %v10608_v54 = vpop.f32.mrf.mxu0  ;;  %v10610_v53 = vpop.f32.mrf.mxu1 }
  0xf7   :  { %8745 = vmatpush3.msra.mxu0 %v10261_v60  ;;  %8789 = vmatpush3.msra.mxu1 %v10266_v61 }
  0xf8   :  { %599 = vmatprep.mubr.f32.mxu0 %v10598_v50  ;;  %684 = vmatprep.mubr.f32.mxu1 %v10600_v51  ;;  %v10620_v61 = vpop.f32.mrf.mxu0  ;;  %v10622_v60 = vpop.f32.mrf.mxu1 }
  0xf9   :  { %8746 = vmatprep.subr.mxu0 %v10273_v62  ;;  %8790 = vmatprep.subr.mxu1 %v10278_v63 }
  0xfa   :  { %600 = vmatmul.mubr.f32.gmra.mxu0 %v10590_v57  ;;  %685 = vmatmul.mubr.f32.gmra.mxu1 %v10592_v47 }
  0xfb   :  { %8747 = vmatpush3.msra.mxu0 %v10283_v0  ;;  %8791 = vmatpush3.msra.mxu1 %v10288_v1  ;;  %v696_v1 = vmul.f32 %v10566_v41, %v10566_v41 }
  0xfc   :  { %8748 = vmatprep.subr.mxu0 %v10295_v2  ;;  %8792 = vmatprep.subr.mxu1 %v10300_v3 }
  0xfd   :  { %8749 = vmatpush3.msra.mxu0 %v10307_v4  ;;  %8793 = vmatpush3.msra.mxu1 %v10312_v5  ;;  %v698_v4 = vmul.f32 %v10568_v40, %v10568_v40 }
  0xfe   :  { %604 = vmatprep.mubr.f32.mxu0 %v10620_v61  ;;  %689 = vmatprep.mubr.f32.mxu1 %v10622_v60 }
  0xff   :  { %8750 = vmatprep.subr.mxu0 %v10319_v6  ;;  %8794 = vmatprep.subr.mxu1 %v10324_v7 }
 0x100   :  { %605 = vmatmul.mubr.f32.gmra.mxu0 %v10608_v54  ;;  %690 = vmatmul.mubr.f32.gmra.mxu1 %v10610_v53 }
 0x101   :  { %8751 = vmatpush3.msra.mxu0 %v10331_v8  ;;  %8795 = vmatpush3.msra.mxu1 %v10336_v9 }
 0x102   :  { %8752 = vmatprep.subr.mxu0 %v10343_v10  ;;  %775 = vmatprep.mubr.f32.mxu0 %v696_v1  ;;  %v12875_v1 = vld [vmem:[#allocation57_spill] sm:$0xff] }
 0x103   :  { %8796 = vmatprep.subr.mxu1 %v10348_v11  ;;  %860 = vmatprep.mubr.f32.mxu1 %v698_v4  ;;  %v12876_v4 = vld [vmem:[#allocation58_spill] sm:$0xff] }
 0x104   :  { %8753 = vmatpush3.msra.mxu0 %v10355_v12  ;;  %8797 = vmatpush3.msra.mxu1 %v10360_v13 }
 0x105   :  { %8754 = vmatprep.subr.mxu0 %v10367_v14  ;;  %8798 = vmatprep.subr.mxu1 %v10372_v15 }
 0x106   :  { %8755 = vmatpush3.msra.mxu0 %v10379_v16  ;;  %8799 = vmatpush3.msra.mxu1 %v10384_v17 }
 0x107   :  { %8756 = vmatprep.subr.mxu0 %v10391_v18  ;;  %8800 = vmatprep.subr.mxu1 %v10396_v19 }
 0x108   :  { %8757 = vmatpush3.msra.mxu0 %v10403_v20  ;;  %8801 = vmatpush3.msra.mxu1 %v10408_v21 }
 0x109   :  { %8758 = vmatprep.subr.mxu0 %v10415_v22  ;;  %8802 = vmatprep.subr.mxu1 %v10420_v23 }
 0x10a   :  { %8759 = vmatpush3.msra.mxu0 %v10427_v24  ;;  %8803 = vmatpush3.msra.mxu1 %v10432_v25  ;;  %v10796_v25 = vld [vmem:[%s12634_s10 + $0x10] sm:$0xff]  ;;  %v12733_v24 = vmov 0.0  }
 0x10b   :  { %8760 = vmatprep.subr.mxu0 %v10439_v26  ;;  %8804 = vmatprep.subr.mxu1 %v10444_v27  ;;  %v10784_v27 = vld [vmem:[%s12634_s10 + $0x18] sm:$0xff]  ;;  %v10791_v26 = vld [vmem:[%s12634_s10] sm:$0xff]  ;;  %12897 = vst [vmem:[#allocation79_spill] sm:$0xff] %v10796_v25 }
 0x10c   :  { %8761 = vmatpush3.msra.mxu0 %v10451_v28  ;;  %8805 = vmatpush3.msra.mxu1 %v10456_v29  ;;  %v10772_v29 = vld [vmem:[%s12634_s10 + $0x30] sm:$0xff]  ;;  %v10779_v28 = vld [vmem:[%s12634_s10 + $0x8] sm:$0xff]  ;;  %12895 = vst [vmem:[#allocation77_spill] sm:$0xff] %v10784_v27  ;;  %12896 = vst [vmem:[#allocation78_spill] sm:$0xff] %v10791_v26 }
 0x10d   :  { %8762 = vmatprep.subr.mxu0 %v10463_v30  ;;  %8806 = vmatprep.subr.mxu1 %v10468_v31  ;;  %v12877_v30 = vld [vmem:[#allocation59_spill] sm:$0xff]  ;;  %v10767_v31 = vld [vmem:[%s12634_s10 + $0x20] sm:$0xff]  ;;  %12893 = vst [vmem:[#allocation75_spill] sm:$0xff] %v10772_v29  ;;  %12894 = vst [vmem:[#allocation76_spill] sm:$0xff] %v10779_v28 }
 0x10e   :  { %8763 = vmatpush3.msra.mxu0 %v10475_v32  ;;  %8807 = vmatpush3.msra.mxu1 %v10480_v33  ;;  %v695_v32 = vmul.f32 %v10562_v42, %v10562_v42  ;;  %v12878_v33 = vld [vmem:[#allocation60_spill] sm:$0xff]  ;;  %12892 = vst [vmem:[#allocation74_spill] sm:$0xff] %v10767_v31 }
 0x10f   :  { %8764 = vmatprep.subr.mxu0 %v10487_v34  ;;  %8808 = vmatprep.subr.mxu1 %v10492_v35  ;;  %v697_v34 = vmul.f32 %v10564_v45, %v10564_v45  ;;  %v12879_v35 = vld [vmem:[#allocation61_spill] sm:$0xff] }
 0x110   :  { %8765 = vmatpush3.msra.mxu0 %v10499_v36  ;;  %8809 = vmatpush3.msra.mxu1 %v10504_v37  ;;  %v700_v37 = vmul.f32 %v10582_v44, %v10582_v44  ;;  %v706_v36 = vmul.f32 %v10600_v51, %v10600_v51 }
 0x111   :  { %8766 = vmatprep.subr.mxu0 %v10511_v38  ;;  %8810 = vmatprep.subr.mxu1 %v12875_v1  ;;  %v702_v1 = vmul.f32 %v10584_v43, %v10584_v43  ;;  %v12880_v38 = vld [vmem:[#allocation62_spill] sm:$0xff] }
 0x112   :  { %8767 = vmatpush3.msra.mxu0 %v12876_v4  ;;  %8811 = vmatpush3.msra.mxu1 %v12877_v30  ;;  %v12881_v4 = vld [vmem:[#allocation63_spill] sm:$0xff]  ;;  %v699_v30 = vmul.f32 %v10572_v39, %v10572_v39 }
 0x113   :  { %8768 = vmatprep.subr.mxu0 %v12878_v33  ;;  %8812 = vmatprep.subr.mxu1 %v12879_v35  ;;  %v701_v33 = vmul.f32 %v10574_v46, %v10574_v46  ;;  %v704_v35 = vmul.f32 %v10598_v50, %v10598_v50 }
 0x114   :  { %8769 = vmatpush3.msra.mxu0 %v12880_v38  ;;  %8813 = vmatpush3.msra.mxu1 %v12881_v4  ;;  %v710_v38 = vmul.f32 %v10622_v60, %v10622_v60  ;;  %v10707_v4 = vld [vmem:[%s12634_s10 + $0x68] sm:$0xff] }
 0x115   :  { %776 = vmatmul.mubr.f32.vlgmr.msra.gmra.mxu0 %v695_v32  ;;  %861 = vmatmul.mubr.f32.vlgmr.msra.gmra.mxu1 %v697_v34  ;;  %v703_v32 = vmul.f32 %v10590_v57, %v10590_v57  ;;  %v705_v34 = vmul.f32 %v10592_v47, %v10592_v47  ;;  %12882 = vst [vmem:[#allocation64_spill] sm:$0xff] %v10707_v4 }
 0x116   :  { %780 = vmatprep.mubr.f32.mxu0 %v700_v37  ;;  %865 = vmatprep.mubr.f32.mxu1 %v702_v1  ;;  %v708_v37 = vmul.f32 %v10620_v61, %v10620_v61  ;;  %v707_v1 = vmul.f32 %v10608_v54, %v10608_v54 }
 0x117   :  { %940 = vmatprep.subr.mxu0 %v10707_v4 }
 0x119   :  { %781 = vmatmul.mubr.f32.gmra.mxu0 %v699_v30  ;;  %866 = vmatmul.mubr.f32.gmra.mxu1 %v701_v33  ;;  %v10712_v30 = vld [vmem:[%s12634_s10 + $0x78] sm:$0xff]  ;;  %v10719_v33 = vld [vmem:[%s12634_s10 + $0x60] sm:$0xff] }
 0x11a   :  { %785 = vmatprep.mubr.f32.mxu0 %v704_v35  ;;  %870 = vmatprep.mubr.f32.mxu1 %v706_v36  ;;  %v709_v36 = vmul.f32 %v10610_v53, %v10610_v53  ;;  %12883 = vst [vmem:[#allocation65_spill] sm:$0xff] %v10712_v30  ;;  %12884 = vst [vmem:[#allocation66_spill] sm:$0xff] %v10719_v33  ;;  %v10724_v35 = vld [vmem:[%s12634_s10 + $0x70] sm:$0xff] }
 0x11b   :  { %1011 = vmatprep.subr.mxu1 %v10712_v30  ;;  %12885 = vst [vmem:[#allocation67_spill] sm:$0xff] %v10724_v35  ;;  %941 = vmatpush1.msra.mxu0 %v10719_v33 }
 0x11c   :  { %1012 = vmatpush1.msra.mxu1 %v10724_v35 }
 0x11d   :  { %786 = vmatmul.mubr.f32.gmra.mxu0 %v703_v32  ;;  %871 = vmatmul.mubr.f32.gmra.mxu1 %v705_v34  ;;  %v10731_v32 = vld [vmem:[%s12634_s10 + $0x48] sm:$0xff]  ;;  %v10736_v34 = vld [vmem:[%s12634_s10 + $0x58] sm:$0xff] }
 0x11e   :  { %790 = vmatprep.mubr.f32.mxu0 %v708_v37  ;;  %875 = vmatprep.mubr.f32.mxu1 %v710_v38  ;;  %12886 = vst [vmem:[#allocation68_spill] sm:$0xff] %v10731_v32  ;;  %12887 = vst [vmem:[#allocation69_spill] sm:$0xff] %v10736_v34  ;;  %v10743_v37 = vld [vmem:[%s12634_s10 + $0x40] sm:$0xff]  ;;  %v10748_v38 = vld [vmem:[%s12634_s10 + $0x50] sm:$0xff] }
 0x11f   :  { %942 = vmatprep.subr.mxu0 %v10731_v32  ;;  %1013 = vmatprep.subr.mxu1 %v10736_v34  ;;  %12888 = vst [vmem:[#allocation70_spill] sm:$0xff] %v10743_v37  ;;  %12889 = vst [vmem:[#allocation71_spill] sm:$0xff] %v10748_v38 }
 0x120   :  { %943 = vmatpush1.msra.mxu0 %v10743_v37  ;;  %1014 = vmatpush1.msra.mxu1 %v10748_v38 }
 0x121   :  { %791 = vmatmul.mubr.f32.gmra.mxu0 %v707_v1  ;;  %876 = vmatmul.mubr.f32.gmra.mxu1 %v709_v36  ;;  %v10755_v1 = vld [vmem:[%s12634_s10 + $0x28] sm:$0xff]  ;;  %v10760_v36 = vld [vmem:[%s12634_s10 + $0x38] sm:$0xff] }
 0x122   :  { %12890 = vst [vmem:[#allocation72_spill] sm:$0xff] %v10755_v1  ;;  %12891 = vst [vmem:[#allocation73_spill] sm:$0xff] %v10760_v36  ;;  %944 = vmatprep.subr.mxu0 %v10755_v1  ;;  %1015 = vmatprep.subr.mxu1 %v10760_v36 }
 0x123   :  { %945 = vmatpush1.msra.mxu0 %v10767_v31  ;;  %1016 = vmatpush1.msra.mxu1 %v10772_v29 }
 0x124   :  { %946 = vmatprep.subr.mxu0 %v10779_v28  ;;  %1017 = vmatprep.subr.mxu1 %v10784_v27 }
 0x125   :  { %947 = vmatpush1.msra.mxu0 %v10791_v26  ;;  %980 = vmatprep.mubr.f32.mxu0 %v12733_v24 }
 0x126   :  { %1018 = vmatpush1.msra.mxu1 %v10796_v25  ;;  %1051 = vmatprep.mubr.f32.mxu1 %v12733_v24 }
 0x127   :  { %1085 = vmatprep.subr.mxu0 %v10707_v4  ;;  %1156 = vmatprep.subr.mxu1 %v10712_v30 }
 0x1ae   :  { %v8682_v23 = vpop.f32.mrf.mxu0  ;;  %v8726_v22 = vpop.f32.mrf.mxu1 }
 0x1b0   :  { %v8683_v21 = vpop.f32.mrf.mxu0  ;;  %v8727_v20 = vpop.f32.mrf.mxu1 }
 0x1b1   :  { %v8684_v11 = vadd.f32 %v8683_v21, %v8682_v23  ;;  %v8728_v10 = vadd.f32 %v8727_v20, %v8726_v22 }
 0x1b3   :  { %v677_v30 = vadd.f32 %v8728_v10, %v8684_v11 }
 0x1b4   :  { %v8685_v19 = vpop.f32.mrf.mxu0  ;;  %v8729_v18 = vpop.f32.mrf.mxu1 }
 0x1b6   :  { %v8686_v17 = vpop.f32.mrf.mxu0  ;;  %v8730_v16 = vpop.f32.mrf.mxu1 }
 0x1b7   :  { %v8687_v15 = vadd.f32 %v8686_v17, %v8685_v19  ;;  %v8731_v14 = vadd.f32 %v8730_v16, %v8729_v18  ;;  %v882_v16 = vsel %vm881_vm2, %v677_v30, 0.0 }
 0x1b9   :  { %v682_v8 = vadd.f32 %v8731_v14, %v8687_v15 }
 0x1ba   :  { %v8688_v13 = vpop.f32.mrf.mxu0  ;;  %v8732_v12 = vpop.f32.mrf.mxu1 }
 0x1bb   :  { %v883_v2 = vsel %vm881_vm2, %v682_v8, 0.0 }
 0x1bc   :  { %v8689_v9 = vpop.f32.mrf.mxu0  ;;  %v8733_v24 = vpop.f32.mrf.mxu1  ;;  %v884_v20 = vadd.f32 %v883_v2, %v882_v16 }
 0x1bd   :  { %v8690_v4 = vadd.f32 %v8689_v9, %v8688_v13  ;;  %v8734_v7 = vadd.f32 %v8733_v24, %v8732_v12 }
 0x1bf   :  { %v687_v6 = vadd.f32 %v8734_v7, %v8690_v4 }
 0x1c0   :  { %v8691_v5 = vpop.f32.mrf.mxu0  ;;  %v8735_v3 = vpop.f32.mrf.mxu1 }
 0x1c1   :  { %v885_v17 = vsel %vm881_vm2, %v687_v6, 0.0 }
 0x1c2   :  { %v8692_v0 = vpop.f32.mrf.mxu0  ;;  %v8736_v63 = vpop.f32.mrf.mxu1  ;;  %v886_v14 = vadd.f32 %v885_v17, %v884_v20 }
 0x1c3   :  { %v8693_v18 = vadd.f32 %v8692_v0, %v8691_v5  ;;  %v8737_v19 = vadd.f32 %v8736_v63, %v8735_v3 }
 0x1c5   :  { %v692_v21 = vadd.f32 %v8737_v19, %v8693_v18 }
 0x1c7   :  { %v887_v9 = vsel %vm881_vm2, %v692_v21, 0.0 }
 0x1c8   :  { %v888_v10 = vadd.f32 %v887_v9, %v886_v14  ;;  %v12898_v9 = vmov 0.0  }
 0x1ca   :  { %v889_v7 = vrot.slane %v888_v10, 4 }
 0x1cc   :  { %v890_v11 = vadd.f32 %v889_v7, %v888_v10 }
 0x1ce   :  { %v891_v12 = vrot.slane %v890_v11, 2 }
 0x1d0   :  { %v892_v13 = vadd.f32 %v891_v12, %v890_v11 }
 0x1d2   :  { %v893_v15 = vrot.slane %v892_v13, 1 }
 0x1d4   :  { %v894_v8 = vadd.f32 %v893_v15, %v892_v13 }
 0x1d5   :  { %v8770_v22 = vpop.f32.mrf.mxu0  ;;  %v8814_v23 = vpop.f32.mrf.mxu1 }
 0x1d6   :  { %v895_v24 = vmul.f32 0.001953125, %v894_v8 }
 0x1d7   :  { %v8771_v4 = vpop.f32.mrf.mxu0  ;;  %v8815_v30 = vpop.f32.mrf.mxu1 }
 0x1d8   :  { %7700 = vmatmul.mubr.msk.f32.vlgmr.msra.gmra.mxu0 %vm881_vm2, %v895_v24  ;;  %7701 = vmatmul.mubr.msk.f32.vlgmr.msra.gmra.mxu1 %vm881_vm2, %v895_v24  ;;  %v8772_v2 = vadd.f32 %v8771_v4, %v8770_v22  ;;  %v8816_v6 = vadd.f32 %v8815_v30, %v8814_v23 }
 0x1d9   :  { %v8773_v63 = vpop.f32.mrf.mxu0  ;;  %v8817_v0 = vpop.f32.mrf.mxu1  ;;  %1086 = vmatpush1.msra.mxu0 %v10719_v33  ;;  %1157 = vmatpush1.msra.mxu1 %v10724_v35 }
 0x1da   :  { %1087 = vmatprep.subr.mxu0 %v10731_v32  ;;  %1158 = vmatprep.subr.mxu1 %v10736_v34  ;;  %v863_v10 = vadd.f32 %v8816_v6, %v8772_v2 }
 0x1db   :  { %v8774_v3 = vpop.f32.mrf.mxu0  ;;  %v8818_v5 = vpop.f32.mrf.mxu1  ;;  %1088 = vmatpush1.msra.mxu0 %v10743_v37  ;;  %1159 = vmatpush1.msra.mxu1 %v10748_v38 }
 0x1dc   :  { %v8775_v16 = vadd.f32 %v8774_v3, %v8773_v63  ;;  %v8819_v17 = vadd.f32 %v8818_v5, %v8817_v0  ;;  %1089 = vmatprep.subr.mxu0 %v10755_v1  ;;  %1160 = vmatprep.subr.mxu1 %v10760_v36  ;;  %v896_v4 = vsel %vm881_vm2, %v863_v10, 0.0 }
 0x1dd   :  { %v8776_v18 = vpop.f32.mrf.mxu0  ;;  %v8820_v19 = vpop.f32.mrf.mxu1  ;;  %1090 = vmatpush1.msra.mxu0 %v10767_v31  ;;  %1161 = vmatpush1.msra.mxu1 %v10772_v29 }
 0x1de   :  { %v868_v20 = vadd.f32 %v8819_v17, %v8775_v16  ;;  %1091 = vmatprep.subr.mxu0 %v10779_v28  ;;  %1162 = vmatprep.subr.mxu1 %v10784_v27 }
 0x1df   :  { %v8777_v21 = vpop.f32.mrf.mxu0  ;;  %v8821_v14 = vpop.f32.mrf.mxu1  ;;  %1092 = vmatpush1.msra.mxu0 %v10791_v26  ;;  %1125 = vmatprep.mubr.f32.mxu0 %v12898_v9 }
 0x1e0   :  { %v8778_v7 = vadd.f32 %v8777_v21, %v8776_v18  ;;  %v8822_v11 = vadd.f32 %v8821_v14, %v8820_v19  ;;  %1163 = vmatpush1.msra.mxu1 %v10796_v25  ;;  %1196 = vmatprep.mubr.f32.mxu1 %v12898_v9  ;;  %v897_v15 = vsel %vm881_vm2, %v868_v20, 0.0 }
 0x1e1   :  { %v8779_v12 = vpop.f32.mrf.mxu0  ;;  %v8823_v13 = vpop.f32.mrf.mxu1  ;;  %v898_v2 = vadd.f32 %v897_v15, %v896_v4 }
 0x1e2   :  { %v873_v8 = vadd.f32 %v8822_v11, %v8778_v7  ;;  %v910_v7 = vmul.f32 %v895_v24, %v895_v24 }
 0x1e3   :  { %v8780_v22 = vpop.f32.mrf.mxu0  ;;  %v8824_v23 = vpop.f32.mrf.mxu1 }
 0x1e4   :  { %v899_v30 = vsel %vm881_vm2, %v873_v8, 0.0  ;;  %v8781_v63 = vadd.f32 %v8780_v22, %v8779_v12  ;;  %v8825_v0 = vadd.f32 %v8824_v23, %v8823_v13  ;;  %v9976_v12 = vmov 0  }
 0x1e5   :  { %v900_v5 = vadd.f32 %v899_v30, %v898_v2  ;;  %122 = vst.msk [vmem:[#allocation2 + $0x10] sm:$0xf] %vm121_vm3, %v9976_v12  ;;  %125 = vst.msk [vmem:[#allocation2 + $0x24] sm:$0xf] %vm121_vm3, %v9976_v12 }
 0x1e6   :  { %v878_v3 = vadd.f32 %v8825_v0, %v8781_v63  ;;  %126 = vst [vmem:[#allocation2 + $0x28] sm:$0x11] %v9976_v12  ;;  %127 = vst [vmem:[#allocation2 + $0x30] sm:$0x11] %v9976_v12 }
 0x1e7   :  { %129 = vst.msk [vmem:[#allocation2 + $0x38] sm:$0x1] %vm128_vm4, %v9976_v12  ;;  %136 = vst [vmem:[#allocation2 + $0x64] sm:$0x11] %v9976_v12 }
 0x1e8   :  { %v901_v6 = vsel %vm881_vm2, %v878_v3, 0.0  ;;  %132 = vst.msk [vmem:[#allocation2 + $0x4c] sm:$0xf] %vm121_vm3, %v9976_v12  ;;  %135 = vst.msk [vmem:[#allocation2 + $0x60] sm:$0xf] %vm121_vm3, %v9976_v12 }
 0x1e9   :  { %v902_v16 = vadd.f32 %v901_v6, %v900_v5  ;;  %137 = vst [vmem:[#allocation2 + $0x6c] sm:$0x11] %v9976_v12  ;;  %138 = vst.msk [vmem:[#allocation2 + $0x74] sm:$0x1] %vm128_vm4, %v9976_v12  ;;  %v9977_v5 = vmov 1966171168  }
 0x1ea   :  { %v1214_v6 = vunpack.c.l.s4 %v9977_v5  ;;  %vm1503_vm3 = vmand %vm1501_vm12, %vm1502_vm13 }
 0x1eb   :  { %v903_v17 = vrot.slane %v902_v16, 4  ;;  %vm10908_vm4 = vmor %vm10892_vm0, %vm10886_vm15 }
 0x1ec   :  { %vm10918_vm5 = vmor %vm1503_vm3, %vm10898_vm1 }
 0x1ed   :  { %v904_v18 = vadd.f32 %v903_v17, %v902_v16  ;;  %v1216_v16 = vlaneseq  ;;  %v1215_v17 = vunpack.c.0.s8 %v1214_v6 }
 0x1ef   :  { %v905_v19 = vrot.slane %v904_v18, 2 }
 0x1f1   :  { %v906_v21 = vadd.f32 %v905_v19, %v904_v18  ;;  %v1217_v18 = vshrl.u32 %v1216_v16, 7 }
 0x1f3   :  { %v907_v20 = vrot.slane %v906_v21, 1 }
 0x1f5   :  { %v908_v14 = vadd.f32 %v907_v20, %v906_v21  ;;  %v10832_v20 = vsub.s32 %v1215_v17, %v1217_v18 }
 0x1f7   :  { %v909_v9 = vmul.f32 0.001953125, %v908_v14  ;;  %12899 = vst [vmem:[#allocation80_spill] sm:$0xff] %v10832_v20 }
 0x1f9   :  { %v911_v11 = vsub.f32 %v909_v9, %v910_v7 }
 0x1fb   :  { %v912_v10 = vmax.f32 %v911_v11, 0.0 }
 0x1fd   :  { %7702 = vmatmul.mubr.msk.f32.vlgmr.msra.gmra.mxu0 %vm881_vm2, %v912_v10  ;;  %7703 = vmatmul.mubr.msk.f32.vlgmr.msra.gmra.mxu1 %vm881_vm2, %v912_v10 }
 0x298   :  { %v982_v24 = vpop.f32.mrf.mxu0  ;;  %v1053_v13 = vpop.f32.mrf.mxu1 }
 0x29a   :  { %v984_v15 = vpop.f32.mrf.mxu0  ;;  %v1055_v8 = vpop.f32.mrf.mxu1 }
 0x2bd   :  { %v1127_v22 = vpop.f32.mrf.mxu0  ;;  %v1198_v23 = vpop.f32.mrf.mxu1 }
 0x2be   :  { %v1128_v4 = vadd.f32 1e-05, %v1127_v22  ;;  %v1199_v30 = vadd.f32 1e-05, %v1198_v23  ;;  %v523_v23 = vld [vmem:[%s12635_s2] sm:$0xf] }
 0x2bf   :  { %v1129_v63 = vpop.f32.mrf.mxu0  ;;  %v1200_v0 = vpop.f32.mrf.mxu1 }
 0x2c0   :  { %9081 = vrsqrt.f32 %v1128_v4  ;;  %v1130_v2 = vadd.f32 1e-05, %v1129_v63  ;;  %v1201_v3 = vadd.f32 1e-05, %v1200_v0  ;;  %v10839_v4 = vsub.s32 0, %v1217_v18 }
 0x2c1   :  { %9083 = vrsqrt.f32 %v1199_v30  ;;  %v10842_v63 = vsub.s32 1, %v1217_v18  ;;  %v10844_v0 = vsub.s32 2, %v1217_v18 }
 0x2c2   :  { %9085 = vrsqrt.f32 %v1130_v2  ;;  %12900 = vst [vmem:[#allocation81_spill] sm:$0xff] %v10839_v4  ;;  %v10846_v2 = vsub.s32 3, %v1217_v18 }
 0x2c3   :  { %9087 = vrsqrt.f32 %v1201_v3  ;;  %12901 = vst [vmem:[#allocation82_spill] sm:$0xff] %v10842_v63  ;;  %12902 = vst [vmem:[#allocation83_spill] sm:$0xff] %v10844_v0 }
 0x2c4   :  { %12903 = vst [vmem:[#allocation84_spill] sm:$0xff] %v10846_v2 }
 0x2cd   :  { %v9082_v19 = vpop.eup %9081 }
 0x2ce   :  { %v9084_v21 = vpop.eup %9083 }
 0x2cf   :  { %v9086_v14 = vpop.eup %9085 }
 0x2d0   :  { %v9088_v9 = vpop.eup %9087  ;;  %v1211_v7 = vcombine.low %v9082_v19, %v9086_v14 }
 0x2d1   :  { %v1212_v11 = vcombine.low %v9084_v21, %v9088_v9 }
 0x2d2   :  { %v1219_v10 = vrot.slane %v1211_v7, %v10832_v20 }
 0x2d3   :  { %v1226_v12 = vrot.slane %v1212_v11, %v10832_v20 }
 0x2d5   :  { %v1227_v22 = vcombine.low %v1219_v10, %v1226_v12 }
 0x2d7   :  { %v1234_v30 = vrot.slane %v1227_v22, %v10832_v20  ;;  %v524_v22 = vld [vmem:[%s12636_s3] sm:$0xf]  ;;  %s10942_s3 = smov 0  }
 0x2d9   :  { %v1236_v3 = vmul.f32 %v1234_v30, %v523_v23 }
 0x2db   :  { %v1241_v5 = vrot.slane %v1236_v3, %v10839_v4  ;;  %v1245_v6 = vrot.slane %v1236_v3, %v10842_v63  ;;  %v1249_v16 = vrot.slane %v1236_v3, %v10844_v0  ;;  %v1253_v17 = vrot.slane %v1236_v3, %v10846_v2 }
 0x2dd   :  { %v1258_v19 = vmul.f32 %v1241_v5, %v982_v24  ;;  %v1259_v21 = vmul.f32 %v1245_v6, %v984_v15  ;;  %v1260_v14 = vmul.f32 %v1249_v16, %v1053_v13  ;;  %v1261_v9 = vmul.f32 %v1253_v17, %v1055_v8 }
 0x2de   :  { %v1292_v30 = vmul.f32 %v1241_v5, %v10562_v42  ;;  %v1293_v24 = vmul.f32 %v1245_v6, %v10566_v41  ;;  %v1294_v13 = vmul.f32 %v1249_v16, %v10564_v45  ;;  %v1295_v15 = vmul.f32 %v1253_v17, %v10568_v40 }
 0x2df   :  { %v1266_v7 = vcombine.low %v1258_v19, %v1259_v21  ;;  %v1267_v11 = vcombine.low %v1260_v14, %v1261_v9  ;;  %v1296_v8 = vmul.f32 %v1241_v5, %v10572_v39  ;;  %v1297_v19 = vmul.f32 %v1245_v6, %v10582_v44 }
 0x2e0   :  { %v1298_v21 = vmul.f32 %v1249_v16, %v10574_v46  ;;  %v1299_v14 = vmul.f32 %v1253_v17, %v10584_v43  ;;  %v1300_v9 = vmul.f32 %v1241_v5, %v10590_v57  ;;  %v1302_v42 = vmul.f32 %v1249_v16, %v10592_v47 }
 0x2e1   :  { %v1274_v10 = vrot.slane %v1266_v7, %v10832_v20  ;;  %v1281_v18 = vrot.slane %v1267_v11, %v10832_v20  ;;  %v1301_v7 = vmul.f32 %v1245_v6, %v10598_v50  ;;  %v1303_v41 = vmul.f32 %v1253_v17, %v10600_v51 }
 0x2e2   :  { %v1304_v46 = vmul.f32 %v1241_v5, %v10608_v54  ;;  %v1305_v43 = vmul.f32 %v1245_v6, %v10620_v61  ;;  %v1306_v57 = vmul.f32 %v1249_v16, %v10610_v53  ;;  %v1307_v50 = vmul.f32 %v1253_v17, %v10622_v60 }
 0x2e3   :  { %v1282_v12 = vcombine.low %v1274_v10, %v1281_v18 }
 0x2e5   :  { %v1289_v23 = vrot.slane %v1282_v12, %v10832_v20 }
 0x2e7   :  { %v1291_v3 = vsub.f32 %v524_v22, %v1289_v23 }
 0x2e9   :  { %v1312_v45 = vrot.slane %v1291_v3, %v10839_v4  ;;  %v1316_v40 = vrot.slane %v1291_v3, %v10842_v63  ;;  %v1320_v39 = vrot.slane %v1291_v3, %v10844_v0  ;;  %v1324_v44 = vrot.slane %v1291_v3, %v10846_v2 }
 0x2eb   :  { %v1329_v47 = vadd.f32 %v1312_v45, %v1292_v30  ;;  %v1330_v51 = vadd.f32 %v1316_v40, %v1293_v24  ;;  %v1331_v11 = vadd.f32 %v1320_v39, %v1294_v13  ;;  %v1332_v10 = vadd.f32 %v1324_v44, %v1295_v15 }
 0x2ec   :  { %v1333_v18 = vadd.f32 %v1312_v45, %v1296_v8  ;;  %v1334_v12 = vadd.f32 %v1316_v40, %v1297_v19  ;;  %v1335_v22 = vadd.f32 %v1320_v39, %v1298_v21  ;;  %v1336_v23 = vadd.f32 %v1324_v44, %v1299_v14 }
 0x2ed   :  { %v1337_v54 = vadd.f32 %v1312_v45, %v1300_v9  ;;  %v1338_v61 = vadd.f32 %v1316_v40, %v1301_v7  ;;  %v1339_v5 = vadd.f32 %v1320_v39, %v1302_v42  ;;  %v1340_v53 = vadd.f32 %v1324_v44, %v1303_v41 }
 0x2ee   :  { %v1341_v60 = vadd.f32 %v1312_v45, %v1304_v46  ;;  %v1342_v6 = vadd.f32 %v1316_v40, %v1305_v43  ;;  %v1343_v16 = vadd.f32 %v1320_v39, %v1306_v57  ;;  %v1344_v17 = vadd.f32 %v1324_v44, %v1307_v50 }
 0x2ef   :  { %v1345_v30 = vmax.f32 %v1329_v47, 0.0  ;;  %v1346_v24 = vmax.f32 %v1330_v51, 0.0  ;;  %v1347_v13 = vmax.f32 %v1331_v11, 0.0  ;;  %v1348_v15 = vmax.f32 %v1332_v10, 0.0 }
 0x2f0   :  { %v1349_v8 = vmax.f32 %v1333_v18, 0.0  ;;  %v1350_v3 = vmax.f32 %v1334_v12, 0.0  ;;  %v1351_v19 = vmax.f32 %v1335_v22, 0.0  ;;  %v1352_v21 = vmax.f32 %v1336_v23, 0.0 }
 0x2f1   :  { %v1353_v14 = vmax.f32 %v1337_v54, 0.0  ;;  %v1354_v9 = vmax.f32 %v1338_v61, 0.0  ;;  %v1355_v7 = vmax.f32 %v1339_v5, 0.0  ;;  %v1356_v42 = vmax.f32 %v1340_v53, 0.0 }
 0x2f2   :  { %v1357_v41 = vmax.f32 %v1341_v60, 0.0  ;;  %v1358_v2 = vmax.f32 %v1342_v6, 0.0  ;;  %v1359_v45 = vmax.f32 %v1343_v16, 0.0  ;;  %v1360_v40 = vmax.f32 %v1344_v17, 0.0 }
 0x2f3   :  { %v8633_v39 = vpack.c.bf16 %v1346_v24, %v1345_v30  ;;  %v8634_v44 = vpack.c.bf16 %v1348_v15, %v1347_v13  ;;  %v8635_v46 = vpack.c.bf16 %v1350_v3, %v1349_v8  ;;  %v8636_v43 = vpack.c.bf16 %v1352_v21, %v1351_v19 }
 0x2f4   :  { %v8637_v57 = vpack.c.bf16 %v1354_v9, %v1353_v14  ;;  %v8638_v50 = vpack.c.bf16 %v1356_v42, %v1355_v7  ;;  %v8639_v47 = vpack.c.bf16 %v1358_v2, %v1357_v41  ;;  %v8640_v51 = vpack.c.bf16 %v1360_v40, %v1359_v45 }
 0x2f5   :  { %v12904_v11 = vmov 0  ;;  %v1405_v10 = vshrl.u32 %v8633_v39, 16  ;;  %v1408_v18 = vshll.u32 %v8633_v39, 16  ;;  %v1412_v12 = vshrl.u32 %v8634_v44, 16 }
 0x2f6   :  { %v12905_v11 = vsel %vm10880_vm14, 4294967295, %v12904_v11  ;;  %v1415_v22 = vshll.u32 %v8634_v44, 16  ;;  %v1420_v23 = vshrl.u32 %v8635_v46, 16  ;;  %v1423_v54 = vshll.u32 %v8635_v46, 16 }
 0x2f7   :  { %12906 = vst [vmem:[#allocation85_spill] sm:$0xff] %v12905_v11  ;;  %v1429_v61 = vshrl.u32 %v8636_v43, 16  ;;  %v1432_v5 = vshll.u32 %v8636_v43, 16  ;;  %v1407_v2 = vrot.slane %v1405_v10, 7  ;;  %v1414_v60 = vrot.slane %v1412_v12, 7 }
 0x2f8   :  { %v1439_v6 = vshrl.u32 %v8637_v57, 16  ;;  %v1442_v16 = vshll.u32 %v8637_v57, 16  ;;  %v1422_v30 = vrot.slane %v1420_v23, 7  ;;  %v1446_v13 = vshrl.u32 %v8638_v50, 16  ;;  %v1508_v12 = vld [vmem:[#allocation2 + $0x30] sm:$0x11] }
 0x2f9   :  { %v1431_v24 = vrot.slane %v1429_v61, 7  ;;  %v1449_v15 = vshll.u32 %v8638_v50, 16  ;;  %v1410_v3 = vor.u32 %v1408_v18, %v1407_v2  ;;  %v1417_v19 = vor.u32 %v1415_v22, %v1414_v60  ;;  %v1505_v18 = vld [vmem:[#allocation2 + $0x28] sm:$0x11] }
 0x2fa   :  { %v1418_v21 = vrot.slane %v1407_v2, 4  ;;  %v1427_v14 = vrot.slane %v1414_v60, 4  ;;  %v1425_v9 = vor.u32 %v1423_v54, %v1422_v30  ;;  %v1436_v42 = vrot.slane %v1422_v30, 4  ;;  %v1519_v60 = vld [vmem:[#allocation2 + $0x64] sm:$0x11] }
 0x2fb   :  { %v1434_v7 = vor.u32 %v1432_v5, %v1431_v24  ;;  %v1437_v41 = vrot.slane %v1431_v24, 4  ;;  %v1441_v45 = vrot.slane %v1439_v6, 7  ;;  %v1448_v40 = vrot.slane %v1446_v13, 7  ;;  %v1522_v24 = vld [vmem:[#allocation2 + $0x6c] sm:$0x11] }
 0x2fc   :  { %v1454_v39 = vshrl.u32 %v8639_v47, 16  ;;  %v1457_v44 = vshll.u32 %v8639_v47, 16  ;;  %v12913_v46 = vmov 0  ;;  %v1426_v43 = vsel %vm10880_vm14, %v1418_v21, %v1425_v9 }
 0x2fd   :  { %v12914_v46 = vsel %vm10908_vm4, 4294967295, %v12913_v46  ;;  %v1435_v57 = vsel %vm10880_vm14, %v1427_v14, %v1434_v7  ;;  %v1463_v50 = vshrl.u32 %v8640_v51, 16  ;;  %v1466_v10 = vshll.u32 %v8640_v51, 16  ;;  %1497 = vst [vmem:[#allocation2 + $0x14] sm:$0xff] %v1426_v43 }
 0x2fe   :  { %12915 = vst [vmem:[#allocation86_spill] sm:$0xff] %v12914_v46  ;;  %v12916_v47 = vmov 0  ;;  %v1444_v22 = vor.u32 %v1442_v16, %v1441_v45  ;;  %v1451_v23 = vor.u32 %v1449_v15, %v1448_v40  ;;  %v1452_v54 = vrot.slane %v1441_v45, 4  ;;  %1498 = vst [vmem:[#allocation2 + $0x1c] sm:$0xff] %v1435_v57 }
 0x2ff   :  { %v12917_v47 = vsel %vm10918_vm5, 4294967295, %v12916_v47  ;;  %v1456_v61 = vrot.slane %v1454_v39, 7  ;;  %v1461_v5 = vrot.slane %v1448_v40, 4  ;;  %v1465_v53 = vrot.slane %v1463_v50, 7 }
 0x300   :  { %12918 = vst [vmem:[#allocation87_spill] sm:$0xff] %v12917_v47  ;;  %v1492_v2 = vsel %vm10908_vm4, %v1410_v3, 0  ;;  %v1495_v51 = vsel %vm10908_vm4, %v1417_v19, 0  ;;  %v1506_v16 = vsel %vm10918_vm5, %v1436_v42, %v1505_v18  ;;  %v1509_v30 = vsel %vm10918_vm5, %v1437_v41, %v1508_v12 }
 0x301   :  { %v1459_v6 = vor.u32 %v1457_v44, %v1456_v61  ;;  %v1470_v17 = vrot.slane %v1456_v61, 4  ;;  %1493 = vst [vmem:[#allocation2] sm:$0xff] %v1492_v2  ;;  %1496 = vst [vmem:[#allocation2 + $0x8] sm:$0xff] %v1495_v51  ;;  %v1468_v13 = vor.u32 %v1466_v10, %v1465_v53  ;;  %v1471_v15 = vrot.slane %v1465_v53, 4 }
 0x302   :  { %1507 = vst [vmem:[#allocation2 + $0x28] sm:$0x11] %v1506_v16  ;;  %1510 = vst [vmem:[#allocation2 + $0x30] sm:$0x11] %v1509_v30  ;;  %v1512_v8 = vsel %vm10908_vm4, %v1444_v22, 0  ;;  %v1515_v3 = vsel %vm10908_vm4, %v1451_v23, 0 }
 0x303   :  { %v1460_v19 = vsel %vm10880_vm14, %v1452_v54, %v1459_v6  ;;  %1513 = vst [vmem:[#allocation2 + $0x3c] sm:$0xff] %v1512_v8  ;;  %1516 = vst [vmem:[#allocation2 + $0x44] sm:$0xff] %v1515_v3  ;;  %v1520_v21 = vsel %vm10918_vm5, %v1470_v17, %v1519_v60  ;;  %v1469_v14 = vsel %vm10880_vm14, %v1461_v5, %v1468_v13 }
 0x304   :  { %1517 = vst [vmem:[#allocation2 + $0x50] sm:$0xff] %v1460_v19  ;;  %1521 = vst [vmem:[#allocation2 + $0x64] sm:$0x11] %v1520_v21  ;;  %v1523_v9 = vsel %vm10918_vm5, %v1471_v15, %v1522_v24 }
 0x305   :  { %1518 = vst [vmem:[#allocation2 + $0x58] sm:$0xff] %v1469_v14  ;;  %1524 = vst [vmem:[#allocation2 + $0x6c] sm:$0x11] %v1523_v9 }
 0x306 LB: > { %v1534_v42 = vld [vmem:[#allocation2 + $0x14] sm:$0xff]  ;;  %vm1697_vm6 = vsmask.f32 3328  ;;  %vm1698_vm7 = vsmask.f32 7440  ;;  %s8641_s22 = smul.u32 3456, %s9973_s3  ;;  %s9973_s3 = sphi %s10942_s3, %s1530_s3  }
 0x307   : > { %v1710_v39 = vshll.u32 %v1534_v42, 16  ;;  %v1742_v43 = vshrl.u32 %v1534_v42, 16  ;;  %v1535_v50 = vld [vmem:[#allocation2 + $0x1c] sm:$0xff]  ;;  %vm10954_vm8 = vmor %vm1697_vm6, %vm1698_vm7  ;;  %v12919_v23 = vmov 0  ;;  %vm2750_vm9 = vcmask 523264   ;;  %v12928_v48 = vld [vmem:[#allocation6_spill] sm:$0xff] }
 0x308   : > { %v1531_v7 = vld [vmem:[#allocation2] sm:$0xff]  ;;  %v1532_v44 = vld [vmem:[#allocation2 + $0x8] sm:$0xff]  ;;  %s10951_s25 = scalar_lea.vmem %s12626_s4, %s8641_s22  ;;  %v12920_v23 = vsel %vm10954_vm8, 4294967295, %v12919_v23  ;;  %v1724_v2 = vshll.u32 %v1535_v50, 16  ;;  %v1752_v17 = vshrl.u32 %v1535_v50, 16  ;;  %vm4187_vm10 = vcmask 1042432  }
 0x309   : > { %v1691_v41 = vld [vmem:[#allocation2 + $0x28] sm:$0x11]  ;;  %v1701_v45 = vshrl.u32 %v1531_v7, 16  ;;  %v1704_v40 = vshll.u32 %v1531_v7, 16  ;;  %v1712_v12 = vrot.slane %v1710_v39, 5  ;;  %v1715_v22 = vshrl.u32 %v1532_v44, 16 }
 0x30a   : > { %v1748_v57 = vshll.u32 %v1691_v41, 16  ;;  %12921 = vst [vmem:[#allocation88_spill] sm:$0xff] %v12920_v23  ;;  %v1744_v54 = vrot.slane %v1742_v43, 4  ;;  %v1692_v5 = vld [vmem:[#allocation2 + $0x30] sm:$0x11]  ;;  %v1718_v53 = vshll.u32 %v1532_v44, 16 }
 0x30b   : > { %v1703_v10 = vrot.slane %v1701_v45, 4  ;;  %v1706_v18 = vrot.slane %v1704_v40, 5  ;;  %v9089_v51 = vld [vmem:[%s10951_s25 + $0x564] ss:$16 sps:$4 sm:$0xff]   ;;  %v1717_v6 = vrot.slane %v1715_v22, 4  ;;  %v1726_v13 = vrot.slane %v1724_v2, 5 }
 0x30c   : > { %v1750_v61 = vrot.slane %v1748_v57, 5  ;;  %v9091_v16 = vld [vmem:[%s10951_s25 + $0x764] ss:$16 sps:$4 sm:$0xff]   ;;  %v1745_v30 = vor.u32 %v1744_v54, %v1712_v12  ;;  %v1720_v24 = vrot.slane %v1718_v53, 5  ;;  %2757 = vmatprep.subr.bf16.mxu0 %v9089_v51  ;;  %v9093_v15 = vld [vmem:[%s10951_s25 + $0x560] ss:$16 sps:$4 sm:$0xff]  }
 0x30d   : > { %v1707_v60 = vor.u32 %v1706_v18, %v1703_v10  ;;  %v9094_v8 = vld [vmem:[%s10951_s25 + $0x760] ss:$16 sps:$4 sm:$0xff]   ;;  %2810 = vmatprep.subr.bf16.mxu1 %v9091_v16  ;;  %v9095_v19 = vld [vmem:[%s10951_s25 + $0x544] ss:$16 sps:$4 sm:$0xff]   ;;  %v1754_v9 = vrot.slane %v1752_v17, 4  ;;  %2758 = vmatpush1.bf16.msra.mxu0 %v9093_v15  ;;  %v1758_v45 = vshll.u32 %v1692_v5, 16 }
 0x30e   : > { %v1746_v21 = vrot.slane %v1745_v30, 4  ;;  %v1721_v14 = vor.u32 %v1720_v24, %v1717_v6  ;;  %2811 = vmatpush1.bf16.msra.mxu1 %v9094_v8  ;;  %v9097_v7 = vld [vmem:[%s10951_s25 + $0x744] ss:$16 sps:$4 sm:$0xff]   ;;  %v9099_v42 = vld [vmem:[%s10951_s25 + $0x540] ss:$16 sps:$4 sm:$0xff]   ;;  %2759 = vmatprep.subr.bf16.mxu0 %v9095_v19  ;;  %vm4188_vm11 = vcmask 1046532  }
 0x30f   : > { %v1708_v3 = vrot.slane %v1707_v60, 4  ;;  %v9100_v40 = vld [vmem:[%s10951_s25 + $0x740] ss:$16 sps:$4 sm:$0xff]   ;;  %v1755_v43 = vor.u32 %v1754_v9, %v1726_v13  ;;  %2812 = vmatprep.subr.bf16.mxu1 %v9097_v7  ;;  %v9101_v57 = vld [vmem:[%s10951_s25 + $0x524] ss:$16 sps:$4 sm:$0xff]   ;;  %v1760_v10 = vrot.slane %v1758_v45, 5  ;;  %vm11441_vm12 = vmor %vm4187_vm10, %vm4188_vm11 }
 0x310   : > { %v10972_v39 = vsel %vm10954_vm8, %v1746_v21, %v1750_v61  ;;  %v1722_v44 = vrot.slane %v1721_v14, 4  ;;  %v9103_v18 = vld [vmem:[%s10951_s25 + $0x724] ss:$16 sps:$4 sm:$0xff]   ;;  %v9106_v22 = vld [vmem:[%s10951_s25 + $0x720] ss:$16 sps:$4 sm:$0xff]   ;;  %v12931_v52 = vld [vmem:[#allocation9_spill] sm:$0xff] }
 0x311   : > { %v10967_v41 = vsel %vm10954_vm8, %v1708_v3, %v1712_v12  ;;  %v9105_v12 = vld [vmem:[%s10951_s25 + $0x520] ss:$16 sps:$4 sm:$0xff]   ;;  %2760 = vmatpush1.bf16.msra.mxu0 %v9099_v42  ;;  %v9107_v54 = vld [vmem:[%s10951_s25 + $0x504] ss:$16 sps:$4 sm:$0xff]   ;;  %v1756_v5 = vrot.slane %v1755_v43, 4  ;;  %v12935_v59 = vld [vmem:[#allocation13_spill] sm:$0xff] }
 0x312   : > { %v10977_v50 = vcombine.high %v10967_v41, %v10972_v39  ;;  %2813 = vmatpush1.bf16.msra.mxu1 %v9100_v40  ;;  %v10985_v61 = vsel %vm10954_vm8, %v1722_v44, %v1726_v13  ;;  %2761 = vmatprep.subr.bf16.mxu0 %v9101_v57  ;;  %v9109_v53 = vld [vmem:[%s10951_s25 + $0x704] ss:$16 sps:$4 sm:$0xff]   ;;  %v9111_v51 = vld [vmem:[%s10951_s25 + $0x500] ss:$16 sps:$4 sm:$0xff]   ;;  %v9769_v11 = vld [vmem:[#allocation2 + $0x28] sm:$0x11] }
 0x313   : > { %2814 = vmatprep.subr.bf16.mxu1 %v9103_v18  ;;  %v10991_v2 = vsel %vm10954_vm8, %v1756_v5, %v1760_v10  ;;  %v9112_v6 = vld [vmem:[%s10951_s25 + $0x700] ss:$16 sps:$4 sm:$0xff]   ;;  %v9113_v17 = vld [vmem:[%s10951_s25 + $0x4e4] ss:$16 sps:$4 sm:$0xff]   ;;  %v12967_v1 = vld [vmem:[#allocation45_spill] sm:$0xff]  ;;  %s8484_s26 = sshll.u32 %s9973_s3, 2 }
 0x314   : > { %2789 = vmatprep.mubr.bf16.mxu0 %v10977_v50  ;;  %v10996_v60 = vcombine.high %v10985_v61, %v10991_v2  ;;  %v9115_v16 = vld [vmem:[%s10951_s25 + $0x6e4] ss:$16 sps:$4 sm:$0xff]   ;;  %v9117_v30 = vld [vmem:[%s10951_s25 + $0x4e0] ss:$16 sps:$4 sm:$0xff]   ;;  %v12969_v37 = vld [vmem:[#allocation47_spill] sm:$0xff]  ;;  %s5479_s29 = scalar_lea.vmem %s12627_s5, %s8484_s26  ;;  %s5481_s9 = scalar_lea.vmem %s12628_s6, %s8484_s26 }
 0x315   : > { %2762 = vmatpush1.bf16.msra.mxu0 %v9105_v12  ;;  %v9118_v24 = vld [vmem:[%s10951_s25 + $0x6e0] ss:$16 sps:$4 sm:$0xff]   ;;  %v9119_v13 = vld [vmem:[%s10951_s25 + $0x4c4] ss:$16 sps:$4 sm:$0xff]   ;;  %s1530_s3 = sadd.s32 1, %s9973_s3  }
 0x316   : > { %2815 = vmatpush1.bf16.msra.mxu1 %v9106_v22  ;;  %2763 = vmatprep.subr.bf16.mxu0 %v9107_v54  ;;  %v9121_v15 = vld [vmem:[%s10951_s25 + $0x6c4] ss:$16 sps:$4 sm:$0xff]   ;;  %v9123_v8 = vld [vmem:[%s10951_s25 + $0x4c0] ss:$16 sps:$4 sm:$0xff]   ;;  %p1527_p0 = scmp.ge.s32.totalorder %s1530_s3, 3  }
 0x317   : > { %2816 = vmatprep.subr.bf16.mxu1 %v9109_v53  ;;  %2842 = vmatprep.mubr.bf16.mxu1 %v10996_v60  ;;  %v9124_v3 = vld [vmem:[%s10951_s25 + $0x6c0] ss:$16 sps:$4 sm:$0xff]   ;;  %v9125_v19 = vld [vmem:[%s10951_s25 + $0x4a4] ss:$16 sps:$4 sm:$0xff]  }
 0x318   : > { %v9127_v21 = vld [vmem:[%s10951_s25 + $0x6a4] ss:$16 sps:$4 sm:$0xff]   ;;  %v9129_v14 = vld [vmem:[%s10951_s25 + $0x4a0] ss:$16 sps:$4 sm:$0xff]  }
 0x319   : > { %2764 = vmatpush1.bf16.msra.mxu0 %v9111_v51  ;;  %v9130_v9 = vld [vmem:[%s10951_s25 + $0x6a0] ss:$16 sps:$4 sm:$0xff]   ;;  %v9131_v7 = vld [vmem:[%s10951_s25 + $0x484] ss:$16 sps:$4 sm:$0xff]  }
 0x31a   : > { %2817 = vmatpush1.bf16.msra.mxu1 %v9112_v6  ;;  %2765 = vmatprep.subr.bf16.mxu0 %v9113_v17  ;;  %v9133_v42 = vld [vmem:[%s10951_s25 + $0x684] ss:$16 sps:$4 sm:$0xff]   ;;  %v9135_v45 = vld [vmem:[%s10951_s25 + $0x480] ss:$16 sps:$4 sm:$0xff]  }
 0x31b   : > { %2818 = vmatprep.subr.bf16.mxu1 %v9115_v16  ;;  %v9136_v40 = vld [vmem:[%s10951_s25 + $0x680] ss:$16 sps:$4 sm:$0xff]   ;;  %v9137_v44 = vld [vmem:[%s10951_s25 + $0x664] ss:$16 sps:$4 sm:$0xff]  }
 0x31c   : > { %v9139_v43 = vld [vmem:[%s10951_s25 + $0x864] ss:$16 sps:$4 sm:$0xff]   ;;  %v9141_v57 = vld [vmem:[%s10951_s25 + $0x660] ss:$16 sps:$4 sm:$0xff]  }
 0x31d   : > { %2766 = vmatpush1.bf16.msra.mxu0 %v9117_v30  ;;  %v9142_v10 = vld [vmem:[%s10951_s25 + $0x860] ss:$16 sps:$4 sm:$0xff]   ;;  %v9143_v18 = vld [vmem:[%s10951_s25 + $0x644] ss:$16 sps:$4 sm:$0xff]  }
 0x31e   : > { %2819 = vmatpush1.bf16.msra.mxu1 %v9118_v24  ;;  %2767 = vmatprep.subr.bf16.mxu0 %v9119_v13  ;;  %v9145_v12 = vld [vmem:[%s10951_s25 + $0x844] ss:$16 sps:$4 sm:$0xff]   ;;  %v9147_v22 = vld [vmem:[%s10951_s25 + $0x640] ss:$16 sps:$4 sm:$0xff]  }
 0x31f   : > { %2820 = vmatprep.subr.bf16.mxu1 %v9121_v15  ;;  %v9148_v54 = vld [vmem:[%s10951_s25 + $0x840] ss:$16 sps:$4 sm:$0xff]   ;;  %v9149_v5 = vld [vmem:[%s10951_s25 + $0x624] ss:$16 sps:$4 sm:$0xff]  }
 0x320   : > { %v9151_v53 = vld [vmem:[%s10951_s25 + $0x824] ss:$16 sps:$4 sm:$0xff]   ;;  %v1537_v51 = vld [vmem:[#allocation2 + $0x3c] sm:$0xff] }
 0x321   : > { %2768 = vmatpush1.bf16.msra.mxu0 %v9123_v8  ;;  %v9153_v6 = vld [vmem:[%s10951_s25 + $0x620] ss:$16 sps:$4 sm:$0xff]   ;;  %v9155_v30 = vld [vmem:[%s10951_s25 + $0x604] ss:$16 sps:$4 sm:$0xff]   ;;  %v1773_v13 = vshrl.u32 %v1537_v51, 16 }
 0x322   : > { %2821 = vmatpush1.bf16.msra.mxu1 %v9124_v3  ;;  %2769 = vmatprep.subr.bf16.mxu0 %v9125_v19  ;;  %v9154_v17 = vld [vmem:[%s10951_s25 + $0x820] ss:$16 sps:$4 sm:$0xff]   ;;  %v9157_v24 = vld [vmem:[%s10951_s25 + $0x804] ss:$16 sps:$4 sm:$0xff]   ;;  %v1776_v3 = vshll.u32 %v1537_v51, 16 }
 0x323   : > { %2822 = vmatprep.subr.bf16.mxu1 %v9127_v21  ;;  %v1540_v16 = vld [vmem:[#allocation2 + $0x50] sm:$0xff]  ;;  %v1694_v51 = vld [vmem:[#allocation2 + $0x64] sm:$0x11]  ;;  %v4173_v38 = vld [vmem:[#allocation2 + $0x44] sm:$0xee] }
 0x324   : > { %v9159_v15 = vld [vmem:[%s10951_s25 + $0x600] ss:$16 sps:$4 sm:$0xff]   ;;  %v9161_v19 = vld [vmem:[%s10951_s25 + $0x5e4] ss:$16 sps:$4 sm:$0xff]   ;;  %v1782_v21 = vshll.u32 %v1540_v16, 16 }
 0x325   : > { %2770 = vmatpush1.bf16.msra.mxu0 %v9129_v14  ;;  %v9160_v8 = vld [vmem:[%s10951_s25 + $0x800] ss:$16 sps:$4 sm:$0xff]   ;;  %v1814_v14 = vshrl.u32 %v1540_v16, 16  ;;  %v9539_v47 = vld [vmem:[%s10951_s25 + $0x9c4] ss:$16 sps:$4 sm:$0xff]  }
 0x326   : > { %2823 = vmatpush1.bf16.msra.mxu1 %v9130_v9  ;;  %2771 = vmatprep.subr.bf16.mxu0 %v9131_v7  ;;  %v9163_v9 = vld [vmem:[%s10951_s25 + $0x7e4] ss:$16 sps:$4 sm:$0xff]   ;;  %v9165_v7 = vld [vmem:[%s10951_s25 + $0x5e0] ss:$16 sps:$4 sm:$0xff]  }
 0x327   : > { %2824 = vmatprep.subr.bf16.mxu1 %v9133_v42  ;;  %v1775_v42 = vrot.slane %v1773_v13, 4  ;;  %v9171_v13 = vld [vmem:[%s10951_s25 + $0x5c0] ss:$16 sps:$4 sm:$0xff]   ;;  %v9617_v20 = vld [vmem:[%s10951_s25 + $0xa24] ss:$16 sps:$4 sm:$0xff]  }
 0x328   : > { %v9534_v23 = vld [vmem:[%s10951_s25 + $0xbe0] ss:$16 sps:$4 sm:$0xff]   ;;  %v9620_v25 = vld [vmem:[%s10951_s25 + $0xc24] ss:$16 sps:$4 sm:$0xff]  }
 0x329   : > { %2772 = vmatpush1.bf16.msra.mxu0 %v9135_v45  ;;  %v9166_v45 = vld [vmem:[%s10951_s25 + $0x7e0] ss:$16 sps:$4 sm:$0xff]  }
 0x32a   : > { %2825 = vmatpush1.bf16.msra.mxu1 %v9136_v40  ;;  %2773 = vmatprep.subr.bf16.mxu0 %v9137_v44  ;;  %v9167_v40 = vld [vmem:[%s10951_s25 + $0x5c4] ss:$16 sps:$4 sm:$0xff]   ;;  %v1778_v44 = vrot.slane %v1776_v3, 5  ;;  %v9609_v63 = vld [vmem:[%s10951_s25 + $0xa40] ss:$16 sps:$4 sm:$0xff]  }
 0x32b   : > { %2826 = vmatprep.subr.bf16.mxu1 %v9139_v43  ;;  %v9169_v43 = vld [vmem:[%s10951_s25 + $0x7c4] ss:$16 sps:$4 sm:$0xff]   ;;  %v9612_v4 = vld [vmem:[%s10951_s25 + $0xc40] ss:$16 sps:$4 sm:$0xff]  }
 0x32c   : > { %v9175_v3 = vld [vmem:[%s10951_s25 + $0x7a4] ss:$16 sps:$4 sm:$0xff]   ;;  %v9621_v31 = vld [vmem:[%s10951_s25 + $0xa00] ss:$16 sps:$4 sm:$0xff]  }
 0x32d   : > { %2774 = vmatpush2.bf16.msra.mxu0 %v9141_v57  ;;  %v11038_v57 = vrot.slane %v1782_v21, 5  ;;  %v12934_v56 = vld [vmem:[#allocation12_spill] sm:$0xff] }
 0x32e   : > { %2827 = vmatpush2.bf16.msra.mxu1 %v9142_v10  ;;  %2775 = vmatprep.subr.bf16.mxu0 %v9143_v18  ;;  %v1816_v10 = vrot.slane %v1814_v14, 4  ;;  %v1538_v18 = vld [vmem:[#allocation2 + $0x44] sm:$0xff]  ;;  %v1820_v14 = vshll.u32 %v1694_v51, 16 }
 0x32f   : > { %2828 = vmatprep.subr.bf16.mxu1 %v9145_v12  ;;  %v1541_v12 = vld [vmem:[#allocation2 + $0x58] sm:$0xff]  ;;  %v12938_v62 = vld [vmem:[#allocation16_spill] sm:$0xff] }
 0x330   : > { %v1817_v21 = vor.u32 %v1816_v10, %v11038_v57  ;;  %v1822_v10 = vrot.slane %v1820_v14, 5  ;;  %v9185_v14 = vld [vmem:[%s10951_s25 + $0x8e0] ss:$16 sps:$4 sm:$0xff]  }
 0x331   : > { %2776 = vmatpush2.bf16.msra.mxu0 %v9147_v22  ;;  %v1787_v22 = vshrl.u32 %v1538_v18, 16  ;;  %v12970_v33 = vld [vmem:[#allocation48_spill] sm:$0xff] }
 0x332   : > { %2829 = vmatpush2.bf16.msra.mxu1 %v9148_v54  ;;  %2777 = vmatprep.subr.bf16.mxu0 %v9149_v5  ;;  %v1790_v54 = vshll.u32 %v1538_v18, 16  ;;  %v1796_v5 = vshll.u32 %v1541_v12, 16 }
 0x333   : > { %2830 = vmatprep.subr.bf16.mxu1 %v9151_v53  ;;  %v1824_v53 = vshrl.u32 %v1541_v12, 16 }
 0x334   : > { %v1792_v16 = vrot.slane %v1790_v54, 5  ;;  %v9178_v54 = vld [vmem:[%s10951_s25 + $0x7a0] ss:$16 sps:$4 sm:$0xff]  }
 0x335   : > { %2778 = vmatpush2.bf16.msra.mxu0 %v9153_v6  ;;  %v1695_v6 = vld [vmem:[#allocation2 + $0x6c] sm:$0x11] }
 0x336   : > { %2831 = vmatpush2.bf16.msra.mxu1 %v9154_v17  ;;  %2779 = vmatprep.subr.bf16.mxu0 %v9155_v30  ;;  %v1789_v17 = vrot.slane %v1787_v22, 4  ;;  %v1798_v30 = vrot.slane %v1796_v5, 5  ;;  %v1830_v12 = vshll.u32 %v1695_v6, 16  ;;  %v9177_v22 = vld [vmem:[%s10951_s25 + $0x5a0] ss:$16 sps:$4 sm:$0xff]  }
 0x337   : > { %2832 = vmatprep.subr.bf16.mxu1 %v9157_v24  ;;  %v1826_v24 = vrot.slane %v1824_v53, 4  ;;  %v1536_v5 = vld [vmem:[#allocation2 + $0x24] sm:$0xf] }
 0x338   : > { %v1832_v6 = vrot.slane %v1830_v12, 5 }
 0x339   : > { %2780 = vmatpush2.bf16.msra.mxu0 %v9159_v15  ;;  %v9172_v15 = vld [vmem:[%s10951_s25 + $0x7c0] ss:$16 sps:$4 sm:$0xff]   ;;  %v1827_v18 = vor.u32 %v1826_v24, %v1798_v30  ;;  %v1738_v24 = vshll.u32 %v1536_v5, 16 }
 0x33a   : > { %2833 = vmatpush2.bf16.msra.mxu1 %v9160_v8  ;;  %2781 = vmatprep.subr.bf16.mxu0 %v9161_v19  ;;  %v9173_v8 = vld [vmem:[%s10951_s25 + $0x5a4] ss:$16 sps:$4 sm:$0xff]   ;;  %v1779_v19 = vor.u32 %v1778_v44, %v1775_v42  ;;  %v1818_v44 = vrot.slane %v1817_v21, 4  ;;  %v9190_v21 = vld [vmem:[%s10951_s25 + $0x56c] ss:$16 sps:$4 sm:$0xff]  }
 0x33b   : > { %2834 = vmatprep.subr.bf16.mxu1 %v9163_v9  ;;  %v1793_v9 = vor.u32 %v1792_v16, %v1789_v17  ;;  %v1828_v51 = vrot.slane %v1827_v18, 4 }
 0x33c   : > { %v1780_v42 = vrot.slane %v1779_v19, 4  ;;  %v11058_v19 = vcombine.low %v10985_v61, %v10991_v2  ;;  %v1823_v12 = vsel %vm10954_vm8, %v1818_v44, %v1822_v10 }
 0x33d   : > { %2782 = vmatpush2.bf16.msra.mxu0 %v9165_v7  ;;  %v9179_v7 = vld [vmem:[%s10951_s25 + $0x584] ss:$16 sps:$4 sm:$0xff]   ;;  %v1794_v53 = vrot.slane %v1793_v9, 4  ;;  %v9188_v9 = vld [vmem:[%s10951_s25 + $0x568] ss:$16 sps:$4 sm:$0xff]  }
 0x33e   : > { %2835 = vmatpush2.bf16.msra.mxu1 %v9166_v45  ;;  %2783 = vmatprep.subr.bf16.mxu0 %v9167_v40  ;;  %v1533_v45 = vld [vmem:[#allocation2 + $0x10] sm:$0xf]  ;;  %v9181_v40 = vld [vmem:[%s10951_s25 + $0x784] ss:$16 sps:$4 sm:$0xff]   ;;  %v1785_v18 = vsel %vm10954_vm8, %v1780_v42, %v11038_v57  ;;  %v1693_v57 = vld [vmem:[#allocation2 + $0x38] sm:$0x1] }
 0x33f   : > { %2836 = vmatprep.subr.bf16.mxu1 %v9169_v43  ;;  %v9183_v43 = vld [vmem:[%s10951_s25 + $0x580] ss:$16 sps:$4 sm:$0xff]   ;;  %v1729_v17 = vshrl.u32 %v1533_v45, 16  ;;  %v1732_v16 = vshll.u32 %v1533_v45, 16  ;;  %v9196_v45 = vld [vmem:[%s10951_s25 + $0x54c] ss:$16 sps:$4 sm:$0xff]  }
 0x340   : > { %v9191_v42 = vld [vmem:[%s10951_s25 + $0x8c0] ss:$16 sps:$4 sm:$0xff]  }
 0x341   : > { %2784 = vmatpush2.bf16.msra.mxu0 %v9171_v13  ;;  %v1762_v13 = vshrl.u32 %v1536_v5, 16  ;;  %v1731_v61 = vrot.slane %v1729_v17, 4  ;;  %v1734_v2 = vrot.slane %v1732_v16, 5  ;;  %v1539_v5 = vld [vmem:[#allocation2 + $0x4c] sm:$0xf] }
 0x342   : > { %2837 = vmatpush2.bf16.msra.mxu1 %v9172_v15  ;;  %2785 = vmatprep.subr.bf16.mxu0 %v9173_v8  ;;  %v9184_v15 = vld [vmem:[%s10951_s25 + $0x780] ss:$16 sps:$4 sm:$0xff]   ;;  %v9187_v8 = vld [vmem:[%s10951_s25 + $0x8e4] ss:$16 sps:$4 sm:$0xff]   ;;  %v1804_v17 = vshll.u32 %v1539_v5, 16 }
 0x343   : > { %2838 = vmatprep.subr.bf16.mxu1 %v9175_v3  ;;  %v11054_v3 = vcombine.low %v10967_v41, %v10972_v39  ;;  %v1799_v41 = vsel %vm10954_vm8, %v1794_v53, %v1798_v30  ;;  %v1833_v39 = vsel %vm10954_vm8, %v1828_v51, %v1832_v6  ;;  %v11077_v30 = vcombine.high %v1785_v18, %v1823_v12 }
 0x344   : > { %v11079_v44 = vcombine.high %v1799_v41, %v1833_v39  ;;  %v1735_v10 = vor.u32 %v1734_v2, %v1731_v61  ;;  %v1768_v51 = vshll.u32 %v1693_v57, 16  ;;  %v1801_v6 = vshrl.u32 %v1539_v5, 16  ;;  %v9200_v61 = vld [vmem:[%s10951_s25 + $0x528] ss:$16 sps:$4 sm:$0xff]  }
 0x345   : > { %2786 = vmatpush2.bf16.msra.mxu0 %v9177_v22  ;;  %v11072_v22 = vrot.slane %v1738_v24, 5 }
 0x346   : > { %2839 = vmatpush2.bf16.msra.mxu1 %v9178_v54  ;;  %2787 = vmatprep.subr.bf16.mxu0 %v9179_v7  ;;  %v1764_v54 = vrot.slane %v1762_v13, 4  ;;  %v9193_v7 = vld [vmem:[%s10951_s25 + $0x8c4] ss:$16 sps:$4 sm:$0xff]   ;;  %v1736_v2 = vrot.slane %v1735_v10, 4  ;;  %v1770_v57 = vrot.slane %v1768_v51, 5 }
 0x347   : > { %2840 = vmatprep.subr.bf16.mxu1 %v9181_v40  ;;  %v1542_v40 = vld [vmem:[#allocation2 + $0x60] sm:$0xf]  ;;  %v9199_v13 = vld [vmem:[%s10951_s25 + $0x8a4] ss:$16 sps:$4 sm:$0xff]  }
 0x348   : > { %v1765_v53 = vor.u32 %v1764_v54, %v11072_v22  ;;  %v1810_v16 = vshll.u32 %v1542_v40, 16  ;;  %v1834_v24 = vshrl.u32 %v1542_v40, 16 }
 0x349   : > { %2788 = vmatpush2.bf16.msra.mxu0 %v9183_v43  ;;  %v9194_v43 = vld [vmem:[%s10951_s25 + $0x548] ss:$16 sps:$4 sm:$0xff]  }
 0x34a   : > { %2841 = vmatpush2.bf16.msra.mxu1 %v9184_v15  ;;  %2871 = vmatprep.subr.bf16.mxu0 %v9187_v8  ;;  %v9202_v15 = vld [vmem:[%s10951_s25 + $0x52c] ss:$16 sps:$4 sm:$0xff]   ;;  %v11089_v8 = vcombine.low %v1785_v18, %v1823_v12  ;;  %v1766_v54 = vrot.slane %v1765_v53, 4  ;;  %v1812_v5 = vrot.slane %v1810_v16, 5  ;;  %v1836_v40 = vrot.slane %v1834_v24, 4 }
 0x34b   : > { %2916 = vmatprep.subr.bf16.mxu1 %v9190_v21  ;;  %v9197_v21 = vld [vmem:[%s10951_s25 + $0x8a0] ss:$16 sps:$4 sm:$0xff]   ;;  %v9208_v18 = vld [vmem:[%s10951_s25 + $0x50c] ss:$16 sps:$4 sm:$0xff]   ;;  %v1696_v12 = vld [vmem:[#allocation2 + $0x74] sm:$0x1] }
 0x34c   : > { %2790 = vmatmul.mubr.bf16.vlgmr.msra.gmra.mxu0 %v11054_v3  ;;  %v1837_v53 = vor.u32 %v1836_v40, %v1812_v5  ;;  %v1840_v51 = vshll.u32 %v1696_v12, 16  ;;  %v12757_v16 = vmov 0   ;;  %v9209_v24 = vld [vmem:[%s10951_s25 + $0x4e8] ss:$16 sps:$4 sm:$0xff]   ;;  %v9226_v40 = vld [vmem:[%s10951_s25 + $0x72c] ss:$16 sps:$4 sm:$0xff]  }
 0x34d   : > { %2843 = vmatmul.mubr.bf16.vlgmr.msra.gmra.mxu1 %v11058_v19  ;;  %2872 = vmatpush1.bf16.msra.mxu0 %v9185_v14  ;;  %v11093_v14 = vcombine.low %v1799_v41, %v1833_v39  ;;  %v1741_v41 = vsel %vm10954_vm8, %v1736_v2, %v11072_v22  ;;  %v9203_v39 = vld [vmem:[%s10951_s25 + $0x880] ss:$16 sps:$4 sm:$0xff]   ;;  %v9220_v2 = vld [vmem:[%s10951_s25 + $0x74c] ss:$16 sps:$4 sm:$0xff]   ;;  %v9221_v12 = vld [vmem:[%s10951_s25 + $0x4a8] ss:$16 sps:$4 sm:$0xff]  }
 0x34e   : > { %2917 = vmatpush1.bf16.msra.mxu1 %v9188_v9  ;;  %2873 = vmatprep.subr.bf16.mxu0 %v9193_v7  ;;  %v9205_v9 = vld [vmem:[%s10951_s25 + $0x884] ss:$16 sps:$4 sm:$0xff]   ;;  %v1803_v7 = vrot.slane %v1801_v6, 4  ;;  %v9211_v6 = vld [vmem:[%s10951_s25 + $0x4ec] ss:$16 sps:$4 sm:$0xff]  }
 0x34f   : > { %2918 = vmatprep.subr.bf16.mxu1 %v9196_v45  ;;  %2799 = vmatprep.mubr.bf16.mxu0 %v11077_v30  ;;  %v1806_v45 = vrot.slane %v1804_v17, 5  ;;  %v9214_v17 = vld [vmem:[%s10951_s25 + $0x76c] ss:$16 sps:$4 sm:$0xff]  }
 0x350   : > { %2852 = vmatprep.mubr.bf16.mxu1 %v11079_v44 }
 0x351   : > { %2874 = vmatpush1.bf16.msra.mxu0 %v9191_v42  ;;  %v9206_v42 = vld [vmem:[%s10951_s25 + $0x508] ss:$16 sps:$4 sm:$0xff]   ;;  %v1807_v10 = vor.u32 %v1806_v45, %v1803_v7  ;;  %v9223_v45 = vld [vmem:[%s10951_s25 + $0x4ac] ss:$16 sps:$4 sm:$0xff]  }
 0x352   : > { %2919 = vmatpush1.bf16.msra.mxu1 %v9194_v43  ;;  %2875 = vmatprep.subr.bf16.mxu0 %v9199_v13  ;;  %v1771_v43 = vsel %vm10954_vm8, %v1766_v54, %v1770_v57  ;;  %v9212_v13 = vld [vmem:[%s10951_s25 + $0x768] ss:$16 sps:$4 sm:$0xff]  }
 0x353   : > { %2920 = vmatprep.subr.bf16.mxu1 %v9202_v15  ;;  %v11110_v22 = vcombine.low %v1741_v41, %v1771_v43  ;;  %v1808_v15 = vrot.slane %v1807_v10, 4  ;;  %v9218_v54 = vld [vmem:[%s10951_s25 + $0x748] ss:$16 sps:$4 sm:$0xff]   ;;  %v9235_v10 = vld [vmem:[%s10951_s25 + $0x66c] ss:$16 sps:$4 sm:$0xff]  }
 0x354   : > { %2800 = vmatmul.mubr.bf16.gmra.mxu0 %v11089_v8  ;;  %v9224_v41 = vld [vmem:[%s10951_s25 + $0x728] ss:$16 sps:$4 sm:$0xff]  }
 0x355   : > { %2853 = vmatmul.mubr.bf16.gmra.mxu1 %v11093_v14  ;;  %2876 = vmatpush1.bf16.msra.mxu0 %v9197_v21  ;;  %v1838_v21 = vrot.slane %v1837_v53, 4  ;;  %v1813_v57 = vsel %vm10954_vm8, %v1808_v15, %v1812_v5  ;;  %v9229_v5 = vld [vmem:[%s10951_s25 + $0x48c] ss:$16 sps:$4 sm:$0xff]   ;;  %v9230_v43 = vld [vmem:[%s10951_s25 + $0x708] ss:$16 sps:$4 sm:$0xff]  }
 0x356   : > { %2921 = vmatpush1.bf16.msra.mxu1 %v9200_v61  ;;  %2877 = vmatprep.subr.bf16.mxu0 %v9205_v9  ;;  %v1842_v61 = vrot.slane %v1840_v51, 5  ;;  %v9217_v9 = vld [vmem:[%s10951_s25 + $0x4cc] ss:$16 sps:$4 sm:$0xff]   ;;  %v9233_v51 = vld [vmem:[%s10951_s25 + $0x668] ss:$16 sps:$4 sm:$0xff]  }
 0x357   : > { %2922 = vmatprep.subr.bf16.mxu1 %v9208_v18  ;;  %2895 = vmatprep.mubr.bf16.mxu0 %v12757_v16  ;;  %v9238_v53 = vld [vmem:[%s10951_s25 + $0x6ec] ss:$16 sps:$4 sm:$0xff]   ;;  %v9242_v15 = vld [vmem:[%s10951_s25 + $0x6c8] ss:$16 sps:$4 sm:$0xff]  }
 0x358   : > { %2948 = vmatprep.mubr.bf16.mxu1 %v10977_v50  ;;  %v9215_v50 = vld [vmem:[%s10951_s25 + $0x4c8] ss:$16 sps:$4 sm:$0xff]   ;;  %v1843_v7 = vsel %vm10954_vm8, %v1838_v21, %v1842_v61  ;;  %v9250_v21 = vld [vmem:[%s10951_s25 + $0x6ac] ss:$16 sps:$4 sm:$0xff]  }
 0x359   : > { %2878 = vmatpush1.bf16.msra.mxu0 %v9203_v39  ;;  %v11127_v18 = vcombine.low %v1813_v57, %v1843_v7  ;;  %v9232_v39 = vld [vmem:[%s10951_s25 + $0x70c] ss:$16 sps:$4 sm:$0xff]   ;;  %v9245_v61 = vld [vmem:[%s10951_s25 + $0x628] ss:$16 sps:$4 sm:$0xff]  }
 0x35a   : > { %2923 = vmatpush1.bf16.msra.mxu1 %v9206_v42  ;;  %2969 = vmatprep.subr.bf16.mxu0 %v9214_v17  ;;  %v9227_v42 = vld [vmem:[%s10951_s25 + $0x488] ss:$16 sps:$4 sm:$0xff]   ;;  %v9241_v17 = vld [vmem:[%s10951_s25 + $0x64c] ss:$16 sps:$4 sm:$0xff]  }
 0x35b   : > { %2924 = vmatprep.subr.bf16.mxu1 %v9211_v6  ;;  %v9236_v6 = vld [vmem:[%s10951_s25 + $0x6e8] ss:$16 sps:$4 sm:$0xff]   ;;  %v9259_v7 = vld [vmem:[%s10951_s25 + $0x5ec] ss:$16 sps:$4 sm:$0xff]  }
 0x35c   : > { %8013 = vmatmul.mubr.msk.bf16.vlgmr.msra.gmra.mxu0 %vm2750_vm9, %v11110_v22  ;;  %v9254_v57 = vld [vmem:[%s10951_s25 + $0x688] ss:$16 sps:$4 sm:$0xff]  }
 0x35d   : > { %2970 = vmatpush1.bf16.msra.mxu0 %v9212_v13  ;;  %2905 = vmatprep.mubr.bf16.mxu0 %v12757_v16  ;;  %v9239_v13 = vld [vmem:[%s10951_s25 + $0x648] ss:$16 sps:$4 sm:$0xff]  }
 0x35e   : > { %2925 = vmatpush1.bf16.msra.mxu1 %v9209_v24  ;;  %2971 = vmatprep.subr.bf16.mxu0 %v9220_v2  ;;  %v9244_v24 = vld [vmem:[%s10951_s25 + $0x6cc] ss:$16 sps:$4 sm:$0xff]  }
 0x35f   : > { %2926 = vmatprep.subr.bf16.mxu1 %v9217_v9  ;;  %v9248_v9 = vld [vmem:[%s10951_s25 + $0x6a8] ss:$16 sps:$4 sm:$0xff]   ;;  %v9253_v2 = vld [vmem:[%s10951_s25 + $0x60c] ss:$16 sps:$4 sm:$0xff]  }
 0x361   : > { %2972 = vmatpush1.bf16.msra.mxu0 %v9218_v54  ;;  %v9251_v54 = vld [vmem:[%s10951_s25 + $0x608] ss:$16 sps:$4 sm:$0xff]  }
 0x362   : > { %2927 = vmatpush1.bf16.msra.mxu1 %v9215_v50  ;;  %2973 = vmatprep.subr.bf16.mxu0 %v9226_v40  ;;  %v9256_v50 = vld [vmem:[%s10951_s25 + $0x68c] ss:$16 sps:$4 sm:$0xff]   ;;  %v9257_v40 = vld [vmem:[%s10951_s25 + $0x5e8] ss:$16 sps:$4 sm:$0xff]  }
 0x363   : > { %2928 = vmatprep.subr.bf16.mxu1 %v9223_v45  ;;  %v9262_v45 = vld [vmem:[%s10951_s25 + $0x86c] ss:$16 sps:$4 sm:$0xff]  }
 0x364   : > { %8014 = vmatmul.mubr.msk.bf16.gmra.mxu0 %vm2750_vm9, %v11127_v18 }
 0x365   : > { %2974 = vmatpush1.bf16.msra.mxu0 %v9224_v41  ;;  %3001 = vmatprep.mubr.bf16.mxu0 %v10996_v60  ;;  %v9247_v60 = vld [vmem:[%s10951_s25 + $0x62c] ss:$16 sps:$4 sm:$0xff]  }
 0x366   : > { %2929 = vmatpush1.bf16.msra.mxu1 %v9221_v12  ;;  %2975 = vmatprep.subr.bf16.mxu0 %v9232_v39  ;;  %v9260_v12 = vld [vmem:[%s10951_s25 + $0x868] ss:$16 sps:$4 sm:$0xff]   ;;  %v9265_v41 = vld [vmem:[%s10951_s25 + $0x5cc] ss:$16 sps:$4 sm:$0xff]  }
 0x367   : > { %2930 = vmatprep.subr.bf16.mxu1 %v9229_v5  ;;  %v9268_v5 = vld [vmem:[%s10951_s25 + $0x84c] ss:$16 sps:$4 sm:$0xff]   ;;  %v9263_v39 = vld [vmem:[%s10951_s25 + $0x5c8] ss:$16 sps:$4 sm:$0xff]  }
 0x369   : > { %2976 = vmatpush1.bf16.msra.mxu0 %v9230_v43  ;;  %v9271_v43 = vld [vmem:[%s10951_s25 + $0x5ac] ss:$16 sps:$4 sm:$0xff]  }
 0x36a   : > { %2931 = vmatpush1.bf16.msra.mxu1 %v9227_v42  ;;  %2977 = vmatprep.subr.bf16.mxu0 %v9238_v53  ;;  %v9266_v42 = vld [vmem:[%s10951_s25 + $0x848] ss:$16 sps:$4 sm:$0xff]  }
 0x36b   : > { %2932 = vmatprep.subr.bf16.mxu1 %v9235_v10  ;;  %v9274_v10 = vld [vmem:[%s10951_s25 + $0x82c] ss:$16 sps:$4 sm:$0xff]   ;;  %v9269_v53 = vld [vmem:[%s10951_s25 + $0x5a8] ss:$16 sps:$4 sm:$0xff]  }
 0x36d   : > { %2978 = vmatpush1.bf16.msra.mxu0 %v9236_v6  ;;  %v9277_v6 = vld [vmem:[%s10951_s25 + $0x58c] ss:$16 sps:$4 sm:$0xff]  }
 0x36e   : > { %2933 = vmatpush2.bf16.msra.mxu1 %v9233_v51  ;;  %2979 = vmatprep.subr.bf16.mxu0 %v9244_v24  ;;  %v9272_v51 = vld [vmem:[%s10951_s25 + $0x828] ss:$16 sps:$4 sm:$0xff]  }
 0x36f   : > { %2934 = vmatprep.subr.bf16.mxu1 %v9241_v17  ;;  %v9280_v17 = vld [vmem:[%s10951_s25 + $0x80c] ss:$16 sps:$4 sm:$0xff]   ;;  %v9275_v24 = vld [vmem:[%s10951_s25 + $0x588] ss:$16 sps:$4 sm:$0xff]  }
 0x371   : > { %2980 = vmatpush1.bf16.msra.mxu0 %v9242_v15  ;;  %v9283_v15 = vld [vmem:[%s10951_s25 + $0x7ec] ss:$16 sps:$4 sm:$0xff]  }
 0x372   : > { %2935 = vmatpush2.bf16.msra.mxu1 %v9239_v13  ;;  %2981 = vmatprep.subr.bf16.mxu0 %v9250_v21  ;;  %v9278_v13 = vld [vmem:[%s10951_s25 + $0x808] ss:$16 sps:$4 sm:$0xff]  }
 0x373   : > { %2936 = vmatprep.subr.bf16.mxu1 %v9247_v60  ;;  %v9286_v60 = vld [vmem:[%s10951_s25 + $0x8ec] ss:$16 sps:$4 sm:$0xff]   ;;  %v9281_v21 = vld [vmem:[%s10951_s25 + $0x7e8] ss:$16 sps:$4 sm:$0xff]  }
 0x375   : > { %2982 = vmatpush1.bf16.msra.mxu0 %v9248_v9  ;;  %v9289_v9 = vld [vmem:[%s10951_s25 + $0x7cc] ss:$16 sps:$4 sm:$0xff]  }
 0x376   : > { %2937 = vmatpush2.bf16.msra.mxu1 %v9245_v61  ;;  %2983 = vmatprep.subr.bf16.mxu0 %v9256_v50  ;;  %v9284_v61 = vld [vmem:[%s10951_s25 + $0x8e8] ss:$16 sps:$4 sm:$0xff]  }
 0x377   : > { %2938 = vmatprep.subr.bf16.mxu1 %v9253_v2  ;;  %v9292_v2 = vld [vmem:[%s10951_s25 + $0x8cc] ss:$16 sps:$4 sm:$0xff]   ;;  %v9287_v50 = vld [vmem:[%s10951_s25 + $0x7c8] ss:$16 sps:$4 sm:$0xff]  }
 0x379   : > { %2984 = vmatpush1.bf16.msra.mxu0 %v9254_v57  ;;  %v9295_v57 = vld [vmem:[%s10951_s25 + $0x7ac] ss:$16 sps:$4 sm:$0xff]  }
 0x37a   : > { %2939 = vmatpush2.bf16.msra.mxu1 %v9251_v54  ;;  %2985 = vmatprep.subr.bf16.mxu0 %v9262_v45  ;;  %v9290_v54 = vld [vmem:[%s10951_s25 + $0x8c8] ss:$16 sps:$4 sm:$0xff]  }
 0x37b   : > { %2940 = vmatprep.subr.bf16.mxu1 %v9259_v7  ;;  %v9298_v7 = vld [vmem:[%s10951_s25 + $0x8ac] ss:$16 sps:$4 sm:$0xff]   ;;  %v9293_v45 = vld [vmem:[%s10951_s25 + $0x7a8] ss:$16 sps:$4 sm:$0xff]  }
 0x37d   : > { %2986 = vmatpush2.bf16.msra.mxu0 %v9260_v12  ;;  %v9304_v12 = vld [vmem:[%s10951_s25 + $0x88c] ss:$16 sps:$4 sm:$0xff]  }
 0x37e   : > { %2941 = vmatpush2.bf16.msra.mxu1 %v9257_v40  ;;  %2987 = vmatprep.subr.bf16.mxu0 %v9268_v5  ;;  %v9301_v40 = vld [vmem:[%s10951_s25 + $0x78c] ss:$16 sps:$4 sm:$0xff]   ;;  %v9307_v5 = vld [vmem:[%s10951_s25 + $0xe4] ss:$16 sps:$4 sm:$0xff]  }
 0x37f   : > { %2942 = vmatprep.subr.bf16.mxu1 %v9265_v41  ;;  %v9299_v41 = vld [vmem:[%s10951_s25 + $0x788] ss:$16 sps:$4 sm:$0xff]  }
 0x381   : > { %2988 = vmatpush2.bf16.msra.mxu0 %v9266_v42  ;;  %v9305_v42 = vld [vmem:[%s10951_s25 + $0xe0] ss:$16 sps:$4 sm:$0xff]  }
 0x382   : > { %2943 = vmatpush2.bf16.msra.mxu1 %v9263_v39  ;;  %2989 = vmatprep.subr.bf16.mxu0 %v9274_v10  ;;  %v9310_v39 = vld [vmem:[%s10951_s25 + $0x2e4] ss:$16 sps:$4 sm:$0xff]  }
 0x383   : > { %2944 = vmatprep.subr.bf16.mxu1 %v9271_v43  ;;  %v9313_v43 = vld [vmem:[%s10951_s25 + $0xc4] ss:$16 sps:$4 sm:$0xff]  }
 0x384   : > { %v9316_v10 = vld [vmem:[%s10951_s25 + $0x2c4] ss:$16 sps:$4 sm:$0xff]  }
 0x385   : > { %2990 = vmatpush2.bf16.msra.mxu0 %v9272_v51  ;;  %v9314_v51 = vld [vmem:[%s10951_s25 + $0x2c0] ss:$16 sps:$4 sm:$0xff]  }
 0x386   : > { %2945 = vmatpush2.bf16.msra.mxu1 %v9269_v53  ;;  %2991 = vmatprep.subr.bf16.mxu0 %v9280_v17  ;;  %v9311_v53 = vld [vmem:[%s10951_s25 + $0xc0] ss:$16 sps:$4 sm:$0xff]   ;;  %v9322_v17 = vld [vmem:[%s10951_s25 + $0x2a4] ss:$16 sps:$4 sm:$0xff]  }
 0x387   : > { %2946 = vmatprep.subr.bf16.mxu1 %v9277_v6  ;;  %v9319_v6 = vld [vmem:[%s10951_s25 + $0xa4] ss:$16 sps:$4 sm:$0xff]  }
 0x389   : > { %2992 = vmatpush2.bf16.msra.mxu0 %v9278_v13  ;;  %v9328_v13 = vld [vmem:[%s10951_s25 + $0x284] ss:$16 sps:$4 sm:$0xff]  }
 0x38a   : > { %2947 = vmatpush2.bf16.msra.mxu1 %v9275_v24  ;;  %2993 = vmatprep.subr.bf16.mxu0 %v9283_v15  ;;  %v9320_v24 = vld [vmem:[%s10951_s25 + $0x2a0] ss:$16 sps:$4 sm:$0xff]  }
 0x38b   : > { %3030 = vmatprep.subr.bf16.mxu1 %v9286_v60  ;;  %v11209_v15 = vld [vmem:[#allocation2] sm:$0xff]  ;;  %v11211_v60 = vld [vmem:[#allocation2 + $0x14] sm:$0xff] }
 0x38d   : > { %2949 = vmatmul.mubr.bf16.vlgmr.msra.gmra.mxu1 %v11054_v3  ;;  %2994 = vmatpush2.bf16.msra.mxu0 %v9281_v21  ;;  %v9296_v3 = vld [vmem:[%s10951_s25 + $0x8a8] ss:$16 sps:$4 sm:$0xff]  }
 0x38e   : > { %3031 = vmatpush1.bf16.msra.mxu1 %v9284_v61  ;;  %2995 = vmatprep.subr.bf16.mxu0 %v9289_v9  ;;  %v11217_v21 = vld [vmem:[#allocation2 + $0x8] sm:$0xff]  ;;  %v11219_v61 = vld [vmem:[#allocation2 + $0x1c] sm:$0xff] }
 0x38f   : > { %3032 = vmatprep.subr.bf16.mxu1 %v9292_v2  ;;  %2958 = vmatprep.mubr.bf16.mxu1 %v11077_v30  ;;  %v9302_v30 = vld [vmem:[%s10951_s25 + $0x888] ss:$16 sps:$4 sm:$0xff]   ;;  %v11223_v9 = vcombine.high %v11217_v21, %v11219_v61  ;;  %v9323_v2 = vld [vmem:[%s10951_s25 + $0x80] ss:$16 sps:$4 sm:$0xff]  }
 0x391   : > { %2996 = vmatpush2.bf16.msra.mxu0 %v9287_v50  ;;  %v9326_v50 = vld [vmem:[%s10951_s25 + $0x280] ss:$16 sps:$4 sm:$0xff]  }
 0x392   : > { %3033 = vmatpush1.bf16.msra.mxu1 %v9290_v54  ;;  %2997 = vmatprep.subr.bf16.mxu0 %v9295_v57  ;;  %v9331_v54 = vld [vmem:[%s10951_s25 + $0x64] ss:$16 sps:$4 sm:$0xff]  }
 0x393   : > { %3034 = vmatprep.subr.bf16.mxu1 %v9298_v7  ;;  %v9334_v57 = vld [vmem:[%s10951_s25 + $0x264] ss:$16 sps:$4 sm:$0xff]  }
 0x394   : > { %v9337_v7 = vld [vmem:[%s10951_s25 + $0x44] ss:$16 sps:$4 sm:$0xff]  }
 0x395   : > { %2959 = vmatmul.mubr.bf16.gmra.mxu1 %v11089_v8  ;;  %2998 = vmatpush2.bf16.msra.mxu0 %v9293_v45  ;;  %v9308_v8 = vld [vmem:[%s10951_s25 + $0x2e0] ss:$16 sps:$4 sm:$0xff]   ;;  %v9340_v45 = vld [vmem:[%s10951_s25 + $0x244] ss:$16 sps:$4 sm:$0xff]  }
 0x396   : > { %3035 = vmatpush1.bf16.msra.mxu1 %v9296_v3  ;;  %2999 = vmatprep.subr.bf16.mxu0 %v9301_v40  ;;  %v9335_v3 = vld [vmem:[%s10951_s25 + $0x40] ss:$16 sps:$4 sm:$0xff]  }
 0x397   : > { %3036 = vmatprep.subr.bf16.mxu1 %v9304_v12  ;;  %3054 = vmatprep.mubr.bf16.mxu1 %v12757_v16  ;;  %v9338_v40 = vld [vmem:[%s10951_s25 + $0x240] ss:$16 sps:$4 sm:$0xff]   ;;  %v9343_v12 = vld [vmem:[%s10951_s25 + $0x24] ss:$16 sps:$4 sm:$0xff]  }
 0x399   : > { %3000 = vmatpush2.bf16.msra.mxu0 %v9299_v41  ;;  %v9346_v41 = vld [vmem:[%s10951_s25 + $0x224] ss:$16 sps:$4 sm:$0xff]  }
 0x39a   : > { %3037 = vmatpush1.bf16.msra.mxu1 %v9302_v30  ;;  %3851 = vmatprep.subr.bf16.mxu0 %v9307_v5  ;;  %v9341_v30 = vld [vmem:[%s10951_s25 + $0x20] ss:$16 sps:$4 sm:$0xff]  }
 0x39b   : > { %3904 = vmatprep.subr.bf16.mxu1 %v9310_v39  ;;  %v9344_v5 = vld [vmem:[%s10951_s25 + $0x220] ss:$16 sps:$4 sm:$0xff]   ;;  %v9349_v39 = vld [vmem:[%s10951_s25 + $0x4] ss:$16 sps:$4 sm:$0xff]  }
 0x39c   : > { %3002 = vmatmul.mubr.bf16.vlgmr.msra.gmra.mxu0 %v11058_v19  ;;  %v9317_v19 = vld [vmem:[%s10951_s25 + $0xa0] ss:$16 sps:$4 sm:$0xff]  }
 0x39d   : > { %8015 = vmatmul.mubr.msk.bf16.vlgmr.msra.gmra.mxu1 %vm2750_vm9, %v11110_v22  ;;  %3852 = vmatpush1.bf16.msra.mxu0 %v9305_v42  ;;  %v9325_v22 = vld [vmem:[%s10951_s25 + $0x84] ss:$16 sps:$4 sm:$0xff]  }
 0x39e   : > { %3905 = vmatpush1.bf16.msra.mxu1 %v9308_v8  ;;  %3853 = vmatprep.subr.bf16.mxu0 %v9313_v43  ;;  %v9352_v42 = vld [vmem:[%s10951_s25 + $0x204] ss:$16 sps:$4 sm:$0xff]   ;;  %v9347_v8 = vld [vmem:[%s10951_s25] ss:$16 sps:$4 sm:$0xff]  }
 0x39f   : > { %3906 = vmatprep.subr.bf16.mxu1 %v9316_v10  ;;  %3011 = vmatprep.mubr.bf16.mxu0 %v11079_v44  ;;  %v11215_v44 = vcombine.high %v11209_v15, %v11211_v60  ;;  %v9350_v43 = vld [vmem:[%s10951_s25 + $0x200] ss:$16 sps:$4 sm:$0xff]   ;;  %v9355_v10 = vld [vmem:[%s10951_s25 + $0x1e4] ss:$16 sps:$4 sm:$0xff]  }
 0x3a0   : > { %3064 = vmatprep.mubr.bf16.mxu1 %v12757_v16 }
 0x3a1   : > { %3854 = vmatpush1.bf16.msra.mxu0 %v9311_v53  ;;  %v9358_v53 = vld [vmem:[%s10951_s25 + $0x3e4] ss:$16 sps:$4 sm:$0xff]  }
 0x3a2   : > { %3907 = vmatpush1.bf16.msra.mxu1 %v9314_v51  ;;  %3855 = vmatprep.subr.bf16.mxu0 %v9319_v6  ;;  %v9353_v51 = vld [vmem:[%s10951_s25 + $0x1e0] ss:$16 sps:$4 sm:$0xff]  }
 0x3a3   : > { %3908 = vmatprep.subr.bf16.mxu1 %v9322_v17  ;;  %v9356_v6 = vld [vmem:[%s10951_s25 + $0x3e0] ss:$16 sps:$4 sm:$0xff]   ;;  %v9361_v17 = vld [vmem:[%s10951_s25 + $0x1c4] ss:$16 sps:$4 sm:$0xff]  }
 0x3a4   : > { %3012 = vmatmul.mubr.bf16.gmra.mxu0 %v11093_v14  ;;  %v9329_v14 = vld [vmem:[%s10951_s25 + $0x60] ss:$16 sps:$4 sm:$0xff]  }
 0x3a5   : > { %8016 = vmatmul.mubr.msk.bf16.gmra.mxu1 %vm2750_vm9, %v11127_v18  ;;  %3856 = vmatpush1.bf16.msra.mxu0 %v9317_v19  ;;  %v9332_v18 = vld [vmem:[%s10951_s25 + $0x260] ss:$16 sps:$4 sm:$0xff]   ;;  %v9364_v19 = vld [vmem:[%s10951_s25 + $0x3c4] ss:$16 sps:$4 sm:$0xff]  }
 0x3a6   : > { %3909 = vmatpush1.bf16.msra.mxu1 %v9320_v24  ;;  %3857 = vmatprep.subr.bf16.mxu0 %v9325_v22  ;;  %v9359_v24 = vld [vmem:[%s10951_s25 + $0x1c0] ss:$16 sps:$4 sm:$0xff]  }
 0x3a7   : > { %3910 = vmatprep.subr.bf16.mxu1 %v9328_v13  ;;  %3883 = vmatprep.mubr.bf16.mxu0 %v11215_v44  ;;  %v9362_v22 = vld [vmem:[%s10951_s25 + $0x3c0] ss:$16 sps:$4 sm:$0xff]   ;;  %v9367_v13 = vld [vmem:[%s10951_s25 + $0x1a4] ss:$16 sps:$4 sm:$0xff]  }
 0x3a8   : > { %3936 = vmatprep.mubr.bf16.mxu1 %v11223_v9 }
 0x3a9   : > { %3858 = vmatpush1.bf16.msra.mxu0 %v9323_v2  ;;  %v9370_v2 = vld [vmem:[%s10951_s25 + $0x3a4] ss:$16 sps:$4 sm:$0xff]  }
 0x3aa   : > { %3911 = vmatpush1.bf16.msra.mxu1 %v9326_v50  ;;  %3859 = vmatprep.subr.bf16.mxu0 %v9331_v54  ;;  %v9365_v50 = vld [vmem:[%s10951_s25 + $0x1a0] ss:$16 sps:$4 sm:$0xff]  }
 0x3ab   : > { %3912 = vmatprep.subr.bf16.mxu1 %v9334_v57  ;;  %v9368_v54 = vld [vmem:[%s10951_s25 + $0x3a0] ss:$16 sps:$4 sm:$0xff]   ;;  %v9373_v57 = vld [vmem:[%s10951_s25 + $0x184] ss:$16 sps:$4 sm:$0xff]  }
 0x3ad   : > { %3860 = vmatpush1.bf16.msra.mxu0 %v9329_v14  ;;  %v9376_v14 = vld [vmem:[%s10951_s25 + $0x384] ss:$16 sps:$4 sm:$0xff]  }
 0x3ae   : > { %3913 = vmatpush1.bf16.msra.mxu1 %v9332_v18  ;;  %3861 = vmatprep.subr.bf16.mxu0 %v9337_v7  ;;  %v9371_v18 = vld [vmem:[%s10951_s25 + $0x180] ss:$16 sps:$4 sm:$0xff]  }
 0x3af   : > { %3914 = vmatprep.subr.bf16.mxu1 %v9340_v45  ;;  %v9374_v7 = vld [vmem:[%s10951_s25 + $0x380] ss:$16 sps:$4 sm:$0xff]   ;;  %v9379_v45 = vld [vmem:[%s10951_s25 + $0x164] ss:$16 sps:$4 sm:$0xff]  }
 0x3b1   : > { %3862 = vmatpush1.bf16.msra.mxu0 %v9335_v3  ;;  %v9382_v3 = vld [vmem:[%s10951_s25 + $0x364] ss:$16 sps:$4 sm:$0xff]  }
 0x3b2   : > { %3915 = vmatpush1.bf16.msra.mxu1 %v9338_v40  ;;  %3863 = vmatprep.subr.bf16.mxu0 %v9343_v12  ;;  %v9377_v40 = vld [vmem:[%s10951_s25 + $0x160] ss:$16 sps:$4 sm:$0xff]  }
 0x3b3   : > { %3916 = vmatprep.subr.bf16.mxu1 %v9346_v41  ;;  %v9380_v12 = vld [vmem:[%s10951_s25 + $0x360] ss:$16 sps:$4 sm:$0xff]   ;;  %v9385_v41 = vld [vmem:[%s10951_s25 + $0x144] ss:$16 sps:$4 sm:$0xff]  }
 0x3b5   : > { %3864 = vmatpush1.bf16.msra.mxu0 %v9341_v30  ;;  %v9388_v30 = vld [vmem:[%s10951_s25 + $0x344] ss:$16 sps:$4 sm:$0xff]  }
 0x3b6   : > { %3917 = vmatpush1.bf16.msra.mxu1 %v9344_v5  ;;  %3865 = vmatprep.subr.bf16.mxu0 %v9349_v39  ;;  %v9383_v5 = vld [vmem:[%s10951_s25 + $0x140] ss:$16 sps:$4 sm:$0xff]  }
 0x3b7   : > { %3918 = vmatprep.subr.bf16.mxu1 %v9352_v42  ;;  %v9386_v39 = vld [vmem:[%s10951_s25 + $0x340] ss:$16 sps:$4 sm:$0xff]   ;;  %v9391_v42 = vld [vmem:[%s10951_s25 + $0x124] ss:$16 sps:$4 sm:$0xff]  }
 0x3b9   : > { %3866 = vmatpush1.bf16.msra.mxu0 %v9347_v8  ;;  %v9394_v8 = vld [vmem:[%s10951_s25 + $0x324] ss:$16 sps:$4 sm:$0xff]  }
 0x3ba   : > { %3919 = vmatpush1.bf16.msra.mxu1 %v9350_v43  ;;  %3867 = vmatprep.subr.bf16.mxu0 %v9355_v10  ;;  %v9389_v43 = vld [vmem:[%s10951_s25 + $0x120] ss:$16 sps:$4 sm:$0xff]  }
 0x3bb   : > { %3920 = vmatprep.subr.bf16.mxu1 %v9358_v53  ;;  %v9392_v10 = vld [vmem:[%s10951_s25 + $0x320] ss:$16 sps:$4 sm:$0xff]   ;;  %v9397_v53 = vld [vmem:[%s10951_s25 + $0x104] ss:$16 sps:$4 sm:$0xff]  }
 0x3bd   : > { %3868 = vmatpush2.bf16.msra.mxu0 %v9353_v51  ;;  %v9400_v51 = vld [vmem:[%s10951_s25 + $0x304] ss:$16 sps:$4 sm:$0xff]  }
 0x3be   : > { %3921 = vmatpush2.bf16.msra.mxu1 %v9356_v6  ;;  %3869 = vmatprep.subr.bf16.mxu0 %v9361_v17  ;;  %v9395_v6 = vld [vmem:[%s10951_s25 + $0x100] ss:$16 sps:$4 sm:$0xff]  }
 0x3bf   : > { %3922 = vmatprep.subr.bf16.mxu1 %v9364_v19  ;;  %v9398_v17 = vld [vmem:[%s10951_s25 + $0x300] ss:$16 sps:$4 sm:$0xff]   ;;  %v9407_v19 = vld [vmem:[%s10951_s25 + $0x464] ss:$16 sps:$4 sm:$0xff]  }
 0x3c1   : > { %3870 = vmatpush2.bf16.msra.mxu0 %v9359_v24  ;;  %v9410_v24 = vld [vmem:[%s10951_s25 + $0xec] ss:$16 sps:$4 sm:$0xff]  }
 0x3c2   : > { %3923 = vmatpush2.bf16.msra.mxu1 %v9362_v22  ;;  %3871 = vmatprep.subr.bf16.mxu0 %v9367_v13  ;;  %v11284_v22 = vcombine.low %v11209_v15, %v11211_v60  ;;  %v11288_v13 = vcombine.low %v11217_v21, %v11219_v61  ;;  %v9761_v60 = vld [vmem:[#allocation2 + $0x44] sm:$0xff]  ;;  %v11299_v21 = vld [vmem:[#allocation2 + $0x58] sm:$0xff] }
 0x3c3   : > { %3924 = vmatprep.subr.bf16.mxu1 %v9370_v2  ;;  %v9405_v2 = vld [vmem:[%s10951_s25 + $0x460] ss:$16 sps:$4 sm:$0xff]   ;;  %v11302_v61 = vcombine.high %v9761_v60, %v11299_v21 }
 0x3c5   : > { %3872 = vmatpush2.bf16.msra.mxu0 %v9365_v50  ;;  %v9408_v50 = vld [vmem:[%s10951_s25 + $0xe8] ss:$16 sps:$4 sm:$0xff]  }
 0x3c6   : > { %3925 = vmatpush2.bf16.msra.mxu1 %v9368_v54  ;;  %3873 = vmatprep.subr.bf16.mxu0 %v9373_v57  ;;  %v9413_v54 = vld [vmem:[%s10951_s25 + $0x444] ss:$16 sps:$4 sm:$0xff]   ;;  %v9416_v57 = vld [vmem:[%s10951_s25 + $0xcc] ss:$16 sps:$4 sm:$0xff]  }
 0x3c7   : > { %3926 = vmatprep.subr.bf16.mxu1 %v9376_v14  ;;  %v9759_v14 = vld [vmem:[#allocation2 + $0x3c] sm:$0xff] }
 0x3c9   : > { %3874 = vmatpush2.bf16.msra.mxu0 %v9371_v18  ;;  %v11294_v18 = vld [vmem:[#allocation2 + $0x50] sm:$0xff] }
 0x3ca   : > { %3927 = vmatpush2.bf16.msra.mxu1 %v9374_v7  ;;  %3875 = vmatprep.subr.bf16.mxu0 %v9379_v45  ;;  %v11297_v15 = vcombine.high %v9759_v14, %v11294_v18  ;;  %v9411_v7 = vld [vmem:[%s10951_s25 + $0x440] ss:$16 sps:$4 sm:$0xff]   ;;  %v9414_v45 = vld [vmem:[%s10951_s25 + $0xc8] ss:$16 sps:$4 sm:$0xff]  }
 0x3cb   : > { %3928 = vmatprep.subr.bf16.mxu1 %v9382_v3  ;;  %v9421_v3 = vld [vmem:[%s10951_s25 + $0x424] ss:$16 sps:$4 sm:$0xff]  }
 0x3cd   : > { %3876 = vmatpush2.bf16.msra.mxu0 %v9377_v40  ;;  %v9424_v40 = vld [vmem:[%s10951_s25 + $0xac] ss:$16 sps:$4 sm:$0xff]  }
 0x3ce   : > { %3929 = vmatpush2.bf16.msra.mxu1 %v9380_v12  ;;  %3877 = vmatprep.subr.bf16.mxu0 %v9385_v41  ;;  %v11313_v12 = vcombine.low %v9759_v14, %v11294_v18  ;;  %v11316_v41 = vcombine.low %v9761_v60, %v11299_v21  ;;  %v9452_v14 = vld [vmem:[%s10951_s25 + $0x2ac] ss:$16 sps:$4 sm:$0xff]  }
 0x3cf   : > { %3930 = vmatprep.subr.bf16.mxu1 %v9388_v30  ;;  %v9419_v30 = vld [vmem:[%s10951_s25 + $0x420] ss:$16 sps:$4 sm:$0xff]   ;;  %v9765_v60 = vld [vmem:[#allocation2 + $0x4c] sm:$0xf] }
 0x3d1   : > { %3878 = vmatpush2.bf16.msra.mxu0 %v9383_v5  ;;  %v9422_v5 = vld [vmem:[%s10951_s25 + $0xa8] ss:$16 sps:$4 sm:$0xff]  }
 0x3d2   : > { %3931 = vmatpush2.bf16.msra.mxu1 %v9386_v39  ;;  %3879 = vmatprep.subr.bf16.mxu0 %v9391_v42  ;;  %v9429_v39 = vld [vmem:[%s10951_s25 + $0x404] ss:$16 sps:$4 sm:$0xff]   ;;  %v9432_v42 = vld [vmem:[%s10951_s25 + $0x8c] ss:$16 sps:$4 sm:$0xff]  }
 0x3d3   : > { %3932 = vmatprep.subr.bf16.mxu1 %v9394_v8  ;;  %v9427_v8 = vld [vmem:[%s10951_s25 + $0x400] ss:$16 sps:$4 sm:$0xff]  }
 0x3d5   : > { %3880 = vmatpush2.bf16.msra.mxu0 %v9389_v43  ;;  %v9430_v43 = vld [vmem:[%s10951_s25 + $0x88] ss:$16 sps:$4 sm:$0xff]  }
 0x3d6   : > { %3933 = vmatpush2.bf16.msra.mxu1 %v9392_v10  ;;  %3881 = vmatprep.subr.bf16.mxu0 %v9397_v53  ;;  %v9436_v10 = vld [vmem:[%s10951_s25 + $0x6c] ss:$16 sps:$4 sm:$0xff]  }
 0x3d7   : > { %3934 = vmatprep.subr.bf16.mxu1 %v9400_v51  ;;  %v9439_v53 = vld [vmem:[%s10951_s25 + $0x2ec] ss:$16 sps:$4 sm:$0xff]   ;;  %v9763_v51 = vld [vmem:[#allocation2 + $0x10] sm:$0xf] }
 0x3d9   : > { %3882 = vmatpush2.bf16.msra.mxu0 %v9395_v6  ;;  %v11330_v6 = vld [vmem:[#allocation2 + $0x24] sm:$0xf] }
 0x3da   : > { %3935 = vmatpush2.bf16.msra.mxu1 %v9398_v17  ;;  %3965 = vmatprep.subr.bf16.mxu0 %v9407_v19  ;;  %v11333_v17 = vcombine.low %v9763_v51, %v11330_v6  ;;  %v9434_v19 = vld [vmem:[%s10951_s25 + $0x68] ss:$16 sps:$4 sm:$0xff]   ;;  %v9467_v51 = vld [vmem:[%s10951_s25 + $0x1cc] ss:$16 sps:$4 sm:$0xff]  }
 0x3db   : > { %4010 = vmatprep.subr.bf16.mxu1 %v9410_v24  ;;  %v9437_v24 = vld [vmem:[%s10951_s25 + $0x2e8] ss:$16 sps:$4 sm:$0xff]  }
 0x3dc   : > { %3884 = vmatmul.mubr.bf16.vlgmr.msra.gmra.mxu0 %v11284_v22 }
 0x3dd   : > { %3937 = vmatmul.mubr.bf16.vlgmr.msra.gmra.mxu1 %v11288_v13  ;;  %3966 = vmatpush1.bf16.msra.mxu0 %v9405_v2  ;;  %v9442_v2 = vld [vmem:[%s10951_s25 + $0x4c] ss:$16 sps:$4 sm:$0xff]  }
 0x3de   : > { %4011 = vmatpush1.bf16.msra.mxu1 %v9408_v50  ;;  %3967 = vmatprep.subr.bf16.mxu0 %v9413_v54  ;;  %v9445_v50 = vld [vmem:[%s10951_s25 + $0x2cc] ss:$16 sps:$4 sm:$0xff]   ;;  %v9443_v54 = vld [vmem:[%s10951_s25 + $0x2c8] ss:$16 sps:$4 sm:$0xff]  }
 0x3df   : > { %4012 = vmatprep.subr.bf16.mxu1 %v9416_v57  ;;  %3893 = vmatprep.mubr.bf16.mxu0 %v11297_v15  ;;  %v9449_v57 = vld [vmem:[%s10951_s25 + $0x2c] ss:$16 sps:$4 sm:$0xff]  }
 0x3e0   : > { %3946 = vmatprep.mubr.bf16.mxu1 %v11302_v61 }
 0x3e1   : > { %3968 = vmatpush1.bf16.msra.mxu0 %v9411_v7  ;;  %v11346_v7 = vld [vmem:[#allocation2 + $0x60] sm:$0xf] }
 0x3e2   : > { %4013 = vmatpush1.bf16.msra.mxu1 %v9414_v45  ;;  %3969 = vmatprep.subr.bf16.mxu0 %v9421_v3  ;;  %v11349_v45 = vcombine.low %v9765_v60, %v11346_v7  ;;  %v9447_v3 = vld [vmem:[%s10951_s25 + $0x28] ss:$16 sps:$4 sm:$0xff]  }
 0x3e3   : > { %4014 = vmatprep.subr.bf16.mxu1 %v9424_v40  ;;  %v9450_v40 = vld [vmem:[%s10951_s25 + $0x2a8] ss:$16 sps:$4 sm:$0xff]  }
 0x3e4   : > { %3894 = vmatmul.mubr.bf16.gmra.mxu0 %v11313_v12  ;;  %v9477_v60 = vld [vmem:[%s10951_s25 + $0x188] ss:$16 sps:$4 sm:$0xff]  }
 0x3e5   : > { %3947 = vmatmul.mubr.bf16.gmra.mxu1 %v11316_v41  ;;  %3970 = vmatpush1.bf16.msra.mxu0 %v9419_v30  ;;  %v9455_v30 = vld [vmem:[%s10951_s25 + $0xc] ss:$16 sps:$4 sm:$0xff]  }
 0x3e6   : > { %4015 = vmatpush1.bf16.msra.mxu1 %v9422_v5  ;;  %3971 = vmatprep.subr.bf16.mxu0 %v9429_v39  ;;  %v9458_v5 = vld [vmem:[%s10951_s25 + $0x28c] ss:$16 sps:$4 sm:$0xff]   ;;  %v9453_v39 = vld [vmem:[%s10951_s25 + $0x8] ss:$16 sps:$4 sm:$0xff]  }
 0x3e7   : > { %4016 = vmatprep.subr.bf16.mxu1 %v9432_v42  ;;  %3989 = vmatprep.mubr.bf16.mxu0 %v12757_v16  ;;  %v9456_v42 = vld [vmem:[%s10951_s25 + $0x288] ss:$16 sps:$4 sm:$0xff]  }
 0x3e8   : > { %4042 = vmatprep.mubr.bf16.mxu1 %v11215_v44  ;;  %v9440_v44 = vld [vmem:[%s10951_s25 + $0x48] ss:$16 sps:$4 sm:$0xff]  }
 0x3e9   : > { %3972 = vmatpush1.bf16.msra.mxu0 %v9427_v8  ;;  %v9461_v8 = vld [vmem:[%s10951_s25 + $0x1ec] ss:$16 sps:$4 sm:$0xff]  }
 0x3ea   : > { %4017 = vmatpush1.bf16.msra.mxu1 %v9430_v43  ;;  %4063 = vmatprep.subr.bf16.mxu0 %v9439_v53  ;;  %v9464_v43 = vld [vmem:[%s10951_s25 + $0x26c] ss:$16 sps:$4 sm:$0xff]   ;;  %v9462_v53 = vld [vmem:[%s10951_s25 + $0x268] ss:$16 sps:$4 sm:$0xff]  }
 0x3eb   : > { %4018 = vmatprep.subr.bf16.mxu1 %v9436_v10  ;;  %v9459_v10 = vld [vmem:[%s10951_s25 + $0x1e8] ss:$16 sps:$4 sm:$0xff]  }
 0x3ec   : > { %8171 = vmatmul.mubr.msk.bf16.vlgmr.msra.gmra.mxu0 %vm2750_vm9, %v11333_v17 }
 0x3ed   : > { %4064 = vmatpush1.bf16.msra.mxu0 %v9437_v24  ;;  %3999 = vmatprep.mubr.bf16.mxu0 %v12757_v16  ;;  %v9465_v24 = vld [vmem:[%s10951_s25 + $0x1c8] ss:$16 sps:$4 sm:$0xff]  }
 0x3ee   : > { %4019 = vmatpush1.bf16.msra.mxu1 %v9434_v19  ;;  %4065 = vmatprep.subr.bf16.mxu0 %v9445_v50  ;;  %v9470_v19 = vld [vmem:[%s10951_s25 + $0x24c] ss:$16 sps:$4 sm:$0xff]  }
 0x3ef   : > { %4020 = vmatprep.subr.bf16.mxu1 %v9442_v2  ;;  %v9468_v2 = vld [vmem:[%s10951_s25 + $0x248] ss:$16 sps:$4 sm:$0xff]   ;;  %v9476_v50 = vld [vmem:[%s10951_s25 + $0x22c] ss:$16 sps:$4 sm:$0xff]  }
 0x3f1   : > { %4066 = vmatpush1.bf16.msra.mxu0 %v9443_v54  ;;  %v9474_v54 = vld [vmem:[%s10951_s25 + $0x228] ss:$16 sps:$4 sm:$0xff]  }
 0x3f2   : > { %4021 = vmatpush1.bf16.msra.mxu1 %v9440_v44  ;;  %4067 = vmatprep.subr.bf16.mxu0 %v9452_v14  ;;  %v9471_v44 = vld [vmem:[%s10951_s25 + $0x1a8] ss:$16 sps:$4 sm:$0xff]   ;;  %v9482_v14 = vld [vmem:[%s10951_s25 + $0x20c] ss:$16 sps:$4 sm:$0xff]  }
 0x3f3   : > { %4022 = vmatprep.subr.bf16.mxu1 %v9449_v57  ;;  %v9479_v57 = vld [vmem:[%s10951_s25 + $0x18c] ss:$16 sps:$4 sm:$0xff]  }
 0x3f4   : > { %8172 = vmatmul.mubr.msk.bf16.gmra.mxu0 %vm2750_vm9, %v11349_v45 }
 0x3f5   : > { %4068 = vmatpush1.bf16.msra.mxu0 %v9450_v40  ;;  %4095 = vmatprep.mubr.bf16.mxu0 %v11223_v9  ;;  %v9473_v9 = vld [vmem:[%s10951_s25 + $0x1ac] ss:$16 sps:$4 sm:$0xff]  }
 0x3f6   : > { %4023 = vmatpush1.bf16.msra.mxu1 %v9447_v3  ;;  %4069 = vmatprep.subr.bf16.mxu0 %v9458_v5  ;;  %v9480_v3 = vld [vmem:[%s10951_s25 + $0x208] ss:$16 sps:$4 sm:$0xff]   ;;  %v9485_v40 = vld [vmem:[%s10951_s25 + $0x16c] ss:$16 sps:$4 sm:$0xff]  }
 0x3f7   : > { %4024 = vmatprep.subr.bf16.mxu1 %v9455_v30  ;;  %v9488_v30 = vld [vmem:[%s10951_s25 + $0x3ec] ss:$16 sps:$4 sm:$0xff]   ;;  %v9483_v5 = vld [vmem:[%s10951_s25 + $0x168] ss:$16 sps:$4 sm:$0xff]  }
 0x3f9   : > { %4070 = vmatpush1.bf16.msra.mxu0 %v9456_v42  ;;  %v9491_v42 = vld [vmem:[%s10951_s25 + $0x14c] ss:$16 sps:$4 sm:$0xff]  }
 0x3fa   : > { %4025 = vmatpush1.bf16.msra.mxu1 %v9453_v39  ;;  %4071 = vmatprep.subr.bf16.mxu0 %v9464_v43  ;;  %v9486_v39 = vld [vmem:[%s10951_s25 + $0x3e8] ss:$16 sps:$4 sm:$0xff]  }
 0x3fb   : > { %4026 = vmatprep.subr.bf16.mxu1 %v9461_v8  ;;  %v9494_v8 = vld [vmem:[%s10951_s25 + $0x3cc] ss:$16 sps:$4 sm:$0xff]  }
 0x3fd   : > { %4072 = vmatpush1.bf16.msra.mxu0 %v9462_v53  ;;  %v9489_v53 = vld [vmem:[%s10951_s25 + $0x148] ss:$16 sps:$4 sm:$0xff]  }
 0x3fe   : > { %4027 = vmatpush2.bf16.msra.mxu1 %v9459_v10  ;;  %4073 = vmatprep.subr.bf16.mxu0 %v9470_v19  ;;  %v9492_v19 = vld [vmem:[%s10951_s25 + $0x3c8] ss:$16 sps:$4 sm:$0xff]  }
 0x3ff   : > { %4028 = vmatprep.subr.bf16.mxu1 %v9467_v51 }
 0x401   : > { %4074 = vmatpush1.bf16.msra.mxu0 %v9468_v2 }
 0x402   : > { %4029 = vmatpush2.bf16.msra.mxu1 %v9465_v24  ;;  %4075 = vmatprep.subr.bf16.mxu0 %v9476_v50  ;;  %v9500_v50 = vld [vmem:[%s10951_s25 + $0x3ac] ss:$16 sps:$4 sm:$0xff]  }
 0x403   : > { %4030 = vmatprep.subr.bf16.mxu1 %v9473_v9  ;;  %v9497_v9 = vld [vmem:[%s10951_s25 + $0x12c] ss:$16 sps:$4 sm:$0xff]  }
 0x405   : > { %4076 = vmatpush1.bf16.msra.mxu0 %v9474_v54 }
 0x406   : > { %4031 = vmatpush2.bf16.msra.mxu1 %v9471_v44  ;;  %4077 = vmatprep.subr.bf16.mxu0 %v9482_v14  ;;  %v9495_v14 = vld [vmem:[%s10951_s25 + $0x128] ss:$16 sps:$4 sm:$0xff]  }
 0x407   : > { %4032 = vmatprep.subr.bf16.mxu1 %v9479_v57 }
 0x409   : > { %4078 = vmatpush1.bf16.msra.mxu0 %v9480_v3  ;;  %v9498_v3 = vld [vmem:[%s10951_s25 + $0x3a8] ss:$16 sps:$4 sm:$0xff]  }
 0x40a   : > { %4033 = vmatpush2.bf16.msra.mxu1 %v9477_v60  ;;  %4079 = vmatprep.subr.bf16.mxu0 %v9488_v30 }
 0x40b   : > { %4034 = vmatprep.subr.bf16.mxu1 %v9485_v40 }
 0x40c   : > { %v2791_v43 = vpop.f32.mrf.mxu0 }
 0x40d   : > { %v2844_v10 = vpop.f32.mrf.mxu1  ;;  %4080 = vmatpush2.bf16.msra.mxu0 %v9486_v39  ;;  %v9506_v39 = vld [vmem:[%s10951_s25 + $0x38c] ss:$16 sps:$4 sm:$0xff]  }
 0x40e   : > { %v2845_v51 = vadd.f32 %v2844_v10, %v2791_v43  ;;  %4035 = vmatpush2.bf16.msra.mxu1 %v9483_v5  ;;  %v2793_v24 = vpop.f32.mrf.mxu0  ;;  %4081 = vmatprep.subr.bf16.mxu0 %v9494_v8  ;;  %v9503_v5 = vld [vmem:[%s10951_s25 + $0x10c] ss:$16 sps:$4 sm:$0xff]   ;;  %v9501_v10 = vld [vmem:[%s10951_s25 + $0x108] ss:$16 sps:$4 sm:$0xff]  }
 0x40f   : > { %v2846_v2 = vpop.f32.mrf.mxu1  ;;  %4036 = vmatprep.subr.bf16.mxu1 %v9491_v42 }
 0x410   : > { %v2847_v44 = vadd.f32 %v2846_v2, %v2793_v24  ;;  %v2795_v54 = vpop.f32.mrf.mxu0 }
 0x411   : > { %v2848_v57 = vpop.f32.mrf.mxu1  ;;  %4082 = vmatpush2.bf16.msra.mxu0 %v9492_v19 }
 0x412   : > { %v2849_v60 = vadd.f32 %v2848_v57, %v2795_v54  ;;  %4037 = vmatpush2.bf16.msra.mxu1 %v9489_v53  ;;  %v2797_v40 = vpop.f32.mrf.mxu0  ;;  %4083 = vmatprep.subr.bf16.mxu0 %v9500_v50  ;;  %v9504_v53 = vld [vmem:[%s10951_s25 + $0x388] ss:$16 sps:$4 sm:$0xff]   ;;  %v9512_v50 = vld [vmem:[%s10951_s25 + $0x46c] ss:$16 sps:$4 sm:$0xff]  }
 0x413   : > { %v2850_v30 = vpop.f32.mrf.mxu1  ;;  %4038 = vmatprep.subr.bf16.mxu1 %v9497_v9  ;;  %v9509_v9 = vld [vmem:[%s10951_s25 + $0x36c] ss:$16 sps:$4 sm:$0xff]  }
 0x414   : > { %v2851_v42 = vadd.f32 %v2850_v30, %v2797_v40  ;;  %v2801_v8 = vpop.f32.mrf.mxu0  ;;  %v9507_v30 = vld [vmem:[%s10951_s25 + $0x368] ss:$16 sps:$4 sm:$0xff]  }
 0x415   : > { %v2854_v43 = vpop.f32.mrf.mxu1  ;;  %4084 = vmatpush2.bf16.msra.mxu0 %v9498_v3 }
 0x416   : > { %v2855_v24 = vadd.f32 %v2854_v43, %v2801_v8  ;;  %4039 = vmatpush2.bf16.msra.mxu1 %v9495_v14  ;;  %v2803_v19 = vpop.f32.mrf.mxu0  ;;  %4085 = vmatprep.subr.bf16.mxu0 %v9506_v39  ;;  %v9510_v14 = vld [vmem:[%s10951_s25 + $0x468] ss:$16 sps:$4 sm:$0xff]   ;;  %v9518_v39 = vld [vmem:[%s10951_s25 + $0x44c] ss:$16 sps:$4 sm:$0xff]  }
 0x417   : > { %v2856_v2 = vpop.f32.mrf.mxu1  ;;  %4040 = vmatprep.subr.bf16.mxu1 %v9503_v5  ;;  %v9515_v5 = vld [vmem:[%s10951_s25 + $0x34c] ss:$16 sps:$4 sm:$0xff]  }
 0x418   : > { %v2857_v54 = vadd.f32 %v2856_v2, %v2803_v19  ;;  %v2805_v57 = vpop.f32.mrf.mxu0  ;;  %v9513_v2 = vld [vmem:[%s10951_s25 + $0x348] ss:$16 sps:$4 sm:$0xff]  }
 0x419   : > { %v2858_v40 = vpop.f32.mrf.mxu1  ;;  %4086 = vmatpush2.bf16.msra.mxu0 %v9504_v53 }
 0x41a   : > { %v2859_v16 = vadd.f32 %v2858_v40, %v2805_v57  ;;  %4041 = vmatpush2.bf16.msra.mxu1 %v9501_v10  ;;  %v2807_v3 = vpop.f32.mrf.mxu0  ;;  %4087 = vmatprep.subr.bf16.mxu0 %v9509_v9  ;;  %v9516_v10 = vld [vmem:[%s10951_s25 + $0x448] ss:$16 sps:$4 sm:$0xff]   ;;  %v9521_v9 = vld [vmem:[%s10951_s25 + $0x32c] ss:$16 sps:$4 sm:$0xff]  }
 0x41b   : > { %v2860_v8 = vpop.f32.mrf.mxu1  ;;  %4124 = vmatprep.subr.bf16.mxu1 %v9512_v50  ;;  %v9524_v50 = vld [vmem:[%s10951_s25 + $0x42c] ss:$16 sps:$4 sm:$0xff]  }
 0x41c   : > { %v2861_v43 = vadd.f32 %v2860_v8, %v2807_v3  ;;  %v2897_v19 = vpop.f32.mrf.mxu0 }
 0x41d   : > { %4043 = vmatmul.mubr.bf16.vlgmr.msra.gmra.mxu1 %v11284_v22  ;;  %v11400_v57 = vadd.f32 %v2897_v19, %v2845_v51  ;;  %4088 = vmatpush2.bf16.msra.mxu0 %v9507_v30  ;;  %v9519_v22 = vld [vmem:[%s10951_s25 + $0x328] ss:$16 sps:$4 sm:$0xff]   ;;  %v9527_v30 = vld [vmem:[%s10951_s25 + $0x30c] ss:$16 sps:$4 sm:$0xff]  }
 0x41e   : > { %4125 = vmatpush1.bf16.msra.mxu1 %v9510_v14  ;;  %v2899_v53 = vpop.f32.mrf.mxu0  ;;  %4089 = vmatprep.subr.bf16.mxu0 %v9515_v5  ;;  %v9522_v51 = vld [vmem:[%s10951_s25 + $0x428] ss:$16 sps:$4 sm:$0xff]   ;;  %v9530_v5 = vld [vmem:[%s10951_s25 + $0x40c] ss:$16 sps:$4 sm:$0xff]  }
 0x41f   : > { %4126 = vmatprep.subr.bf16.mxu1 %v9518_v39  ;;  %v11405_v40 = vadd.f32 %v2899_v53, %v2847_v44  ;;  %4052 = vmatprep.mubr.bf16.mxu1 %v11297_v15  ;;  %v9525_v44 = vld [vmem:[%s10951_s25 + $0x308] ss:$16 sps:$4 sm:$0xff]   ;;  %v9536_v53 = vld [vmem:[%s10951_s25 + $0xbe4] ss:$16 sps:$4 sm:$0xff]  }
 0x420   : > { %v2901_v3 = vpop.f32.mrf.mxu0  ;;  %v9528_v19 = vld [vmem:[%s10951_s25 + $0x408] ss:$16 sps:$4 sm:$0xff]  }
 0x421   : > { %v11410_v8 = vadd.f32 %v2901_v3, %v2849_v60  ;;  %4090 = vmatpush2.bf16.msra.mxu0 %v9513_v2  ;;  %v12922_v3 = vmov 0  }
 0x422   : > { %4127 = vmatpush1.bf16.msra.mxu1 %v9516_v10  ;;  %v2903_v14 = vpop.f32.mrf.mxu0  ;;  %4091 = vmatprep.subr.bf16.mxu0 %v9521_v9  ;;  %v9533_v10 = vld [vmem:[%s10951_s25 + $0x9e4] ss:$16 sps:$4 sm:$0xff]  }
 0x423   : > { %4128 = vmatprep.subr.bf16.mxu1 %v9524_v50  ;;  %v11414_v39 = vadd.f32 %v2903_v14, %v2851_v42  ;;  %v9767_v9 = vld [vmem:[#allocation2 + $0x14] sm:$0xff]  ;;  %v9531_v14 = vld [vmem:[%s10951_s25 + $0x9e0] ss:$16 sps:$4 sm:$0xff]  }
 0x424   : > { %v2907_v15 = vpop.f32.mrf.mxu0  ;;  %v4192_v42 = vrot.slane %v9767_v9, 5  ;;  %v9537_v9 = vld [vmem:[%s10951_s25 + $0x9c0] ss:$16 sps:$4 sm:$0xff]  }
 0x425   : > { %4053 = vmatmul.mubr.bf16.gmra.mxu1 %v11313_v12  ;;  %v11419_v60 = vadd.f32 %v2907_v15, %v2855_v24  ;;  %4092 = vmatpush2.bf16.msra.mxu0 %v9519_v22  ;;  %v4169_v12 = vld [vmem:[#allocation2] sm:$0xee]  ;;  %v4170_v24 = vld [vmem:[#allocation2 + $0x8] sm:$0xee] }
 0x426   : > { %4129 = vmatpush1.bf16.msra.mxu1 %v9522_v51  ;;  %v2909_v2 = vpop.f32.mrf.mxu0  ;;  %4093 = vmatprep.subr.bf16.mxu0 %v9527_v30  ;;  %v9768_v22 = vld [vmem:[#allocation2 + $0x1c] sm:$0xff]  ;;  %v4202_v46 = vrot.slane %v4192_v42, 4 }
 0x427   : > { %4130 = vmatprep.subr.bf16.mxu1 %v9530_v5  ;;  %v11423_v50 = vadd.f32 %v2909_v2, %v2857_v54  ;;  %4148 = vmatprep.mubr.bf16.mxu1 %v12922_v3  ;;  %v4196_v51 = vrot.slane %v9768_v22, 5  ;;  %v9542_v54 = vld [vmem:[%s10951_s25 + $0xbc4] ss:$16 sps:$4 sm:$0xff]   ;;  %v4203_v22 = vrot.slane %v9769_v11, 5 }
 0x428   : > { %v2911_v15 = vpop.f32.mrf.mxu0  ;;  %v9545_v11 = vld [vmem:[%s10951_s25 + $0x9a4] ss:$16 sps:$4 sm:$0xff]  }
 0x429   : > { %v11429_v30 = vadd.f32 %v2911_v15, %v2859_v16  ;;  %4094 = vmatpush2.bf16.msra.mxu0 %v9525_v44  ;;  %v4205_v0 = vrot.slane %v4196_v51, 4  ;;  %v8175_v16 = vrot.slane %v4169_v12, 9  ;;  %v8176_v44 = vrot.slane %v4170_v24, 9  ;;  %v9554_v12 = vld [vmem:[%s10951_s25 + $0xb84] ss:$16 sps:$4 sm:$0xff]  }
 0x42a   : > { %4131 = vmatpush1.bf16.msra.mxu1 %v9528_v19  ;;  %v2913_v5 = vpop.f32.mrf.mxu0  ;;  %5144 = vmatprep.subr.bf16.mxu0 %v9533_v10  ;;  %v9770_v19 = vld [vmem:[#allocation2 + $0x30] sm:$0x11] }
 0x42b   : > { %5197 = vmatprep.subr.bf16.mxu1 %v9536_v53  ;;  %v11432_v2 = vadd.f32 %v2913_v5, %v2861_v43  ;;  %v4206_v10 = vrot.slane %v9770_v19, 5  ;;  %v9540_v43 = vld [vmem:[%s10951_s25 + $0xbc0] ss:$16 sps:$4 sm:$0xff]   ;;  %v9557_v5 = vld [vmem:[%s10951_s25 + $0x964] ss:$16 sps:$4 sm:$0xff]  }
 0x42c   : > { %4096 = vmatmul.mubr.bf16.vlgmr.msra.gmra.mxu0 %v11288_v13  ;;  %v9548_v13 = vld [vmem:[%s10951_s25 + $0xba4] ss:$16 sps:$4 sm:$0xff]   ;;  %v9552_v15 = vld [vmem:[%s10951_s25 + $0xb80] ss:$16 sps:$4 sm:$0xff]   ;;  %v9671_v53 = vld [vmem:[%s10951_s25 + $0x90c] ss:$16 sps:$4 sm:$0xff]  }
 0x42d   : > { %8173 = vmatmul.mubr.msk.bf16.vlgmr.msra.gmra.mxu1 %vm2750_vm9, %v11333_v17  ;;  %5145 = vmatpush1.bf16.msra.mxu0 %v9531_v14  ;;  %v11455_v17 = vsel %vm11441_vm12, %v4202_v46, %v4203_v22  ;;  %v11463_v14 = vsel %vm11441_vm12, %v4205_v0, %v4206_v10  ;;  %v9551_v46 = vld [vmem:[%s10951_s25 + $0x984] ss:$16 sps:$4 sm:$0xff]  }
 0x42e   : > { %5198 = vmatpush1.bf16.msra.mxu1 %v9534_v23  ;;  %5146 = vmatprep.subr.bf16.mxu0 %v9539_v47  ;;  %v11451_v23 = vsel %vm11441_vm12, %v8175_v16, %v4192_v42  ;;  %v11459_v47 = vsel %vm11441_vm12, %v8176_v44, %v4196_v51  ;;  %v9546_v42 = vld [vmem:[%s10951_s25 + $0xba0] ss:$16 sps:$4 sm:$0xff]   ;;  %v9566_v22 = vld [vmem:[%s10951_s25 + $0xb44] ss:$16 sps:$4 sm:$0xff]  }
 0x42f   : > { %5199 = vmatprep.subr.bf16.mxu1 %v9542_v54  ;;  %4105 = vmatprep.mubr.bf16.mxu0 %v11302_v61  ;;  %v9543_v61 = vld [vmem:[%s10951_s25 + $0x9a0] ss:$16 sps:$4 sm:$0xff]   ;;  %v11471_v24 = vcombine.high %v11451_v23, %v11455_v17  ;;  %v11475_v0 = vcombine.high %v11459_v47, %v11463_v14  ;;  %v9560_v54 = vld [vmem:[%s10951_s25 + $0xb64] ss:$16 sps:$4 sm:$0xff]  }
 0x430   : > { %4158 = vmatprep.mubr.bf16.mxu1 %v12922_v3  ;;  %v9549_v51 = vld [vmem:[%s10951_s25 + $0x980] ss:$16 sps:$4 sm:$0xff]   ;;  %v9569_v19 = vld [vmem:[%s10951_s25 + $0x924] ss:$16 sps:$4 sm:$0xff]  }
 0x431   : > { %5147 = vmatpush1.bf16.msra.mxu0 %v9537_v9  ;;  %v9563_v9 = vld [vmem:[%s10951_s25 + $0x944] ss:$16 sps:$4 sm:$0xff]   ;;  %v9561_v16 = vld [vmem:[%s10951_s25 + $0x940] ss:$16 sps:$4 sm:$0xff]  }
 0x432   : > { %5200 = vmatpush1.bf16.msra.mxu1 %v9540_v43  ;;  %5148 = vmatprep.subr.bf16.mxu0 %v9545_v11  ;;  %v9564_v44 = vld [vmem:[%s10951_s25 + $0xb40] ss:$16 sps:$4 sm:$0xff]   ;;  %v9572_v10 = vld [vmem:[%s10951_s25 + $0xb24] ss:$16 sps:$4 sm:$0xff]  }
 0x433   : > { %5201 = vmatprep.subr.bf16.mxu1 %v9548_v13  ;;  %v9567_v43 = vld [vmem:[%s10951_s25 + $0x920] ss:$16 sps:$4 sm:$0xff]   ;;  %v9575_v13 = vld [vmem:[%s10951_s25 + $0x904] ss:$16 sps:$4 sm:$0xff]  }
 0x434   : > { %4106 = vmatmul.mubr.bf16.gmra.mxu0 %v11316_v41  ;;  %v9555_v41 = vld [vmem:[%s10951_s25 + $0x960] ss:$16 sps:$4 sm:$0xff]  }
 0x435   : > { %8174 = vmatmul.mubr.msk.bf16.gmra.mxu1 %vm2750_vm9, %v11349_v45  ;;  %5149 = vmatpush1.bf16.msra.mxu0 %v9543_v61  ;;  %v9558_v45 = vld [vmem:[%s10951_s25 + $0xb60] ss:$16 sps:$4 sm:$0xff]   ;;  %v9578_v61 = vld [vmem:[%s10951_s25 + $0xb04] ss:$16 sps:$4 sm:$0xff]  }
 0x436   : > { %5202 = vmatpush1.bf16.msra.mxu1 %v9546_v42  ;;  %5150 = vmatprep.subr.bf16.mxu0 %v9551_v46  ;;  %v9570_v11 = vld [vmem:[%s10951_s25 + $0xb20] ss:$16 sps:$4 sm:$0xff]  }
 0x437   : > { %5203 = vmatprep.subr.bf16.mxu1 %v9554_v12  ;;  %5176 = vmatprep.mubr.bf16.mxu0 %v11471_v24  ;;  %v9573_v42 = vld [vmem:[%s10951_s25 + $0x900] ss:$16 sps:$4 sm:$0xff]   ;;  %v9581_v12 = vld [vmem:[%s10951_s25 + $0xae4] ss:$16 sps:$4 sm:$0xff]  }
 0x438   : > { %5229 = vmatprep.mubr.bf16.mxu1 %v11475_v0  ;;  %v9576_v46 = vld [vmem:[%s10951_s25 + $0xb00] ss:$16 sps:$4 sm:$0xff]  }
 0x439   : > { %5151 = vmatpush1.bf16.msra.mxu0 %v9549_v51  ;;  %v9584_v51 = vld [vmem:[%s10951_s25 + $0xce4] ss:$16 sps:$4 sm:$0xff]  }
 0x43a   : > { %5204 = vmatpush1.bf16.msra.mxu1 %v9552_v15  ;;  %5152 = vmatprep.subr.bf16.mxu0 %v9557_v5  ;;  %v9579_v15 = vld [vmem:[%s10951_s25 + $0xae0] ss:$16 sps:$4 sm:$0xff]  }
 0x43b   : > { %5205 = vmatprep.subr.bf16.mxu1 %v9560_v54  ;;  %v9582_v5 = vld [vmem:[%s10951_s25 + $0xce0] ss:$16 sps:$4 sm:$0xff]   ;;  %v9587_v54 = vld [vmem:[%s10951_s25 + $0xac4] ss:$16 sps:$4 sm:$0xff]  }
 0x43d   : > { %5153 = vmatpush1.bf16.msra.mxu0 %v9555_v41  ;;  %v9590_v41 = vld [vmem:[%s10951_s25 + $0xcc4] ss:$16 sps:$4 sm:$0xff]  }
 0x43e   : > { %5206 = vmatpush1.bf16.msra.mxu1 %v9558_v45  ;;  %5154 = vmatprep.subr.bf16.mxu0 %v9563_v9  ;;  %v9585_v9 = vld [vmem:[%s10951_s25 + $0xac0] ss:$16 sps:$4 sm:$0xff]  }
 0x43f   : > { %5207 = vmatprep.subr.bf16.mxu1 %v9566_v22  ;;  %v9588_v22 = vld [vmem:[%s10951_s25 + $0xcc0] ss:$16 sps:$4 sm:$0xff]  }
 0x441   : > { %5155 = vmatpush1.bf16.msra.mxu0 %v9561_v16 }
 0x442   : > { %5208 = vmatpush1.bf16.msra.mxu1 %v9564_v44  ;;  %5156 = vmatprep.subr.bf16.mxu0 %v9569_v19  ;;  %v9593_v44 = vld [vmem:[%s10951_s25 + $0xaa4] ss:$16 sps:$4 sm:$0xff]  }
 0x443   : > { %5209 = vmatprep.subr.bf16.mxu1 %v9572_v10  ;;  %v9596_v19 = vld [vmem:[%s10951_s25 + $0xca4] ss:$16 sps:$4 sm:$0xff]  }
 0x445   : > { %5157 = vmatpush1.bf16.msra.mxu0 %v9567_v43  ;;  %v9591_v43 = vld [vmem:[%s10951_s25 + $0xaa0] ss:$16 sps:$4 sm:$0xff]  }
 0x446   : > { %5210 = vmatpush1.bf16.msra.mxu1 %v9570_v11  ;;  %5158 = vmatprep.subr.bf16.mxu0 %v9575_v13  ;;  %v9594_v11 = vld [vmem:[%s10951_s25 + $0xca0] ss:$16 sps:$4 sm:$0xff]  }
 0x447   : > { %5211 = vmatprep.subr.bf16.mxu1 %v9578_v61  ;;  %v9599_v61 = vld [vmem:[%s10951_s25 + $0xa84] ss:$16 sps:$4 sm:$0xff]  }
 0x449   : > { %5159 = vmatpush1.bf16.msra.mxu0 %v9573_v42  ;;  %v9602_v42 = vld [vmem:[%s10951_s25 + $0xc84] ss:$16 sps:$4 sm:$0xff]  }
 0x44a   : > { %5212 = vmatpush1.bf16.msra.mxu1 %v9576_v46  ;;  %5160 = vmatprep.subr.bf16.mxu0 %v9581_v12  ;;  %v9597_v12 = vld [vmem:[%s10951_s25 + $0xa80] ss:$16 sps:$4 sm:$0xff]  }
 0x44b   : > { %5213 = vmatprep.subr.bf16.mxu1 %v9584_v51  ;;  %v9600_v51 = vld [vmem:[%s10951_s25 + $0xc80] ss:$16 sps:$4 sm:$0xff]  }
 0x44d   : > { %v2950_v45 = vpop.f32.mrf.mxu1  ;;  %5161 = vmatpush2.bf16.msra.mxu0 %v9579_v15 }
 0x44e   : > { %5214 = vmatpush2.bf16.msra.mxu1 %v9582_v5  ;;  %5162 = vmatprep.subr.bf16.mxu0 %v9587_v54  ;;  %v9605_v5 = vld [vmem:[%s10951_s25 + $0xa64] ss:$16 sps:$4 sm:$0xff]  }
 0x44f   : > { %v2952_v16 = vpop.f32.mrf.mxu1  ;;  %5215 = vmatprep.subr.bf16.mxu1 %v9590_v41  ;;  %v9608_v54 = vld [vmem:[%s10951_s25 + $0xc64] ss:$16 sps:$4 sm:$0xff]  }
 0x451   : > { %v2954_v10 = vpop.f32.mrf.mxu1  ;;  %5163 = vmatpush2.bf16.msra.mxu0 %v9585_v9  ;;  %v9603_v9 = vld [vmem:[%s10951_s25 + $0xa60] ss:$16 sps:$4 sm:$0xff]  }
 0x452   : > { %5216 = vmatpush2.bf16.msra.mxu1 %v9588_v22  ;;  %5164 = vmatprep.subr.bf16.mxu0 %v9593_v44  ;;  %v9606_v22 = vld [vmem:[%s10951_s25 + $0xc60] ss:$16 sps:$4 sm:$0xff]  }
 0x453   : > { %v2956_v13 = vpop.f32.mrf.mxu1  ;;  %5217 = vmatprep.subr.bf16.mxu1 %v9596_v19  ;;  %v9611_v19 = vld [vmem:[%s10951_s25 + $0xa44] ss:$16 sps:$4 sm:$0xff]  }
 0x455   : > { %v11514_v46 = vpop.f32.mrf.mxu1  ;;  %5165 = vmatpush2.bf16.msra.mxu0 %v9591_v43  ;;  %v9614_v43 = vld [vmem:[%s10951_s25 + $0xc44] ss:$16 sps:$4 sm:$0xff]  }
 0x456   : > { %5218 = vmatpush2.bf16.msra.mxu1 %v9594_v11  ;;  %5166 = vmatprep.subr.bf16.mxu0 %v9599_v61 }
 0x457   : > { %v11518_v15 = vpop.f32.mrf.mxu1  ;;  %5219 = vmatprep.subr.bf16.mxu1 %v9602_v42 }
 0x459   : > { %v11522_v41 = vpop.f32.mrf.mxu1  ;;  %5167 = vmatpush2.bf16.msra.mxu0 %v9597_v12 }
 0x45a   : > { %5220 = vmatpush2.bf16.msra.mxu1 %v9600_v51  ;;  %5168 = vmatprep.subr.bf16.mxu0 %v9605_v5  ;;  %v4213_v5 = vrot.slane %v11294_v18, 5 }
 0x45b   : > { %v11526_v44 = vpop.f32.mrf.mxu1  ;;  %5221 = vmatprep.subr.bf16.mxu1 %v9608_v54 }
 0x45c   : > { %v3003_v11 = vpop.f32.mrf.mxu0 }
 0x45d   : > { %v3056_v61 = vpop.f32.mrf.mxu1  ;;  %v3004_v42 = vadd.f32 %v3003_v11, %v2950_v45  ;;  %5169 = vmatpush2.bf16.msra.mxu0 %v9603_v9  ;;  %v4217_v45 = vrot.slane %v11299_v21, 5  ;;  %v9615_v11 = vld [vmem:[%s10951_s25 + $0xa20] ss:$16 sps:$4 sm:$0xff]   ;;  %v9771_v21 = vld [vmem:[#allocation2 + $0x64] sm:$0x11] }
 0x45e   : > { %5222 = vmatpush2.bf16.msra.mxu1 %v9606_v22  ;;  %v3005_v12 = vpop.f32.mrf.mxu0  ;;  %5170 = vmatprep.subr.bf16.mxu0 %v9611_v19  ;;  %v9618_v19 = vld [vmem:[%s10951_s25 + $0xc20] ss:$16 sps:$4 sm:$0xff]  }
 0x45f   : > { %v3058_v51 = vpop.f32.mrf.mxu1  ;;  %5223 = vmatprep.subr.bf16.mxu1 %v9614_v43  ;;  %v11535_v54 = vadd.f32 %v3056_v61, %v3004_v42  ;;  %v3006_v27 = vadd.f32 %v3005_v12, %v2952_v16  ;;  %v4172_v43 = vld [vmem:[#allocation2 + $0x3c] sm:$0xee]  ;;  %v9623_v16 = vld [vmem:[%s10951_s25 + $0xa04] ss:$16 sps:$4 sm:$0xff]   ;;  %v4223_v42 = vrot.slane %v4213_v5, 4  ;;  %v4224_v12 = vrot.slane %v9771_v21, 5 }
 0x460   : > { %v3007_v9 = vpop.f32.mrf.mxu0  ;;  %v9626_v61 = vld [vmem:[%s10951_s25 + $0xc04] ss:$16 sps:$4 sm:$0xff]   ;;  %v8178_v26 = vrot.slane %v4172_v43, 9  ;;  %v9624_v21 = vld [vmem:[%s10951_s25 + $0xc00] ss:$16 sps:$4 sm:$0xff]  }
 0x461   : > { %v3060_v22 = vpop.f32.mrf.mxu1  ;;  %v11539_v29 = vadd.f32 %v3058_v51, %v3006_v27  ;;  %v3008_v36 = vadd.f32 %v3007_v9, %v2954_v10  ;;  %5171 = vmatpush2.bf16.msra.mxu0 %v9609_v63  ;;  %v4226_v10 = vrot.slane %v4217_v45, 4  ;;  %v9772_v63 = vld [vmem:[#allocation2 + $0x6c] sm:$0x11] }
 0x462   : > { %5224 = vmatpush2.bf16.msra.mxu1 %v9612_v4  ;;  %v3009_v34 = vpop.f32.mrf.mxu0  ;;  %5172 = vmatprep.subr.bf16.mxu0 %v9617_v20  ;;  %v4227_v4 = vrot.slane %v9772_v63, 5  ;;  %v8179_v20 = vrot.slane %v4173_v38, 9  ;;  %v4225_v38 = vsel %vm11441_vm12, %v4223_v42, %v4224_v12  ;;  %v9627_v12 = vld [vmem:[%s10951_s25 + $0xd60] ss:$16 sps:$4 sm:$0xff]  }
 0x463   : > { %v3062_v18 = vpop.f32.mrf.mxu1  ;;  %5225 = vmatprep.subr.bf16.mxu1 %v9620_v25  ;;  %v11544_v35 = vadd.f32 %v3060_v22, %v3008_v36  ;;  %v3010_v27 = vadd.f32 %v3009_v34, %v2956_v13  ;;  %v9629_v34 = vld [vmem:[%s10951_s25 + $0xd64] ss:$16 sps:$4 sm:$0xff]   ;;  %v9632_v13 = vld [vmem:[%s10951_s25 + $0x9ec] ss:$16 sps:$4 sm:$0xff]  }
 0x464   : > { %v3013_v51 = vpop.f32.mrf.mxu0 }
 0x465   : > { %v3066_v9 = vpop.f32.mrf.mxu1  ;;  %v11546_v25 = vadd.f32 %v3062_v18, %v3010_v27  ;;  %v3014_v28 = vadd.f32 %v3013_v51, %v11514_v46  ;;  %5173 = vmatpush2.bf16.msra.mxu0 %v9615_v11  ;;  %v4228_v46 = vsel %vm11441_vm12, %v4226_v10, %v4227_v4  ;;  %v11562_v18 = vcombine.low %v11451_v23, %v11455_v17  ;;  %v9630_v27 = vld [vmem:[%s10951_s25 + $0x9e8] ss:$16 sps:$4 sm:$0xff]   ;;  %v9633_v4 = vld [vmem:[%s10951_s25 + $0xd40] ss:$16 sps:$4 sm:$0xff]   ;;  %v9641_v51 = vld [vmem:[%s10951_s25 + $0xd24] ss:$16 sps:$4 sm:$0xff]  }
 0x466   : > { %5226 = vmatpush2.bf16.msra.mxu1 %v9618_v19  ;;  %v3015_v36 = vpop.f32.mrf.mxu0  ;;  %5174 = vmatprep.subr.bf16.mxu0 %v9623_v16  ;;  %v11566_v16 = vcombine.low %v11459_v47, %v11463_v14  ;;  %v9635_v47 = vld [vmem:[%s10951_s25 + $0xd44] ss:$16 sps:$4 sm:$0xff]  }
 0x467   : > { %v3068_v22 = vpop.f32.mrf.mxu1  ;;  %5227 = vmatprep.subr.bf16.mxu1 %v9626_v61  ;;  %v3016_v63 = vadd.f32 %v3015_v36, %v11518_v15  ;;  %v11554_v43 = vadd.f32 %v3066_v9, %v3014_v28  ;;  %v4214_v28 = vsel %vm11441_vm12, %v8178_v26, %v4213_v5  ;;  %v4218_v15 = vsel %vm11441_vm12, %v8179_v20, %v4217_v45  ;;  %v9638_v26 = vld [vmem:[%s10951_s25 + $0x9cc] ss:$16 sps:$4 sm:$0xff]   ;;  %v4171_v20 = vld [vmem:[#allocation2 + $0x10] sm:$0xe] }
 0x468   : > { %v3017_v11 = vpop.f32.mrf.mxu0  ;;  %v4200_v45 = vrot.slane %v11330_v6, 5  ;;  %v9644_v9 = vld [vmem:[%s10951_s25 + $0x9ac] ss:$16 sps:$4 sm:$0xff]   ;;  %v11597_v6 = vcombine.low %v4214_v28, %v4225_v38 }
 0x469   : > { %v3070_v19 = vpop.f32.mrf.mxu1  ;;  %v3018_v61 = vadd.f32 %v3017_v11, %v11522_v41  ;;  %v11573_v42 = vadd.f32 %v3068_v22, %v3016_v63  ;;  %5175 = vmatpush2.bf16.msra.mxu0 %v9621_v31  ;;  %v11582_v41 = vcombine.high %v4214_v28, %v4225_v38  ;;  %v11584_v31 = vcombine.high %v4218_v15, %v4228_v46  ;;  %v9639_v22 = vld [vmem:[%s10951_s25 + $0xd20] ss:$16 sps:$4 sm:$0xff]   ;;  %v9773_v63 = vld [vmem:[#allocation2 + $0x38] sm:$0x1] }
 0x46a   : > { %5228 = vmatpush2.bf16.msra.mxu1 %v9624_v21  ;;  %v3019_v23 = vpop.f32.mrf.mxu0  ;;  %5258 = vmatprep.subr.bf16.mxu0 %v9629_v34  ;;  %v11599_v21 = vcombine.low %v4218_v15, %v4228_v46  ;;  %v4208_v36 = vrot.slane %v4200_v45, 4  ;;  %v9642_v34 = vld [vmem:[%s10951_s25 + $0x9a8] ss:$16 sps:$4 sm:$0xff]   ;;  %v4209_v11 = vrot.slane %v9773_v63, 5  ;;  %v4221_v38 = vrot.slane %v11346_v7, 5 }
 0x46b   : > { %v3072_v17 = vpop.f32.mrf.mxu1  ;;  %5303 = vmatprep.subr.bf16.mxu1 %v9632_v13  ;;  %v3020_v14 = vadd.f32 %v3019_v23, %v11526_v44  ;;  %v11580_v5 = vadd.f32 %v3070_v19, %v3018_v61  ;;  %v9636_v44 = vld [vmem:[%s10951_s25 + $0x9c8] ss:$16 sps:$4 sm:$0xff]   ;;  %v8177_v13 = vrot.slane %v4171_v20, 9  ;;  %v9647_v19 = vld [vmem:[%s10951_s25 + $0xd04] ss:$16 sps:$4 sm:$0xff]  }
 0x46c   : > { %5177 = vmatmul.mubr.bf16.vlgmr.msra.gmra.mxu0 %v11562_v18  ;;  %v9650_v61 = vld [vmem:[%s10951_s25 + $0x98c] ss:$16 sps:$4 sm:$0xff]   ;;  %v9645_v46 = vld [vmem:[%s10951_s25 + $0xd00] ss:$16 sps:$4 sm:$0xff]   ;;  %v9648_v28 = vld [vmem:[%s10951_s25 + $0x988] ss:$16 sps:$4 sm:$0xff]  }
 0x46d   : > { %5230 = vmatmul.mubr.bf16.vlgmr.msra.gmra.mxu1 %v11566_v16  ;;  %v11589_v10 = vadd.f32 %v3072_v17, %v3020_v14  ;;  %5259 = vmatpush1.bf16.msra.mxu0 %v9627_v12  ;;  %v4201_v15 = vsel %vm11441_vm12, %v8177_v13, %v4200_v45  ;;  %v4210_v12 = vsel %vm11441_vm12, %v4208_v36, %v4209_v11  ;;  %v9656_v23 = vld [vmem:[%s10951_s25 + $0xbec] ss:$16 sps:$4 sm:$0xff]   ;;  %v9654_v14 = vld [vmem:[%s10951_s25 + $0xbe8] ss:$16 sps:$4 sm:$0xff]  }
 0x46e   : > { %5304 = vmatpush1.bf16.msra.mxu1 %v9630_v27  ;;  %5260 = vmatprep.subr.bf16.mxu0 %v9635_v47  ;;  %v9653_v27 = vld [vmem:[%s10951_s25 + $0x96c] ss:$16 sps:$4 sm:$0xff]   ;;  %v11618_v7 = vcombine.low %v4201_v15, %v4210_v12  ;;  %v4229_v47 = vrot.slane %v4221_v38, 4  ;;  %v9660_v20 = vld [vmem:[%s10951_s25 + $0xbc8] ss:$16 sps:$4 sm:$0xff]  }
 0x46f   : > { %5305 = vmatprep.subr.bf16.mxu1 %v9638_v26  ;;  %5186 = vmatprep.mubr.bf16.mxu0 %v11582_v41  ;;  %v4174_v17 = vld [vmem:[#allocation2 + $0x4c] sm:$0xe]  ;;  %v9651_v26 = vld [vmem:[%s10951_s25 + $0x968] ss:$16 sps:$4 sm:$0xff]  }
 0x470   : > { %5239 = vmatprep.mubr.bf16.mxu1 %v11584_v31  ;;  %v8180_v45 = vrot.slane %v4174_v17, 9  ;;  %v9668_v13 = vld [vmem:[%s10951_s25 + $0xbac] ss:$16 sps:$4 sm:$0xff]   ;;  %v9663_v11 = vld [vmem:[%s10951_s25 + $0x928] ss:$16 sps:$4 sm:$0xff]  }
 0x471   : > { %5261 = vmatpush1.bf16.msra.mxu0 %v9633_v4  ;;  %v9774_v4 = vld [vmem:[#allocation2 + $0x74] sm:$0x1]  ;;  %v9680_v15 = vld [vmem:[%s10951_s25 + $0xb6c] ss:$16 sps:$4 sm:$0xff]   ;;  %v9675_v12 = vld [vmem:[%s10951_s25 + $0xae8] ss:$16 sps:$4 sm:$0xff]  }
 0x472   : > { %5306 = vmatpush1.bf16.msra.mxu1 %v9636_v44  ;;  %5262 = vmatprep.subr.bf16.mxu0 %v9641_v51  ;;  %v4230_v44 = vrot.slane %v9774_v4, 5  ;;  %v9659_v51 = vld [vmem:[%s10951_s25 + $0x94c] ss:$16 sps:$4 sm:$0xff]   ;;  %v4222_v36 = vsel %vm11441_vm12, %v8180_v45, %v4221_v38  ;;  %v9669_v38 = vld [vmem:[%s10951_s25 + $0x908] ss:$16 sps:$4 sm:$0xff]  }
 0x473   : > { %5307 = vmatprep.subr.bf16.mxu1 %v9644_v9  ;;  %v9662_v9 = vld [vmem:[%s10951_s25 + $0xbcc] ss:$16 sps:$4 sm:$0xff]   ;;  %v9687_v45 = vld [vmem:[%s10951_s25 + $0xaa8] ss:$16 sps:$4 sm:$0xff]  }
 0x474   : > { %5187 = vmatmul.mubr.bf16.gmra.mxu0 %v11597_v6  ;;  %v9686_v17 = vld [vmem:[%s10951_s25 + $0xb4c] ss:$16 sps:$4 sm:$0xff]   ;;  %v9690_v4 = vld [vmem:[%s10951_s25 + $0xb28] ss:$16 sps:$4 sm:$0xff]  }
 0x475   : > { %5240 = vmatmul.mubr.bf16.gmra.mxu1 %v11599_v21  ;;  %5263 = vmatpush1.bf16.msra.mxu0 %v9639_v22  ;;  %v4231_v22 = vsel %vm11441_vm12, %v4229_v47, %v4230_v44  ;;  %v9681_v47 = vld [vmem:[%s10951_s25 + $0xac8] ss:$16 sps:$4 sm:$0xff]   ;;  %v9695_v44 = vld [vmem:[%s10951_s25 + $0xa8c] ss:$16 sps:$4 sm:$0xff]  }
 0x476   : > { %5308 = vmatpush1.bf16.msra.mxu1 %v9642_v34  ;;  %5264 = vmatprep.subr.bf16.mxu0 %v9647_v19  ;;  %v9665_v34 = vld [vmem:[%s10951_s25 + $0x92c] ss:$16 sps:$4 sm:$0xff]   ;;  %v11635_v63 = vcombine.low %v4222_v36, %v4231_v22  ;;  %v9666_v19 = vld [vmem:[%s10951_s25 + $0xba8] ss:$16 sps:$4 sm:$0xff]  }
 0x477   : > { %5309 = vmatprep.subr.bf16.mxu1 %v9650_v61  ;;  %5282 = vmatprep.mubr.bf16.mxu0 %v12922_v3  ;;  %v9674_v61 = vld [vmem:[%s10951_s25 + $0xb8c] ss:$16 sps:$4 sm:$0xff]   ;;  %v9699_v22 = vld [vmem:[%s10951_s25 + $0xa68] ss:$16 sps:$4 sm:$0xff]  }
 0x478   : > { %5335 = vmatprep.mubr.bf16.mxu1 %v11471_v24  ;;  %v9657_v24 = vld [vmem:[%s10951_s25 + $0x948] ss:$16 sps:$4 sm:$0xff]   ;;  %v9704_v36 = vld [vmem:[%s10951_s25 + $0xcec] ss:$16 sps:$4 sm:$0xff]  }
 0x479   : > { %5265 = vmatpush1.bf16.msra.mxu0 %v9645_v46  ;;  %v9672_v46 = vld [vmem:[%s10951_s25 + $0xb88] ss:$16 sps:$4 sm:$0xff]  }
 0x47a   : > { %5310 = vmatpush1.bf16.msra.mxu1 %v9648_v28  ;;  %5356 = vmatprep.subr.bf16.mxu0 %v9656_v23  ;;  %v9677_v28 = vld [vmem:[%s10951_s25 + $0xaec] ss:$16 sps:$4 sm:$0xff]  }
 0x47b   : > { %5311 = vmatprep.subr.bf16.mxu1 %v9653_v27  ;;  %v9678_v27 = vld [vmem:[%s10951_s25 + $0xb68] ss:$16 sps:$4 sm:$0xff]   ;;  %v9683_v23 = vld [vmem:[%s10951_s25 + $0xacc] ss:$16 sps:$4 sm:$0xff]  }
 0x47c   : > { %8480 = vmatmul.mubr.msk.bf16.vlgmr.msra.gmra.mxu0 %vm2750_vm9, %v11618_v7 }
 0x47d   : > { %5357 = vmatpush1.bf16.msra.mxu0 %v9654_v14  ;;  %5292 = vmatprep.mubr.bf16.mxu0 %v12922_v3  ;;  %v9692_v14 = vld [vmem:[%s10951_s25 + $0xb2c] ss:$16 sps:$4 sm:$0xff]  }
 0x47e   : > { %5312 = vmatpush1.bf16.msra.mxu1 %v9651_v26  ;;  %5358 = vmatprep.subr.bf16.mxu0 %v9662_v9  ;;  %v9684_v26 = vld [vmem:[%s10951_s25 + $0xb48] ss:$16 sps:$4 sm:$0xff]  }
 0x47f   : > { %5313 = vmatprep.subr.bf16.mxu1 %v9659_v51  ;;  %v9698_v51 = vld [vmem:[%s10951_s25 + $0xb0c] ss:$16 sps:$4 sm:$0xff]   ;;  %v9693_v9 = vld [vmem:[%s10951_s25 + $0xa88] ss:$16 sps:$4 sm:$0xff]  }
 0x481   : > { %5359 = vmatpush1.bf16.msra.mxu0 %v9660_v20  ;;  %v9701_v20 = vld [vmem:[%s10951_s25 + $0xa6c] ss:$16 sps:$4 sm:$0xff]  }
 0x482   : > { %5314 = vmatpush1.bf16.msra.mxu1 %v9657_v24  ;;  %5360 = vmatprep.subr.bf16.mxu0 %v9668_v13  ;;  %v9696_v24 = vld [vmem:[%s10951_s25 + $0xb08] ss:$16 sps:$4 sm:$0xff]   ;;  %v9707_v13 = vld [vmem:[%s10951_s25 + $0xa4c] ss:$16 sps:$4 sm:$0xff]  }
 0x483   : > { %5315 = vmatprep.subr.bf16.mxu1 %v9665_v34  ;;  %v9702_v34 = vld [vmem:[%s10951_s25 + $0xce8] ss:$16 sps:$4 sm:$0xff]  }
 0x484   : > { %8481 = vmatmul.mubr.msk.bf16.gmra.mxu0 %vm2750_vm9, %v11635_v63 }
 0x485   : > { %5361 = vmatpush1.bf16.msra.mxu0 %v9666_v19  ;;  %5388 = vmatprep.mubr.bf16.mxu0 %v11475_v0  ;;  %v9689_v0 = vld [vmem:[%s10951_s25 + $0xaac] ss:$16 sps:$4 sm:$0xff]   ;;  %v9705_v19 = vld [vmem:[%s10951_s25 + $0xa48] ss:$16 sps:$4 sm:$0xff]  }
 0x486   : > { %5316 = vmatpush1.bf16.msra.mxu1 %v9663_v11  ;;  %5362 = vmatprep.subr.bf16.mxu0 %v9674_v61  ;;  %v9710_v11 = vld [vmem:[%s10951_s25 + $0xccc] ss:$16 sps:$4 sm:$0xff]  }
 0x487   : > { %5317 = vmatprep.subr.bf16.mxu1 %v9671_v53  ;;  %v9708_v53 = vld [vmem:[%s10951_s25 + $0xcc8] ss:$16 sps:$4 sm:$0xff]   ;;  %v9713_v61 = vld [vmem:[%s10951_s25 + $0xa2c] ss:$16 sps:$4 sm:$0xff]  }
 0x489   : > { %5363 = vmatpush1.bf16.msra.mxu0 %v9672_v46  ;;  %v9711_v46 = vld [vmem:[%s10951_s25 + $0xa28] ss:$16 sps:$4 sm:$0xff]  }
 0x48a   : > { %5318 = vmatpush1.bf16.msra.mxu1 %v9669_v38  ;;  %5364 = vmatprep.subr.bf16.mxu0 %v9680_v15  ;;  %v9716_v38 = vld [vmem:[%s10951_s25 + $0xcac] ss:$16 sps:$4 sm:$0xff]  }
 0x48b   : > { %5319 = vmatprep.subr.bf16.mxu1 %v9677_v28  ;;  %v9714_v28 = vld [vmem:[%s10951_s25 + $0xca8] ss:$16 sps:$4 sm:$0xff]   ;;  %v9719_v15 = vld [vmem:[%s10951_s25 + $0xa0c] ss:$16 sps:$4 sm:$0xff]  }
 0x48d   : > { %5365 = vmatpush1.bf16.msra.mxu0 %v9678_v27  ;;  %v9717_v27 = vld [vmem:[%s10951_s25 + $0xa08] ss:$16 sps:$4 sm:$0xff]  }
 0x48e   : > { %5320 = vmatpush2.bf16.msra.mxu1 %v9675_v12  ;;  %5366 = vmatprep.subr.bf16.mxu0 %v9686_v17  ;;  %v9722_v12 = vld [vmem:[%s10951_s25 + $0xc8c] ss:$16 sps:$4 sm:$0xff]  }
 0x48f   : > { %5321 = vmatprep.subr.bf16.mxu1 %v9683_v23  ;;  %v9720_v23 = vld [vmem:[%s10951_s25 + $0xc88] ss:$16 sps:$4 sm:$0xff]   ;;  %v9725_v17 = vld [vmem:[%s10951_s25 + $0xc6c] ss:$16 sps:$4 sm:$0xff]  }
 0x491   : > { %5367 = vmatpush1.bf16.msra.mxu0 %v9684_v26  ;;  %v9723_v26 = vld [vmem:[%s10951_s25 + $0xc68] ss:$16 sps:$4 sm:$0xff]  }
 0x492   : > { %5322 = vmatpush2.bf16.msra.mxu1 %v9681_v47  ;;  %5368 = vmatprep.subr.bf16.mxu0 %v9692_v14  ;;  %v9728_v47 = vld [vmem:[%s10951_s25 + $0xd6c] ss:$16 sps:$4 sm:$0xff]  }
 0x493   : > { %5323 = vmatprep.subr.bf16.mxu1 %v9689_v0  ;;  %v9726_v0 = vld [vmem:[%s10951_s25 + $0xd68] ss:$16 sps:$4 sm:$0xff]   ;;  %v9731_v14 = vld [vmem:[%s10951_s25 + $0xc4c] ss:$16 sps:$4 sm:$0xff]  }
 0x495   : > { %5369 = vmatpush1.bf16.msra.mxu0 %v9690_v4  ;;  %v9729_v4 = vld [vmem:[%s10951_s25 + $0xc48] ss:$16 sps:$4 sm:$0xff]  }
 0x496   : > { %5324 = vmatpush2.bf16.msra.mxu1 %v9687_v45  ;;  %5370 = vmatprep.subr.bf16.mxu0 %v9698_v51  ;;  %v9734_v45 = vld [vmem:[%s10951_s25 + $0xd4c] ss:$16 sps:$4 sm:$0xff]  }
 0x497   : > { %5325 = vmatprep.subr.bf16.mxu1 %v9695_v44  ;;  %v9732_v44 = vld [vmem:[%s10951_s25 + $0xd48] ss:$16 sps:$4 sm:$0xff]  }
 0x499   : > { %5371 = vmatpush1.bf16.msra.mxu0 %v9696_v24  ;;  %v9740_v24 = vld [vmem:[%s10951_s25 + $0xd2c] ss:$16 sps:$4 sm:$0xff]  }
 0x49a   : > { %5326 = vmatpush2.bf16.msra.mxu1 %v9693_v9  ;;  %5372 = vmatprep.subr.bf16.mxu0 %v9704_v36  ;;  %v9737_v9 = vld [vmem:[%s10951_s25 + $0xc2c] ss:$16 sps:$4 sm:$0xff]  }
 0x49b   : > { %5327 = vmatprep.subr.bf16.mxu1 %v9701_v20  ;;  %v9735_v20 = vld [vmem:[%s10951_s25 + $0xc28] ss:$16 sps:$4 sm:$0xff]  }
 0x49c   : > { %v11687_v51 = vpop.f32.mrf.mxu0 }
 0x49d   : > { %5373 = vmatpush2.bf16.msra.mxu0 %v9702_v34  ;;  %v9746_v34 = vld [vmem:[%s10951_s25 + $0xd0c] ss:$16 sps:$4 sm:$0xff]  }
 0x49e   : > { %5328 = vmatpush2.bf16.msra.mxu1 %v9699_v22  ;;  %5374 = vmatprep.subr.bf16.mxu0 %v9710_v11  ;;  %v11694_v36 = vpop.f32.mrf.mxu0  ;;  %v9743_v22 = vld [vmem:[%s10951_s25 + $0xc0c] ss:$16 sps:$4 sm:$0xff]   ;;  %v9744_v11 = vld [vmem:[%s10951_s25 + $0xd08] ss:$16 sps:$4 sm:$0xff]  }
 0x49f   : > { %5329 = vmatprep.subr.bf16.mxu1 %v9707_v13  ;;  %v9741_v13 = vld [vmem:[%s10951_s25 + $0xc08] ss:$16 sps:$4 sm:$0xff]  }
 0x4a1   : > { %5375 = vmatpush2.bf16.msra.mxu0 %v9708_v53  ;;  %v12925_v53 = vld [vmem:[#allocation3_spill] sm:$0xff] }
 0x4a2   : > { %5330 = vmatpush2.bf16.msra.mxu1 %v9705_v19  ;;  %5376 = vmatprep.subr.bf16.mxu0 %v9716_v38  ;;  %v11701_v19 = vpop.f32.mrf.mxu0  ;;  %v12927_v38 = vld [vmem:[#allocation5_spill] sm:$0xff] }
 0x4a3   : > { %5331 = vmatprep.subr.bf16.mxu1 %v9713_v61  ;;  %v12926_v61 = vld [vmem:[#allocation4_spill] sm:$0xff] }
 0x4a5   : > { %5377 = vmatpush2.bf16.msra.mxu0 %v9714_v28  ;;  %v11719_v28 = vpop.f32.mrf.mxu1 }
 0x4a6   : > { %5332 = vmatpush2.bf16.msra.mxu1 %v9711_v46  ;;  %5378 = vmatprep.subr.bf16.mxu0 %v9722_v12  ;;  %v12929_v46 = vld [vmem:[#allocation7_spill] sm:$0xff]  ;;  %v12936_v12 = vld [vmem:[#allocation14_spill] sm:$0xff] }
 0x4a7   : > { %5333 = vmatprep.subr.bf16.mxu1 %v9719_v15  ;;  %v11731_v15 = vpop.f32.mrf.mxu1 }
 0x4a9   : > { %5379 = vmatpush2.bf16.msra.mxu0 %v9720_v23 }
 0x4aa   : > { %5334 = vmatpush2.bf16.msra.mxu1 %v9717_v27  ;;  %5380 = vmatprep.subr.bf16.mxu0 %v9725_v17  ;;  %v12937_v27 = vld [vmem:[#allocation15_spill] sm:$0xff]  ;;  %v12939_v17 = vld [vmem:[#allocation17_spill] sm:$0xff] }
 0x4ab   : > { %5417 = vmatprep.subr.bf16.mxu1 %v9728_v47  ;;  %v12940_v47 = vld [vmem:[#allocation18_spill] sm:$0xff] }
 0x4ad   : > { %5336 = vmatmul.mubr.bf16.vlgmr.msra.gmra.mxu1 %v11562_v18  ;;  %5381 = vmatpush2.bf16.msra.mxu0 %v9723_v26  ;;  %v9738_v18 = vld [vmem:[%s10951_s25 + $0xd28] ss:$16 sps:$4 sm:$0xff]  }
 0x4ae   : > { %5418 = vmatpush1.bf16.msra.mxu1 %v9726_v0  ;;  %5382 = vmatprep.subr.bf16.mxu0 %v9731_v14  ;;  %v12941_v26 = vld [vmem:[#allocation19_spill] sm:$0xff]  ;;  %v11744_v0 = vpop.f32.mrf.mxu1  ;;  %v12943_v14 = vld [vmem:[#allocation21_spill] sm:$0xff] }
 0x4af   : > { %5419 = vmatprep.subr.bf16.mxu1 %v9734_v45  ;;  %5345 = vmatprep.mubr.bf16.mxu1 %v11582_v41  ;;  %v11704_v41 = vpop.f32.mrf.mxu0  ;;  %v12945_v45 = vld [vmem:[#allocation23_spill] sm:$0xff] }
 0x4b1   : > { %5383 = vmatpush2.bf16.msra.mxu0 %v9729_v4 }
 0x4b2   : > { %5420 = vmatpush1.bf16.msra.mxu1 %v9732_v44  ;;  %5384 = vmatprep.subr.bf16.mxu0 %v9737_v9  ;;  %v12946_v44 = vld [vmem:[#allocation24_spill] sm:$0xff]  ;;  %v12947_v9 = vld [vmem:[#allocation25_spill] sm:$0xff] }
 0x4b3   : > { %5421 = vmatprep.subr.bf16.mxu1 %v9740_v24  ;;  %v12948_v24 = vld [vmem:[#allocation26_spill] sm:$0xff] }
 0x4b5   : > { %5346 = vmatmul.mubr.bf16.gmra.mxu1 %v11597_v6  ;;  %5385 = vmatpush2.bf16.msra.mxu0 %v9735_v20  ;;  %v11713_v6 = vpop.f32.mrf.mxu0  ;;  %v12949_v20 = vld [vmem:[#allocation27_spill] sm:$0xff] }
 0x4b6   : > { %5422 = vmatpush1.bf16.msra.mxu1 %v9738_v18  ;;  %5386 = vmatprep.subr.bf16.mxu0 %v9743_v22  ;;  %v11756_v18 = vpop.f32.mrf.mxu1  ;;  %v12950_v22 = vld [vmem:[#allocation28_spill] sm:$0xff] }
 0x4b7   : > { %5423 = vmatprep.subr.bf16.mxu1 %v9746_v34  ;;  %5441 = vmatprep.mubr.bf16.mxu1 %v12922_v3  ;;  %v12951_v34 = vld [vmem:[#allocation29_spill] sm:$0xff] }
 0x4b9   : > { %5387 = vmatpush2.bf16.msra.mxu0 %v9741_v13  ;;  %v12952_v13 = vld [vmem:[#allocation30_spill] sm:$0xff] }
 0x4ba   : > { %5424 = vmatpush1.bf16.msra.mxu1 %v9744_v11  ;;  %8826 = vmatprep.subr.mxu0 %v12925_v53  ;;  %v12953_v11 = vld [vmem:[#allocation31_spill] sm:$0xff] }
 0x4bb   : > { %8870 = vmatprep.subr.mxu1 %v12926_v61 }
 0x4bc   : > { %5389 = vmatmul.mubr.bf16.vlgmr.msra.gmra.mxu0 %v11566_v16  ;;  %v12930_v16 = vld [vmem:[#allocation8_spill] sm:$0xff] }
 0x4bd   : > { %8482 = vmatmul.mubr.msk.bf16.vlgmr.msra.gmra.mxu1 %vm2750_vm9, %v11618_v7  ;;  %5398 = vmatprep.mubr.bf16.mxu0 %v11584_v31  ;;  %v12932_v7 = vld [vmem:[#allocation10_spill] sm:$0xff]  ;;  %v12933_v31 = vld [vmem:[#allocation11_spill] sm:$0xff] }
 0x4be   : > { %5451 = vmatprep.mubr.bf16.mxu1 %v12922_v3  ;;  %8827 = vmatpush3.msra.mxu0 %v12927_v38  ;;  %v11725_v3 = vpop.f32.mrf.mxu0 }
 0x4bf   : > { %8871 = vmatpush3.msra.mxu1 %v12928_v48  ;;  %8828 = vmatprep.subr.mxu0 %v10196_v49  ;;  %v12965_v48 = vld [vmem:[#allocation43_spill] sm:$0xff] }
 0x4c0   : > { %8872 = vmatprep.subr.mxu1 %v12929_v46  ;;  %8829 = vmatpush3.msra.mxu0 %v12930_v16  ;;  %v11738_v23 = vpop.f32.mrf.mxu0  ;;  %v12963_v46 = vld [vmem:[#allocation41_spill] sm:$0xff] }
 0x4c1   : > { %8873 = vmatpush3.msra.mxu1 %v12931_v52  ;;  %8830 = vmatprep.subr.mxu0 %v12932_v7  ;;  %v12962_v52 = vld [vmem:[#allocation40_spill] sm:$0xff] }
 0x4c2   : > { %8874 = vmatprep.subr.mxu1 %v12933_v31  ;;  %8831 = vmatpush3.msra.mxu0 %v10232_v55  ;;  %v11750_v4 = vpop.f32.mrf.mxu0 }
 0x4c3   : > { %8875 = vmatpush3.msra.mxu1 %v12934_v56  ;;  %8832 = vmatprep.subr.mxu0 %v10247_v58  ;;  %v12961_v56 = vld [vmem:[#allocation39_spill] sm:$0xff] }
 0x4c4   : > { %8876 = vmatprep.subr.mxu1 %v12935_v59  ;;  %5399 = vmatmul.mubr.bf16.gmra.mxu0 %v11599_v21  ;;  %v12942_v21 = vld [vmem:[#allocation20_spill] sm:$0xff]  ;;  %v12959_v59 = vld [vmem:[#allocation37_spill] sm:$0xff] }
 0x4c5   : > { %8483 = vmatmul.mubr.msk.bf16.gmra.mxu1 %vm2750_vm9, %v11635_v63  ;;  %8833 = vmatpush3.msra.mxu0 %v12936_v12  ;;  %v12944_v63 = vld [vmem:[#allocation22_spill] sm:$0xff] }
 0x4c6   : > { %8877 = vmatpush3.msra.mxu1 %v12937_v27  ;;  %8834 = vmatprep.subr.mxu0 %v12938_v62  ;;  %v12958_v27 = vld [vmem:[#allocation36_spill] sm:$0xff] }
 0x4c7   : > { %8878 = vmatprep.subr.mxu1 %v12939_v17  ;;  %8835 = vmatpush3.msra.mxu0 %v12940_v47  ;;  %v12956_v17 = vld [vmem:[#allocation34_spill] sm:$0xff] }
 0x4c8   : > { %8879 = vmatpush3.msra.mxu1 %v12941_v26  ;;  %8836 = vmatprep.subr.mxu0 %v12942_v21  ;;  %v12954_v26 = vld [vmem:[#allocation32_spill] sm:$0xff] }
 0x4c9   : > { %8880 = vmatprep.subr.mxu1 %v12943_v14  ;;  %8837 = vmatpush3.msra.mxu0 %v12944_v63  ;;  %v11764_v14 = vpop.f32.mrf.mxu0 }
 0x4ca   : > { %8881 = vmatpush3.msra.mxu1 %v12945_v45  ;;  %8838 = vmatprep.subr.mxu0 %v12946_v44  ;;  %v11762_v45 = vpop.f32.mrf.mxu1 }
 0x4cb   : > { %8882 = vmatprep.subr.mxu1 %v12947_v9  ;;  %8839 = vmatpush3.msra.mxu0 %v12948_v24  ;;  %v12955_v9 = vld [vmem:[#allocation33_spill] sm:$0xff]  ;;  %v11776_v31 = vpop.f32.mrf.mxu0 }
 0x4cc   : > { %8883 = vmatpush3.msra.mxu1 %v12949_v20  ;;  %8840 = vmatprep.subr.mxu0 %v12950_v22  ;;  %v12957_v20 = vld [vmem:[#allocation35_spill] sm:$0xff] }
 0x4cd   : > { %8884 = vmatprep.subr.mxu1 %v12951_v34  ;;  %8841 = vmatpush3.msra.mxu0 %v12952_v13  ;;  %v12960_v34 = vld [vmem:[#allocation38_spill] sm:$0xff]  ;;  %v11788_v32 = vpop.f32.mrf.mxu0 }
 0x4ce   : > { %8885 = vmatpush3.msra.mxu1 %v12953_v11  ;;  %8842 = vmatprep.subr.mxu0 %v12954_v26  ;;  %v11774_v11 = vpop.f32.mrf.mxu1 }
 0x4cf   : > { %8886 = vmatprep.subr.mxu1 %v12955_v9  ;;  %8843 = vmatpush3.msra.mxu0 %v12956_v17  ;;  %v12964_v9 = vld [vmem:[#allocation42_spill] sm:$0xff]  ;;  %v12985_v17 = vld [vmem:[#allocation63_spill] sm:$0xff] }
 0x4d0   : > { %8887 = vmatpush3.msra.mxu1 %v12957_v20  ;;  %8844 = vmatprep.subr.mxu0 %v12958_v27  ;;  %v12966_v20 = vld [vmem:[#allocation44_spill] sm:$0xff] }
 0x4d1   : > { %8888 = vmatprep.subr.mxu1 %v12959_v59  ;;  %8845 = vmatpush3.msra.mxu0 %v12960_v34  ;;  %v12968_v59 = vld [vmem:[#allocation46_spill] sm:$0xff]  ;;  %v11800_v34 = vpop.f32.mrf.mxu0  ;;  %v12978_v27 = vld [vmem:[#allocation56_spill] sm:$0xff] }
 0x4d2   : > { %8889 = vmatpush3.msra.mxu1 %v12961_v56  ;;  %8846 = vmatprep.subr.mxu0 %v12962_v52  ;;  %v11786_v56 = vpop.f32.mrf.mxu1  ;;  %v12971_v52 = vld [vmem:[#allocation49_spill] sm:$0xff] }
 0x4d3   : > { %8890 = vmatprep.subr.mxu1 %v12963_v46  ;;  %8847 = vmatpush3.msra.mxu0 %v12964_v9  ;;  %v12972_v46 = vld [vmem:[#allocation50_spill] sm:$0xff]  ;;  %v12973_v9 = vld [vmem:[#allocation51_spill] sm:$0xff]  ;;  %v11811_v26 = vpop.f32.mrf.mxu0 }
 0x4d4   : > { %8891 = vmatpush3.msra.mxu1 %v12965_v48  ;;  %8848 = vmatprep.subr.mxu0 %v12966_v20  ;;  %v12974_v48 = vld [vmem:[#allocation52_spill] sm:$0xff]  ;;  %v12975_v20 = vld [vmem:[#allocation53_spill] sm:$0xff] }
 0x4d5   : > { %8892 = vmatprep.subr.mxu1 %v12967_v1  ;;  %8849 = vmatpush3.msra.mxu0 %v12968_v59  ;;  %v12976_v1 = vld [vmem:[#allocation54_spill] sm:$0xff]  ;;  %v12977_v59 = vld [vmem:[#allocation55_spill] sm:$0xff] }
 0x4d6   : > { %8893 = vmatpush3.msra.mxu1 %v12969_v37  ;;  %8850 = vmatprep.subr.mxu0 %v12970_v33  ;;  %v11798_v37 = vpop.f32.mrf.mxu1  ;;  %v12979_v33 = vld [vmem:[#allocation57_spill] sm:$0xff] }
 0x4d7   : > { %8894 = vmatprep.subr.mxu1 %v12971_v52  ;;  %8851 = vmatpush3.msra.mxu0 %v12972_v46  ;;  %v12980_v52 = vld [vmem:[#allocation58_spill] sm:$0xff]  ;;  %v12981_v46 = vld [vmem:[#allocation59_spill] sm:$0xff] }
 0x4d8   : > { %8895 = vmatpush3.msra.mxu1 %v12973_v9  ;;  %8852 = vmatprep.subr.mxu0 %v12974_v48  ;;  %v12982_v48 = vld [vmem:[#allocation60_spill] sm:$0xff] }
 0x4d9   : > { %8896 = vmatprep.subr.mxu1 %v12975_v20  ;;  %8853 = vmatpush3.msra.mxu0 %v12976_v1  ;;  %v12983_v20 = vld [vmem:[#allocation61_spill] sm:$0xff] }
 0x4da   : > { %8897 = vmatpush3.msra.mxu1 %v12977_v59  ;;  %8854 = vmatprep.subr.mxu0 %v12978_v27  ;;  %v12984_v59 = vld [vmem:[#allocation62_spill] sm:$0xff] }
 0x4db   : > { %8898 = vmatprep.subr.mxu1 %v12979_v33  ;;  %8855 = vmatpush3.msra.mxu0 %v12980_v52  ;;  %v11817_v52 = vpop.f32.mrf.mxu0 }
 0x4dc   : > { %8899 = vmatpush3.msra.mxu1 %v12981_v46  ;;  %8856 = vmatprep.subr.mxu0 %v12982_v48 }
 0x4dd   : > { %v4044_v9 = vpop.f32.mrf.mxu1  ;;  %8900 = vmatprep.subr.mxu1 %v12983_v20  ;;  %8857 = vmatpush3.msra.mxu0 %v12984_v59  ;;  %v11821_v59 = vpop.f32.mrf.mxu0 }
 0x4de   : > { %v4045_v1 = vadd.f32 %v4044_v9, %v11535_v54  ;;  %8901 = vmatpush3.msra.mxu1 %v12985_v17  ;;  %8914 = vmatprep.subr.mxu0 %v12925_v53  ;;  %12986 = vst [vmem:[#allocation89_spill] sm:$0xff] %v11821_v59 }
 0x4df   : > { %v4046_v27 = vpop.f32.mrf.mxu1  ;;  %8958 = vmatprep.subr.mxu1 %v12926_v61 }
 0x4e0   : > { %v4047_v46 = vadd.f32 %v4046_v27, %v11539_v29  ;;  %v11825_v29 = vpop.f32.mrf.mxu0 }
 0x4e1   : > { %v4048_v33 = vpop.f32.mrf.mxu1 }
 0x4e2   : > { %v4049_v48 = vadd.f32 %v4048_v33, %v11544_v35 }
 0x4e3   : > { %v4050_v20 = vpop.f32.mrf.mxu1 }
 0x4e4   : > { %v4051_v54 = vadd.f32 %v4050_v20, %v11546_v25 }
 0x4e5   : > { %v4054_v9 = vpop.f32.mrf.mxu1 }
 0x4e6   : > { %v4055_v17 = vadd.f32 %v4054_v9, %v11554_v43 }
 0x4e7   : > { %v4056_v13 = vpop.f32.mrf.mxu1 }
 0x4e8   : > { %v4057_v53 = vadd.f32 %v4056_v13, %v11573_v42 }
 0x4e9   : > { %v4058_v22 = vpop.f32.mrf.mxu1 }
 0x4ea   : > { %v4059_v61 = vadd.f32 %v4058_v22, %v11580_v5 }
 0x4eb   : > { %v4060_v27 = vpop.f32.mrf.mxu1 }
 0x4ec   : > { %v4061_v33 = vadd.f32 %v4060_v27, %v11589_v10  ;;  %v4097_v35 = vpop.f32.mrf.mxu0 }
 0x4ed   : > { %v4150_v24 = vpop.f32.mrf.mxu1  ;;  %v4098_v44 = vadd.f32 %v4097_v35, %v4045_v1 }
 0x4ee   : > { %v4099_v25 = vpop.f32.mrf.mxu0 }
 0x4ef   : > { %v4152_v20 = vpop.f32.mrf.mxu1  ;;  %v11828_v63 = vadd.f32 %v4150_v24, %v4098_v44  ;;  %v4100_v43 = vadd.f32 %v4099_v25, %v4047_v46 }
 0x4f0   : > { %v4101_v9 = vpop.f32.mrf.mxu0 }
 0x4f1   : > { %v4154_v21 = vpop.f32.mrf.mxu1  ;;  %v11830_v47 = vadd.f32 %v4152_v20, %v4100_v43  ;;  %v4102_v42 = vadd.f32 %v4101_v9, %v4049_v48 }
 0x4f2   : > { %v4103_v13 = vpop.f32.mrf.mxu0 }
 0x4f3   : > { %v4156_v5 = vpop.f32.mrf.mxu1  ;;  %v11832_v22 = vadd.f32 %v4154_v21, %v4102_v42  ;;  %v4104_v62 = vadd.f32 %v4103_v13, %v4051_v54 }
 0x4f4   : > { %v4107_v59 = vpop.f32.mrf.mxu0 }
 0x4f5   : > { %12987 = vst [vmem:[#allocation90_spill] sm:$0xff] %v11832_v22  ;;  %v4160_v10 = vpop.f32.mrf.mxu1  ;;  %v11834_v27 = vadd.f32 %v4156_v5, %v4104_v62  ;;  %v4108_v1 = vadd.f32 %v4107_v59, %v4055_v17 }
 0x4f6   : > { %v4109_v35 = vpop.f32.mrf.mxu0 }
 0x4f7   : > { %v4162_v12 = vpop.f32.mrf.mxu1  ;;  %v4110_v44 = vadd.f32 %v4109_v35, %v4057_v53  ;;  %v11836_v24 = vadd.f32 %v4160_v10, %v4108_v1 }
 0x4f8   : > { %v4111_v46 = vpop.f32.mrf.mxu0 }
 0x4f9   : > { %12988 = vst [vmem:[#allocation91_spill] sm:$0xff] %v11836_v24  ;;  %v4164_v25 = vpop.f32.mrf.mxu1  ;;  %v4112_v20 = vadd.f32 %v4111_v46, %v4059_v61  ;;  %v11838_v43 = vadd.f32 %v4162_v12, %v4110_v44  ;;  %v3888_v12 = vadd.f32 %v11694_v36, %v11405_v40 }
 0x4fa   : > { %v4113_v48 = vpop.f32.mrf.mxu0 }
 0x4fb   : > { %12989 = vst [vmem:[#allocation92_spill] sm:$0xff] %v11838_v43  ;;  %v4166_v9 = vpop.f32.mrf.mxu1  ;;  %v4114_v21 = vadd.f32 %v4113_v48, %v4061_v33  ;;  %v11840_v42 = vadd.f32 %v4164_v25, %v4112_v20  ;;  %v3886_v33 = vadd.f32 %v11687_v51, %v11400_v57  ;;  %v3941_v48 = vadd.f32 %v11731_v15, %v3888_v12 }
 0x4fd   : > { %12990 = vst [vmem:[#allocation93_spill] sm:$0xff] %v11840_v42  ;;  %v11842_v54 = vadd.f32 %v4166_v9, %v4114_v21  ;;  %v3892_v9 = vadd.f32 %v11704_v41, %v11414_v39  ;;  %v3939_v42 = vadd.f32 %v11719_v28, %v3886_v33  ;;  %v3994_v57 = vadd.f32 %v11776_v31, %v3941_v48 }
 0x4fe   : > { %v3898_v39 = vadd.f32 %v11725_v3, %v11423_v50 }
 0x4ff   : > { %12991 = vst [vmem:[#allocation94_spill] sm:$0xff] %v11842_v54  ;;  %v3890_v54 = vadd.f32 %v11701_v19, %v11410_v8  ;;  %v3945_v15 = vadd.f32 %v11756_v18, %v3892_v9  ;;  %v3896_v19 = vadd.f32 %v11713_v6, %v11419_v60  ;;  %v3902_v60 = vadd.f32 %v11750_v4, %v11432_v2  ;;  %v12996_v9 = vld [vmem:[#allocation20_spill] sm:$0xff] }
 0x501   : > { %v3943_v8 = vadd.f32 %v11744_v0, %v3890_v54  ;;  %v3951_v0 = vadd.f32 %v11774_v11, %v3898_v39  ;;  %v13005_v39 = vld [vmem:[#allocation38_spill] sm:$0xff] }
 0x503   : > { %v3996_v50 = vadd.f32 %v11788_v32, %v3943_v8  ;;  %v13007_v8 = vld [vmem:[#allocation42_spill] sm:$0xff] }
 0x52c   : > { %v5178_v62 = vpop.f32.mrf.mxu0 }
 0x52d   : > { %v5231_v13 = vpop.f32.mrf.mxu1 }
 0x52e   : > { %v5180_v59 = vpop.f32.mrf.mxu0  ;;  %v5232_v25 = vadd.f32 %v5231_v13, %v5178_v62  ;;  %v3992_v62 = vadd.f32 %v11764_v14, %v3939_v42  ;;  %v3998_v42 = vadd.f32 %v11800_v34, %v3945_v15  ;;  %v3949_v34 = vadd.f32 %v11762_v45, %v3896_v19  ;;  %v13004_v15 = vld [vmem:[#allocation36_spill] sm:$0xff] }
 0x52f   : > { %v5233_v17 = vpop.f32.mrf.mxu1  ;;  %v13008_v19 = vld [vmem:[#allocation44_spill] sm:$0xff] }
 0x530   : > { %v5182_v5 = vpop.f32.mrf.mxu0  ;;  %v5234_v21 = vadd.f32 %v5233_v17, %v5180_v59  ;;  %v4002_v4 = vadd.f32 %v11811_v26, %v3949_v34  ;;  %v13018_v34 = vld [vmem:[#allocation64_spill] sm:$0xff] }
 0x531   : > { %v5235_v53 = vpop.f32.mrf.mxu1 }
 0x532   : > { %v5184_v10 = vpop.f32.mrf.mxu0  ;;  %v5236_v13 = vadd.f32 %v5235_v53, %v5182_v5 }
 0x533   : > { %v5237_v35 = vpop.f32.mrf.mxu1 }
 0x534   : > { %v5188_v1 = vpop.f32.mrf.mxu0  ;;  %v5238_v41 = vadd.f32 %v5237_v35, %v5184_v10 }
 0x535   : > { %v5241_v44 = vpop.f32.mrf.mxu1 }
 0x536   : > { %v5190_v24 = vpop.f32.mrf.mxu0  ;;  %v5242_v3 = vadd.f32 %v5241_v44, %v5188_v1  ;;  %v4004_v1 = vadd.f32 %v11817_v52, %v3951_v0  ;;  %v12992_v44 = vld [vmem:[#allocation14_spill] sm:$0xff]  ;;  %v13016_v0 = vld [vmem:[#allocation60_spill] sm:$0xff] }
 0x537   : > { %v5243_v43 = vpop.f32.mrf.mxu1 }
 0x538   : > { %v5192_v61 = vpop.f32.mrf.mxu0  ;;  %v5244_v6 = vadd.f32 %v5243_v43, %v5190_v24 }
 0x539   : > { %v5245_v59 = vpop.f32.mrf.mxu1 }
 0x53a   : > { %v5194_v46 = vpop.f32.mrf.mxu0  ;;  %v5246_v45 = vadd.f32 %v5245_v59, %v5192_v61  ;;  %v13009_v59 = vld [vmem:[#allocation46_spill] sm:$0xff] }
 0x53b   : > { %v5247_v32 = vpop.f32.mrf.mxu1 }
 0x53c   : > { %v5284_v20 = vpop.f32.mrf.mxu0  ;;  %v5248_v24 = vadd.f32 %v5247_v32, %v5194_v46 }
 0x53d   : > { %v5285_v40 = vadd.f32 %v5284_v20, %v5232_v25  ;;  %v12994_v25 = vld [vmem:[#allocation16_spill] sm:$0xff]  ;;  %v12995_v20 = vld [vmem:[#allocation18_spill] sm:$0xff] }
 0x53e   : > { %v5286_v36 = vpop.f32.mrf.mxu0 }
 0x53f   : > { %v5287_v51 = vadd.f32 %v5286_v36, %v5234_v21  ;;  %v11864_v31 = vadd.f32 %v5285_v40, %v3992_v62  ;;  %v12998_v40 = vld [vmem:[#allocation24_spill] sm:$0xff]  ;;  %v12999_v36 = vld [vmem:[#allocation26_spill] sm:$0xff] }
 0x540   : > { %v5288_v22 = vpop.f32.mrf.mxu0  ;;  %v13002_v62 = vld [vmem:[#allocation32_spill] sm:$0xff] }
 0x541   : > { %v11859_v28 = vadd.f32 %v5287_v51, %v3994_v57  ;;  %v5289_v17 = vadd.f32 %v5288_v22, %v5236_v13  ;;  %v3900_v22 = vadd.f32 %v11738_v23, %v11429_v30  ;;  %v3955_v23 = vadd.f32 %v11798_v37, %v3902_v60  ;;  %v12993_v37 = vld [vmem:[#allocation89_spill] sm:$0xff]  ;;  %v13000_v57 = vld [vmem:[#allocation28_spill] sm:$0xff]  ;;  %v13001_v51 = vld [vmem:[#allocation30_spill] sm:$0xff] }
 0x542   : > { %v5290_v14 = vpop.f32.mrf.mxu0  ;;  %v13003_v13 = vld [vmem:[#allocation34_spill] sm:$0xff] }
 0x543   : > { %v5291_v5 = vadd.f32 %v5290_v14, %v5238_v41  ;;  %5547 = vmatprep.mubr.f32.mxu0 %v11859_v28  ;;  %v11879_v53 = vadd.f32 %v5289_v17, %v3996_v50  ;;  %v3953_v52 = vadd.f32 %v11786_v56, %v3900_v22  ;;  %v4008_v61 = vadd.f32 %v11825_v29, %v3955_v23  ;;  %v12997_v29 = vld [vmem:[#allocation22_spill] sm:$0xff]  ;;  %v13006_v41 = vld [vmem:[#allocation40_spill] sm:$0xff] }
 0x544   : > { %v5294_v18 = vpop.f32.mrf.mxu0  ;;  %5548 = vmatmul.mubr.f32.vlgmr.msra.gmra.mxu0 %v11864_v31  ;;  %v5654_v21 = vmul.f32 %v11859_v28, %v11859_v28  ;;  %v13010_v17 = vld [vmem:[#allocation48_spill] sm:$0xff]  ;;  %v13011_v14 = vld [vmem:[#allocation50_spill] sm:$0xff] }
 0x545   : > { %v11873_v54 = vadd.f32 %v5291_v5, %v3998_v42  ;;  %8915 = vmatpush3.msra.mxu0 %v12927_v38  ;;  %v5295_v10 = vadd.f32 %v5294_v18, %v5242_v3  ;;  %v4006_v46 = vadd.f32 %v12993_v37, %v3953_v52  ;;  %v13012_v42 = vld [vmem:[#allocation52_spill] sm:$0xff]  ;;  %v13013_v5 = vld [vmem:[#allocation54_spill] sm:$0xff]  ;;  %v5653_v18 = vmul.f32 %v11864_v31, %v11864_v31 }
 0x546   : > { %8916 = vmatprep.subr.mxu0 %v10196_v49  ;;  %v5296_v11 = vpop.f32.mrf.mxu0  ;;  %v13014_v50 = vld [vmem:[#allocation56_spill] sm:$0xff]  ;;  %v13015_v3 = vld [vmem:[#allocation58_spill] sm:$0xff]  ;;  %v5657_v32 = vmul.f32 %v11879_v53, %v11879_v53 }
 0x547   : > { %v5297_v2 = vadd.f32 %v5296_v11, %v5244_v6  ;;  %8917 = vmatpush3.msra.mxu0 %v12930_v16  ;;  %5552 = vmatprep.mubr.f32.mxu0 %v11873_v54  ;;  %v11893_v35 = vadd.f32 %v5295_v10, %v4002_v4  ;;  %v13017_v60 = vld [vmem:[#allocation62_spill] sm:$0xff]  ;;  %v5658_v6 = vmul.f32 %v11873_v54, %v11873_v54  ;;  %v13020_v10 = vld [vmem:[#allocation68_spill] sm:$0xff] }
 0x548   : > { %8918 = vmatprep.subr.mxu0 %v12932_v7  ;;  %v5298_v30 = vpop.f32.mrf.mxu0  ;;  %5553 = vmatmul.mubr.f32.gmra.mxu0 %v11879_v53  ;;  %v13019_v22 = vld [vmem:[#allocation66_spill] sm:$0xff] }
 0x549   : > { %v11889_v43 = vadd.f32 %v5297_v2, %v4004_v1  ;;  %8919 = vmatpush3.msra.mxu0 %v10232_v55  ;;  %v5299_v12 = vadd.f32 %v5298_v30, %v5246_v45  ;;  %v13021_v1 = vld [vmem:[#allocation70_spill] sm:$0xff]  ;;  %v13022_v2 = vld [vmem:[#allocation72_spill] sm:$0xff]  ;;  %v5661_v45 = vmul.f32 %v11893_v35, %v11893_v35 }
 0x54a   : > { %8920 = vmatprep.subr.mxu0 %v10247_v58  ;;  %v5300_v26 = vpop.f32.mrf.mxu0  ;;  %v13023_v4 = vld [vmem:[#allocation74_spill] sm:$0xff]  ;;  %v13024_v30 = vld [vmem:[#allocation76_spill] sm:$0xff] }
 0x54b   : > { %v5301_v33 = vadd.f32 %v5300_v26, %v5248_v24  ;;  %8921 = vmatpush3.msra.mxu0 %v12992_v44  ;;  %5557 = vmatprep.mubr.f32.mxu0 %v11889_v43  ;;  %v11905_v48 = vadd.f32 %v5299_v12, %v4006_v46  ;;  %v5662_v11 = vmul.f32 %v11889_v43, %v11889_v43  ;;  %v13025_v24 = vld [vmem:[#allocation78_spill] sm:$0xff] }
 0x54c   : > { %8922 = vmatprep.subr.mxu0 %v12994_v25  ;;  %5558 = vmatmul.mubr.f32.gmra.mxu0 %v11893_v35  ;;  %v9781_v49 = vld [vmem:[%s12629_s7 + $0xc4] ss:$16 sps:$4 sm:$0xff] (%p1527_p0)   ;;  %v9785_v58 = vld [vmem:[%s12629_s7 + $0xc0] ss:$16 sps:$4 sm:$0xff] (%p1527_p0)  }
 0x54d   : > { %v11902_v56 = vadd.f32 %v5301_v33, %v4008_v61  ;;  %8923 = vmatpush3.msra.mxu0 %v12995_v20  ;;  %v5665_v26 = vmul.f32 %v11905_v48, %v11905_v48  ;;  %v9783_v55 = vld [vmem:[%s12629_s7 + $0x2c4] ss:$16 sps:$4 sm:$0xff] (%p1527_p0)   ;;  %v9786_v38 = vld [vmem:[%s12629_s7 + $0x2c0] ss:$16 sps:$4 sm:$0xff] (%p1527_p0)  }
 0x54e   : > { %8924 = vmatprep.subr.mxu0 %v12996_v9 }
 0x54f   : > { %8925 = vmatpush3.msra.mxu0 %v12997_v29  ;;  %5562 = vmatprep.mubr.f32.mxu0 %v11902_v56  ;;  %v5666_v23 = vmul.f32 %v11902_v56, %v11902_v56 }
 0x550   : > { %8926 = vmatprep.subr.mxu0 %v12998_v40  ;;  %5563 = vmatmul.mubr.f32.gmra.mxu0 %v11905_v48 }
 0x551   : > { %8927 = vmatpush3.msra.mxu0 %v12999_v36  ;;  %5733 = vmatprep.mubr.f32.mxu0 %v5654_v21 }
 0x552   : > { %8928 = vmatprep.subr.mxu0 %v13000_v57 }
 0x553   : > { %8929 = vmatpush3.msra.mxu0 %v13001_v51 }
 0x554   : > { %8930 = vmatprep.subr.mxu0 %v13002_v62 }
 0x555   : > { %8931 = vmatpush3.msra.mxu0 %v13003_v13 }
 0x556   : > { %8932 = vmatprep.subr.mxu0 %v13004_v15 }
 0x557   : > { %8933 = vmatpush3.msra.mxu0 %v13005_v39 }
 0x558   : > { %8934 = vmatprep.subr.mxu0 %v13006_v41 }
 0x559   : > { %8935 = vmatpush3.msra.mxu0 %v13007_v8 }
 0x55a   : > { %8936 = vmatprep.subr.mxu0 %v13008_v19 }
 0x55b   : > { %8937 = vmatpush3.msra.mxu0 %v13009_v59 }
 0x55c   : > { %8938 = vmatprep.subr.mxu0 %v13010_v17 }
 0x55d   : > { %8939 = vmatpush3.msra.mxu0 %v13011_v14 }
 0x55e   : > { %8940 = vmatprep.subr.mxu0 %v13012_v42 }
 0x55f   : > { %8941 = vmatpush3.msra.mxu0 %v13013_v5 }
 0x560   : > { %8942 = vmatprep.subr.mxu0 %v13014_v50 }
 0x561   : > { %8943 = vmatpush3.msra.mxu0 %v13015_v3 }
 0x562   : > { %8944 = vmatprep.subr.mxu0 %v13016_v0 }
 0x563   : > { %8945 = vmatpush3.msra.mxu0 %v13017_v60  ;;  %v13026_v60 = vld [vmem:[#allocation6_spill] sm:$0xff] }
 0x564   : > { %5734 = vmatmul.mubr.f32.vlgmr.msra.gmra.mxu0 %v5653_v18  ;;  %5897 = vmatprep.subr.mxu0 %v13018_v34 }
 0x565   : > { %5738 = vmatprep.mubr.f32.mxu0 %v5658_v6  ;;  %5898 = vmatpush1.msra.mxu0 %v13019_v22  ;;  %v13027_v6 = vld [vmem:[#allocation90_spill] sm:$0xff] }
 0x566   : > { %5899 = vmatprep.subr.mxu0 %v13020_v10 }
 0x567   : > { %5900 = vmatpush1.msra.mxu0 %v13021_v1 }
 0x568   : > { %5739 = vmatmul.mubr.f32.gmra.mxu0 %v5657_v32  ;;  %5901 = vmatprep.subr.mxu0 %v13022_v2 }
 0x569   : > { %5743 = vmatprep.mubr.f32.mxu0 %v5662_v11  ;;  %5902 = vmatpush1.msra.mxu0 %v13023_v4  ;;  %v13028_v11 = vld [vmem:[#allocation7_spill] sm:$0xff] }
 0x56a   : > { %5903 = vmatprep.subr.mxu0 %v13024_v30 }
 0x56b   : > { %5904 = vmatpush1.msra.mxu0 %v13025_v24 }
 0x56c   : > { %5744 = vmatmul.mubr.f32.gmra.mxu0 %v5661_v45  ;;  %6042 = vmatprep.subr.mxu0 %v13018_v34  ;;  %v9787_v34 = vld [vmem:[%s12629_s7 + $0xa4] ss:$16 sps:$4 sm:$0xff] (%p1527_p0)  }
 0x56d   : > { %v5337_v52 = vpop.f32.mrf.mxu1  ;;  %5748 = vmatprep.mubr.f32.mxu0 %v5666_v23 }
 0x56f   : > { %v5339_v12 = vpop.f32.mrf.mxu1 }
 0x570   : > { %5749 = vmatmul.mubr.f32.gmra.mxu0 %v5665_v26  ;;  %v13029_v26 = vld [vmem:[#allocation9_spill] sm:$0xff] }
 0x571   : > { %v5341_v61 = vpop.f32.mrf.mxu1 }
 0x573   : > { %v5343_v33 = vpop.f32.mrf.mxu1 }
 0x575   : > { %v5347_v44 = vpop.f32.mrf.mxu1 }
 0x577   : > { %v5349_v37 = vpop.f32.mrf.mxu1 }
 0x579   : > { %v5351_v46 = vpop.f32.mrf.mxu1 }
 0x57b   : > { %v5353_v25 = vpop.f32.mrf.mxu1 }
 0x57c   : > { %v5390_v20 = vpop.f32.mrf.mxu0 }
 0x57d   : > { %v5443_v9 = vpop.f32.mrf.mxu1  ;;  %v5391_v29 = vadd.f32 %v5390_v20, %v5337_v52 }
 0x57e   : > { %v5392_v21 = vpop.f32.mrf.mxu0 }
 0x57f   : > { %v5445_v40 = vpop.f32.mrf.mxu1  ;;  %v5393_v36 = vadd.f32 %v5392_v21, %v5339_v12  ;;  %v5444_v57 = vadd.f32 %v5443_v9, %v5391_v29  ;;  %v13032_v9 = vld [vmem:[#allocation12_spill] sm:$0xff]  ;;  %v13033_v29 = vld [vmem:[#allocation91_spill] sm:$0xff] }
 0x580   : > { %v5394_v51 = vpop.f32.mrf.mxu0 }
 0x581   : > { %v5447_v62 = vpop.f32.mrf.mxu1  ;;  %v5446_v13 = vadd.f32 %v5445_v40, %v5393_v36  ;;  %v5395_v15 = vadd.f32 %v5394_v51, %v5341_v61  ;;  %v11960_v59 = vadd.f32 %v5444_v57, %v11828_v63  ;;  %v13030_v61 = vld [vmem:[#allocation11_spill] sm:$0xff]  ;;  %v13034_v40 = vld [vmem:[#allocation13_spill] sm:$0xff] }
 0x582   : > { %v5396_v39 = vpop.f32.mrf.mxu0  ;;  %v13035_v57 = vld [vmem:[#allocation15_spill] sm:$0xff]  ;;  %v13036_v51 = vld [vmem:[#allocation17_spill] sm:$0xff] }
 0x583   : > { %v5449_v41 = vpop.f32.mrf.mxu1  ;;  %v11957_v8 = vadd.f32 %v5446_v13, %v11830_v47  ;;  %v5397_v19 = vadd.f32 %v5396_v39, %v5343_v33  ;;  %v5448_v17 = vadd.f32 %v5447_v62, %v5395_v15  ;;  %v13037_v62 = vld [vmem:[#allocation94_spill] sm:$0xff]  ;;  %v13039_v15 = vld [vmem:[#allocation93_spill] sm:$0xff] }
 0x584   : > { %v5400_v14 = vpop.f32.mrf.mxu0 }
 0x585   : > { %v5453_v42 = vpop.f32.mrf.mxu1  ;;  %v5450_v5 = vadd.f32 %v5449_v41, %v5397_v19  ;;  %v5401_v50 = vadd.f32 %v5400_v14, %v5347_v44  ;;  %5632 = vmatprep.mubr.f32.mxu1 %v11957_v8  ;;  %v11969_v63 = vadd.f32 %v5448_v17, %v13027_v6  ;;  %v13031_v44 = vld [vmem:[#allocation92_spill] sm:$0xff]  ;;  %v13040_v41 = vld [vmem:[#allocation21_spill] sm:$0xff]  ;;  %v13041_v19 = vld [vmem:[#allocation23_spill] sm:$0xff]  ;;  %v5656_v17 = vmul.f32 %v11957_v8, %v11957_v8 }
 0x586   : > { %v5402_v3 = vpop.f32.mrf.mxu0  ;;  %5633 = vmatmul.mubr.f32.vlgmr.msra.gmra.mxu1 %v11960_v59  ;;  %v13042_v14 = vld [vmem:[#allocation25_spill] sm:$0xff] }
 0x587   : > { %v5455_v18 = vpop.f32.mrf.mxu1  ;;  %v11965_v0 = vadd.f32 %v5450_v5, %v11834_v27  ;;  %v5403_v47 = vadd.f32 %v5402_v3, %v5349_v37  ;;  %8959 = vmatpush3.msra.mxu1 %v13026_v60  ;;  %v5454_v32 = vadd.f32 %v5453_v42, %v5401_v50  ;;  %v13043_v42 = vld [vmem:[#allocation27_spill] sm:$0xff]  ;;  %v13044_v5 = vld [vmem:[#allocation29_spill] sm:$0xff] }
 0x588   : > { %8960 = vmatprep.subr.mxu1 %v13028_v11  ;;  %v5404_v45 = vpop.f32.mrf.mxu0  ;;  %v13045_v50 = vld [vmem:[#allocation31_spill] sm:$0xff]  ;;  %v13046_v3 = vld [vmem:[#allocation33_spill] sm:$0xff] }
 0x589   : > { %v5457_v23 = vpop.f32.mrf.mxu1  ;;  %v5405_v52 = vadd.f32 %v5404_v45, %v5351_v46  ;;  %v5456_v12 = vadd.f32 %v5455_v18, %v5403_v47  ;;  %8961 = vmatpush3.msra.mxu1 %v13029_v26  ;;  %5637 = vmatprep.mubr.f32.mxu1 %v11965_v0  ;;  %v11981_v21 = vadd.f32 %v5454_v32, %v13033_v29  ;;  %v13047_v18 = vld [vmem:[#allocation35_spill] sm:$0xff]  ;;  %v13048_v47 = vld [vmem:[#allocation37_spill] sm:$0xff] }
 0x58a   : > { %8962 = vmatprep.subr.mxu1 %v13030_v61  ;;  %v5406_v27 = vpop.f32.mrf.mxu0  ;;  %5638 = vmatmul.mubr.f32.gmra.mxu1 %v11969_v63  ;;  %v13049_v60 = vld [vmem:[#allocation39_spill] sm:$0xff]  ;;  %v13050_v6 = vld [vmem:[#allocation41_spill] sm:$0xff] }
 0x58b   : > { %v5459_v33 = vpop.f32.mrf.mxu1  ;;  %v11977_v37 = vadd.f32 %v5456_v12, %v13031_v44  ;;  %v5407_v20 = vadd.f32 %v5406_v27, %v5353_v25  ;;  %8963 = vmatpush3.msra.mxu1 %v13032_v9  ;;  %v5458_v46 = vadd.f32 %v5457_v23, %v5405_v52  ;;  %v13038_v25 = vld [vmem:[#allocation19_spill] sm:$0xff]  ;;  %v13052_v11 = vld [vmem:[#allocation45_spill] sm:$0xff]  ;;  %v5660_v9 = vmul.f32 %v11965_v0, %v11965_v0 }
 0x58c   : > { %8964 = vmatprep.subr.mxu1 %v13034_v40  ;;  %v13051_v32 = vld [vmem:[#allocation43_spill] sm:$0xff]  ;;  %v13054_v23 = vld [vmem:[#allocation49_spill] sm:$0xff]  ;;  %v5659_v40 = vmul.f32 %v11969_v63, %v11969_v63 }
 0x58d   : > { %v5460_v36 = vadd.f32 %v5459_v33, %v5407_v20  ;;  %8965 = vmatpush3.msra.mxu1 %v13035_v57  ;;  %5642 = vmatprep.mubr.f32.mxu1 %v11977_v37  ;;  %v11993_v39 = vadd.f32 %v5458_v46, %v13039_v15  ;;  %v13053_v45 = vld [vmem:[#allocation47_spill] sm:$0xff]  ;;  %v13056_v12 = vld [vmem:[#allocation53_spill] sm:$0xff]  ;;  %v5655_v33 = vmul.f32 %v11960_v59, %v11960_v59 }
 0x58e   : > { %8966 = vmatprep.subr.mxu1 %v13036_v51  ;;  %5643 = vmatmul.mubr.f32.gmra.mxu1 %v11981_v21  ;;  %v13055_v52 = vld [vmem:[#allocation51_spill] sm:$0xff]  ;;  %v13058_v61 = vld [vmem:[#allocation57_spill] sm:$0xff]  ;;  %v5664_v57 = vmul.f32 %v11977_v37, %v11977_v37  ;;  %v5663_v15 = vmul.f32 %v11981_v21, %v11981_v21 }
 0x58f   : > { %v11989_v13 = vadd.f32 %v5460_v36, %v13037_v62  ;;  %8967 = vmatpush3.msra.mxu1 %v13038_v25  ;;  %v13057_v26 = vld [vmem:[#allocation55_spill] sm:$0xff]  ;;  %v13060_v44 = vld [vmem:[#allocation61_spill] sm:$0xff] }
 0x590   : > { %8968 = vmatprep.subr.mxu1 %v13040_v41  ;;  %v13059_v27 = vld [vmem:[#allocation59_spill] sm:$0xff]  ;;  %v13062_v29 = vld [vmem:[#allocation65_spill] sm:$0xff] }
 0x591   : > { %8969 = vmatpush3.msra.mxu1 %v13041_v19  ;;  %5647 = vmatprep.mubr.f32.mxu1 %v11989_v13  ;;  %v13061_v20 = vld [vmem:[#allocation63_spill] sm:$0xff]  ;;  %v13064_v36 = vld [vmem:[#allocation69_spill] sm:$0xff]  ;;  %v5668_v19 = vmul.f32 %v11989_v13, %v11989_v13 }
 0x592   : > { %8970 = vmatprep.subr.mxu1 %v13042_v14  ;;  %5648 = vmatmul.mubr.f32.gmra.mxu1 %v11993_v39  ;;  %v13063_v46 = vld [vmem:[#allocation67_spill] sm:$0xff]  ;;  %v13066_v62 = vld [vmem:[#allocation73_spill] sm:$0xff]  ;;  %v5667_v14 = vmul.f32 %v11993_v39, %v11993_v39 }
 0x593   : > { %8971 = vmatpush3.msra.mxu1 %v13043_v42  ;;  %5818 = vmatprep.mubr.f32.mxu1 %v5656_v17  ;;  %v13065_v51 = vld [vmem:[#allocation71_spill] sm:$0xff]  ;;  %v13068_v41 = vld [vmem:[#allocation77_spill] sm:$0xff]  ;;  %v12810_v42 = vmov 0.0  }
 0x594   : > { %8972 = vmatprep.subr.mxu1 %v13044_v5  ;;  %v13067_v25 = vld [vmem:[#allocation75_spill] sm:$0xff]  ;;  %5937 = vmatprep.mubr.f32.mxu0 %v12810_v42 }
 0x595   : > { %8973 = vmatpush3.msra.mxu1 %v13045_v50  ;;  %v13069_v17 = vld [vmem:[#allocation79_spill] sm:$0xff] }
 0x596   : > { %8974 = vmatprep.subr.mxu1 %v13046_v3 }
 0x597   : > { %8975 = vmatpush3.msra.mxu1 %v13047_v18 }
 0x598   : > { %8976 = vmatprep.subr.mxu1 %v13048_v47 }
 0x599   : > { %8977 = vmatpush3.msra.mxu1 %v13049_v60 }
 0x59a   : > { %8978 = vmatprep.subr.mxu1 %v13050_v6 }
 0x59b   : > { %8979 = vmatpush3.msra.mxu1 %v13051_v32 }
 0x59c   : > { %8980 = vmatprep.subr.mxu1 %v13052_v11 }
 0x59d   : > { %8981 = vmatpush3.msra.mxu1 %v13053_v45 }
 0x59e   : > { %8982 = vmatprep.subr.mxu1 %v13054_v23 }
 0x59f   : > { %8983 = vmatpush3.msra.mxu1 %v13055_v52 }
 0x5a0   : > { %8984 = vmatprep.subr.mxu1 %v13056_v12 }
 0x5a1   : > { %8985 = vmatpush3.msra.mxu1 %v13057_v26 }
 0x5a2   : > { %8986 = vmatprep.subr.mxu1 %v13058_v61 }
 0x5a3   : > { %8987 = vmatpush3.msra.mxu1 %v13059_v27 }
 0x5a4   : > { %8988 = vmatprep.subr.mxu1 %v13060_v44 }
 0x5a5   : > { %8989 = vmatpush3.msra.mxu1 %v13061_v20 }
 0x5a6   : > { %5819 = vmatmul.mubr.f32.vlgmr.msra.gmra.mxu1 %v5655_v33  ;;  %5968 = vmatprep.subr.mxu1 %v13062_v29 }
 0x5a7   : > { %5823 = vmatprep.mubr.f32.mxu1 %v5660_v9  ;;  %5969 = vmatpush1.msra.mxu1 %v13063_v46 }
 0x5a8   : > { %5970 = vmatprep.subr.mxu1 %v13064_v36 }
 0x5a9   : > { %5971 = vmatpush1.msra.mxu1 %v13065_v51 }
 0x5aa   : > { %5824 = vmatmul.mubr.f32.gmra.mxu1 %v5659_v40  ;;  %5972 = vmatprep.subr.mxu1 %v13066_v62 }
 0x5ab   : > { %5828 = vmatprep.mubr.f32.mxu1 %v5664_v57  ;;  %5973 = vmatpush1.msra.mxu1 %v13067_v25 }
 0x5ac   : > { %5974 = vmatprep.subr.mxu1 %v13068_v41 }
 0x5ad   : > { %5975 = vmatpush1.msra.mxu1 %v13069_v17 }
 0x5ae   : > { %5829 = vmatmul.mubr.f32.gmra.mxu1 %v5663_v15  ;;  %6113 = vmatprep.subr.mxu1 %v13062_v29  ;;  %v9799_v29 = vld [vmem:[%s12629_s7 + $0x64] ss:$16 sps:$4 sm:$0xff] (%p1527_p0)  }
 0x5af   : > { %5833 = vmatprep.mubr.f32.mxu1 %v5668_v19 }
 0x5b2   : > { %5834 = vmatmul.mubr.f32.gmra.mxu1 %v5667_v14 }
 0x5b3   : > { %6008 = vmatprep.mubr.f32.mxu1 %v12810_v42 }
 0x604   : > { %v8858_v5 = vpop.f32.mrf.mxu0 }
 0x606   : > { %v8859_v50 = vpop.f32.mrf.mxu0 }
 0x607   : > { %v8860_v27 = vadd.f32 %v8859_v50, %v8858_v5 }
 0x608   : > { %v8861_v3 = vpop.f32.mrf.mxu0 }
 0x60a   : > { %v8862_v18 = vpop.f32.mrf.mxu0 }
 0x60b   : > { %v8863_v23 = vadd.f32 %v8862_v18, %v8861_v3 }
 0x60c   : > { %v8864_v47 = vpop.f32.mrf.mxu0 }
 0x60e   : > { %v8865_v32 = vpop.f32.mrf.mxu0 }
 0x60f   : > { %v8866_v20 = vadd.f32 %v8865_v32, %v8864_v47 }
 0x610   : > { %v8867_v26 = vpop.f32.mrf.mxu0 }
 0x612   : > { %v8868_v57 = vpop.f32.mrf.mxu0 }
 0x613   : > { %v8869_v7 = vadd.f32 %v8868_v57, %v8867_v26 }
 0x646   : > { %v8902_v60 = vpop.f32.mrf.mxu1 }
 0x648   : > { %v8903_v6 = vpop.f32.mrf.mxu1 }
 0x649   : > { %v8904_v52 = vadd.f32 %v8903_v6, %v8902_v60  ;;  %v8946_v60 = vpop.f32.mrf.mxu0 }
 0x64a   : > { %v8905_v11 = vpop.f32.mrf.mxu1 }
 0x64b   : > { %v5635_v9 = vadd.f32 %v8904_v52, %v8860_v27  ;;  %v8947_v32 = vpop.f32.mrf.mxu0 }
 0x64c   : > { %v8906_v45 = vpop.f32.mrf.mxu1 }
 0x64d   : > { %v8907_v12 = vadd.f32 %v8906_v45, %v8905_v11  ;;  %v5839_v16 = vsel %vm881_vm2, %v5635_v9, 0.0 }
 0x64e   : > { %v8908_v61 = vpop.f32.mrf.mxu1 }
 0x64f   : > { %v5640_v33 = vadd.f32 %v8907_v12, %v8863_v23  ;;  %v8949_v23 = vpop.f32.mrf.mxu0 }
 0x650   : > { %v8909_v44 = vpop.f32.mrf.mxu1 }
 0x651   : > { %v8910_v40 = vadd.f32 %v8909_v44, %v8908_v61  ;;  %v5840_v19 = vsel %vm881_vm2, %v5640_v33, 0.0  ;;  %v8950_v61 = vpop.f32.mrf.mxu0 }
 0x652   : > { %v8911_v15 = vpop.f32.mrf.mxu1  ;;  %v5841_v6 = vadd.f32 %v5840_v19, %v5839_v16  ;;  %v8951_v57 = vadd.f32 %v8950_v61, %v8949_v23 }
 0x653   : > { %v5645_v14 = vadd.f32 %v8910_v40, %v8866_v20  ;;  %v8952_v33 = vpop.f32.mrf.mxu0 }
 0x654   : > { %v8912_v42 = vpop.f32.mrf.mxu1 }
 0x655   : > { %v5842_v3 = vsel %vm881_vm2, %v5645_v14, 0.0  ;;  %v8913_v18 = vadd.f32 %v8912_v42, %v8911_v15  ;;  %v8953_v40 = vpop.f32.mrf.mxu0 }
 0x656   : > { %v5843_v50 = vadd.f32 %v5842_v3, %v5841_v6 }
 0x657   : > { %v5650_v5 = vadd.f32 %v8913_v18, %v8869_v7  ;;  %v8955_v14 = vpop.f32.mrf.mxu0  ;;  %v8948_v18 = vadd.f32 %v8947_v32, %v8946_v60 }
 0x659   : > { %v5844_v47 = vsel %vm881_vm2, %v5650_v5, 0.0  ;;  %v8956_v23 = vpop.f32.mrf.mxu0 }
 0x65a   : > { %v5845_v11 = vadd.f32 %v5844_v47, %v5843_v50  ;;  %v8954_v50 = vadd.f32 %v8953_v40, %v8952_v33  ;;  %v8957_v61 = vadd.f32 %v8956_v23, %v8955_v14 }
 0x65c   : > { %v5846_v45 = vrot.slane %v5845_v11, 4 }
 0x65e   : > { %v5847_v52 = vadd.f32 %v5846_v45, %v5845_v11  ;;  %v13070_v45 = vmov 0.0  }
 0x660   : > { %v5848_v12 = vrot.slane %v5847_v52, 2 }
 0x662   : > { %v5849_v27 = vadd.f32 %v5848_v12, %v5847_v52 }
 0x664   : > { %v5850_v26 = vrot.slane %v5849_v27, 1 }
 0x666   : > { %v5851_v44 = vadd.f32 %v5850_v26, %v5849_v27  ;;  %v8990_v20 = vpop.f32.mrf.mxu1 }
 0x668   : > { %v5852_v9 = vmul.f32 0.001953125, %v5851_v44  ;;  %v8991_v42 = vpop.f32.mrf.mxu1 }
 0x669   : > { %v8992_v15 = vadd.f32 %v8991_v42, %v8990_v20 }
 0x66a   : > { %v8993_v16 = vpop.f32.mrf.mxu1  ;;  %8485 = vmatmul.mubr.msk.f32.vlgmr.msra.gmra.mxu0 %vm881_vm2, %v5852_v9  ;;  %8486 = vmatmul.mubr.msk.f32.vlgmr.msra.gmra.mxu1 %vm881_vm2, %v5852_v9 }
 0x66b   : > { %6043 = vmatpush1.msra.mxu0 %v13019_v22  ;;  %6114 = vmatpush1.msra.mxu1 %v13063_v46  ;;  %v5821_v47 = vadd.f32 %v8992_v15, %v8948_v18  ;;  %v9789_v22 = vld [vmem:[%s12629_s7 + $0x2a4] ss:$16 sps:$4 sm:$0xff] (%p1527_p0)  }
 0x66c   : > { %v8994_v7 = vpop.f32.mrf.mxu1  ;;  %6044 = vmatprep.subr.mxu0 %v13020_v10  ;;  %6115 = vmatprep.subr.mxu1 %v13064_v36  ;;  %v9791_v10 = vld [vmem:[%s12629_s7 + $0xa0] ss:$16 sps:$4 sm:$0xff] (%p1527_p0)   ;;  %v9801_v46 = vld [vmem:[%s12629_s7 + $0x264] ss:$16 sps:$4 sm:$0xff] (%p1527_p0)  }
 0x66d   : > { %v8995_v19 = vadd.f32 %v8994_v7, %v8993_v16  ;;  %6045 = vmatpush1.msra.mxu0 %v13021_v1  ;;  %6116 = vmatpush1.msra.mxu1 %v13065_v51  ;;  %v5853_v27 = vsel %vm881_vm2, %v5821_v47, 0.0  ;;  %v9792_v1 = vld [vmem:[%s12629_s7 + $0x2a0] ss:$16 sps:$4 sm:$0xff] (%p1527_p0)  }
 0x66e   : > { %v8996_v3 = vpop.f32.mrf.mxu1  ;;  %6046 = vmatprep.subr.mxu0 %v13022_v2  ;;  %6117 = vmatprep.subr.mxu1 %v13066_v62  ;;  %v9793_v2 = vld [vmem:[%s12629_s7 + $0x84] ss:$16 sps:$4 sm:$0xff] (%p1527_p0)   ;;  %v9803_v36 = vld [vmem:[%s12629_s7 + $0x60] ss:$16 sps:$4 sm:$0xff] (%p1527_p0)  }
 0x66f   : > { %v5826_v6 = vadd.f32 %v8995_v19, %v8951_v57  ;;  %6047 = vmatpush1.msra.mxu0 %v13023_v4  ;;  %6118 = vmatpush1.msra.mxu1 %v13067_v25  ;;  %v9795_v4 = vld [vmem:[%s12629_s7 + $0x284] ss:$16 sps:$4 sm:$0xff] (%p1527_p0)   ;;  %v9804_v51 = vld [vmem:[%s12629_s7 + $0x260] ss:$16 sps:$4 sm:$0xff] (%p1527_p0)  }
 0x670   : > { %v8997_v5 = vpop.f32.mrf.mxu1  ;;  %6048 = vmatprep.subr.mxu0 %v13024_v30  ;;  %6119 = vmatprep.subr.mxu1 %v13068_v41  ;;  %v9797_v30 = vld [vmem:[%s12629_s7 + $0x80] ss:$16 sps:$4 sm:$0xff] (%p1527_p0)   ;;  %v9805_v62 = vld [vmem:[%s12629_s7 + $0x44] ss:$16 sps:$4 sm:$0xff] (%p1527_p0)  }
 0x671   : > { %v8998_v11 = vadd.f32 %v8997_v5, %v8996_v3  ;;  %6049 = vmatpush1.msra.mxu0 %v13025_v24  ;;  %6082 = vmatprep.mubr.f32.mxu0 %v13070_v45  ;;  %v5854_v60 = vsel %vm881_vm2, %v5826_v6, 0.0  ;;  %v5867_v5 = vmul.f32 %v5852_v9, %v5852_v9  ;;  %v9798_v24 = vld [vmem:[%s12629_s7 + $0x280] ss:$16 sps:$4 sm:$0xff] (%p1527_p0)   ;;  %v9807_v25 = vld [vmem:[%s12629_s7 + $0x244] ss:$16 sps:$4 sm:$0xff] (%p1527_p0)  }
 0x672   : > { %v8999_v52 = vpop.f32.mrf.mxu1  ;;  %6120 = vmatpush1.msra.mxu1 %v13069_v17  ;;  %6153 = vmatprep.mubr.f32.mxu1 %v13070_v45  ;;  %v5855_v44 = vadd.f32 %v5854_v60, %v5853_v27  ;;  %v9809_v41 = vld [vmem:[%s12629_s7 + $0x40] ss:$16 sps:$4 sm:$0xff] (%p1527_p0)  }
 0x673   : > { %v5831_v32 = vadd.f32 %v8998_v11, %v8954_v50  ;;  %v9810_v17 = vld [vmem:[%s12629_s7 + $0x240] ss:$16 sps:$4 sm:$0xff] (%p1527_p0)  }
 0x674   : > { %v9000_v12 = vpop.f32.mrf.mxu1 }
 0x675   : > { %v5856_v26 = vsel %vm881_vm2, %v5831_v32, 0.0  ;;  %v9001_v33 = vadd.f32 %v9000_v12, %v8999_v52 }
 0x676   : > { %v5857_v42 = vadd.f32 %v5856_v26, %v5855_v44 }
 0x677   : > { %v5836_v20 = vadd.f32 %v9001_v33, %v8957_v61 }
 0x679   : > { %v5858_v40 = vsel %vm881_vm2, %v5836_v20, 0.0 }
 0x67a   : > { %v5859_v16 = vadd.f32 %v5858_v40, %v5857_v42 }
 0x67c   : > { %v5860_v7 = vrot.slane %v5859_v16, 4 }
 0x67e   : > { %v5861_v57 = vadd.f32 %v5860_v7, %v5859_v16  ;;  %v13071_v7 = vld [vmem:[#allocation80_spill] sm:$0xff] }
 0x680   : > { %v5862_v15 = vrot.slane %v5861_v57, 2 }
 0x682   : > { %v5863_v19 = vadd.f32 %v5862_v15, %v5861_v57 }
 0x684   : > { %v5864_v3 = vrot.slane %v5863_v19, 1 }
 0x686   : > { %v5865_v18 = vadd.f32 %v5864_v3, %v5863_v19  ;;  %v5480_v3 = vld [vmem:[%s5479_s29] sm:$0xf] }
 0x688   : > { %v5866_v6 = vmul.f32 0.001953125, %v5865_v18 }
 0x68a   : > { %v5868_v14 = vsub.f32 %v5866_v6, %v5867_v5  ;;  %v13072_v5 = vld [vmem:[#allocation81_spill] sm:$0xff] }
 0x68c   : > { %v5869_v50 = vmax.f32 %v5868_v14, 0.0 }
 0x68e   : > { %8487 = vmatmul.mubr.msk.f32.vlgmr.msra.gmra.mxu0 %vm881_vm2, %v5869_v50  ;;  %8488 = vmatmul.mubr.msk.f32.vlgmr.msra.gmra.mxu1 %vm881_vm2, %v5869_v50  ;;  %v13073_v50 = vld [vmem:[#allocation82_spill] sm:$0xff] }
 0x72a   : > { %v5939_v47 = vpop.f32.mrf.mxu0  ;;  %v6010_v11 = vpop.f32.mrf.mxu1 }
 0x72c   : > { %v5941_v45 = vpop.f32.mrf.mxu0  ;;  %v6012_v23 = vpop.f32.mrf.mxu1 }
 0x74e   : > { %v6084_v52 = vpop.f32.mrf.mxu0  ;;  %v6155_v60 = vpop.f32.mrf.mxu1 }
 0x74f   : > { %v6085_v32 = vadd.f32 1e-05, %v6084_v52  ;;  %v6156_v12 = vadd.f32 1e-05, %v6155_v60  ;;  %v13074_v60 = vld [vmem:[#allocation83_spill] sm:$0xff] }
 0x750   : > { %v6086_v61 = vpop.f32.mrf.mxu0  ;;  %v6157_v27 = vpop.f32.mrf.mxu1 }
 0x751   : > { %9747 = vrsqrt.f32 %v6085_v32  ;;  %v6087_v26 = vadd.f32 1e-05, %v6086_v61  ;;  %v6158_v9 = vadd.f32 1e-05, %v6157_v27 }
 0x752   : > { %9749 = vrsqrt.f32 %v6156_v12  ;;  %v13075_v12 = vld [vmem:[#allocation84_spill] sm:$0xff] }
 0x753   : > { %9751 = vrsqrt.f32 %v6087_v26 }
 0x754   : > { %9753 = vrsqrt.f32 %v6158_v9 }
 0x75e   : > { %v9748_v33 = vpop.eup %9747 }
 0x75f   : > { %v9750_v44 = vpop.eup %9749 }
 0x760   : > { %v9752_v20 = vpop.eup %9751 }
 0x761   : > { %v9754_v42 = vpop.eup %9753  ;;  %v6168_v40 = vcombine.low %v9748_v33, %v9752_v20 }
 0x762   : > { %v6169_v16 = vcombine.low %v9750_v44, %v9754_v42 }
 0x763   : > { %v6176_v57 = vrot.slane %v6168_v40, %v13071_v7 }
 0x764   : > { %v6183_v15 = vrot.slane %v6169_v16, %v13071_v7 }
 0x766   : > { %v6184_v19 = vcombine.low %v6176_v57, %v6183_v15  ;;  %v5482_v57 = vld [vmem:[%s5481_s9] sm:$0xf] }
 0x768   : > { %v6191_v18 = vrot.slane %v6184_v19, %v13071_v7 }
 0x76a   : > { %v6193_v6 = vmul.f32 %v6191_v18, %v5480_v3 }
 0x76c   : > { %v6198_v14 = vrot.slane %v6193_v6, %v13072_v5  ;;  %v6202_v52 = vrot.slane %v6193_v6, %v13073_v50  ;;  %v6206_v32 = vrot.slane %v6193_v6, %v13074_v60  ;;  %v6210_v61 = vrot.slane %v6193_v6, %v13075_v12 }
 0x76e   : > { %v6215_v27 = vmul.f32 %v6198_v14, %v5939_v47  ;;  %v6216_v26 = vmul.f32 %v6202_v52, %v5941_v45  ;;  %v6217_v9 = vmul.f32 %v6206_v32, %v6010_v11  ;;  %v6218_v33 = vmul.f32 %v6210_v61, %v6012_v23 }
 0x76f   : > { %v6249_v19 = vmul.f32 %v6198_v14, %v11864_v31  ;;  %v6250_v47 = vmul.f32 %v6202_v52, %v11859_v28  ;;  %v6251_v11 = vmul.f32 %v6206_v32, %v11960_v59  ;;  %v6252_v45 = vmul.f32 %v6210_v61, %v11957_v8 }
 0x770   : > { %v6223_v44 = vcombine.low %v6215_v27, %v6216_v26  ;;  %v6224_v20 = vcombine.low %v6217_v9, %v6218_v33  ;;  %v6253_v23 = vmul.f32 %v6198_v14, %v11879_v53  ;;  %v6254_v18 = vmul.f32 %v6202_v52, %v11873_v54 }
 0x771   : > { %v6255_v6 = vmul.f32 %v6206_v32, %v11969_v63  ;;  %v6256_v27 = vmul.f32 %v6210_v61, %v11965_v0  ;;  %v6257_v26 = vmul.f32 %v6198_v14, %v11893_v35  ;;  %v6258_v9 = vmul.f32 %v6202_v52, %v11889_v43 }
 0x772   : > { %v6231_v42 = vrot.slane %v6223_v44, %v13071_v7  ;;  %v6238_v40 = vrot.slane %v6224_v20, %v13071_v7  ;;  %v6259_v31 = vmul.f32 %v6206_v32, %v11981_v21  ;;  %v6260_v28 = vmul.f32 %v6210_v61, %v11977_v37 }
 0x773   : > { %v6261_v63 = vmul.f32 %v6198_v14, %v11905_v48  ;;  %v6262_v0 = vmul.f32 %v6202_v52, %v11902_v56  ;;  %v6263_v35 = vmul.f32 %v6206_v32, %v11993_v39  ;;  %v6264_v43 = vmul.f32 %v6210_v61, %v11989_v13 }
 0x774   : > { %v6239_v16 = vcombine.low %v6231_v42, %v6238_v40 }
 0x776   : > { %v6246_v15 = vrot.slane %v6239_v16, %v13071_v7  ;;  %v9811_v7 = vld [vmem:[%s12629_s7 + $0x24] ss:$16 sps:$4 sm:$0xff] (%p1527_p0)  }
 0x778   : > { %v6248_v3 = vsub.f32 %v5482_v57, %v6246_v15 }
 0x77a   : > { %v6269_v59 = vrot.slane %v6248_v3, %v13072_v5  ;;  %v6273_v8 = vrot.slane %v6248_v3, %v13073_v50  ;;  %v6277_v53 = vrot.slane %v6248_v3, %v13074_v60  ;;  %v6281_v54 = vrot.slane %v6248_v3, %v13075_v12 }
 0x77c   : > { %v6286_v33 = vadd.f32 %v6269_v59, %v6249_v19  ;;  %v6287_v21 = vadd.f32 %v6273_v8, %v6250_v47  ;;  %v6288_v44 = vadd.f32 %v6277_v53, %v6251_v11  ;;  %v6289_v37 = vadd.f32 %v6281_v54, %v6252_v45 }
 0x77d   : > { %v6290_v20 = vadd.f32 %v6269_v59, %v6253_v23  ;;  %v6291_v5 = vadd.f32 %v6273_v8, %v6254_v18  ;;  %v6292_v42 = vadd.f32 %v6277_v53, %v6255_v6  ;;  %v6293_v50 = vadd.f32 %v6281_v54, %v6256_v27 }
 0x77e   : > { %v6294_v40 = vadd.f32 %v6269_v59, %v6257_v26  ;;  %v6295_v60 = vadd.f32 %v6273_v8, %v6258_v9  ;;  %v6296_v16 = vadd.f32 %v6277_v53, %v6259_v31  ;;  %v6297_v12 = vadd.f32 %v6281_v54, %v6260_v28 }
 0x77f   : > { %v6298_v57 = vadd.f32 %v6269_v59, %v6261_v63  ;;  %v6299_v48 = vadd.f32 %v6273_v8, %v6262_v0  ;;  %v6300_v14 = vadd.f32 %v6277_v53, %v6263_v35  ;;  %v6301_v56 = vadd.f32 %v6281_v54, %v6264_v43 }
 0x780   : > { %v6302_v52 = vmax.f32 %v6286_v33, 0.0  ;;  %v6303_v39 = vmax.f32 %v6287_v21, 0.0  ;;  %v6304_v32 = vmax.f32 %v6288_v44, 0.0  ;;  %v6305_v13 = vmax.f32 %v6289_v37, 0.0 }
 0x781   : > { %v6306_v61 = vmax.f32 %v6290_v20, 0.0  ;;  %v6307_v15 = vmax.f32 %v6291_v5, 0.0  ;;  %v6308_v19 = vmax.f32 %v6292_v42, 0.0  ;;  %v6309_v47 = vmax.f32 %v6293_v50, 0.0 }
 0x782   : > { %v6310_v11 = vmax.f32 %v6294_v40, 0.0  ;;  %v6311_v45 = vmax.f32 %v6295_v60, 0.0  ;;  %v6312_v23 = vmax.f32 %v6296_v16, 0.0  ;;  %v6313_v3 = vmax.f32 %v6297_v12, 0.0 }
 0x783   : > { %v6314_v18 = vmax.f32 %v6298_v57, 0.0  ;;  %v6315_v6 = vmax.f32 %v6299_v48, 0.0  ;;  %v6316_v27 = vmax.f32 %v6300_v14, 0.0  ;;  %v6317_v26 = vmax.f32 %v6301_v56, 0.0 }
 0x784   : > { %v8642_v9 = vpack.c.bf16 %v6303_v39, %v6302_v52  ;;  %v8643_v31 = vpack.c.bf16 %v6305_v13, %v6304_v32  ;;  %v8644_v28 = vpack.c.bf16 %v6307_v15, %v6306_v61  ;;  %v8645_v59 = vpack.c.bf16 %v6309_v47, %v6308_v19 }
 0x785   : > { %v8646_v8 = vpack.c.bf16 %v6311_v45, %v6310_v11  ;;  %v8647_v53 = vpack.c.bf16 %v6313_v3, %v6312_v23  ;;  %v8648_v54 = vpack.c.bf16 %v6315_v6, %v6314_v18  ;;  %v8649_v63 = vpack.c.bf16 %v6317_v26, %v6316_v27  ;;  %v6438_v45 = vld [vmem:[#allocation2] sm:$0xff]  ;;  %v6441_v23 = vld [vmem:[#allocation2 + $0x8] sm:$0xff] }
 0x786   : > { %v6359_v0 = vshrl.u32 %v8642_v9, 16  ;;  %v6362_v35 = vshll.u32 %v8642_v9, 16  ;;  %v6366_v43 = vshrl.u32 %v8643_v31, 16  ;;  %v6369_v33 = vshll.u32 %v8643_v31, 16  ;;  %v6446_v9 = vld [vmem:[#allocation2 + $0x28] sm:$0x11] }
 0x787   : > { %v6374_v21 = vshrl.u32 %v8644_v28, 16  ;;  %v6377_v44 = vshll.u32 %v8644_v28, 16  ;;  %v6383_v37 = vshrl.u32 %v8645_v59, 16  ;;  %v6386_v20 = vshll.u32 %v8645_v59, 16  ;;  %v6449_v31 = vld [vmem:[#allocation2 + $0x30] sm:$0x11] }
 0x788   : > { %v6361_v5 = vrot.slane %v6359_v0, 7  ;;  %v6368_v42 = vrot.slane %v6366_v43, 7  ;;  %v6393_v50 = vshrl.u32 %v8646_v8, 16  ;;  %v6396_v40 = vshll.u32 %v8646_v8, 16  ;;  %v6452_v0 = vld [vmem:[#allocation2 + $0x3c] sm:$0xff] }
 0x789   : > { %v6376_v60 = vrot.slane %v6374_v21, 7  ;;  %v6385_v16 = vrot.slane %v6383_v37, 7  ;;  %v6400_v12 = vshrl.u32 %v8647_v53, 16  ;;  %v6403_v57 = vshll.u32 %v8647_v53, 16  ;;  %v6460_v37 = vld [vmem:[#allocation2 + $0x64] sm:$0x11] }
 0x78a   : > { %v6364_v48 = vor.u32 %v6362_v35, %v6361_v5  ;;  %v6371_v14 = vor.u32 %v6369_v33, %v6368_v42  ;;  %v6372_v56 = vrot.slane %v6361_v5, 4  ;;  %v6381_v52 = vrot.slane %v6368_v42, 4  ;;  %v9822_v3 = vld [vmem:[%s12629_s7 + $0x200] ss:$16 sps:$4 sm:$0xff] (%p1527_p0)  }
 0x78b   : > { %v6379_v39 = vor.u32 %v6377_v44, %v6376_v60  ;;  %v6388_v32 = vor.u32 %v6386_v20, %v6385_v16  ;;  %v6390_v13 = vrot.slane %v6376_v60, 4  ;;  %v6391_v61 = vrot.slane %v6385_v16, 4  ;;  %v9845_v33 = vld [vmem:[%s12629_s7 + $0x180] ss:$16 sps:$4 sm:$0xff] (%p1527_p0)  }
 0x78c   : > { %v6395_v15 = vrot.slane %v6393_v50, 7  ;;  %v6402_v19 = vrot.slane %v6400_v12, 7  ;;  %v6408_v47 = vshrl.u32 %v8648_v54, 16  ;;  %v6411_v11 = vshll.u32 %v8648_v54, 16  ;;  %v6455_v54 = vld [vmem:[#allocation2 + $0x44] sm:$0xff] }
 0x78d   : > { %v6380_v18 = vsel %vm10880_vm14, %v6372_v56, %v6379_v39  ;;  %v6389_v6 = vsel %vm10880_vm14, %v6381_v52, %v6388_v32  ;;  %v6417_v27 = vshrl.u32 %v8649_v63, 16  ;;  %v6420_v26 = vshll.u32 %v8649_v63, 16  ;;  %v9775_v39 = vld [vmem:[%s12629_s7 + $0xe4] ss:$16 sps:$4 sm:$0xff] (%p1527_p0)  }
 0x78e   : > { %v6398_v28 = vor.u32 %v6396_v40, %v6395_v15  ;;  %v6405_v59 = vor.u32 %v6403_v57, %v6402_v19  ;;  %v6406_v8 = vrot.slane %v6395_v15, 4  ;;  %v6410_v53 = vrot.slane %v6408_v47, 7  ;;  %6444 = vst [vmem:[#allocation2 + $0x14] sm:$0xff] %v6380_v18  ;;  %6445 = vst [vmem:[#allocation2 + $0x1c] sm:$0xff] %v6389_v6  ;;  %v6463_v40 = vld [vmem:[#allocation2 + $0x6c] sm:$0x11]  ;;  %7399 = vmatprep.subr.bf16.mxu0 (%p1527_p0), %v9775_v39 }
 0x78f   : > { %v6415_v35 = vrot.slane %v6402_v19, 4  ;;  %v6419_v43 = vrot.slane %v6417_v27, 7  ;;  %v6439_v21 = vsel %vm10908_vm4, %v6364_v48, %v6438_v45  ;;  %v6442_v44 = vsel %vm10908_vm4, %v6371_v14, %v6441_v23  ;;  %v9777_v32 = vld [vmem:[%s12629_s7 + $0x2e4] ss:$16 sps:$4 sm:$0xff] (%p1527_p0)   ;;  %v9815_v19 = vld [vmem:[%s12629_s7 + $0x20] ss:$16 sps:$4 sm:$0xff] (%p1527_p0)  }
 0x790   : > { %v6413_v63 = vor.u32 %v6411_v11, %v6410_v53  ;;  %v6424_v20 = vrot.slane %v6410_v53, 4  ;;  %6440 = vst [vmem:[#allocation2] sm:$0xff] %v6439_v21  ;;  %6443 = vst [vmem:[#allocation2 + $0x8] sm:$0xff] %v6442_v44  ;;  %v6447_v42 = vsel %vm10918_vm5, %v6390_v13, %v6446_v9  ;;  %v6450_v50 = vsel %vm10918_vm5, %v6391_v61, %v6449_v31  ;;  %v9779_v13 = vld [vmem:[%s12629_s7 + $0xe0] ss:$16 sps:$4 sm:$0xff] (%p1527_p0)  }
 0x791   : > { %v6422_v60 = vor.u32 %v6420_v26, %v6419_v43  ;;  %v6425_v16 = vrot.slane %v6419_v43, 4  ;;  %6448 = vst [vmem:[#allocation2 + $0x28] sm:$0x11] %v6447_v42  ;;  %6451 = vst [vmem:[#allocation2 + $0x30] sm:$0x11] %v6450_v50  ;;  %v6453_v12 = vsel %vm10908_vm4, %v6398_v28, %v6452_v0  ;;  %v6456_v57 = vsel %vm10908_vm4, %v6405_v59, %v6455_v54 }
 0x792   : > { %v6414_v48 = vsel %vm10880_vm14, %v6406_v8, %v6413_v63  ;;  %6454 = vst [vmem:[#allocation2 + $0x3c] sm:$0xff] %v6453_v12  ;;  %6457 = vst [vmem:[#allocation2 + $0x44] sm:$0xff] %v6456_v57  ;;  %v6461_v14 = vsel %vm10918_vm5, %v6424_v20, %v6460_v37  ;;  %v9780_v61 = vld [vmem:[%s12629_s7 + $0x2e0] ss:$16 sps:$4 sm:$0xff] (%p1527_p0)   ;;  %7452 = vmatprep.subr.bf16.mxu1 (%p1527_p0), %v9777_v32  ;;  %7400 = vmatpush1.bf16.msra.mxu0 (%p1527_p0), %v9779_v13  ;;  %v9813_v15 = vld [vmem:[%s12629_s7 + $0x224] ss:$16 sps:$4 sm:$0xff] (%p1527_p0)  }
 0x793   : > { %v6423_v56 = vsel %vm10880_vm14, %v6415_v35, %v6422_v60  ;;  %6458 = vst [vmem:[#allocation2 + $0x50] sm:$0xff] %v6414_v48  ;;  %6462 = vst [vmem:[#allocation2 + $0x64] sm:$0x11] %v6461_v14  ;;  %v6464_v52 = vsel %vm10918_vm5, %v6425_v16, %v6463_v40  ;;  %1529 = sbr.rel (!%p1527_p0) target bundleno = 774 (0x306), region = 76  ;;  %7453 = vmatpush1.bf16.msra.mxu1 (%p1527_p0), %v9780_v61  ;;  %7401 = vmatprep.subr.bf16.mxu0 (%p1527_p0), %v9781_v49  ;;  %v9816_v47 = vld [vmem:[%s12629_s7 + $0x220] ss:$16 sps:$4 sm:$0xff] (%p1527_p0)  }
 0x794   : > { %6459 = vst [vmem:[#allocation2 + $0x58] sm:$0xff] %v6423_v56  ;;  %6465 = vst [vmem:[#allocation2 + $0x6c] sm:$0x11] %v6464_v52  ;;  %7454 = vmatprep.subr.bf16.mxu1 (%p1527_p0), %v9783_v55  ;;  %v9817_v11 = vld [vmem:[%s12629_s7 + $0x4] ss:$16 sps:$4 sm:$0xff] (%p1527_p0)  }
 0x795   :  { %v9819_v45 = vld [vmem:[%s12629_s7 + $0x204] ss:$16 sps:$4 sm:$0xff] (%p1527_p0)   ;;  %v9821_v23 = vld [vmem:[%s12629_s7] ss:$16 sps:$4 sm:$0xff] (%p1527_p0)  }
 0x796   :  { %7402 = vmatpush1.bf16.msra.mxu0 (%p1527_p0), %v9785_v58  ;;  %v9823_v18 = vld [vmem:[%s12629_s7 + $0x1e4] ss:$16 sps:$4 sm:$0xff] (%p1527_p0)   ;;  %v9827_v27 = vld [vmem:[%s12629_s7 + $0x1e0] ss:$16 sps:$4 sm:$0xff] (%p1527_p0)  }
 0x797   :  { %7455 = vmatpush1.bf16.msra.mxu1 (%p1527_p0), %v9786_v38  ;;  %7403 = vmatprep.subr.bf16.mxu0 (%p1527_p0), %v9787_v34  ;;  %v9825_v6 = vld [vmem:[%s12629_s7 + $0x3e4] ss:$16 sps:$4 sm:$0xff] (%p1527_p0)   ;;  %v9828_v26 = vld [vmem:[%s12629_s7 + $0x3e0] ss:$16 sps:$4 sm:$0xff] (%p1527_p0)   ;;  %v6467_v40 = vld [vmem:[#allocation2 + $0x8] sm:$0xff] (%p1527_p0) }
 0x798   :  { %7456 = vmatprep.subr.bf16.mxu1 %v9789_v22  ;;  %v9829_v9 = vld [vmem:[%s12629_s7 + $0x1c4] ss:$16 sps:$4 sm:$0xff]   ;;  %v9833_v28 = vld [vmem:[%s12629_s7 + $0x1c0] ss:$16 sps:$4 sm:$0xff]   ;;  %v6470_v5 = vld [vmem:[#allocation2 + $0x28] sm:$0x11] }
 0x799   :  { %v9831_v31 = vld [vmem:[%s12629_s7 + $0x3c4] ss:$16 sps:$4 sm:$0xff]   ;;  %v9834_v59 = vld [vmem:[%s12629_s7 + $0x3c0] ss:$16 sps:$4 sm:$0xff]   ;;  %v6515_v12 = vshll.u32 %v6470_v5, 16  ;;  %v6496_v52 = vshrl.u32 %v6467_v40, 16 }
 0x79a   :  { %7404 = vmatpush1.bf16.msra.mxu0 %v9791_v10  ;;  %v9835_v8 = vld [vmem:[%s12629_s7 + $0x1a4] ss:$16 sps:$4 sm:$0xff]   ;;  %v9839_v0 = vld [vmem:[%s12629_s7 + $0x1a0] ss:$16 sps:$4 sm:$0xff]   ;;  %v6499_v39 = vshll.u32 %v6467_v40, 16 }
 0x79b   :  { %7457 = vmatpush1.bf16.msra.mxu1 %v9792_v1  ;;  %7405 = vmatprep.subr.bf16.mxu0 %v9793_v2  ;;  %v9837_v53 = vld [vmem:[%s12629_s7 + $0x3a4] ss:$16 sps:$4 sm:$0xff]   ;;  %v9840_v54 = vld [vmem:[%s12629_s7 + $0x3a0] ss:$16 sps:$4 sm:$0xff]   ;;  %v6498_v34 = vrot.slane %v6496_v52, 4  ;;  %v6517_v2 = vrot.slane %v6515_v12, 5 }
 0x79c   :  { %7458 = vmatprep.subr.bf16.mxu1 %v9795_v4  ;;  %v9841_v35 = vld [vmem:[%s12629_s7 + $0x184] ss:$16 sps:$4 sm:$0xff]   ;;  %v9846_v21 = vld [vmem:[%s12629_s7 + $0x380] ss:$16 sps:$4 sm:$0xff]   ;;  %v6501_v22 = vrot.slane %v6499_v39, 5 }
 0x79d   :  { %v9843_v43 = vld [vmem:[%s12629_s7 + $0x384] ss:$16 sps:$4 sm:$0xff]   ;;  %v6469_v57 = vld [vmem:[#allocation2 + $0x1c] sm:$0xff]  ;;  %v9892_v12 = vld [vmem:[%s12629_s7 + $0x288] ss:$16 sps:$4 sm:$0xff]  }
 0x79e   :  { %7406 = vmatpush1.bf16.msra.mxu0 %v9797_v30  ;;  %v6466_v44 = vld [vmem:[#allocation2] sm:$0xff]  ;;  %v6468_v20 = vld [vmem:[#allocation2 + $0x14] sm:$0xff]  ;;  %v6505_v55 = vshll.u32 %v6469_v57, 16  ;;  %v6519_v10 = vshrl.u32 %v6469_v57, 16  ;;  %v9888_v5 = vld [vmem:[%s12629_s7 + $0x2ac] ss:$16 sps:$4 sm:$0xff]  }
 0x79f   :  { %7459 = vmatpush1.bf16.msra.mxu1 %v9798_v24  ;;  %7407 = vmatprep.subr.bf16.mxu0 %v9799_v29  ;;  %v9847_v37 = vld [vmem:[%s12629_s7 + $0x164] ss:$16 sps:$4 sm:$0xff]   ;;  %v6482_v42 = vshrl.u32 %v6466_v44, 16  ;;  %v6485_v50 = vshll.u32 %v6466_v44, 16  ;;  %v6491_v60 = vshll.u32 %v6468_v20, 16  ;;  %v6509_v16 = vshrl.u32 %v6468_v20, 16 }
 0x7a0   :  { %7460 = vmatprep.subr.bf16.mxu1 %v9801_v46  ;;  %v9849_v63 = vld [vmem:[%s12629_s7 + $0x364] ss:$16 sps:$4 sm:$0xff]   ;;  %v9851_v32 = vld [vmem:[%s12629_s7 + $0x160] ss:$16 sps:$4 sm:$0xff]   ;;  %v6507_v4 = vrot.slane %v6505_v55, 5  ;;  %v6502_v46 = vor.u32 %v6501_v22, %v6498_v34 }
 0x7a1   :  { %v6471_v48 = vld [vmem:[#allocation2 + $0x30] sm:$0x11]  ;;  %v6484_v14 = vrot.slane %v6482_v42, 4  ;;  %v6487_v56 = vrot.slane %v6485_v50, 5  ;;  %v6493_v61 = vrot.slane %v6491_v60, 5  ;;  %v6511_v49 = vrot.slane %v6509_v16, 4 }
 0x7a2   :  { %7408 = vmatpush1.bf16.msra.mxu0 %v9803_v36  ;;  %v9852_v13 = vld [vmem:[%s12629_s7 + $0x360] ss:$16 sps:$4 sm:$0xff]   ;;  %v9853_v58 = vld [vmem:[%s12629_s7 + $0x144] ss:$16 sps:$4 sm:$0xff]   ;;  %v6525_v30 = vshll.u32 %v6471_v48, 16  ;;  %v6521_v36 = vrot.slane %v6519_v10, 4 }
 0x7a3   :  { %7461 = vmatpush1.bf16.msra.mxu1 %v9804_v51  ;;  %7409 = vmatprep.subr.bf16.mxu0 %v9805_v62  ;;  %v6488_v38 = vor.u32 %v6487_v56, %v6484_v14  ;;  %v6512_v1 = vor.u32 %v6511_v49, %v6493_v61  ;;  %v9855_v24 = vld [vmem:[%s12629_s7 + $0x344] ss:$16 sps:$4 sm:$0xff]   ;;  %v9857_v51 = vld [vmem:[%s12629_s7 + $0x140] ss:$16 sps:$4 sm:$0xff]   ;;  %v9882_v44 = vld [vmem:[%s12629_s7 + $0x2cc] ss:$16 sps:$4 sm:$0xff]  }
 0x7a4   :  { %7462 = vmatprep.subr.bf16.mxu1 %v9807_v25  ;;  %v9858_v25 = vld [vmem:[%s12629_s7 + $0x340] ss:$16 sps:$4 sm:$0xff]   ;;  %v9885_v20 = vld [vmem:[%s12629_s7 + $0xac] ss:$16 sps:$4 sm:$0xff]   ;;  %v9883_v42 = vld [vmem:[%s12629_s7 + $0xa8] ss:$16 sps:$4 sm:$0xff]  }
 0x7a5   :  { %v6489_v29 = vrot.slane %v6488_v38, 4  ;;  %v6513_v62 = vrot.slane %v6512_v1, 4  ;;  %v9886_v50 = vld [vmem:[%s12629_s7 + $0x2a8] ss:$16 sps:$4 sm:$0xff]   ;;  %v9891_v40 = vld [vmem:[%s12629_s7 + $0x8c] ss:$16 sps:$4 sm:$0xff]  }
 0x7a6   :  { %7410 = vmatpush1.bf16.msra.mxu0 %v9809_v41  ;;  %v9894_v60 = vld [vmem:[%s12629_s7 + $0x28c] ss:$16 sps:$4 sm:$0xff]   ;;  %v9889_v16 = vld [vmem:[%s12629_s7 + $0x88] ss:$16 sps:$4 sm:$0xff]  }
 0x7a7   :  { %7463 = vmatpush1.bf16.msra.mxu1 %v9810_v17  ;;  %7411 = vmatprep.subr.bf16.mxu0 %v9811_v7  ;;  %v6494_v17 = vsel %vm10954_vm8, %v6489_v29, %v6493_v61  ;;  %v6503_v7 = vrot.slane %v6502_v46, 4  ;;  %v9897_v57 = vld [vmem:[%s12629_s7 + $0x6c] ss:$16 sps:$4 sm:$0xff]   ;;  %v9895_v14 = vld [vmem:[%s12629_s7 + $0x68] ss:$16 sps:$4 sm:$0xff]  }
 0x7a8   :  { %7464 = vmatprep.subr.bf16.mxu1 %v9813_v15  ;;  %v6522_v15 = vor.u32 %v6521_v36, %v6507_v4  ;;  %v9900_v48 = vld [vmem:[%s12629_s7 + $0x26c] ss:$16 sps:$4 sm:$0xff]   ;;  %v9898_v56 = vld [vmem:[%s12629_s7 + $0x268] ss:$16 sps:$4 sm:$0xff]  }
 0x7a9   :  { %v9903_v52 = vld [vmem:[%s12629_s7 + $0x4c] ss:$16 sps:$4 sm:$0xff]   ;;  %v9901_v61 = vld [vmem:[%s12629_s7 + $0x48] ss:$16 sps:$4 sm:$0xff]  }
 0x7aa   :  { %7412 = vmatpush1.bf16.msra.mxu0 %v9815_v19  ;;  %v6527_v19 = vrot.slane %v6525_v30, 5  ;;  %v9906_v39 = vld [vmem:[%s12629_s7 + $0x24c] ss:$16 sps:$4 sm:$0xff]   ;;  %v9904_v49 = vld [vmem:[%s12629_s7 + $0x248] ss:$16 sps:$4 sm:$0xff]  }
 0x7ab   :  { %7465 = vmatpush1.bf16.msra.mxu1 %v9816_v47  ;;  %7413 = vmatprep.subr.bf16.mxu0 %v9817_v11  ;;  %v9859_v47 = vld [vmem:[%s12629_s7 + $0x124] ss:$16 sps:$4 sm:$0xff]   ;;  %v6518_v11 = vsel %vm10954_vm8, %v6513_v62, %v6517_v2  ;;  %v9909_v10 = vld [vmem:[%s12629_s7 + $0x2c] ss:$16 sps:$4 sm:$0xff]  }
 0x7ac   :  { %7466 = vmatprep.subr.bf16.mxu1 %v9819_v45  ;;  %v9861_v45 = vld [vmem:[%s12629_s7 + $0x324] ss:$16 sps:$4 sm:$0xff]   ;;  %v6477_v30 = vld [vmem:[#allocation2 + $0x6c] sm:$0x11] }
 0x7ad   :  { %v6476_v55 = vld [vmem:[#allocation2 + $0x64] sm:$0x11]  ;;  %v9927_v41 = vld [vmem:[%s12629_s7 + $0x1cc] ss:$16 sps:$4 sm:$0xff]  }
 0x7ae   :  { %7414 = vmatpush1.bf16.msra.mxu0 %v9821_v23  ;;  %v12316_v23 = vcombine.high %v6494_v17, %v6518_v11  ;;  %v6563_v1 = vshll.u32 %v6476_v55, 16  ;;  %v6473_v2 = vld [vmem:[#allocation2 + $0x44] sm:$0xff] }
 0x7af   :  { %7467 = vmatpush1.bf16.msra.mxu1 %v9822_v3  ;;  %7415 = vmatprep.subr.bf16.mxu0 %v9823_v18  ;;  %v6508_v3 = vsel %vm10954_vm8, %v6503_v7, %v6507_v4  ;;  %v6523_v18 = vrot.slane %v6522_v15, 4  ;;  %v6475_v4 = vld [vmem:[#allocation2 + $0x58] sm:$0xff] }
 0x7b0   :  { %7468 = vmatprep.subr.bf16.mxu1 %v9825_v6  ;;  %v9863_v6 = vld [vmem:[%s12629_s7 + $0x120] ss:$16 sps:$4 sm:$0xff]   ;;  %7431 = vmatprep.mubr.bf16.mxu0 %v12316_v23  ;;  %v6565_v62 = vrot.slane %v6563_v1, 5  ;;  %v6553_v7 = vshll.u32 %v6475_v4, 16  ;;  %v9937_v55 = vld [vmem:[%s12629_s7 + $0x188] ss:$16 sps:$4 sm:$0xff]  }
 0x7b1   :  { %v9951_v1 = vld [vmem:[%s12629_s7 + $0x14c] ss:$16 sps:$4 sm:$0xff]  }
 0x7b2   :  { %7416 = vmatpush2.bf16.msra.mxu0 %v9827_v27  ;;  %v9864_v27 = vld [vmem:[%s12629_s7 + $0x320] ss:$16 sps:$4 sm:$0xff]  }
 0x7b3   :  { %7469 = vmatpush2.bf16.msra.mxu1 %v9828_v26  ;;  %7417 = vmatprep.subr.bf16.mxu0 %v9829_v9  ;;  %v6528_v26 = vsel %vm10954_vm8, %v6523_v18, %v6527_v19  ;;  %v9865_v9 = vld [vmem:[%s12629_s7 + $0x104] ss:$16 sps:$4 sm:$0xff]  }
 0x7b4   :  { %7470 = vmatprep.subr.bf16.mxu1 %v9831_v31  ;;  %v12332_v31 = vcombine.high %v6508_v3, %v6528_v26 }
 0x7b6   :  { %7418 = vmatpush2.bf16.msra.mxu0 %v9833_v28  ;;  %v9867_v28 = vld [vmem:[%s12629_s7 + $0x304] ss:$16 sps:$4 sm:$0xff]   ;;  %7484 = vmatprep.mubr.bf16.mxu1 %v12332_v31 }
 0x7b7   :  { %7471 = vmatpush2.bf16.msra.mxu1 %v9834_v59  ;;  %7419 = vmatprep.subr.bf16.mxu0 %v9835_v8  ;;  %v9869_v59 = vld [vmem:[%s12629_s7 + $0x100] ss:$16 sps:$4 sm:$0xff]  }
 0x7b8   :  { %7472 = vmatprep.subr.bf16.mxu1 %v9837_v53  ;;  %v9870_v8 = vld [vmem:[%s12629_s7 + $0x300] ss:$16 sps:$4 sm:$0xff]   ;;  %v9873_v53 = vld [vmem:[%s12629_s7 + $0xec] ss:$16 sps:$4 sm:$0xff]  }
 0x7ba   :  { %7420 = vmatpush2.bf16.msra.mxu0 %v9839_v0  ;;  %v9876_v0 = vld [vmem:[%s12629_s7 + $0x2ec] ss:$16 sps:$4 sm:$0xff]  }
 0x7bb   :  { %7473 = vmatpush2.bf16.msra.mxu1 %v9840_v54  ;;  %7421 = vmatprep.subr.bf16.mxu0 %v9841_v35  ;;  %v12350_v54 = vcombine.low %v6494_v17, %v6518_v11  ;;  %v12352_v35 = vcombine.low %v6508_v3, %v6528_v26  ;;  %v6547_v17 = vshll.u32 %v6473_v2, 16  ;;  %v6573_v11 = vshll.u32 %v6477_v30, 16  ;;  %v9952_v30 = vld [vmem:[%s12629_s7 + $0x348] ss:$16 sps:$4 sm:$0xff]  }
 0x7bc   :  { %7474 = vmatprep.subr.bf16.mxu1 %v9843_v43  ;;  %v9871_v43 = vld [vmem:[%s12629_s7 + $0xe8] ss:$16 sps:$4 sm:$0xff]  }
 0x7bd   :  { %v6549_v18 = vrot.slane %v6547_v17, 5  ;;  %v9964_v17 = vld [vmem:[%s12629_s7 + $0x308] ss:$16 sps:$4 sm:$0xff]  }
 0x7be   :  { %7422 = vmatpush2.bf16.msra.mxu0 %v9845_v33  ;;  %v9874_v33 = vld [vmem:[%s12629_s7 + $0x2e8] ss:$16 sps:$4 sm:$0xff]  }
 0x7bf   :  { %7475 = vmatpush2.bf16.msra.mxu1 %v9846_v21  ;;  %7423 = vmatprep.subr.bf16.mxu0 %v9847_v37  ;;  %v9879_v21 = vld [vmem:[%s12629_s7 + $0xcc] ss:$16 sps:$4 sm:$0xff]   ;;  %v9877_v37 = vld [vmem:[%s12629_s7 + $0xc8] ss:$16 sps:$4 sm:$0xff]  }
 0x7c0   :  { %7476 = vmatprep.subr.bf16.mxu1 %v9849_v63  ;;  %v9880_v63 = vld [vmem:[%s12629_s7 + $0x2c8] ss:$16 sps:$4 sm:$0xff]  }
 0x7c2   :  { %7424 = vmatpush2.bf16.msra.mxu0 %v9851_v32  ;;  %v6472_v32 = vld [vmem:[#allocation2 + $0x3c] sm:$0xff] }
 0x7c3   :  { %7477 = vmatpush2.bf16.msra.mxu1 %v9852_v13  ;;  %7425 = vmatprep.subr.bf16.mxu0 %v9853_v58  ;;  %v6474_v13 = vld [vmem:[#allocation2 + $0x50] sm:$0xff]  ;;  %v6530_v58 = vshrl.u32 %v6472_v32, 16  ;;  %v6533_v38 = vshll.u32 %v6472_v32, 16  ;;  %v9933_v32 = vld [vmem:[%s12629_s7 + $0x1ac] ss:$16 sps:$4 sm:$0xff]  }
 0x7c4   :  { %7478 = vmatprep.subr.bf16.mxu1 %v9855_v24  ;;  %v6539_v34 = vshll.u32 %v6474_v13, 16  ;;  %v6557_v22 = vshrl.u32 %v6474_v13, 16  ;;  %v9931_v13 = vld [vmem:[%s12629_s7 + $0x1a8] ss:$16 sps:$4 sm:$0xff]  }
 0x7c5   :  { %v6532_v24 = vrot.slane %v6530_v58, 4  ;;  %v6535_v29 = vrot.slane %v6533_v38, 5  ;;  %v9940_v58 = vld [vmem:[%s12629_s7 + $0x388] ss:$16 sps:$4 sm:$0xff]   ;;  %v9945_v38 = vld [vmem:[%s12629_s7 + $0x16c] ss:$16 sps:$4 sm:$0xff]  }
 0x7c6   :  { %7426 = vmatpush2.bf16.msra.mxu0 %v9857_v51  ;;  %v6541_v46 = vrot.slane %v6539_v34, 5  ;;  %v6559_v36 = vrot.slane %v6557_v22, 4  ;;  %v9912_v51 = vld [vmem:[%s12629_s7 + $0x22c] ss:$16 sps:$4 sm:$0xff]   ;;  %v9943_v22 = vld [vmem:[%s12629_s7 + $0x168] ss:$16 sps:$4 sm:$0xff]  }
 0x7c7   :  { %7479 = vmatpush2.bf16.msra.mxu1 %v9858_v25  ;;  %7427 = vmatprep.subr.bf16.mxu0 %v9859_v47  ;;  %v6544_v25 = vshrl.u32 %v6473_v2, 16  ;;  %v6536_v15 = vor.u32 %v6535_v29, %v6532_v24  ;;  %v6567_v47 = vshrl.u32 %v6475_v4, 16  ;;  %v9948_v34 = vld [vmem:[%s12629_s7 + $0x36c] ss:$16 sps:$4 sm:$0xff]   ;;  %v9949_v4 = vld [vmem:[%s12629_s7 + $0x148] ss:$16 sps:$4 sm:$0xff]  }
 0x7c8   :  { %7480 = vmatprep.subr.bf16.mxu1 %v9861_v45  ;;  %v6560_v19 = vor.u32 %v6559_v36, %v6541_v46  ;;  %v9907_v45 = vld [vmem:[%s12629_s7 + $0x28] ss:$16 sps:$4 sm:$0xff]   ;;  %v9954_v2 = vld [vmem:[%s12629_s7 + $0x34c] ss:$16 sps:$4 sm:$0xff]  }
 0x7c9   :  { %v6546_v3 = vrot.slane %v6544_v25, 4  ;;  %v6537_v26 = vrot.slane %v6536_v15, 4  ;;  %v9957_v24 = vld [vmem:[%s12629_s7 + $0x12c] ss:$16 sps:$4 sm:$0xff]   ;;  %v9958_v36 = vld [vmem:[%s12629_s7 + $0x328] ss:$16 sps:$4 sm:$0xff]  }
 0x7ca   :  { %7428 = vmatpush2.bf16.msra.mxu0 %v9863_v6  ;;  %v6555_v6 = vrot.slane %v6553_v7, 5  ;;  %v9960_v29 = vld [vmem:[%s12629_s7 + $0x32c] ss:$16 sps:$4 sm:$0xff]   ;;  %v9961_v25 = vld [vmem:[%s12629_s7 + $0x108] ss:$16 sps:$4 sm:$0xff]  }
 0x7cb   :  { %7481 = vmatpush2.bf16.msra.mxu1 %v9864_v27  ;;  %7429 = vmatprep.subr.bf16.mxu0 %v9865_v9  ;;  %v9910_v27 = vld [vmem:[%s12629_s7 + $0x228] ss:$16 sps:$4 sm:$0xff]   ;;  %v6561_v9 = vrot.slane %v6560_v19, 4  ;;  %v6705_v7 = vld [vmem:[%s12630_s8] sm:$0xf] }
 0x7cc   :  { %7482 = vmatprep.subr.bf16.mxu1 %v9867_v28  ;;  %v6569_v28 = vrot.slane %v6567_v47, 4  ;;  %v13080_v15 = vld [vmem:[#allocation81_spill] sm:$0xff]  ;;  %v13081_v47 = vld [vmem:[#allocation82_spill] sm:$0xff] }
 0x7cd   :  { %v6710_v19 = vrot.slane %v6705_v7, %v13080_v15 }
 0x7ce   :  { %7430 = vmatpush2.bf16.msra.mxu0 %v9869_v59  ;;  %v9915_v59 = vld [vmem:[%s12629_s7 + $0xc] ss:$16 sps:$4 sm:$0xff]  }
 0x7cf   :  { %7483 = vmatpush2.bf16.msra.mxu1 %v9870_v8  ;;  %7505 = vmatprep.subr.bf16.mxu0 %v9873_v53  ;;  %v9918_v8 = vld [vmem:[%s12629_s7 + $0x20c] ss:$16 sps:$4 sm:$0xff]   ;;  %v6550_v53 = vor.u32 %v6549_v18, %v6546_v3 }
 0x7d0   :  { %7558 = vmatprep.subr.bf16.mxu1 %v9876_v0  ;;  %v6542_v0 = vsel %vm10954_vm8, %v6537_v26, %v6541_v46  ;;  %v9955_v46 = vld [vmem:[%s12629_s7 + $0x128] ss:$16 sps:$4 sm:$0xff]  }
 0x7d1   :  { %7432 = vmatmul.mubr.bf16.vlgmr.msra.gmra.mxu0 %v12350_v54 }
 0x7d2   :  { %7485 = vmatmul.mubr.bf16.vlgmr.msra.gmra.mxu1 %v12352_v35  ;;  %7506 = vmatpush1.bf16.msra.mxu0 %v9871_v43  ;;  %v6566_v43 = vsel %vm10954_vm8, %v6561_v9, %v6565_v62  ;;  %v9966_v62 = vld [vmem:[%s12629_s7 + $0x30c] ss:$16 sps:$4 sm:$0xff]  }
 0x7d3   :  { %7559 = vmatpush1.bf16.msra.mxu1 %v9874_v33  ;;  %7507 = vmatprep.subr.bf16.mxu0 %v9879_v21  ;;  %v6570_v33 = vor.u32 %v6569_v28, %v6555_v6  ;;  %v6575_v21 = vrot.slane %v6573_v11, 5  ;;  %v6714_v11 = vrot.slane %v6705_v7, %v13081_v47 }
 0x7d4   :  { %7560 = vmatprep.subr.bf16.mxu1 %v9882_v44  ;;  %v12444_v44 = vcombine.high %v6542_v0, %v6566_v43 }
 0x7d6   :  { %7508 = vmatpush1.bf16.msra.mxu0 %v9877_v37  ;;  %v12446_v37 = vcombine.low %v6542_v0, %v6566_v43  ;;  %7441 = vmatprep.mubr.bf16.mxu0 %v12444_v44 }
 0x7d7   :  { %7561 = vmatpush1.bf16.msra.mxu1 %v9880_v63  ;;  %7509 = vmatprep.subr.bf16.mxu0 %v9885_v20  ;;  %v6551_v63 = vrot.slane %v6550_v53, 4  ;;  %v9913_v20 = vld [vmem:[%s12629_s7 + $0x8] ss:$16 sps:$4 sm:$0xff]  }
 0x7d8   :  { %7562 = vmatprep.subr.bf16.mxu1 %v9888_v5  ;;  %v9916_v5 = vld [vmem:[%s12629_s7 + $0x208] ss:$16 sps:$4 sm:$0xff]  }
 0x7d9   :  { %7442 = vmatmul.mubr.bf16.gmra.mxu0 %v12446_v37 }
 0x7da   :  { %7510 = vmatpush1.bf16.msra.mxu0 %v9883_v42  ;;  %v6571_v42 = vrot.slane %v6570_v33, 4  ;;  %7537 = vmatprep.mubr.bf16.mxu0 %v12316_v23  ;;  %v9936_v23 = vld [vmem:[%s12629_s7 + $0x3ac] ss:$16 sps:$4 sm:$0xff]  }
 0x7db   :  { %7563 = vmatpush1.bf16.msra.mxu1 %v9886_v50  ;;  %7511 = vmatprep.subr.bf16.mxu0 %v9891_v40  ;;  %v9921_v50 = vld [vmem:[%s12629_s7 + $0x1ec] ss:$16 sps:$4 sm:$0xff]  }
 0x7dc   :  { %7564 = vmatprep.subr.bf16.mxu1 %v9894_v60  ;;  %v9924_v40 = vld [vmem:[%s12629_s7 + $0x3ec] ss:$16 sps:$4 sm:$0xff]   ;;  %v6556_v60 = vsel %vm10954_vm8, %v6551_v63, %v6555_v6 }
 0x7de   :  { %7512 = vmatpush1.bf16.msra.mxu0 %v9889_v16  ;;  %v6576_v16 = vsel %vm10954_vm8, %v6571_v42, %v6575_v21 }
 0x7df   :  { %7565 = vmatpush1.bf16.msra.mxu1 %v9892_v12  ;;  %7513 = vmatprep.subr.bf16.mxu0 %v9897_v57  ;;  %v12466_v12 = vcombine.high %v6556_v60, %v6576_v16  ;;  %v12468_v57 = vcombine.low %v6556_v60, %v6576_v16 }
 0x7e0   :  { %7566 = vmatprep.subr.bf16.mxu1 %v9900_v48  ;;  %v9919_v48 = vld [vmem:[%s12629_s7 + $0x1e8] ss:$16 sps:$4 sm:$0xff]  }
 0x7e1   :  { %7494 = vmatprep.mubr.bf16.mxu1 %v12466_v12 }
 0x7e2   :  { %7514 = vmatpush1.bf16.msra.mxu0 %v9895_v14  ;;  %v9922_v14 = vld [vmem:[%s12629_s7 + $0x3e8] ss:$16 sps:$4 sm:$0xff]   ;;  %7495 = vmatmul.mubr.bf16.gmra.mxu1 %v12468_v57 }
 0x7e3   :  { %7567 = vmatpush1.bf16.msra.mxu1 %v9898_v56  ;;  %7515 = vmatprep.subr.bf16.mxu0 %v9903_v52  ;;  %v9930_v56 = vld [vmem:[%s12629_s7 + $0x3cc] ss:$16 sps:$4 sm:$0xff]   ;;  %v9925_v52 = vld [vmem:[%s12629_s7 + $0x1c8] ss:$16 sps:$4 sm:$0xff]  }
 0x7e4   :  { %7568 = vmatprep.subr.bf16.mxu1 %v9906_v39  ;;  %v9928_v39 = vld [vmem:[%s12629_s7 + $0x3c8] ss:$16 sps:$4 sm:$0xff]   ;;  %7590 = vmatprep.mubr.bf16.mxu1 %v12332_v31  ;;  %v9942_v31 = vld [vmem:[%s12629_s7 + $0x38c] ss:$16 sps:$4 sm:$0xff]  }
 0x7e6   :  { %7516 = vmatpush1.bf16.msra.mxu0 %v9901_v61  ;;  %v9934_v61 = vld [vmem:[%s12629_s7 + $0x3a8] ss:$16 sps:$4 sm:$0xff]  }
 0x7e7   :  { %7569 = vmatpush1.bf16.msra.mxu1 %v9904_v49  ;;  %7517 = vmatprep.subr.bf16.mxu0 %v9909_v10  ;;  %v9939_v49 = vld [vmem:[%s12629_s7 + $0x18c] ss:$16 sps:$4 sm:$0xff]   ;;  %v9946_v10 = vld [vmem:[%s12629_s7 + $0x368] ss:$16 sps:$4 sm:$0xff]  }
 0x7e8   :  { %7570 = vmatprep.subr.bf16.mxu1 %v9912_v51  ;;  %v9963_v51 = vld [vmem:[%s12629_s7 + $0x10c] ss:$16 sps:$4 sm:$0xff]  }
 0x7ea   :  { %7518 = vmatpush1.bf16.msra.mxu0 %v9907_v45 }
 0x7eb   :  { %7571 = vmatpush1.bf16.msra.mxu1 %v9910_v27  ;;  %7519 = vmatprep.subr.bf16.mxu0 %v9915_v59 }
 0x7ec   :  { %7572 = vmatprep.subr.bf16.mxu1 %v9918_v8 }
 0x7ee   :  { %7520 = vmatpush1.bf16.msra.mxu0 %v9913_v20 }
 0x7ef   :  { %7573 = vmatpush1.bf16.msra.mxu1 %v9916_v5  ;;  %7521 = vmatprep.subr.bf16.mxu0 %v9921_v50 }
 0x7f0   :  { %7574 = vmatprep.subr.bf16.mxu1 %v9924_v40 }
 0x7f2   :  { %7522 = vmatpush2.bf16.msra.mxu0 %v9919_v48 }
 0x7f3   :  { %7575 = vmatpush2.bf16.msra.mxu1 %v9922_v14  ;;  %7523 = vmatprep.subr.bf16.mxu0 %v9927_v41 }
 0x7f4   :  { %7576 = vmatprep.subr.bf16.mxu1 %v9930_v56  ;;  %v13082_v56 = vld [vmem:[#allocation83_spill] sm:$0xff] }
 0x7f6   :  { %7524 = vmatpush2.bf16.msra.mxu0 %v9925_v52  ;;  %v6718_v52 = vrot.slane %v6705_v7, %v13082_v56 }
 0x7f7   :  { %7577 = vmatpush2.bf16.msra.mxu1 %v9928_v39  ;;  %7525 = vmatprep.subr.bf16.mxu0 %v9933_v32  ;;  %v13083_v39 = vld [vmem:[#allocation84_spill] sm:$0xff] }
 0x7f8   :  { %7578 = vmatprep.subr.bf16.mxu1 %v9936_v23  ;;  %v6722_v32 = vrot.slane %v6705_v7, %v13083_v39 }
 0x7fa   :  { %7526 = vmatpush2.bf16.msra.mxu0 %v9931_v13 }
 0x7fb   :  { %7579 = vmatpush2.bf16.msra.mxu1 %v9934_v61  ;;  %7527 = vmatprep.subr.bf16.mxu0 %v9939_v49 }
 0x7fc   :  { %7580 = vmatprep.subr.bf16.mxu1 %v9942_v31 }
 0x7fe   :  { %7528 = vmatpush2.bf16.msra.mxu0 %v9937_v55 }
 0x7ff   :  { %7581 = vmatpush2.bf16.msra.mxu1 %v9940_v58  ;;  %7529 = vmatprep.subr.bf16.mxu0 %v9945_v38 }
 0x800   :  { %7582 = vmatprep.subr.bf16.mxu1 %v9948_v34 }
 0x802   :  { %7530 = vmatpush2.bf16.msra.mxu0 %v9943_v22 }
 0x803   :  { %7583 = vmatpush2.bf16.msra.mxu1 %v9946_v10  ;;  %7531 = vmatprep.subr.bf16.mxu0 %v9951_v1 }
 0x804   :  { %7584 = vmatprep.subr.bf16.mxu1 %v9954_v2 }
 0x806   :  { %7532 = vmatpush2.bf16.msra.mxu0 %v9949_v4 }
 0x807   :  { %7585 = vmatpush2.bf16.msra.mxu1 %v9952_v30  ;;  %7533 = vmatprep.subr.bf16.mxu0 %v9957_v24 }
 0x808   :  { %7586 = vmatprep.subr.bf16.mxu1 %v9960_v29 }
 0x80a   :  { %7534 = vmatpush2.bf16.msra.mxu0 %v9955_v46 }
 0x80b   :  { %7587 = vmatpush2.bf16.msra.mxu1 %v9958_v36  ;;  %7535 = vmatprep.subr.bf16.mxu0 %v9963_v51 }
 0x80c   :  { %7588 = vmatprep.subr.bf16.mxu1 %v9966_v62 }
 0x80e   :  { %7536 = vmatpush2.bf16.msra.mxu0 %v9961_v25 }
 0x80f   :  { %7589 = vmatpush2.bf16.msra.mxu1 %v9964_v17 }
 0x811   :  { %7538 = vmatmul.mubr.bf16.vlgmr.msra.gmra.mxu0 %v12350_v54 }
 0x812   :  { %7591 = vmatmul.mubr.bf16.vlgmr.msra.gmra.mxu1 %v12352_v35  ;;  %7547 = vmatprep.mubr.bf16.mxu0 %v12444_v44 }
 0x813   :  { %7600 = vmatprep.mubr.bf16.mxu1 %v12466_v12 }
 0x819   :  { %7548 = vmatmul.mubr.bf16.gmra.mxu0 %v12446_v37 }
 0x81a   :  { %7601 = vmatmul.mubr.bf16.gmra.mxu1 %v12468_v57 }
 0x891   :  { %v7433_v45 = vpop.f32.mrf.mxu0 }
 0x892   :  { %v7486_v54 = vpop.f32.mrf.mxu1  ;;  %v7434_v3 = vadd.f32 %v7433_v45, %v6710_v19 }
 0x893   :  { %v7435_v35 = vpop.f32.mrf.mxu0 }
 0x894   :  { %v7488_v18 = vpop.f32.mrf.mxu1  ;;  %v7487_v6 = vadd.f32 %v7486_v54, %v7434_v3  ;;  %v7436_v27 = vadd.f32 %v7435_v35, %v6714_v11 }
 0x895   :  { %v7437_v26 = vpop.f32.mrf.mxu0 }
 0x896   :  { %v7490_v9 = vpop.f32.mrf.mxu1  ;;  %7611 = vst [vmem:[%s12631_s11] sm:$0xff] %v7487_v6  ;;  %v7489_v28 = vadd.f32 %v7488_v18, %v7436_v27  ;;  %v7438_v59 = vadd.f32 %v7437_v26, %v6710_v19 }
 0x897   :  { %v7439_v8 = vpop.f32.mrf.mxu0 }
 0x898   :  { %7612 = vst [vmem:[%s12631_s11 + $0x8] sm:$0xff] %v7489_v28  ;;  %v7491_v53 = vadd.f32 %v7490_v9, %v7438_v59  ;;  %v7440_v0 = vadd.f32 %v7439_v8, %v6714_v11  ;;  %v7492_v43 = vpop.f32.mrf.mxu1 }
 0x899   :  { %v7443_v21 = vpop.f32.mrf.mxu0 }
 0x89a   :  { %7615 = vst [vmem:[%s12631_s11 + $0x20] sm:$0xff] %v7491_v53  ;;  %v7493_v33 = vadd.f32 %v7492_v43, %v7440_v0  ;;  %v7444_v44 = vadd.f32 %v7443_v21, %v6710_v19 }
 0x89b   :  { %v7445_v37 = vpop.f32.mrf.mxu0 }
 0x89c   :  { %7616 = vst [vmem:[%s12631_s11 + $0x28] sm:$0xff] %v7493_v33  ;;  %v7446_v63 = vadd.f32 %v7445_v37, %v6714_v11 }
 0x89d   :  { %v7447_v5 = vpop.f32.mrf.mxu0 }
 0x89e   :  { %v7448_v50 = vadd.f32 %v7447_v5, %v6710_v19 }
 0x89f   :  { %v7449_v60 = vpop.f32.mrf.mxu0 }
 0x8a0   :  { %v7450_v12 = vadd.f32 %v7449_v60, %v6714_v11 }
 0x8a2   :  { %v7496_v20 = vpop.f32.mrf.mxu1 }
 0x8a3   :  { %v7497_v42 = vadd.f32 %v7496_v20, %v7444_v44 }
 0x8a4   :  { %v7498_v40 = vpop.f32.mrf.mxu1 }
 0x8a5   :  { %7619 = vst [vmem:[%s12631_s11 + $0x40] sm:$0xff] %v7497_v42  ;;  %v7499_v16 = vadd.f32 %v7498_v40, %v7446_v63 }
 0x8a6   :  { %v7500_v57 = vpop.f32.mrf.mxu1 }
 0x8a7   :  { %7620 = vst [vmem:[%s12631_s11 + $0x48] sm:$0xff] %v7499_v16  ;;  %v7501_v48 = vadd.f32 %v7500_v57, %v7448_v50 }
 0x8a8   :  { %v7502_v14 = vpop.f32.mrf.mxu1 }
 0x8a9   :  { %7623 = vst [vmem:[%s12631_s11 + $0x60] sm:$0xff] %v7501_v48  ;;  %v7503_v41 = vadd.f32 %v7502_v14, %v7450_v12 }
 0x8ab   :  { %7624 = vst [vmem:[%s12631_s11 + $0x68] sm:$0xff] %v7503_v41 }
 0x8d1   :  { %v7539_v23 = vpop.f32.mrf.mxu0 }
 0x8d2   :  { %v7592_v13 = vpop.f32.mrf.mxu1  ;;  %v7540_v61 = vadd.f32 %v7539_v23, %v6718_v52 }
 0x8d3   :  { %v7541_v49 = vpop.f32.mrf.mxu0 }
 0x8d4   :  { %v7594_v31 = vpop.f32.mrf.mxu1  ;;  %v7593_v55 = vadd.f32 %v7592_v13, %v7540_v61  ;;  %v7542_v58 = vadd.f32 %v7541_v49, %v6722_v32 }
 0x8d5   :  { %v7543_v38 = vpop.f32.mrf.mxu0 }
 0x8d6   :  { %v7596_v34 = vpop.f32.mrf.mxu1  ;;  %7613 = vst [vmem:[%s12631_s11 + $0x10] sm:$0xff] %v7593_v55  ;;  %v7595_v22 = vadd.f32 %v7594_v31, %v7542_v58  ;;  %v7544_v10 = vadd.f32 %v7543_v38, %v6718_v52 }
 0x8d7   :  { %v7545_v1 = vpop.f32.mrf.mxu0 }
 0x8d8   :  { %v7598_v2 = vpop.f32.mrf.mxu1  ;;  %7614 = vst [vmem:[%s12631_s11 + $0x18] sm:$0xff] %v7595_v22  ;;  %v7597_v4 = vadd.f32 %v7596_v34, %v7544_v10  ;;  %v7546_v30 = vadd.f32 %v7545_v1, %v6722_v32 }
 0x8d9   :  { %v7549_v24 = vpop.f32.mrf.mxu0 }
 0x8da   :  { %v7602_v29 = vpop.f32.mrf.mxu1  ;;  %7617 = vst [vmem:[%s12631_s11 + $0x30] sm:$0xff] %v7597_v4  ;;  %v7599_v46 = vadd.f32 %v7598_v2, %v7546_v30  ;;  %v7550_v36 = vadd.f32 %v7549_v24, %v6718_v52 }
 0x8db   :  { %v7551_v51 = vpop.f32.mrf.mxu0 }
 0x8dc   :  { %v7604_v62 = vpop.f32.mrf.mxu1  ;;  %7618 = vst [vmem:[%s12631_s11 + $0x38] sm:$0xff] %v7599_v46  ;;  %v7603_v25 = vadd.f32 %v7602_v29, %v7550_v36  ;;  %v7552_v17 = vadd.f32 %v7551_v51, %v6722_v32 }
 0x8dd   :  { %v7553_v7 = vpop.f32.mrf.mxu0 }
 0x8de   :  { %v7606_v15 = vpop.f32.mrf.mxu1  ;;  %7621 = vst [vmem:[%s12631_s11 + $0x50] sm:$0xff] %v7603_v25  ;;  %v7605_v19 = vadd.f32 %v7604_v62, %v7552_v17  ;;  %v7554_v47 = vadd.f32 %v7553_v7, %v6718_v52 }
 0x8df   :  { %v7555_v11 = vpop.f32.mrf.mxu0 }
 0x8e0   :  { %7622 = vst [vmem:[%s12631_s11 + $0x58] sm:$0xff] %v7605_v19  ;;  %v7607_v45 = vadd.f32 %v7606_v15, %v7554_v47  ;;  %v7556_v54 = vadd.f32 %v7555_v11, %v6722_v32  ;;  %v7608_v3 = vpop.f32.mrf.mxu1 }
 0x8e2   :  { %7625 = vst [vmem:[%s12631_s11 + $0x70] sm:$0xff] %v7607_v45  ;;  %v7609_v35 = vadd.f32 %v7608_v3, %v7556_v54 }
 0x8e4   :  { %7626 = vst [vmem:[%s12631_s11 + $0x78] sm:$0xff] %v7609_v35 }

</bundles_post_ra>
